<compile_context>
chip_gen: v7x
topology: tpu7x:2x2x1
jax: 0.10.0
libtpu: 0.0.40
codegen_flags: <defaults>
</compile_context>

<pallas_src>
import functools

import jax
import jax.numpy as jnp
from jax.experimental import pallas as pl
from jax.experimental.pallas import tpu as pltpu


# --------------------------------------------------------------------------------------
# Generation-aware compiler params
# --------------------------------------------------------------------------------------

def _vmem_limit_bytes():
    kind = ""
    try:
        kind = jax.devices()[0].device_kind.lower()
    except Exception:
        pass
    if any(v in kind for v in ("v4", "v5", "v6")):
        return 100 * 1024 * 1024          # 128 MiB physical VMEM
    return 40 * 1024 * 1024               # v7x: 64 MiB per TC; unknown: conservative


_VMEM_LIMIT = _vmem_limit_bytes()


def _cparams(*sem):
    return pltpu.CompilerParams(dimension_semantics=sem,
                                vmem_limit_bytes=_VMEM_LIMIT)


def _pick_m_tile(m, cap=1024):
    """Largest row tile <= cap that divides m and keeps blocks (8,128)-legal."""
    if m <= cap:
        return m
    for t in range(cap - cap % 8, 7, -8):
        if m % t == 0:
            return t
    # TODO(synk): pad/mask the M tail when m has no 8-divisible factor <= cap.
    return m


def bn_affine(stats, gamma, beta, count, eps=1e-5):
    """stats=(2,C) [sum, sumsq] -> per-channel (scale, shift) for x*scale+shift."""
    mean = stats[0:1, :] / count
    var = jnp.maximum(stats[1:2, :] / count - mean * mean, 0.0)   # biased variance
    scale = gamma * jax.lax.rsqrt(var + eps)
    shift = beta - mean * scale
    return scale, shift


# --------------------------------------------------------------------------------------
# Kernel 1: fused (optional BN+ReLU prologue) + matmul, M "parallel" / K "arbitrary",
#           with fused per-M-tile output statistics (sum / sumsq per channel).
# --------------------------------------------------------------------------------------

def _bn_relu_matmul_kernel(scale_ref, shift_ref, x_ref, w_ref, o_ref, st_ref, acc_ref,
                           *, relu):
    kk = pl.program_id(1)

    @pl.when(kk == 0)
    def _init():
        acc_ref[...] = jnp.zeros_like(acc_ref)

    x = x_ref[...].astype(jnp.float32) * scale_ref[...] + shift_ref[...]
    if relu:
        x = jnp.maximum(x, 0.0)
    acc_ref[...] += jnp.dot(x.astype(jnp.bfloat16), w_ref[...],
                            preferred_element_type=jnp.float32)

    @pl.when(kk == pl.num_programs(1) - 1)
    def _done():
        acc = acc_ref[...]
        n = acc.shape[1]
        o_ref[...] = acc.astype(o_ref.dtype)
        st_ref[0:1, 0:1, :] = jnp.sum(acc, axis=0, keepdims=True).reshape(1, 1, n)
        st_ref[0:1, 1:2, :] = jnp.sum(acc * acc, axis=0, keepdims=True).reshape(1, 1, n)


def pallas_bn_relu_matmul(scale, shift, x2d, w, *, relu=True):
    """y = relu(x*scale+shift) @ w  (+ fused per-tile stats of y).

    The weight's row count (k_eff) may be smaller than x2d's column count: only the
    first k_eff columns of x2d are read (K trimming for the dense-block buffer)."""
    m, k_full = x2d.shape
    k_eff, ncol = w.shape
    assert scale.shape == (1, k_eff) and shift.shape == (1, k_eff)
    assert k_eff == k_full or (k_eff < k_full and k_eff % 128 == 0)
    tm = _pick_m_tile(m)
    # Single K step whenever the (trimmed) weight comfortably fits VMEM (true for every
    # DenseNet conv1 / transition) so the weight block stays resident across M tiles.
    if k_eff * ncol * 2 <= (4 << 20) or k_eff % 256 != 0:
        tk = k_eff
    else:
        tk = 256
        for cand in (2048, 1024, 512, 256):
            if k_eff % cand == 0:
                tk = cand
                break
    num_m = m // tm
    kern = functools.partial(_bn_relu_matmul_kernel, relu=relu)
    out, stats = pl.pallas_call(
        kern,
        out_shape=(jax.ShapeDtypeStruct((m, ncol), jnp.bfloat16),
                   jax.ShapeDtypeStruct((num_m, 2, ncol), jnp.float32)),
        grid=(num_m, k_eff // tk),
        in_specs=[pl.BlockSpec((1, tk), lambda i, kk: (0, kk)),
                  pl.BlockSpec((1, tk), lambda i, kk: (0, kk)),
                  pl.BlockSpec((tm, tk), lambda i, kk: (i, kk)),
                  pl.BlockSpec((tk, ncol), lambda i, kk: (kk, 0))],
        out_specs=(pl.BlockSpec((tm, ncol), lambda i, kk: (i, 0)),
                   pl.BlockSpec((1, 2, ncol), lambda i, kk: (i, 0, 0))),
        scratch_shapes=[pltpu.VMEM((tm, ncol), jnp.float32)],
        compiler_params=_cparams("parallel", "arbitrary"),
    )(scale, shift, x2d, w)
    return out, stats


# --------------------------------------------------------------------------------------
# Kernel 2: fused BN+ReLU + 3x3 maxpool (stride 2, pad 1), halo built in VMEM scratch,
#           fused output statistics.  Grid over batch.
# --------------------------------------------------------------------------------------

def _bn_relu_maxpool_kernel(scale_ref, shift_ref, x_ref, o_ref, st_ref, pad_ref):
    _, h, w, c = x_ref.shape
    _, ho, wo, _ = o_ref.shape
    hp, wp = h + 2, w + 2
    # zero halo: post-ReLU values are >= 0, so a 0 border preserves the window max
    pad_ref[...] = jnp.zeros_like(pad_ref)
    x = x_ref[0].astype(jnp.float32)
    pad_ref[1:h + 1, 1:w + 1, :] = jnp.maximum(x * scale_ref[...] + shift_ref[...], 0.0)
    xp = pad_ref[...].reshape(hp // 2, 2, wp // 2, 2, c)   # parity split (lanes intact)
    out = None
    for t in range(9):
        dy, dx = divmod(t, 3)
        qy, ry = divmod(dy, 2)
        qx, rx = divmod(dx, 2)
        tap = xp[qy:qy + ho, ry, qx:qx + wo, rx, :]
        out = tap if out is None else jnp.maximum(out, tap)
    o_ref[...] = out.reshape(1, ho, wo, c).astype(o_ref.dtype)
    flat = out.reshape(ho * wo, c)
    st_ref[0:1, 0:1, :] = jnp.sum(flat, axis=0, keepdims=True).reshape(1, 1, c)
    st_ref[0:1, 1:2, :] = jnp.sum(flat * flat, axis=0, keepdims=True).reshape(1, 1, c)


def pallas_bn_relu_maxpool(scale, shift, x):
    n, h, w, c = x.shape
    assert h % 2 == 0 and w % 2 == 0
    ho, wo = h // 2, w // 2
    # TODO(synk): add spatial row tiling with a 1-row halo for >224px resolutions.
    return pl.pallas_call(
        _bn_relu_maxpool_kernel,
        out_shape=(jax.ShapeDtypeStruct((n, ho, wo, c), jnp.bfloat16),
                   jax.ShapeDtypeStruct((n, 2, c), jnp.float32)),
        grid=(n,),
        in_specs=[pl.BlockSpec((1, c), lambda b: (0, 0)),
                  pl.BlockSpec((1, c), lambda b: (0, 0)),
                  pl.BlockSpec((1, h, w, c), lambda b: (b, 0, 0, 0))],
        out_specs=(pl.BlockSpec((1, ho, wo, c), lambda b: (b, 0, 0, 0)),
                   pl.BlockSpec((1, 2, c), lambda b: (b, 0, 0))),
        scratch_shapes=[pltpu.VMEM((h + 2, w + 2, c), jnp.float32)],
        compiler_params=_cparams("parallel"),
    )(scale, shift, x)


# --------------------------------------------------------------------------------------
# Kernel 3: fused BN+ReLU + 3x3 conv (stride 1, pad 1): halo in VMEM scratch, f32 VMEM
#           scratch accumulator (9 tap matmuls), fused output statistics.  Grid over N.
# --------------------------------------------------------------------------------------

def _bn_relu_conv3x3_kernel(scale_ref, shift_ref, x_ref, w_ref, o_ref, st_ref,
                            pad_ref, acc_ref):
    _, h, w, cb = x_ref.shape
    _, _, _, g = o_ref.shape
    pad_ref[...] = jnp.zeros_like(pad_ref)       # true zero-pad of the post-BN-ReLU act
    x = x_ref[0].astype(jnp.float32)
    act = jnp.maximum(x * scale_ref[...] + shift_ref[...], 0.0)
    pad_ref[1:h + 1, 1:w + 1, :] = act.astype(pad_ref.dtype)
    acc_ref[...] = jnp.zeros_like(acc_ref)
    # TODO(synk): on v6e/v7x, stack the 3 taps of each kernel row along K (K=3*cb) to
    #             fill the 256-deep MXU and cut accumulator read-modify-writes 3x.
    for t in range(9):
        dy, dx = divmod(t, 3)
        tap = pad_ref[dy:dy + h, dx:dx + w, :].reshape(h * w, cb)
        acc_ref[...] += jnp.dot(tap, w_ref[t], preferred_element_type=jnp.float32)
    acc = acc_ref[...]
    o_ref[...] = acc.reshape(1, h, w, g).astype(o_ref.dtype)
    st_ref[0:1, 0:1, :] = jnp.sum(acc, axis=0, keepdims=True).reshape(1, 1, g)
    st_ref[0:1, 1:2, :] = jnp.sum(acc * acc, axis=0, keepdims=True).reshape(1, 1, g)


def pallas_bn_relu_conv3x3(scale, shift, x, w):
    n, h, wd, cb = x.shape
    _, _, g = w.shape
    return pl.pallas_call(
        _bn_relu_conv3x3_kernel,
        out_shape=(jax.ShapeDtypeStruct((n, h, wd, g), jnp.bfloat16),
                   jax.ShapeDtypeStruct((n, 2, g), jnp.float32)),
        grid=(n,),
        in_specs=[pl.BlockSpec((1, cb), lambda b: (0, 0)),
                  pl.BlockSpec((1, cb), lambda b: (0, 0)),
                  pl.BlockSpec((1, h, wd, cb), lambda b: (b, 0, 0, 0)),
                  pl.BlockSpec((9, cb, g), lambda b: (0, 0, 0))],
        out_specs=(pl.BlockSpec((1, h, wd, g), lambda b: (b, 0, 0, 0)),
                   pl.BlockSpec((1, 2, g), lambda b: (b, 0, 0))),
        scratch_shapes=[pltpu.VMEM((h + 2, wd + 2, cb), jnp.bfloat16),
                        pltpu.VMEM((h * wd, g), jnp.float32)],
        compiler_params=_cparams("parallel"),
    )(scale, shift, x, w)


# --------------------------------------------------------------------------------------
# Kernel 4: fused BN+ReLU + 2x2 average pool (transition prologue; the 1x1 conv is
#           commuted to run *after* the pool on the 4x smaller tensor).  Grid over N.
# --------------------------------------------------------------------------------------

def _bn_relu_avgpool_kernel(scale_ref, shift_ref, x_ref, o_ref):
    _, h, w, c = x_ref.shape
    _, ho, wo, _ = o_ref.shape
    x = x_ref[0].astype(jnp.float32)
    act = jnp.maximum(x * scale_ref[...] + shift_ref[...], 0.0)
    a = act.reshape(ho, 2, wo, 2, c)
    s = a[:, 0, :, 0, :] + a[:, 0, :, 1, :] + a[:, 1, :, 0, :] + a[:, 1, :, 1, :]
    o_ref[...] = (0.25 * s).reshape(1, ho, wo, c).astype(o_ref.dtype)


def pallas_bn_relu_avgpool2(scale, shift, x):
    n, h, w, c = x.shape
    assert h % 2 == 0 and w % 2 == 0
    ho, wo = h // 2, w // 2
    return pl.pallas_call(
        _bn_relu_avgpool_kernel,
        out_shape=jax.ShapeDtypeStruct((n, ho, wo, c), jnp.bfloat16),
        grid=(n,),
        in_specs=[pl.BlockSpec((1, c), lambda b: (0, 0)),
                  pl.BlockSpec((1, c), lambda b: (0, 0)),
                  pl.BlockSpec((1, h, w, c), lambda b: (b, 0, 0, 0))],
        out_specs=pl.BlockSpec((1, ho, wo, c), lambda b: (b, 0, 0, 0)),
        compiler_params=_cparams("parallel"),
    )(scale, shift, x)


# --------------------------------------------------------------------------------------
# Kernel 5: head = norm5 + ReLU + global average pool + classifier, whole batch at once,
#           lane-dense (class-padded-to-128) output.
# --------------------------------------------------------------------------------------

def _head_kernel(scale_ref, shift_ref, x_ref, w_ref, b_ref, o_ref):
    x = x_ref[...].astype(jnp.float32)                        # (n, hw, c)
    act = jnp.maximum(x * scale_ref[...] + shift_ref[...], 0.0)
    feat = jnp.mean(act, axis=1)                              # adaptive_avg_pool2d(1,1)
    y = jnp.dot(feat.astype(jnp.bfloat16), w_ref[...],
                preferred_element_type=jnp.float32) + b_ref[...]
    o_ref[...] = y


def pallas_head(scale, shift, x3d, w, b):
    n, hw, c = x3d.shape
    npad = w.shape[1]
    return pl.pallas_call(
        _head_kernel,
        out_shape=jax.ShapeDtypeStruct((n, npad), jnp.float32),
        grid=(1,),
        in_specs=[pl.BlockSpec((1, c), lambda i: (0, 0)),
                  pl.BlockSpec((1, c), lambda i: (0, 0)),
                  pl.BlockSpec((n, hw, c), lambda i: (0, 0, 0)),
                  pl.BlockSpec((c, npad), lambda i: (0, 0)),
                  pl.BlockSpec((1, npad), lambda i: (0, 0))],
        out_specs=pl.BlockSpec((n, npad), lambda i: (0, 0)),
        compiler_params=_cparams("arbitrary"),
    )(scale, shift, x3d, w, b)


# --------------------------------------------------------------------------------------
# Parameter initialization (mirrors DenseNet.__init__ init rules, weights=None)
# --------------------------------------------------------------------------------------

def _kaiming_conv(key, cout, cin, kh, kw):
    fan_in = cin * kh * kw
    std = (2.0 / fan_in) ** 0.5                      # nn.init.kaiming_normal_
    return std * jax.random.normal(key, (cout, cin, kh, kw), dtype=jnp.float32)


def _bn_params(c):
    return {'gamma': jnp.ones((1, c), jnp.float32),  # constant_(weight, 1)
            'beta': jnp.zeros((1, c), jnp.float32)}  # constant_(bias, 0)


def init_densenet_params(key, growth_rate, block_config, num_init_features,
                         bn_size, in_channels, num_classes):
    n_keys = 4 + 2 * sum(block_config) + len(block_config)
    keys = iter(jax.random.split(key, n_keys))
    params = {}
    params['conv0'] = _kaiming_conv(next(keys), num_init_features, in_channels, 7, 7)
    params['norm0'] = _bn_params(num_init_features)
    num_features = num_init_features
    for bi, num_layers in enumerate(block_config):
        for li in range(num_layers):
            cin = num_features + li * growth_rate
            params[f'block{bi}_layer{li}'] = {
                'norm1': _bn_params(cin),
                'conv1': _kaiming_conv(next(keys), bn_size * growth_rate, cin, 1, 1),
                'norm2': _bn_params(bn_size * growth_rate),
                'conv2': _kaiming_conv(next(keys), growth_rate,
                                       bn_size * growth_rate, 3, 3),
            }
        num_features = num_features + num_layers * growth_rate
        if bi != len(block_config) - 1:
            params[f'trans{bi}'] = {
                'norm': _bn_params(num_features),
                'conv': _kaiming_conv(next(keys), num_features // 2, num_features, 1, 1),
            }
            num_features = num_features // 2
    params['norm5'] = _bn_params(num_features)
    bound = 1.0 / (num_features ** 0.5)
    params['cls_w'] = jax.random.uniform(next(keys), (num_features, num_classes),
                                         minval=-bound, maxval=bound, dtype=jnp.float32)
    params['cls_b'] = jnp.zeros((1, num_classes), jnp.float32)
    return params, num_features


# --------------------------------------------------------------------------------------
# Forward pass (mirrors DenseNet.forward / features2)
# --------------------------------------------------------------------------------------

def densenet_forward(params, x_nchw, *, growth_rate, block_config, bn_size):
    eps = 1e-5
    x = jnp.transpose(x_nchw, (0, 2, 3, 1)).astype(jnp.float32)   # NCHW -> NHWC
    n, h, w, cin = x.shape
    # fix_resolution: identity (weights=None => no upsample module)

    # ---- stem: conv0 (7x7/s2/p3) as a patches matmul (cin is tiny, so the 49*cin-wide
    #      patch slab is cheap) + fused stats; then fused norm0+relu0+maxpool.
    assert h % 2 == 0 and w % 2 == 0
    ho0, wo0 = h // 2, w // 2
    xp = jnp.pad(x, ((0, 0), (3, 3), (3, 3), (0, 0)))
    patches = jnp.concatenate(
        [xp[:, dy:dy + 2 * ho0:2, dx:dx + 2 * wo0:2, :]
         for dy in range(7) for dx in range(7)], axis=-1)          # (n, ho0, wo0, 49*cin)
    k0 = 49 * cin
    m0 = n * ho0 * wo0
    w0 = jnp.transpose(params['conv0'], (2, 3, 1, 0)).reshape(k0, -1).astype(jnp.bfloat16)
    c0 = w0.shape[1]
    one0 = jnp.ones((1, k0), jnp.float32)
    zero0 = jnp.zeros((1, k0), jnp.float32)
    y0_2d, st0_p = pallas_bn_relu_matmul(one0, zero0, patches.reshape(m0, k0), w0,
                                         relu=False)
    st0 = jnp.sum(st0_p, axis=0)
    s0, sh0 = bn_affine(st0, params['norm0']['gamma'], params['norm0']['beta'], m0, eps)
    feat, fst_p = pallas_bn_relu_maxpool(s0, sh0, y0_2d.reshape(n, ho0, wo0, c0))
    feat_stats = jnp.sum(fst_p, axis=0)
    num_features = c0

    final_stats = None
    final_m = None
    for bi, num_layers in enumerate(block_config):
        nb, hb, wb, _ = feat.shape
        m = nb * hb * wb
        c_final = num_features + num_layers * growth_rate
        # Dense-block buffer at final width.  Invariant: channels >= c_used are EXACT
        # zeros until written, and the matching conv1 weight rows are exact zeros, so
        # full/trimmed-width reads are exact (no per-layer concatenate).
        # TODO(synk): alias the 3x3-conv output directly into this buffer (needs a
        #             128-aligned channel slice to keep the out block lane-legal).
        buf = jnp.pad(feat, ((0, 0), (0, 0), (0, 0), (0, c_final - num_features)))
        run_stats = jnp.zeros((2, c_final), jnp.float32)
        run_stats = run_stats.at[:, :num_features].set(feat_stats)

        for li in range(num_layers):
            p = params[f'block{bi}_layer{li}']
            c_used = num_features + li * growth_rate
            cb = bn_size * growth_rate

            # trim conv1's K to the populated channels (rounded to a lane-legal width)
            if c_final % 128 == 0:
                k_eff = min(-(-c_used // 128) * 128, c_final)
            else:
                k_eff = c_final
            g1 = jnp.pad(p['norm1']['gamma'], ((0, 0), (0, k_eff - c_used)),
                         constant_values=1.0)
            b1 = jnp.pad(p['norm1']['beta'], ((0, 0), (0, k_eff - c_used)))
            s1, sh1 = bn_affine(run_stats[:, :k_eff], g1, b1, m, eps)
            w1 = p['conv1'].reshape(cb, c_used).T
            w1 = jnp.pad(w1, ((0, k_eff - c_used), (0, 0))).astype(jnp.bfloat16)
            bott2d, bst_p = pallas_bn_relu_matmul(s1, sh1, buf.reshape(m, c_final), w1)

            # norm2 + relu2 + conv2 (3x3) with fused output stats
            st2 = jnp.sum(bst_p, axis=0)
            s2, sh2 = bn_affine(st2, p['norm2']['gamma'], p['norm2']['beta'], m, eps)
            w2 = jnp.transpose(p['conv2'], (2, 3, 1, 0)).reshape(
                9, cb, growth_rate).astype(jnp.bfloat16)
            new, nst_p = pallas_bn_relu_conv3x3(s2, sh2, bott2d.reshape(nb, hb, wb, cb),
                                                w2)
            # drop_rate = 0 -> no dropout

            buf = buf.at[:, :, :, c_used:c_used + growth_rate].set(new)
            run_stats = run_stats.at[:, c_used:c_used + growth_rate].set(
                jnp.sum(nst_p, axis=0))
        num_features = c_final

        if bi != len(block_config) - 1:
            # transition: BN+ReLU+avgpool first, then the (linear) 1x1 conv on the 4x
            # smaller tensor (identity affine; ReLU is a no-op on the >=0 pooled values).
            pt = params[f'trans{bi}']
            st_, sht_ = bn_affine(run_stats, pt['norm']['gamma'], pt['norm']['beta'],
                                  m, eps)
            pooled = pallas_bn_relu_avgpool2(st_, sht_, buf)
            ct = num_features // 2
            wt = pt['conv'].reshape(ct, num_features).T.astype(jnp.bfloat16)
            m2 = nb * (hb // 2) * (wb // 2)
            one_t = jnp.ones((1, num_features), jnp.float32)
            zero_t = jnp.zeros((1, num_features), jnp.float32)
            f2d, fst_p = pallas_bn_relu_matmul(one_t, zero_t,
                                               pooled.reshape(m2, num_features), wt)
            feat = f2d.reshape(nb, hb // 2, wb // 2, ct)
            feat_stats = jnp.sum(fst_p, axis=0)
            num_features = ct
        else:
            feat = buf
            final_stats = run_stats
            final_m = m

    # norm5 + F.relu + adaptive_avg_pool2d + classifier (whole batch, lane-dense 128)
    nb, hb, wb, cf = feat.shape
    s5, sh5 = bn_affine(final_stats, params['norm5']['gamma'], params['norm5']['beta'],
                        final_m, eps)
    ncls = params['cls_w'].shape[1]
    npad = int(pl.cdiv(ncls, 128) * 128)
    wc = jnp.pad(params['cls_w'], ((0, 0), (0, npad - ncls))).astype(jnp.bfloat16)
    bc = jnp.pad(params['cls_b'], ((0, 0), (0, npad - ncls)))
    logits = pallas_head(s5, sh5, feat.reshape(nb, hb * wb, cf), wc, bc)
    # TODO(synk): sigmoid / op_norm branches omitted (apply_sigmoid=False,
    #             op_threshs=None defaults) -> raw logits, matching the reference.
    return logits[:, :ncls]


# --------------------------------------------------------------------------------------
if __name__ == "__main__":
    key = jax.random.PRNGKey(0)
    k_params, k_x = jax.random.split(key)

    # Small DenseNet-BC configuration consistent with the module's constructor.
    growth_rate = 8
    block_config = (2, 2)
    num_init_features = 16
    bn_size = 2
    in_channels = 1
    num_classes = 18

    params, num_features = init_densenet_params(
        k_params, growth_rate, block_config, num_init_features,
        bn_size, in_channels, num_classes)

    x = jax.random.normal(k_x, (2, in_channels, 32, 32), dtype=jnp.float32)

    fwd = jax.jit(functools.partial(densenet_forward,
                                    growth_rate=growth_rate,
                                    block_config=block_config,
                                    bn_size=bn_size))
    out = fwd(params, x)
    jax.block_until_ready(out)
    assert out.shape == (2, num_classes), out.shape
    print("KERNEL_OK")
</pallas_src>

<mosaic_0001>
module attributes {stable_mosaic.version = 11 : i64} {
  func.func @_bn_relu_maxpool_kernel(%arg0: i32, %arg1: memref<1x16xf32, #tpu.memory_space<vmem>>, %arg2: memref<1x16xf32, #tpu.memory_space<vmem>>, %arg3: memref<1x16x16x16xbf16, #tpu.memory_space<vmem>>, %arg4: memref<1x8x8x16xbf16, #tpu.memory_space<vmem>>, %arg5: memref<1x2x16xf32, #tpu.memory_space<vmem>>, %arg6: memref<18x18x16xf32, #tpu.memory_space<vmem>>) attributes {dimension_semantics = [#tpu.dimension_semantics<parallel>], iteration_bounds = array<i64: 2>, scalar_prefetch = 0 : i64, scratch_operands = 1 : i64, tpu.core_type = #tpu.core_type<tc>, window_params = [{pipeline_mode = #tpu.pipeline_mode<synchronous>, transform_indices = @transform_0, window_bounds = array<i64: 1, 16>}, {pipeline_mode = #tpu.pipeline_mode<synchronous>, transform_indices = @transform_1, window_bounds = array<i64: 1, 16>}, {transform_indices = @transform_2, window_bounds = array<i64: 1, 16, 16, 16>}, {transform_indices = @transform_3, window_bounds = array<i64: 1, 8, 8, 16>}, {transform_indices = @transform_4, window_bounds = array<i64: 1, 2, 16>}]} {
    %cst = arith.constant 0.000000e+00 : f32
    %0 = vector.broadcast %cst : f32 to vector<18x18x16xf32>
    %c0 = arith.constant 0 : index
    %c0_0 = arith.constant 0 : index
    %c0_1 = arith.constant 0 : index
    %1 = vector.load %arg6[%c0, %c0_0, %c0_1] : memref<18x18x16xf32, #tpu.memory_space<vmem>>, vector<18x18x16xf32>
    tpu.vector_store %arg6[%c0, %c0_0, %c0_1], %0 {strides = array<i32>} : memref<18x18x16xf32, #tpu.memory_space<vmem>>, vector<18x18x16xf32>,
    %c0_2 = arith.constant 0 : index
    %c0_3 = arith.constant 0 : index
    %c0_4 = arith.constant 0 : index
    %c0_5 = arith.constant 0 : index
    %2 = vector.load %arg3[%c0_2, %c0_3, %c0_4, %c0_5] : memref<1x16x16x16xbf16, #tpu.memory_space<vmem>>, vector<1x16x16x16xbf16>
    %3 = vector.shape_cast %2 : vector<1x16x16x16xbf16> to vector<16x16x16xbf16>
    %4 = arith.extf %3 : vector<16x16x16xbf16> to vector<16x16x16xf32>
    %c0_6 = arith.constant 0 : index
    %c0_7 = arith.constant 0 : index
    %5 = vector.load %arg1[%c0_6, %c0_7] : memref<1x16xf32, #tpu.memory_space<vmem>>, vector<1x16xf32>
    %6 = vector.shape_cast %5 : vector<1x16xf32> to vector<1x1x16xf32>
    %7 = vector.broadcast %6 : vector<1x1x16xf32> to vector<16x16x16xf32>
    %8 = arith.mulf %4, %7 : vector<16x16x16xf32>
    %c0_8 = arith.constant 0 : index
    %c0_9 = arith.constant 0 : index
    %9 = vector.load %arg2[%c0_8, %c0_9] : memref<1x16xf32, #tpu.memory_space<vmem>>, vector<1x16xf32>
    %10 = vector.shape_cast %9 : vector<1x16xf32> to vector<1x1x16xf32>
    %11 = vector.broadcast %10 : vector<1x1x16xf32> to vector<16x16x16xf32>
    %12 = arith.addf %8, %11 : vector<16x16x16xf32>
    %cst_10 = arith.constant 0.000000e+00 : f32
    %13 = vector.broadcast %cst_10 : f32 to vector<16x16x16xf32>
    %14 = arith.maximumf %12, %13 : vector<16x16x16xf32>
    %c1 = arith.constant 1 : index
    %c1_11 = arith.constant 1 : index
    %c0_12 = arith.constant 0 : index
    %15 = vector.load %arg6[%c1, %c1_11, %c0_12] : memref<18x18x16xf32, #tpu.memory_space<vmem>>, vector<16x16x16xf32>
    tpu.vector_store %arg6[%c1, %c1_11, %c0_12], %14 {strides = array<i32>} : memref<18x18x16xf32, #tpu.memory_space<vmem>>, vector<16x16x16xf32>,
    %c0_13 = arith.constant 0 : index
    %c0_14 = arith.constant 0 : index
    %c0_15 = arith.constant 0 : index
    %16 = vector.load %arg6[%c0_13, %c0_14, %c0_15] : memref<18x18x16xf32, #tpu.memory_space<vmem>>, vector<18x18x16xf32>
    %17 = vector.shape_cast %16 : vector<18x18x16xf32> to vector<9x2x9x2x16xf32>
    %18 = vector.extract_strided_slice %17 {offsets = [0, 0, 0, 0, 0], sizes = [8, 1, 8, 1, 16], strides = [1, 1, 1, 1, 1]} : vector<9x2x9x2x16xf32> to vector<8x1x8x1x16xf32>
    %19 = vector.shape_cast %18 : vector<8x1x8x1x16xf32> to vector<8x8x16xf32>
    %20 = vector.extract_strided_slice %17 {offsets = [0, 0, 0, 1, 0], sizes = [8, 1, 8, 1, 16], strides = [1, 1, 1, 1, 1]} : vector<9x2x9x2x16xf32> to vector<8x1x8x1x16xf32>
    %21 = vector.shape_cast %20 : vector<8x1x8x1x16xf32> to vector<8x8x16xf32>
    %22 = arith.maximumf %19, %21 : vector<8x8x16xf32>
    %23 = vector.extract_strided_slice %17 {offsets = [0, 0, 1, 0, 0], sizes = [8, 1, 8, 1, 16], strides = [1, 1, 1, 1, 1]} : vector<9x2x9x2x16xf32> to vector<8x1x8x1x16xf32>
    %24 = vector.shape_cast %23 : vector<8x1x8x1x16xf32> to vector<8x8x16xf32>
    %25 = arith.maximumf %22, %24 : vector<8x8x16xf32>
    %26 = vector.extract_strided_slice %17 {offsets = [0, 1, 0, 0, 0], sizes = [8, 1, 8, 1, 16], strides = [1, 1, 1, 1, 1]} : vector<9x2x9x2x16xf32> to vector<8x1x8x1x16xf32>
    %27 = vector.shape_cast %26 : vector<8x1x8x1x16xf32> to vector<8x8x16xf32>
    %28 = arith.maximumf %25, %27 : vector<8x8x16xf32>
    %29 = vector.extract_strided_slice %17 {offsets = [0, 1, 0, 1, 0], sizes = [8, 1, 8, 1, 16], strides = [1, 1, 1, 1, 1]} : vector<9x2x9x2x16xf32> to vector<8x1x8x1x16xf32>
    %30 = vector.shape_cast %29 : vector<8x1x8x1x16xf32> to vector<8x8x16xf32>
    %31 = arith.maximumf %28, %30 : vector<8x8x16xf32>
    %32 = vector.extract_strided_slice %17 {offsets = [0, 1, 1, 0, 0], sizes = [8, 1, 8, 1, 16], strides = [1, 1, 1, 1, 1]} : vector<9x2x9x2x16xf32> to vector<8x1x8x1x16xf32>
    %33 = vector.shape_cast %32 : vector<8x1x8x1x16xf32> to vector<8x8x16xf32>
    %34 = arith.maximumf %31, %33 : vector<8x8x16xf32>
    %35 = vector.extract_strided_slice %17 {offsets = [1, 0, 0, 0, 0], sizes = [8, 1, 8, 1, 16], strides = [1, 1, 1, 1, 1]} : vector<9x2x9x2x16xf32> to vector<8x1x8x1x16xf32>
    %36 = vector.shape_cast %35 : vector<8x1x8x1x16xf32> to vector<8x8x16xf32>
    %37 = arith.maximumf %34, %36 : vector<8x8x16xf32>
    %38 = vector.extract_strided_slice %17 {offsets = [1, 0, 0, 1, 0], sizes = [8, 1, 8, 1, 16], strides = [1, 1, 1, 1, 1]} : vector<9x2x9x2x16xf32> to vector<8x1x8x1x16xf32>
    %39 = vector.shape_cast %38 : vector<8x1x8x1x16xf32> to vector<8x8x16xf32>
    %40 = arith.maximumf %37, %39 : vector<8x8x16xf32>
    %41 = vector.extract_strided_slice %17 {offsets = [1, 0, 1, 0, 0], sizes = [8, 1, 8, 1, 16], strides = [1, 1, 1, 1, 1]} : vector<9x2x9x2x16xf32> to vector<8x1x8x1x16xf32>
    %42 = vector.shape_cast %41 : vector<8x1x8x1x16xf32> to vector<8x8x16xf32>
    %43 = arith.maximumf %40, %42 : vector<8x8x16xf32>
    %44 = vector.shape_cast %43 : vector<8x8x16xf32> to vector<1x8x8x16xf32>
    %45 = arith.truncf %44 : vector<1x8x8x16xf32> to vector<1x8x8x16xbf16>
    %c0_16 = arith.constant 0 : index
    %c0_17 = arith.constant 0 : index
    %c0_18 = arith.constant 0 : index
    %c0_19 = arith.constant 0 : index
    %46 = vector.load %arg4[%c0_16, %c0_17, %c0_18, %c0_19] : memref<1x8x8x16xbf16, #tpu.memory_space<vmem>>, vector<1x8x8x16xbf16>
    tpu.vector_store %arg4[%c0_16, %c0_17, %c0_18, %c0_19], %45 {strides = array<i32>} : memref<1x8x8x16xbf16, #tpu.memory_space<vmem>>, vector<1x8x8x16xbf16>,
    %47 = vector.shape_cast %43 : vector<8x8x16xf32> to vector<64x16xf32>
    %cst_20 = arith.constant dense<0.000000e+00> : vector<16xf32>
    %48 = vector.multi_reduction <add>, %47, %cst_20 [0] : vector<64x16xf32> to vector<16xf32>
    %49 = vector.shape_cast %48 : vector<16xf32> to vector<1x16xf32>
    %50 = vector.shape_cast %49 : vector<1x16xf32> to vector<1x1x16xf32>
    %c0_21 = arith.constant 0 : index
    %c0_22 = arith.constant 0 : index
    %c0_23 = arith.constant 0 : index
    %51 = vector.load %arg5[%c0_21, %c0_22, %c0_23] : memref<1x2x16xf32, #tpu.memory_space<vmem>>, vector<1x1x16xf32>
    tpu.vector_store %arg5[%c0_21, %c0_22, %c0_23], %50 {strides = array<i32>} : memref<1x2x16xf32, #tpu.memory_space<vmem>>, vector<1x1x16xf32>,
    %52 = arith.mulf %47, %47 : vector<64x16xf32>
    %cst_24 = arith.constant dense<0.000000e+00> : vector<16xf32>
    %53 = vector.multi_reduction <add>, %52, %cst_24 [0] : vector<64x16xf32> to vector<16xf32>
    %54 = vector.shape_cast %53 : vector<16xf32> to vector<1x16xf32>
    %55 = vector.shape_cast %54 : vector<1x16xf32> to vector<1x1x16xf32>
    %c0_25 = arith.constant 0 : index
    %c1_26 = arith.constant 1 : index
    %c0_27 = arith.constant 0 : index
    %56 = vector.load %arg5[%c0_25, %c1_26, %c0_27] : memref<1x2x16xf32, #tpu.memory_space<vmem>>, vector<1x1x16xf32>
    tpu.vector_store %arg5[%c0_25, %c1_26, %c0_27], %55 {strides = array<i32>} : memref<1x2x16xf32, #tpu.memory_space<vmem>>, vector<1x1x16xf32>,
    return
  }
  func.func @transform_0(%arg0: i32) -> (i32, i32) {
    %c0_i32 = arith.constant 0 : i32
    %c0_i32_0 = arith.constant 0 : i32
    %c0_i32_1 = arith.constant 0 : i32
    return %c0_i32, %c0_i32_0 : i32, i32
  }
  func.func @transform_1(%arg0: i32) -> (i32, i32) {
    %c0_i32 = arith.constant 0 : i32
    %c0_i32_0 = arith.constant 0 : i32
    %c0_i32_1 = arith.constant 0 : i32
    return %c0_i32, %c0_i32_0 : i32, i32
  }
  func.func @transform_2(%arg0: i32) -> (i32, i32, i32, i32) {
    %c0_i32 = arith.constant 0 : i32
    %c0_i32_0 = arith.constant 0 : i32
    %c0_i32_1 = arith.constant 0 : i32
    %c0_i32_2 = arith.constant 0 : i32
    return %arg0, %c0_i32, %c0_i32_0, %c0_i32_1 : i32, i32, i32, i32
  }
  func.func @transform_3(%arg0: i32) -> (i32, i32, i32, i32) {
    %c0_i32 = arith.constant 0 : i32
    %c0_i32_0 = arith.constant 0 : i32
    %c0_i32_1 = arith.constant 0 : i32
    %c0_i32_2 = arith.constant 0 : i32
    return %arg0, %c0_i32, %c0_i32_0, %c0_i32_1 : i32, i32, i32, i32
  }
  func.func @transform_4(%arg0: i32) -> (i32, i32, i32) {
    %c0_i32 = arith.constant 0 : i32
    %c0_i32_0 = arith.constant 0 : i32
    %c0_i32_1 = arith.constant 0 : i32
    return %arg0, %c0_i32, %c0_i32_0 : i32, i32, i32
  }
}

module attributes {stable_mosaic.version = 11 : i64} {
  func.func @_bn_relu_matmul_kernel(%arg0: i32, %arg1: i32, %arg2: memref<1x32xf32, #tpu.memory_space<vmem>>, %arg3: memref<1x32xf32, #tpu.memory_space<vmem>>, %arg4: memref<128x32xbf16, #tpu.memory_space<vmem>>, %arg5: memref<32x16xbf16, #tpu.memory_space<vmem>>, %arg6: memref<128x16xbf16, #tpu.memory_space<vmem>>, %arg7: memref<1x2x16xf32, #tpu.memory_space<vmem>>, %arg8: memref<128x16xf32, #tpu.memory_space<vmem>>) attributes {dimension_semantics = [#tpu.dimension_semantics<parallel>, #tpu.dimension_semantics<arbitrary>], iteration_bounds = array<i64: 1, 1>, scalar_prefetch = 0 : i64, scratch_operands = 1 : i64, tpu.core_type = #tpu.core_type<tc>, window_params = [{transform_indices = @transform_0, window_bounds = array<i64: 1, 32>}, {transform_indices = @transform_1, window_bounds = array<i64: 1, 32>}, {transform_indices = @transform_2, window_bounds = array<i64: 128, 32>}, {transform_indices = @transform_3, window_bounds = array<i64: 32, 16>}, {transform_indices = @transform_4, window_bounds = array<i64: 128, 16>}, {transform_indices = @transform_5, window_bounds = array<i64: 1, 2, 16>}]} {
    %c0_i32 = arith.constant 0 : i32
    %0 = arith.cmpi eq, %arg1, %c0_i32 : i32
    %1 = arith.extui %0 : i1 to i32
    %c0_i32_0 = arith.constant 0 : i32
    %2 = arith.cmpi ne, %1, %c0_i32_0 : i32
    scf.if %2 {
      %cst_15 = arith.constant 0.000000e+00 : f32
      %22 = vector.broadcast %cst_15 : f32 to vector<128x16xf32>
      %c0_16 = arith.constant 0 : index
      %c0_17 = arith.constant 0 : index
      %23 = vector.load %arg8[%c0_16, %c0_17] : memref<128x16xf32, #tpu.memory_space<vmem>>, vector<128x16xf32>
      tpu.vector_store %arg8[%c0_16, %c0_17], %22 {strides = array<i32>} : memref<128x16xf32, #tpu.memory_space<vmem>>, vector<128x16xf32>,
    } else {
    }
    %c0 = arith.constant 0 : index
    %c0_1 = arith.constant 0 : index
    %3 = vector.load %arg4[%c0, %c0_1] : memref<128x32xbf16, #tpu.memory_space<vmem>>, vector<128x32xbf16>
    %4 = arith.extf %3 : vector<128x32xbf16> to vector<128x32xf32>
    %c0_2 = arith.constant 0 : index
    %c0_3 = arith.constant 0 : index
    %5 = vector.load %arg2[%c0_2, %c0_3] : memref<1x32xf32, #tpu.memory_space<vmem>>, vector<1x32xf32>
    %6 = vector.broadcast %5 : vector<1x32xf32> to vector<128x32xf32>
    %7 = arith.mulf %4, %6 : vector<128x32xf32>
    %c0_4 = arith.constant 0 : index
    %c0_5 = arith.constant 0 : index
    %8 = vector.load %arg3[%c0_4, %c0_5] : memref<1x32xf32, #tpu.memory_space<vmem>>, vector<1x32xf32>
    %9 = vector.broadcast %8 : vector<1x32xf32> to vector<128x32xf32>
    %10 = arith.addf %7, %9 : vector<128x32xf32>
    %cst = arith.constant 0.000000e+00 : f32
    %11 = vector.broadcast %cst : f32 to vector<128x32xf32>
    %12 = arith.maximumf %10, %11 : vector<128x32xf32>
    %c0_6 = arith.constant 0 : index
    %c0_7 = arith.constant 0 : index
    %13 = vector.load %arg8[%c0_6, %c0_7] : memref<128x16xf32, #tpu.memory_space<vmem>>, vector<128x16xf32>
    %14 = arith.truncf %12 : vector<128x32xf32> to vector<128x32xbf16>
    %c0_8 = arith.constant 0 : index
    %c0_9 = arith.constant 0 : index
    %15 = vector.load %arg5[%c0_8, %c0_9] : memref<32x16xbf16, #tpu.memory_space<vmem>>, vector<32x16xbf16>
    %cst_10 = arith.constant dense<0.000000e+00> : vector<128x16xf32>
    %16 = tpu.matmul %14, %15, %cst_10 {dimension_numbers = #tpu.dot_dimension_numbers<[1], [0], [0], [1], [0, 0, 1, 1], [], []>} : vector<128x32xbf16>, vector<32x16xbf16>, vector<128x16xf32> -> vector<128x16xf32>
    %17 = arith.addf %13, %16 : vector<128x16xf32>
    %c0_11 = arith.constant 0 : index
    %c0_12 = arith.constant 0 : index
    %18 = vector.load %arg8[%c0_11, %c0_12] : memref<128x16xf32, #tpu.memory_space<vmem>>, vector<128x16xf32>
    tpu.vector_store %arg8[%c0_11, %c0_12], %17 {strides = array<i32>} : memref<128x16xf32, #tpu.memory_space<vmem>>, vector<128x16xf32>,
    %c0_i32_13 = arith.constant 0 : i32
    %19 = arith.cmpi eq, %arg1, %c0_i32_13 : i32
    %20 = arith.extui %19 : i1 to i32
    %c0_i32_14 = arith.constant 0 : i32
    %21 = arith.cmpi ne, %20, %c0_i32_14 : i32
    scf.if %21 {
      %c0_15 = arith.constant 0 : index
      %c0_16 = arith.constant 0 : index
      %22 = vector.load %arg8[%c0_15, %c0_16] : memref<128x16xf32, #tpu.memory_space<vmem>>, vector<128x16xf32>
      %23 = arith.truncf %22 : vector<128x16xf32> to vector<128x16xbf16>
      %c0_17 = arith.constant 0 : index
      %c0_18 = arith.constant 0 : index
      %24 = vector.load %arg6[%c0_17, %c0_18] : memref<128x16xbf16, #tpu.memory_space<vmem>>, vector<128x16xbf16>
      tpu.vector_store %arg6[%c0_17, %c0_18], %23 {strides = array<i32>} : memref<128x16xbf16, #tpu.memory_space<vmem>>, vector<128x16xbf16>,
      %cst_19 = arith.constant dense<0.000000e+00> : vector<16xf32>
      %25 = vector.multi_reduction <add>, %22, %cst_19 [0] : vector<128x16xf32> to vector<16xf32>
      %26 = vector.shape_cast %25 : vector<16xf32> to vector<1x16xf32>
      %27 = vector.shape_cast %26 : vector<1x16xf32> to vector<1x1x16xf32>
      %c0_20 = arith.constant 0 : index
      %c0_21 = arith.constant 0 : index
      %c0_22 = arith.constant 0 : index
      %28 = vector.load %arg7[%c0_20, %c0_21, %c0_22] : memref<1x2x16xf32, #tpu.memory_space<vmem>>, vector<1x1x16xf32>
      tpu.vector_store %arg7[%c0_20, %c0_21, %c0_22], %27 {strides = array<i32>} : memref<1x2x16xf32, #tpu.memory_space<vmem>>, vector<1x1x16xf32>,
      %29 = arith.mulf %22, %22 : vector<128x16xf32>
      %cst_23 = arith.constant dense<0.000000e+00> : vector<16xf32>
      %30 = vector.multi_reduction <add>, %29, %cst_23 [0] : vector<128x16xf32> to vector<16xf32>
      %31 = vector.shape_cast %30 : vector<16xf32> to vector<1x16xf32>
      %32 = vector.shape_cast %31 : vector<1x16xf32> to vector<1x1x16xf32>
      %c0_24 = arith.constant 0 : index
      %c1 = arith.constant 1 : index
      %c0_25 = arith.constant 0 : index
      %33 = vector.load %arg7[%c0_24, %c1, %c0_25] : memref<1x2x16xf32, #tpu.memory_space<vmem>>, vector<1x1x16xf32>
      tpu.vector_store %arg7[%c0_24, %c1, %c0_25], %32 {strides = array<i32>} : memref<1x2x16xf32, #tpu.memory_space<vmem>>, vector<1x1x16xf32>,
    } else {
    }
    return
  }
  func.func @transform_0(%arg0: i32, %arg1: i32) -> (i32, i32) {
    %c0_i32 = arith.constant 0 : i32
    %c0_i32_0 = arith.constant 0 : i32
    return %c0_i32, %arg1 : i32, i32
  }
  func.func @transform_1(%arg0: i32, %arg1: i32) -> (i32, i32) {
    %c0_i32 = arith.constant 0 : i32
    %c0_i32_0 = arith.constant 0 : i32
    return %c0_i32, %arg1 : i32, i32
  }
  func.func @transform_2(%arg0: i32, %arg1: i32) -> (i32, i32) {
    %c0_i32 = arith.constant 0 : i32
    return %arg0, %arg1 : i32, i32
  }
  func.func @transform_3(%arg0: i32, %arg1: i32) -> (i32, i32) {
    %c0_i32 = arith.constant 0 : i32
    %c0_i32_0 = arith.constant 0 : i32
    return %arg1, %c0_i32 : i32, i32
  }
  func.func @transform_4(%arg0: i32, %arg1: i32) -> (i32, i32) {
    %c0_i32 = arith.constant 0 : i32
    %c0_i32_0 = arith.constant 0 : i32
    return %arg0, %c0_i32 : i32, i32
  }
  func.func @transform_5(%arg0: i32, %arg1: i32) -> (i32, i32, i32) {
    %c0_i32 = arith.constant 0 : i32
    %c0_i32_0 = arith.constant 0 : i32
    %c0_i32_1 = arith.constant 0 : i32
    return %arg0, %c0_i32, %c0_i32_0 : i32, i32, i32
  }
}

module attributes {stable_mosaic.version = 11 : i64} {
  func.func @_bn_relu_matmul_kernel(%arg0: i32, %arg1: i32, %arg2: memref<1x49xf32, #tpu.memory_space<vmem>>, %arg3: memref<1x49xf32, #tpu.memory_space<vmem>>, %arg4: memref<512x49xf32, #tpu.memory_space<vmem>>, %arg5: memref<49x16xbf16, #tpu.memory_space<vmem>>, %arg6: memref<512x16xbf16, #tpu.memory_space<vmem>>, %arg7: memref<1x2x16xf32, #tpu.memory_space<vmem>>, %arg8: memref<512x16xf32, #tpu.memory_space<vmem>>) attributes {dimension_semantics = [#tpu.dimension_semantics<parallel>, #tpu.dimension_semantics<arbitrary>], iteration_bounds = array<i64: 1, 1>, scalar_prefetch = 0 : i64, scratch_operands = 1 : i64, tpu.core_type = #tpu.core_type<tc>, window_params = [{transform_indices = @transform_0, window_bounds = array<i64: 1, 49>}, {transform_indices = @transform_1, window_bounds = array<i64: 1, 49>}, {transform_indices = @transform_2, window_bounds = array<i64: 512, 49>}, {transform_indices = @transform_3, window_bounds = array<i64: 49, 16>}, {transform_indices = @transform_4, window_bounds = array<i64: 512, 16>}, {transform_indices = @transform_5, window_bounds = array<i64: 1, 2, 16>}]} {
    %c0_i32 = arith.constant 0 : i32
    %0 = arith.cmpi eq, %arg1, %c0_i32 : i32
    %1 = arith.extui %0 : i1 to i32
    %c0_i32_0 = arith.constant 0 : i32
    %2 = arith.cmpi ne, %1, %c0_i32_0 : i32
    scf.if %2 {
      %cst_14 = arith.constant 0.000000e+00 : f32
      %19 = vector.broadcast %cst_14 : f32 to vector<512x16xf32>
      %c0_15 = arith.constant 0 : index
      %c0_16 = arith.constant 0 : index
      %20 = vector.load %arg8[%c0_15, %c0_16] : memref<512x16xf32, #tpu.memory_space<vmem>>, vector<512x16xf32>
      tpu.vector_store %arg8[%c0_15, %c0_16], %19 {strides = array<i32>} : memref<512x16xf32, #tpu.memory_space<vmem>>, vector<512x16xf32>,
    } else {
    }
    %c0 = arith.constant 0 : index
    %c0_1 = arith.constant 0 : index
    %3 = vector.load %arg4[%c0, %c0_1] : memref<512x49xf32, #tpu.memory_space<vmem>>, vector<512x49xf32>
    %c0_2 = arith.constant 0 : index
    %c0_3 = arith.constant 0 : index
    %4 = vector.load %arg2[%c0_2, %c0_3] : memref<1x49xf32, #tpu.memory_space<vmem>>, vector<1x49xf32>
    %5 = vector.broadcast %4 : vector<1x49xf32> to vector<512x49xf32>
    %6 = arith.mulf %3, %5 : vector<512x49xf32>
    %c0_4 = arith.constant 0 : index
    %c0_5 = arith.constant 0 : index
    %7 = vector.load %arg3[%c0_4, %c0_5] : memref<1x49xf32, #tpu.memory_space<vmem>>, vector<1x49xf32>
    %8 = vector.broadcast %7 : vector<1x49xf32> to vector<512x49xf32>
    %9 = arith.addf %6, %8 : vector<512x49xf32>
    %c0_6 = arith.constant 0 : index
    %c0_7 = arith.constant 0 : index
    %10 = vector.load %arg8[%c0_6, %c0_7] : memref<512x16xf32, #tpu.memory_space<vmem>>, vector<512x16xf32>
    %11 = arith.truncf %9 : vector<512x49xf32> to vector<512x49xbf16>
    %c0_8 = arith.constant 0 : index
    %c0_9 = arith.constant 0 : index
    %12 = vector.load %arg5[%c0_8, %c0_9] : memref<49x16xbf16, #tpu.memory_space<vmem>>, vector<49x16xbf16>
    %cst = arith.constant dense<0.000000e+00> : vector<512x16xf32>
    %13 = tpu.matmul %11, %12, %cst {dimension_numbers = #tpu.dot_dimension_numbers<[1], [0], [0], [1], [0, 0, 1, 1], [], []>} : vector<512x49xbf16>, vector<49x16xbf16>, vector<512x16xf32> -> vector<512x16xf32>
    %14 = arith.addf %10, %13 : vector<512x16xf32>
    %c0_10 = arith.constant 0 : index
    %c0_11 = arith.constant 0 : index
    %15 = vector.load %arg8[%c0_10, %c0_11] : memref<512x16xf32, #tpu.memory_space<vmem>>, vector<512x16xf32>
    tpu.vector_store %arg8[%c0_10, %c0_11], %14 {strides = array<i32>} : memref<512x16xf32, #tpu.memory_space<vmem>>, vector<512x16xf32>,
    %c0_i32_12 = arith.constant 0 : i32
    %16 = arith.cmpi eq, %arg1, %c0_i32_12 : i32
    %17 = arith.extui %16 : i1 to i32
    %c0_i32_13 = arith.constant 0 : i32
    %18 = arith.cmpi ne, %17, %c0_i32_13 : i32
    scf.if %18 {
      %c0_14 = arith.constant 0 : index
      %c0_15 = arith.constant 0 : index
      %19 = vector.load %arg8[%c0_14, %c0_15] : memref<512x16xf32, #tpu.memory_space<vmem>>, vector<512x16xf32>
      %20 = arith.truncf %19 : vector<512x16xf32> to vector<512x16xbf16>
      %c0_16 = arith.constant 0 : index
      %c0_17 = arith.constant 0 : index
      %21 = vector.load %arg6[%c0_16, %c0_17] : memref<512x16xbf16, #tpu.memory_space<vmem>>, vector<512x16xbf16>
      tpu.vector_store %arg6[%c0_16, %c0_17], %20 {strides = array<i32>} : memref<512x16xbf16, #tpu.memory_space<vmem>>, vector<512x16xbf16>,
      %cst_18 = arith.constant dense<0.000000e+00> : vector<16xf32>
      %22 = vector.multi_reduction <add>, %19, %cst_18 [0] : vector<512x16xf32> to vector<16xf32>
      %23 = vector.shape_cast %22 : vector<16xf32> to vector<1x16xf32>
      %24 = vector.shape_cast %23 : vector<1x16xf32> to vector<1x1x16xf32>
      %c0_19 = arith.constant 0 : index
      %c0_20 = arith.constant 0 : index
      %c0_21 = arith.constant 0 : index
      %25 = vector.load %arg7[%c0_19, %c0_20, %c0_21] : memref<1x2x16xf32, #tpu.memory_space<vmem>>, vector<1x1x16xf32>
      tpu.vector_store %arg7[%c0_19, %c0_20, %c0_21], %24 {strides = array<i32>} : memref<1x2x16xf32, #tpu.memory_space<vmem>>, vector<1x1x16xf32>,
      %26 = arith.mulf %19, %19 : vector<512x16xf32>
      %cst_22 = arith.constant dense<0.000000e+00> : vector<16xf32>
      %27 = vector.multi_reduction <add>, %26, %cst_22 [0] : vector<512x16xf32> to vector<16xf32>
      %28 = vector.shape_cast %27 : vector<16xf32> to vector<1x16xf32>
      %29 = vector.shape_cast %28 : vector<1x16xf32> to vector<1x1x16xf32>
      %c0_23 = arith.constant 0 : index
      %c1 = arith.constant 1 : index
      %c0_24 = arith.constant 0 : index
      %30 = vector.load %arg7[%c0_23, %c1, %c0_24] : memref<1x2x16xf32, #tpu.memory_space<vmem>>, vector<1x1x16xf32>
      tpu.vector_store %arg7[%c0_23, %c1, %c0_24], %29 {strides = array<i32>} : memref<1x2x16xf32, #tpu.memory_space<vmem>>, vector<1x1x16xf32>,
    } else {
    }
    return
  }
  func.func @transform_0(%arg0: i32, %arg1: i32) -> (i32, i32) {
    %c0_i32 = arith.constant 0 : i32
    %c0_i32_0 = arith.constant 0 : i32
    return %c0_i32, %arg1 : i32, i32
  }
  func.func @transform_1(%arg0: i32, %arg1: i32) -> (i32, i32) {
    %c0_i32 = arith.constant 0 : i32
    %c0_i32_0 = arith.constant 0 : i32
    return %c0_i32, %arg1 : i32, i32
  }
  func.func @transform_2(%arg0: i32, %arg1: i32) -> (i32, i32) {
    %c0_i32 = arith.constant 0 : i32
    return %arg0, %arg1 : i32, i32
  }
  func.func @transform_3(%arg0: i32, %arg1: i32) -> (i32, i32) {
    %c0_i32 = arith.constant 0 : i32
    %c0_i32_0 = arith.constant 0 : i32
    return %arg1, %c0_i32 : i32, i32
  }
  func.func @transform_4(%arg0: i32, %arg1: i32) -> (i32, i32) {
    %c0_i32 = arith.constant 0 : i32
    %c0_i32_0 = arith.constant 0 : i32
    return %arg0, %c0_i32 : i32, i32
  }
  func.func @transform_5(%arg0: i32, %arg1: i32) -> (i32, i32, i32) {
    %c0_i32 = arith.constant 0 : i32
    %c0_i32_0 = arith.constant 0 : i32
    %c0_i32_1 = arith.constant 0 : i32
    return %arg0, %c0_i32, %c0_i32_0 : i32, i32, i32
  }
}

module attributes {stable_mosaic.version = 11 : i64} {
  func.func @_bn_relu_conv3x3_kernel(%arg0: i32, %arg1: memref<1x16xf32, #tpu.memory_space<vmem>>, %arg2: memref<1x16xf32, #tpu.memory_space<vmem>>, %arg3: memref<1x8x8x16xbf16, #tpu.memory_space<vmem>>, %arg4: memref<9x16x8xbf16, #tpu.memory_space<vmem>>, %arg5: memref<1x8x8x8xbf16, #tpu.memory_space<vmem>>, %arg6: memref<1x2x8xf32, #tpu.memory_space<vmem>>, %arg7: memref<10x10x16xbf16, #tpu.memory_space<vmem>>, %arg8: memref<64x8xf32, #tpu.memory_space<vmem>>) attributes {dimension_semantics = [#tpu.dimension_semantics<parallel>], iteration_bounds = array<i64: 2>, scalar_prefetch = 0 : i64, scratch_operands = 2 : i64, tpu.core_type = #tpu.core_type<tc>, window_params = [{pipeline_mode = #tpu.pipeline_mode<synchronous>, transform_indices = @transform_0, window_bounds = array<i64: 1, 16>}, {pipeline_mode = #tpu.pipeline_mode<synchronous>, transform_indices = @transform_1, window_bounds = array<i64: 1, 16>}, {transform_indices = @transform_2, window_bounds = array<i64: 1, 8, 8, 16>}, {pipeline_mode = #tpu.pipeline_mode<synchronous>, transform_indices = @transform_3, window_bounds = array<i64: 9, 16, 8>}, {transform_indices = @transform_4, window_bounds = array<i64: 1, 8, 8, 8>}, {transform_indices = @transform_5, window_bounds = array<i64: 1, 2, 8>}]} {
    %cst = arith.constant 0.000000e+00 : bf16
    %0 = vector.broadcast %cst : bf16 to vector<10x10x16xbf16>
    %c0 = arith.constant 0 : index
    %c0_0 = arith.constant 0 : index
    %c0_1 = arith.constant 0 : index
    %1 = vector.load %arg7[%c0, %c0_0, %c0_1] : memref<10x10x16xbf16, #tpu.memory_space<vmem>>, vector<10x10x16xbf16>
    tpu.vector_store %arg7[%c0, %c0_0, %c0_1], %0 {strides = array<i32>} : memref<10x10x16xbf16, #tpu.memory_space<vmem>>, vector<10x10x16xbf16>,
    %c0_2 = arith.constant 0 : index
    %c0_3 = arith.constant 0 : index
    %c0_4 = arith.constant 0 : index
    %c0_5 = arith.constant 0 : index
    %2 = vector.load %arg3[%c0_2, %c0_3, %c0_4, %c0_5] : memref<1x8x8x16xbf16, #tpu.memory_space<vmem>>, vector<1x8x8x16xbf16>
    %3 = vector.shape_cast %2 : vector<1x8x8x16xbf16> to vector<8x8x16xbf16>
    %4 = arith.extf %3 : vector<8x8x16xbf16> to vector<8x8x16xf32>
    %c0_6 = arith.constant 0 : index
    %c0_7 = arith.constant 0 : index
    %5 = vector.load %arg1[%c0_6, %c0_7] : memref<1x16xf32, #tpu.memory_space<vmem>>, vector<1x16xf32>
    %6 = vector.shape_cast %5 : vector<1x16xf32> to vector<1x1x16xf32>
    %7 = vector.broadcast %6 : vector<1x1x16xf32> to vector<8x8x16xf32>
    %8 = arith.mulf %4, %7 : vector<8x8x16xf32>
    %c0_8 = arith.constant 0 : index
    %c0_9 = arith.constant 0 : index
    %9 = vector.load %arg2[%c0_8, %c0_9] : memref<1x16xf32, #tpu.memory_space<vmem>>, vector<1x16xf32>
    %10 = vector.shape_cast %9 : vector<1x16xf32> to vector<1x1x16xf32>
    %11 = vector.broadcast %10 : vector<1x1x16xf32> to vector<8x8x16xf32>
    %12 = arith.addf %8, %11 : vector<8x8x16xf32>
    %cst_10 = arith.constant 0.000000e+00 : f32
    %13 = vector.broadcast %cst_10 : f32 to vector<8x8x16xf32>
    %14 = arith.maximumf %12, %13 : vector<8x8x16xf32>
    %15 = arith.truncf %14 : vector<8x8x16xf32> to vector<8x8x16xbf16>
    %c1 = arith.constant 1 : index
    %c1_11 = arith.constant 1 : index
    %c0_12 = arith.constant 0 : index
    %16 = vector.load %arg7[%c1, %c1_11, %c0_12] : memref<10x10x16xbf16, #tpu.memory_space<vmem>>, vector<8x8x16xbf16>
    tpu.vector_store %arg7[%c1, %c1_11, %c0_12], %15 {strides = array<i32>} : memref<10x10x16xbf16, #tpu.memory_space<vmem>>, vector<8x8x16xbf16>,
    %cst_13 = arith.constant 0.000000e+00 : f32
    %17 = vector.broadcast %cst_13 : f32 to vector<64x8xf32>
    %c0_14 = arith.constant 0 : index
    %c0_15 = arith.constant 0 : index
    %18 = vector.load %arg8[%c0_14, %c0_15] : memref<64x8xf32, #tpu.memory_space<vmem>>, vector<64x8xf32>
    tpu.vector_store %arg8[%c0_14, %c0_15], %17 {strides = array<i32>} : memref<64x8xf32, #tpu.memory_space<vmem>>, vector<64x8xf32>,
    %c0_16 = arith.constant 0 : index
    %c0_17 = arith.constant 0 : index
    %c0_18 = arith.constant 0 : index
    %19 = vector.load %arg7[%c0_16, %c0_17, %c0_18] : memref<10x10x16xbf16, #tpu.memory_space<vmem>>, vector<8x8x16xbf16>
    %20 = vector.shape_cast %19 : vector<8x8x16xbf16> to vector<64x16xbf16>
    %c0_19 = arith.constant 0 : index
    %c0_20 = arith.constant 0 : index
    %21 = vector.load %arg8[%c0_19, %c0_20] : memref<64x8xf32, #tpu.memory_space<vmem>>, vector<64x8xf32>
    %c0_21 = arith.constant 0 : index
    %c0_22 = arith.constant 0 : index
    %c0_23 = arith.constant 0 : index
    %22 = vector.load %arg4[%c0_21, %c0_22, %c0_23] : memref<9x16x8xbf16, #tpu.memory_space<vmem>>, vector<1x16x8xbf16>
    %23 = vector.shape_cast %22 : vector<1x16x8xbf16> to vector<16x8xbf16>
    %cst_24 = arith.constant dense<0.000000e+00> : vector<64x8xf32>
    %24 = tpu.matmul %20, %23, %cst_24 {dimension_numbers = #tpu.dot_dimension_numbers<[1], [0], [0], [1], [0, 0, 1, 1], [], []>} : vector<64x16xbf16>, vector<16x8xbf16>, vector<64x8xf32> -> vector<64x8xf32>
    %25 = arith.addf %21, %24 : vector<64x8xf32>
    %c0_25 = arith.constant 0 : index
    %c0_26 = arith.constant 0 : index
    %26 = vector.load %arg8[%c0_25, %c0_26] : memref<64x8xf32, #tpu.memory_space<vmem>>, vector<64x8xf32>
    tpu.vector_store %arg8[%c0_25, %c0_26], %25 {strides = array<i32>} : memref<64x8xf32, #tpu.memory_space<vmem>>, vector<64x8xf32>,
    %c0_27 = arith.constant 0 : index
    %c1_28 = arith.constant 1 : index
    %c0_29 = arith.constant 0 : index
    %27 = vector.load %arg7[%c0_27, %c1_28, %c0_29] : memref<10x10x16xbf16, #tpu.memory_space<vmem>>, vector<8x8x16xbf16>
    %28 = vector.shape_cast %27 : vector<8x8x16xbf16> to vector<64x16xbf16>
    %c0_30 = arith.constant 0 : index
    %c0_31 = arith.constant 0 : index
    %29 = vector.load %arg8[%c0_30, %c0_31] : memref<64x8xf32, #tpu.memory_space<vmem>>, vector<64x8xf32>
    %c1_32 = arith.constant 1 : index
    %c0_33 = arith.constant 0 : index
    %c0_34 = arith.constant 0 : index
    %30 = vector.load %arg4[%c1_32, %c0_33, %c0_34] : memref<9x16x8xbf16, #tpu.memory_space<vmem>>, vector<1x16x8xbf16>
    %31 = vector.shape_cast %30 : vector<1x16x8xbf16> to vector<16x8xbf16>
    %cst_35 = arith.constant dense<0.000000e+00> : vector<64x8xf32>
    %32 = tpu.matmul %28, %31, %cst_35 {dimension_numbers = #tpu.dot_dimension_numbers<[1], [0], [0], [1], [0, 0, 1, 1], [], []>} : vector<64x16xbf16>, vector<16x8xbf16>, vector<64x8xf32> -> vector<64x8xf32>
    %33 = arith.addf %29, %32 : vector<64x8xf32>
    %c0_36 = arith.constant 0 : index
    %c0_37 = arith.constant 0 : index
    %34 = vector.load %arg8[%c0_36, %c0_37] : memref<64x8xf32, #tpu.memory_space<vmem>>, vector<64x8xf32>
    tpu.vector_store %arg8[%c0_36, %c0_37], %33 {strides = array<i32>} : memref<64x8xf32, #tpu.memory_space<vmem>>, vector<64x8xf32>,
    %c0_38 = arith.constant 0 : index
    %c2 = arith.constant 2 : index
    %c0_39 = arith.constant 0 : index
    %35 = vector.load %arg7[%c0_38, %c2, %c0_39] : memref<10x10x16xbf16, #tpu.memory_space<vmem>>, vector<8x8x16xbf16>
    %36 = vector.shape_cast %35 : vector<8x8x16xbf16> to vector<64x16xbf16>
    %c0_40 = arith.constant 0 : index
    %c0_41 = arith.constant 0 : index
    %37 = vector.load %arg8[%c0_40, %c0_41] : memref<64x8xf32, #tpu.memory_space<vmem>>, vector<64x8xf32>
    %c2_42 = arith.constant 2 : index
    %c0_43 = arith.constant 0 : index
    %c0_44 = arith.constant 0 : index
    %38 = vector.load %arg4[%c2_42, %c0_43, %c0_44] : memref<9x16x8xbf16, #tpu.memory_space<vmem>>, vector<1x16x8xbf16>
    %39 = vector.shape_cast %38 : vector<1x16x8xbf16> to vector<16x8xbf16>
    %cst_45 = arith.constant dense<0.000000e+00> : vector<64x8xf32>
    %40 = tpu.matmul %36, %39, %cst_45 {dimension_numbers = #tpu.dot_dimension_numbers<[1], [0], [0], [1], [0, 0, 1, 1], [], []>} : vector<64x16xbf16>, vector<16x8xbf16>, vector<64x8xf32> -> vector<64x8xf32>
    %41 = arith.addf %37, %40 : vector<64x8xf32>
    %c0_46 = arith.constant 0 : index
    %c0_47 = arith.constant 0 : index
    %42 = vector.load %arg8[%c0_46, %c0_47] : memref<64x8xf32, #tpu.memory_space<vmem>>, vector<64x8xf32>
    tpu.vector_store %arg8[%c0_46, %c0_47], %41 {strides = array<i32>} : memref<64x8xf32, #tpu.memory_space<vmem>>, vector<64x8xf32>,
    %c1_48 = arith.constant 1 : index
    %c0_49 = arith.constant 0 : index
    %c0_50 = arith.constant 0 : index
    %43 = vector.load %arg7[%c1_48, %c0_49, %c0_50] : memref<10x10x16xbf16, #tpu.memory_space<vmem>>, vector<8x8x16xbf16>
    %44 = vector.shape_cast %43 : vector<8x8x16xbf16> to vector<64x16xbf16>
    %c0_51 = arith.constant 0 : index
    %c0_52 = arith.constant 0 : index
    %45 = vector.load %arg8[%c0_51, %c0_52] : memref<64x8xf32, #tpu.memory_space<vmem>>, vector<64x8xf32>
    %c3 = arith.constant 3 : index
    %c0_53 = arith.constant 0 : index
    %c0_54 = arith.constant 0 : index
    %46 = vector.load %arg4[%c3, %c0_53, %c0_54] : memref<9x16x8xbf16, #tpu.memory_space<vmem>>, vector<1x16x8xbf16>
    %47 = vector.shape_cast %46 : vector<1x16x8xbf16> to vector<16x8xbf16>
    %cst_55 = arith.constant dense<0.000000e+00> : vector<64x8xf32>
    %48 = tpu.matmul %44, %47, %cst_55 {dimension_numbers = #tpu.dot_dimension_numbers<[1], [0], [0], [1], [0, 0, 1, 1], [], []>} : vector<64x16xbf16>, vector<16x8xbf16>, vector<64x8xf32> -> vector<64x8xf32>
    %49 = arith.addf %45, %48 : vector<64x8xf32>
    %c0_56 = arith.constant 0 : index
    %c0_57 = arith.constant 0 : index
    %50 = vector.load %arg8[%c0_56, %c0_57] : memref<64x8xf32, #tpu.memory_space<vmem>>, vector<64x8xf32>
    tpu.vector_store %arg8[%c0_56, %c0_57], %49 {strides = array<i32>} : memref<64x8xf32, #tpu.memory_space<vmem>>, vector<64x8xf32>,
    %c1_58 = arith.constant 1 : index
    %c1_59 = arith.constant 1 : index
    %c0_60 = arith.constant 0 : index
    %51 = vector.load %arg7[%c1_58, %c1_59, %c0_60] : memref<10x10x16xbf16, #tpu.memory_space<vmem>>, vector<8x8x16xbf16>
    %52 = vector.shape_cast %51 : vector<8x8x16xbf16> to vector<64x16xbf16>
    %c0_61 = arith.constant 0 : index
    %c0_62 = arith.constant 0 : index
    %53 = vector.load %arg8[%c0_61, %c0_62] : memref<64x8xf32, #tpu.memory_space<vmem>>, vector<64x8xf32>
    %c4 = arith.constant 4 : index
    %c0_63 = arith.constant 0 : index
    %c0_64 = arith.constant 0 : index
    %54 = vector.load %arg4[%c4, %c0_63, %c0_64] : memref<9x16x8xbf16, #tpu.memory_space<vmem>>, vector<1x16x8xbf16>
    %55 = vector.shape_cast %54 : vector<1x16x8xbf16> to vector<16x8xbf16>
    %cst_65 = arith.constant dense<0.000000e+00> : vector<64x8xf32>
    %56 = tpu.matmul %52, %55, %cst_65 {dimension_numbers = #tpu.dot_dimension_numbers<[1], [0], [0], [1], [0, 0, 1, 1], [], []>} : vector<64x16xbf16>, vector<16x8xbf16>, vector<64x8xf32> -> vector<64x8xf32>
    %57 = arith.addf %53, %56 : vector<64x8xf32>
    %c0_66 = arith.constant 0 : index
    %c0_67 = arith.constant 0 : index
    %58 = vector.load %arg8[%c0_66, %c0_67] : memref<64x8xf32, #tpu.memory_space<vmem>>, vector<64x8xf32>
    tpu.vector_store %arg8[%c0_66, %c0_67], %57 {strides = array<i32>} : memref<64x8xf32, #tpu.memory_space<vmem>>, vector<64x8xf32>,
    %c1_68 = arith.constant 1 : index
    %c2_69 = arith.constant 2 : index
    %c0_70 = arith.constant 0 : index
    %59 = vector.load %arg7[%c1_68, %c2_69, %c0_70] : memref<10x10x16xbf16, #tpu.memory_space<vmem>>, vector<8x8x16xbf16>
    %60 = vector.shape_cast %59 : vector<8x8x16xbf16> to vector<64x16xbf16>
    %c0_71 = arith.constant 0 : index
    %c0_72 = arith.constant 0 : index
    %61 = vector.load %arg8[%c0_71, %c0_72] : memref<64x8xf32, #tpu.memory_space<vmem>>, vector<64x8xf32>
    %c5 = arith.constant 5 : index
    %c0_73 = arith.constant 0 : index
    %c0_74 = arith.constant 0 : index
    %62 = vector.load %arg4[%c5, %c0_73, %c0_74] : memref<9x16x8xbf16, #tpu.memory_space<vmem>>, vector<1x16x8xbf16>
    %63 = vector.shape_cast %62 : vector<1x16x8xbf16> to vector<16x8xbf16>
    %cst_75 = arith.constant dense<0.000000e+00> : vector<64x8xf32>
    %64 = tpu.matmul %60, %63, %cst_75 {dimension_numbers = #tpu.dot_dimension_numbers<[1], [0], [0], [1], [0, 0, 1, 1], [], []>} : vector<64x16xbf16>, vector<16x8xbf16>, vector<64x8xf32> -> vector<64x8xf32>
    %65 = arith.addf %61, %64 : vector<64x8xf32>
    %c0_76 = arith.constant 0 : index
    %c0_77 = arith.constant 0 : index
    %66 = vector.load %arg8[%c0_76, %c0_77] : memref<64x8xf32, #tpu.memory_space<vmem>>, vector<64x8xf32>
    tpu.vector_store %arg8[%c0_76, %c0_77], %65 {strides = array<i32>} : memref<64x8xf32, #tpu.memory_space<vmem>>, vector<64x8xf32>,
    %c2_78 = arith.constant 2 : index
    %c0_79 = arith.constant 0 : index
    %c0_80 = arith.constant 0 : index
    %67 = vector.load %arg7[%c2_78, %c0_79, %c0_80] : memref<10x10x16xbf16, #tpu.memory_space<vmem>>, vector<8x8x16xbf16>
    %68 = vector.shape_cast %67 : vector<8x8x16xbf16> to vector<64x16xbf16>
    %c0_81 = arith.constant 0 : index
    %c0_82 = arith.constant 0 : index
    %69 = vector.load %arg8[%c0_81, %c0_82] : memref<64x8xf32, #tpu.memory_space<vmem>>, vector<64x8xf32>
    %c6 = arith.constant 6 : index
    %c0_83 = arith.constant 0 : index
    %c0_84 = arith.constant 0 : index
    %70 = vector.load %arg4[%c6, %c0_83, %c0_84] : memref<9x16x8xbf16, #tpu.memory_space<vmem>>, vector<1x16x8xbf16>
    %71 = vector.shape_cast %70 : vector<1x16x8xbf16> to vector<16x8xbf16>
    %cst_85 = arith.constant dense<0.000000e+00> : vector<64x8xf32>
    %72 = tpu.matmul %68, %71, %cst_85 {dimension_numbers = #tpu.dot_dimension_numbers<[1], [0], [0], [1], [0, 0, 1, 1], [], []>} : vector<64x16xbf16>, vector<16x8xbf16>, vector<64x8xf32> -> vector<64x8xf32>
    %73 = arith.addf %69, %72 : vector<64x8xf32>
    %c0_86 = arith.constant 0 : index
    %c0_87 = arith.constant 0 : index
    %74 = vector.load %arg8[%c0_86, %c0_87] : memref<64x8xf32, #tpu.memory_space<vmem>>, vector<64x8xf32>
    tpu.vector_store %arg8[%c0_86, %c0_87], %73 {strides = array<i32>} : memref<64x8xf32, #tpu.memory_space<vmem>>, vector<64x8xf32>,
    %c2_88 = arith.constant 2 : index
    %c1_89 = arith.constant 1 : index
    %c0_90 = arith.constant 0 : index
    %75 = vector.load %arg7[%c2_88, %c1_89, %c0_90] : memref<10x10x16xbf16, #tpu.memory_space<vmem>>, vector<8x8x16xbf16>
    %76 = vector.shape_cast %75 : vector<8x8x16xbf16> to vector<64x16xbf16>
    %c0_91 = arith.constant 0 : index
    %c0_92 = arith.constant 0 : index
    %77 = vector.load %arg8[%c0_91, %c0_92] : memref<64x8xf32, #tpu.memory_space<vmem>>, vector<64x8xf32>
    %c7 = arith.constant 7 : index
    %c0_93 = arith.constant 0 : index
    %c0_94 = arith.constant 0 : index
    %78 = vector.load %arg4[%c7, %c0_93, %c0_94] : memref<9x16x8xbf16, #tpu.memory_space<vmem>>, vector<1x16x8xbf16>
    %79 = vector.shape_cast %78 : vector<1x16x8xbf16> to vector<16x8xbf16>
    %cst_95 = arith.constant dense<0.000000e+00> : vector<64x8xf32>
    %80 = tpu.matmul %76, %79, %cst_95 {dimension_numbers = #tpu.dot_dimension_numbers<[1], [0], [0], [1], [0, 0, 1, 1], [], []>} : vector<64x16xbf16>, vector<16x8xbf16>, vector<64x8xf32> -> vector<64x8xf32>
    %81 = arith.addf %77, %80 : vector<64x8xf32>
    %c0_96 = arith.constant 0 : index
    %c0_97 = arith.constant 0 : index
    %82 = vector.load %arg8[%c0_96, %c0_97] : memref<64x8xf32, #tpu.memory_space<vmem>>, vector<64x8xf32>
    tpu.vector_store %arg8[%c0_96, %c0_97], %81 {strides = array<i32>} : memref<64x8xf32, #tpu.memory_space<vmem>>, vector<64x8xf32>,
    %c2_98 = arith.constant 2 : index
    %c2_99 = arith.constant 2 : index
    %c0_100 = arith.constant 0 : index
    %83 = vector.load %arg7[%c2_98, %c2_99, %c0_100] : memref<10x10x16xbf16, #tpu.memory_space<vmem>>, vector<8x8x16xbf16>
    %84 = vector.shape_cast %83 : vector<8x8x16xbf16> to vector<64x16xbf16>
    %c0_101 = arith.constant 0 : index
    %c0_102 = arith.constant 0 : index
    %85 = vector.load %arg8[%c0_101, %c0_102] : memref<64x8xf32, #tpu.memory_space<vmem>>, vector<64x8xf32>
    %c8 = arith.constant 8 : index
    %c0_103 = arith.constant 0 : index
    %c0_104 = arith.constant 0 : index
    %86 = vector.load %arg4[%c8, %c0_103, %c0_104] : memref<9x16x8xbf16, #tpu.memory_space<vmem>>, vector<1x16x8xbf16>
    %87 = vector.shape_cast %86 : vector<1x16x8xbf16> to vector<16x8xbf16>
    %cst_105 = arith.constant dense<0.000000e+00> : vector<64x8xf32>
    %88 = tpu.matmul %84, %87, %cst_105 {dimension_numbers = #tpu.dot_dimension_numbers<[1], [0], [0], [1], [0, 0, 1, 1], [], []>} : vector<64x16xbf16>, vector<16x8xbf16>, vector<64x8xf32> -> vector<64x8xf32>
    %89 = arith.addf %85, %88 : vector<64x8xf32>
    %c0_106 = arith.constant 0 : index
    %c0_107 = arith.constant 0 : index
    %90 = vector.load %arg8[%c0_106, %c0_107] : memref<64x8xf32, #tpu.memory_space<vmem>>, vector<64x8xf32>
    tpu.vector_store %arg8[%c0_106, %c0_107], %89 {strides = array<i32>} : memref<64x8xf32, #tpu.memory_space<vmem>>, vector<64x8xf32>,
    %c0_108 = arith.constant 0 : index
    %c0_109 = arith.constant 0 : index
    %91 = vector.load %arg8[%c0_108, %c0_109] : memref<64x8xf32, #tpu.memory_space<vmem>>, vector<64x8xf32>
    %92 = vector.shape_cast %91 : vector<64x8xf32> to vector<1x8x8x8xf32>
    %93 = arith.truncf %92 : vector<1x8x8x8xf32> to vector<1x8x8x8xbf16>
    %c0_110 = arith.constant 0 : index
    %c0_111 = arith.constant 0 : index
    %c0_112 = arith.constant 0 : index
    %c0_113 = arith.constant 0 : index
    %94 = vector.load %arg5[%c0_110, %c0_111, %c0_112, %c0_113] : memref<1x8x8x8xbf16, #tpu.memory_space<vmem>>, vector<1x8x8x8xbf16>
    tpu.vector_store %arg5[%c0_110, %c0_111, %c0_112, %c0_113], %93 {strides = array<i32>} : memref<1x8x8x8xbf16, #tpu.memory_space<vmem>>, vector<1x8x8x8xbf16>,
    %cst_114 = arith.constant dense<0.000000e+00> : vector<8xf32>
    %95 = vector.multi_reduction <add>, %91, %cst_114 [0] : vector<64x8xf32> to vector<8xf32>
    %96 = vector.shape_cast %95 : vector<8xf32> to vector<1x8xf32>
    %97 = vector.shape_cast %96 : vector<1x8xf32> to vector<1x1x8xf32>
    %c0_115 = arith.constant 0 : index
    %c0_116 = arith.constant 0 : index
    %c0_117 = arith.constant 0 : index
    %98 = vector.load %arg6[%c0_115, %c0_116, %c0_117] : memref<1x2x8xf32, #tpu.memory_space<vmem>>, vector<1x1x8xf32>
    tpu.vector_store %arg6[%c0_115, %c0_116, %c0_117], %97 {strides = array<i32>} : memref<1x2x8xf32, #tpu.memory_space<vmem>>, vector<1x1x8xf32>,
    %99 = arith.mulf %91, %91 : vector<64x8xf32>
    %cst_118 = arith.constant dense<0.000000e+00> : vector<8xf32>
    %100 = vector.multi_reduction <add>, %99, %cst_118 [0] : vector<64x8xf32> to vector<8xf32>
    %101 = vector.shape_cast %100 : vector<8xf32> to vector<1x8xf32>
    %102 = vector.shape_cast %101 : vector<1x8xf32> to vector<1x1x8xf32>
    %c0_119 = arith.constant 0 : index
    %c1_120 = arith.constant 1 : index
    %c0_121 = arith.constant 0 : index
    %103 = vector.load %arg6[%c0_119, %c1_120, %c0_121] : memref<1x2x8xf32, #tpu.memory_space<vmem>>, vector<1x1x8xf32>
    tpu.vector_store %arg6[%c0_119, %c1_120, %c0_121], %102 {strides = array<i32>} : memref<1x2x8xf32, #tpu.memory_space<vmem>>, vector<1x1x8xf32>,
    return
  }
  func.func @transform_0(%arg0: i32) -> (i32, i32) {
    %c0_i32 = arith.constant 0 : i32
    %c0_i32_0 = arith.constant 0 : i32
    %c0_i32_1 = arith.constant 0 : i32
    return %c0_i32, %c0_i32_0 : i32, i32
  }
  func.func @transform_1(%arg0: i32) -> (i32, i32) {
    %c0_i32 = arith.constant 0 : i32
    %c0_i32_0 = arith.constant 0 : i32
    %c0_i32_1 = arith.constant 0 : i32
    return %c0_i32, %c0_i32_0 : i32, i32
  }
  func.func @transform_2(%arg0: i32) -> (i32, i32, i32, i32) {
    %c0_i32 = arith.constant 0 : i32
    %c0_i32_0 = arith.constant 0 : i32
    %c0_i32_1 = arith.constant 0 : i32
    %c0_i32_2 = arith.constant 0 : i32
    return %arg0, %c0_i32, %c0_i32_0, %c0_i32_1 : i32, i32, i32, i32
  }
  func.func @transform_3(%arg0: i32) -> (i32, i32, i32) {
    %c0_i32 = arith.constant 0 : i32
    %c0_i32_0 = arith.constant 0 : i32
    %c0_i32_1 = arith.constant 0 : i32
    %c0_i32_2 = arith.constant 0 : i32
    return %c0_i32, %c0_i32_0, %c0_i32_1 : i32, i32, i32
  }
  func.func @transform_4(%arg0: i32) -> (i32, i32, i32, i32) {
    %c0_i32 = arith.constant 0 : i32
    %c0_i32_0 = arith.constant 0 : i32
    %c0_i32_1 = arith.constant 0 : i32
    %c0_i32_2 = arith.constant 0 : i32
    return %arg0, %c0_i32, %c0_i32_0, %c0_i32_1 : i32, i32, i32, i32
  }
  func.func @transform_5(%arg0: i32) -> (i32, i32, i32) {
    %c0_i32 = arith.constant 0 : i32
    %c0_i32_0 = arith.constant 0 : i32
    %c0_i32_1 = arith.constant 0 : i32
    return %arg0, %c0_i32, %c0_i32_0 : i32, i32, i32
  }
}

module attributes {stable_mosaic.version = 11 : i64} {
  func.func @_bn_relu_avgpool_kernel(%arg0: i32, %arg1: memref<1x32xf32, #tpu.memory_space<vmem>>, %arg2: memref<1x32xf32, #tpu.memory_space<vmem>>, %arg3: memref<1x8x8x32xbf16, #tpu.memory_space<vmem>>, %arg4: memref<1x4x4x32xbf16, #tpu.memory_space<vmem>>) attributes {dimension_semantics = [#tpu.dimension_semantics<parallel>], iteration_bounds = array<i64: 2>, scalar_prefetch = 0 : i64, scratch_operands = 0 : i64, tpu.core_type = #tpu.core_type<tc>, window_params = [{pipeline_mode = #tpu.pipeline_mode<synchronous>, transform_indices = @transform_0, window_bounds = array<i64: 1, 32>}, {pipeline_mode = #tpu.pipeline_mode<synchronous>, transform_indices = @transform_1, window_bounds = array<i64: 1, 32>}, {transform_indices = @transform_2, window_bounds = array<i64: 1, 8, 8, 32>}, {transform_indices = @transform_3, window_bounds = array<i64: 1, 4, 4, 32>}]} {
    %c0 = arith.constant 0 : index
    %c0_0 = arith.constant 0 : index
    %c0_1 = arith.constant 0 : index
    %c0_2 = arith.constant 0 : index
    %0 = vector.load %arg3[%c0, %c0_0, %c0_1, %c0_2] : memref<1x8x8x32xbf16, #tpu.memory_space<vmem>>, vector<1x8x8x32xbf16>
    %1 = vector.shape_cast %0 : vector<1x8x8x32xbf16> to vector<8x8x32xbf16>
    %2 = arith.extf %1 : vector<8x8x32xbf16> to vector<8x8x32xf32>
    %c0_3 = arith.constant 0 : index
    %c0_4 = arith.constant 0 : index
    %3 = vector.load %arg1[%c0_3, %c0_4] : memref<1x32xf32, #tpu.memory_space<vmem>>, vector<1x32xf32>
    %4 = vector.shape_cast %3 : vector<1x32xf32> to vector<1x1x32xf32>
    %5 = vector.broadcast %4 : vector<1x1x32xf32> to vector<8x8x32xf32>
    %6 = arith.mulf %2, %5 : vector<8x8x32xf32>
    %c0_5 = arith.constant 0 : index
    %c0_6 = arith.constant 0 : index
    %7 = vector.load %arg2[%c0_5, %c0_6] : memref<1x32xf32, #tpu.memory_space<vmem>>, vector<1x32xf32>
    %8 = vector.shape_cast %7 : vector<1x32xf32> to vector<1x1x32xf32>
    %9 = vector.broadcast %8 : vector<1x1x32xf32> to vector<8x8x32xf32>
    %10 = arith.addf %6, %9 : vector<8x8x32xf32>
    %cst = arith.constant 0.000000e+00 : f32
    %11 = vector.broadcast %cst : f32 to vector<8x8x32xf32>
    %12 = arith.maximumf %10, %11 : vector<8x8x32xf32>
    %13 = vector.shape_cast %12 : vector<8x8x32xf32> to vector<4x2x4x2x32xf32>
    %14 = vector.extract_strided_slice %13 {offsets = [0, 0, 0, 0, 0], sizes = [4, 1, 4, 1, 32], strides = [1, 1, 1, 1, 1]} : vector<4x2x4x2x32xf32> to vector<4x1x4x1x32xf32>
    %15 = vector.shape_cast %14 : vector<4x1x4x1x32xf32> to vector<4x4x32xf32>
    %16 = vector.extract_strided_slice %13 {offsets = [0, 0, 0, 1, 0], sizes = [4, 1, 4, 1, 32], strides = [1, 1, 1, 1, 1]} : vector<4x2x4x2x32xf32> to vector<4x1x4x1x32xf32>
    %17 = vector.shape_cast %16 : vector<4x1x4x1x32xf32> to vector<4x4x32xf32>
    %18 = arith.addf %15, %17 : vector<4x4x32xf32>
    %19 = vector.extract_strided_slice %13 {offsets = [0, 1, 0, 0, 0], sizes = [4, 1, 4, 1, 32], strides = [1, 1, 1, 1, 1]} : vector<4x2x4x2x32xf32> to vector<4x1x4x1x32xf32>
    %20 = vector.shape_cast %19 : vector<4x1x4x1x32xf32> to vector<4x4x32xf32>
    %21 = arith.addf %18, %20 : vector<4x4x32xf32>
    %22 = vector.extract_strided_slice %13 {offsets = [0, 1, 0, 1, 0], sizes = [4, 1, 4, 1, 32], strides = [1, 1, 1, 1, 1]} : vector<4x2x4x2x32xf32> to vector<4x1x4x1x32xf32>
    %23 = vector.shape_cast %22 : vector<4x1x4x1x32xf32> to vector<4x4x32xf32>
    %24 = arith.addf %21, %23 : vector<4x4x32xf32>
    %cst_7 = arith.constant 2.500000e-01 : f32
    %25 = vector.broadcast %cst_7 : f32 to vector<4x4x32xf32>
    %26 = arith.mulf %25, %24 : vector<4x4x32xf32>
    %27 = vector.shape_cast %26 : vector<4x4x32xf32> to vector<1x4x4x32xf32>
    %28 = arith.truncf %27 : vector<1x4x4x32xf32> to vector<1x4x4x32xbf16>
    %c0_8 = arith.constant 0 : index
    %c0_9 = arith.constant 0 : index
    %c0_10 = arith.constant 0 : index
    %c0_11 = arith.constant 0 : index
    %29 = vector.load %arg4[%c0_8, %c0_9, %c0_10, %c0_11] : memref<1x4x4x32xbf16, #tpu.memory_space<vmem>>, vector<1x4x4x32xbf16>
    tpu.vector_store %arg4[%c0_8, %c0_9, %c0_10, %c0_11], %28 {strides = array<i32>} : memref<1x4x4x32xbf16, #tpu.memory_space<vmem>>, vector<1x4x4x32xbf16>,
    return
  }
  func.func @transform_0(%arg0: i32) -> (i32, i32) {
    %c0_i32 = arith.constant 0 : i32
    %c0_i32_0 = arith.constant 0 : i32
    %c0_i32_1 = arith.constant 0 : i32
    return %c0_i32, %c0_i32_0 : i32, i32
  }
  func.func @transform_1(%arg0: i32) -> (i32, i32) {
    %c0_i32 = arith.constant 0 : i32
    %c0_i32_0 = arith.constant 0 : i32
    %c0_i32_1 = arith.constant 0 : i32
    return %c0_i32, %c0_i32_0 : i32, i32
  }
  func.func @transform_2(%arg0: i32) -> (i32, i32, i32, i32) {
    %c0_i32 = arith.constant 0 : i32
    %c0_i32_0 = arith.constant 0 : i32
    %c0_i32_1 = arith.constant 0 : i32
    %c0_i32_2 = arith.constant 0 : i32
    return %arg0, %c0_i32, %c0_i32_0, %c0_i32_1 : i32, i32, i32, i32
  }
  func.func @transform_3(%arg0: i32) -> (i32, i32, i32, i32) {
    %c0_i32 = arith.constant 0 : i32
    %c0_i32_0 = arith.constant 0 : i32
    %c0_i32_1 = arith.constant 0 : i32
    %c0_i32_2 = arith.constant 0 : i32
    return %arg0, %c0_i32, %c0_i32_0, %c0_i32_1 : i32, i32, i32, i32
  }
}

module attributes {stable_mosaic.version = 11 : i64} {
  func.func @_bn_relu_matmul_kernel(%arg0: i32, %arg1: i32, %arg2: memref<1x32xf32, #tpu.memory_space<vmem>>, %arg3: memref<1x32xf32, #tpu.memory_space<vmem>>, %arg4: memref<32x32xbf16, #tpu.memory_space<vmem>>, %arg5: memref<32x16xbf16, #tpu.memory_space<vmem>>, %arg6: memref<32x16xbf16, #tpu.memory_space<vmem>>, %arg7: memref<1x2x16xf32, #tpu.memory_space<vmem>>, %arg8: memref<32x16xf32, #tpu.memory_space<vmem>>) attributes {dimension_semantics = [#tpu.dimension_semantics<parallel>, #tpu.dimension_semantics<arbitrary>], iteration_bounds = array<i64: 1, 1>, scalar_prefetch = 0 : i64, scratch_operands = 1 : i64, tpu.core_type = #tpu.core_type<tc>, window_params = [{transform_indices = @transform_0, window_bounds = array<i64: 1, 32>}, {transform_indices = @transform_1, window_bounds = array<i64: 1, 32>}, {transform_indices = @transform_2, window_bounds = array<i64: 32, 32>}, {transform_indices = @transform_3, window_bounds = array<i64: 32, 16>}, {transform_indices = @transform_4, window_bounds = array<i64: 32, 16>}, {transform_indices = @transform_5, window_bounds = array<i64: 1, 2, 16>}]} {
    %c0_i32 = arith.constant 0 : i32
    %0 = arith.cmpi eq, %arg1, %c0_i32 : i32
    %1 = arith.extui %0 : i1 to i32
    %c0_i32_0 = arith.constant 0 : i32
    %2 = arith.cmpi ne, %1, %c0_i32_0 : i32
    scf.if %2 {
      %cst_15 = arith.constant 0.000000e+00 : f32
      %22 = vector.broadcast %cst_15 : f32 to vector<32x16xf32>
      %c0_16 = arith.constant 0 : index
      %c0_17 = arith.constant 0 : index
      %23 = vector.load %arg8[%c0_16, %c0_17] : memref<32x16xf32, #tpu.memory_space<vmem>>, vector<32x16xf32>
      tpu.vector_store %arg8[%c0_16, %c0_17], %22 {strides = array<i32>} : memref<32x16xf32, #tpu.memory_space<vmem>>, vector<32x16xf32>,
    } else {
    }
    %c0 = arith.constant 0 : index
    %c0_1 = arith.constant 0 : index
    %3 = vector.load %arg4[%c0, %c0_1] : memref<32x32xbf16, #tpu.memory_space<vmem>>, vector<32x32xbf16>
    %4 = arith.extf %3 : vector<32x32xbf16> to vector<32x32xf32>
    %c0_2 = arith.constant 0 : index
    %c0_3 = arith.constant 0 : index
    %5 = vector.load %arg2[%c0_2, %c0_3] : memref<1x32xf32, #tpu.memory_space<vmem>>, vector<1x32xf32>
    %6 = vector.broadcast %5 : vector<1x32xf32> to vector<32x32xf32>
    %7 = arith.mulf %4, %6 : vector<32x32xf32>
    %c0_4 = arith.constant 0 : index
    %c0_5 = arith.constant 0 : index
    %8 = vector.load %arg3[%c0_4, %c0_5] : memref<1x32xf32, #tpu.memory_space<vmem>>, vector<1x32xf32>
    %9 = vector.broadcast %8 : vector<1x32xf32> to vector<32x32xf32>
    %10 = arith.addf %7, %9 : vector<32x32xf32>
    %cst = arith.constant 0.000000e+00 : f32
    %11 = vector.broadcast %cst : f32 to vector<32x32xf32>
    %12 = arith.maximumf %10, %11 : vector<32x32xf32>
    %c0_6 = arith.constant 0 : index
    %c0_7 = arith.constant 0 : index
    %13 = vector.load %arg8[%c0_6, %c0_7] : memref<32x16xf32, #tpu.memory_space<vmem>>, vector<32x16xf32>
    %14 = arith.truncf %12 : vector<32x32xf32> to vector<32x32xbf16>
    %c0_8 = arith.constant 0 : index
    %c0_9 = arith.constant 0 : index
    %15 = vector.load %arg5[%c0_8, %c0_9] : memref<32x16xbf16, #tpu.memory_space<vmem>>, vector<32x16xbf16>
    %cst_10 = arith.constant dense<0.000000e+00> : vector<32x16xf32>
    %16 = tpu.matmul %14, %15, %cst_10 {dimension_numbers = #tpu.dot_dimension_numbers<[1], [0], [0], [1], [0, 0, 1, 1], [], []>} : vector<32x32xbf16>, vector<32x16xbf16>, vector<32x16xf32> -> vector<32x16xf32>
    %17 = arith.addf %13, %16 : vector<32x16xf32>
    %c0_11 = arith.constant 0 : index
    %c0_12 = arith.constant 0 : index
    %18 = vector.load %arg8[%c0_11, %c0_12] : memref<32x16xf32, #tpu.memory_space<vmem>>, vector<32x16xf32>
    tpu.vector_store %arg8[%c0_11, %c0_12], %17 {strides = array<i32>} : memref<32x16xf32, #tpu.memory_space<vmem>>, vector<32x16xf32>,
    %c0_i32_13 = arith.constant 0 : i32
    %19 = arith.cmpi eq, %arg1, %c0_i32_13 : i32
    %20 = arith.extui %19 : i1 to i32
    %c0_i32_14 = arith.constant 0 : i32
    %21 = arith.cmpi ne, %20, %c0_i32_14 : i32
    scf.if %21 {
      %c0_15 = arith.constant 0 : index
      %c0_16 = arith.constant 0 : index
      %22 = vector.load %arg8[%c0_15, %c0_16] : memref<32x16xf32, #tpu.memory_space<vmem>>, vector<32x16xf32>
      %23 = arith.truncf %22 : vector<32x16xf32> to vector<32x16xbf16>
      %c0_17 = arith.constant 0 : index
      %c0_18 = arith.constant 0 : index
      %24 = vector.load %arg6[%c0_17, %c0_18] : memref<32x16xbf16, #tpu.memory_space<vmem>>, vector<32x16xbf16>
      tpu.vector_store %arg6[%c0_17, %c0_18], %23 {strides = array<i32>} : memref<32x16xbf16, #tpu.memory_space<vmem>>, vector<32x16xbf16>,
      %cst_19 = arith.constant dense<0.000000e+00> : vector<16xf32>
      %25 = vector.multi_reduction <add>, %22, %cst_19 [0] : vector<32x16xf32> to vector<16xf32>
      %26 = vector.shape_cast %25 : vector<16xf32> to vector<1x16xf32>
      %27 = vector.shape_cast %26 : vector<1x16xf32> to vector<1x1x16xf32>
      %c0_20 = arith.constant 0 : index
      %c0_21 = arith.constant 0 : index
      %c0_22 = arith.constant 0 : index
      %28 = vector.load %arg7[%c0_20, %c0_21, %c0_22] : memref<1x2x16xf32, #tpu.memory_space<vmem>>, vector<1x1x16xf32>
      tpu.vector_store %arg7[%c0_20, %c0_21, %c0_22], %27 {strides = array<i32>} : memref<1x2x16xf32, #tpu.memory_space<vmem>>, vector<1x1x16xf32>,
      %29 = arith.mulf %22, %22 : vector<32x16xf32>
      %cst_23 = arith.constant dense<0.000000e+00> : vector<16xf32>
      %30 = vector.multi_reduction <add>, %29, %cst_23 [0] : vector<32x16xf32> to vector<16xf32>
      %31 = vector.shape_cast %30 : vector<16xf32> to vector<1x16xf32>
      %32 = vector.shape_cast %31 : vector<1x16xf32> to vector<1x1x16xf32>
      %c0_24 = arith.constant 0 : index
      %c1 = arith.constant 1 : index
      %c0_25 = arith.constant 0 : index
      %33 = vector.load %arg7[%c0_24, %c1, %c0_25] : memref<1x2x16xf32, #tpu.memory_space<vmem>>, vector<1x1x16xf32>
      tpu.vector_store %arg7[%c0_24, %c1, %c0_25], %32 {strides = array<i32>} : memref<1x2x16xf32, #tpu.memory_space<vmem>>, vector<1x1x16xf32>,
    } else {
    }
    return
  }
  func.func @transform_0(%arg0: i32, %arg1: i32) -> (i32, i32) {
    %c0_i32 = arith.constant 0 : i32
    %c0_i32_0 = arith.constant 0 : i32
    return %c0_i32, %arg1 : i32, i32
  }
  func.func @transform_1(%arg0: i32, %arg1: i32) -> (i32, i32) {
    %c0_i32 = arith.constant 0 : i32
    %c0_i32_0 = arith.constant 0 : i32
    return %c0_i32, %arg1 : i32, i32
  }
  func.func @transform_2(%arg0: i32, %arg1: i32) -> (i32, i32) {
    %c0_i32 = arith.constant 0 : i32
    return %arg0, %arg1 : i32, i32
  }
  func.func @transform_3(%arg0: i32, %arg1: i32) -> (i32, i32) {
    %c0_i32 = arith.constant 0 : i32
    %c0_i32_0 = arith.constant 0 : i32
    return %arg1, %c0_i32 : i32, i32
  }
  func.func @transform_4(%arg0: i32, %arg1: i32) -> (i32, i32) {
    %c0_i32 = arith.constant 0 : i32
    %c0_i32_0 = arith.constant 0 : i32
    return %arg0, %c0_i32 : i32, i32
  }
  func.func @transform_5(%arg0: i32, %arg1: i32) -> (i32, i32, i32) {
    %c0_i32 = arith.constant 0 : i32
    %c0_i32_0 = arith.constant 0 : i32
    %c0_i32_1 = arith.constant 0 : i32
    return %arg0, %c0_i32, %c0_i32_0 : i32, i32, i32
  }
}

module attributes {stable_mosaic.version = 11 : i64} {
  func.func @_bn_relu_conv3x3_kernel(%arg0: i32, %arg1: memref<1x16xf32, #tpu.memory_space<vmem>>, %arg2: memref<1x16xf32, #tpu.memory_space<vmem>>, %arg3: memref<1x4x4x16xbf16, #tpu.memory_space<vmem>>, %arg4: memref<9x16x8xbf16, #tpu.memory_space<vmem>>, %arg5: memref<1x4x4x8xbf16, #tpu.memory_space<vmem>>, %arg6: memref<1x2x8xf32, #tpu.memory_space<vmem>>, %arg7: memref<6x6x16xbf16, #tpu.memory_space<vmem>>, %arg8: memref<16x8xf32, #tpu.memory_space<vmem>>) attributes {dimension_semantics = [#tpu.dimension_semantics<parallel>], iteration_bounds = array<i64: 2>, scalar_prefetch = 0 : i64, scratch_operands = 2 : i64, tpu.core_type = #tpu.core_type<tc>, window_params = [{pipeline_mode = #tpu.pipeline_mode<synchronous>, transform_indices = @transform_0, window_bounds = array<i64: 1, 16>}, {pipeline_mode = #tpu.pipeline_mode<synchronous>, transform_indices = @transform_1, window_bounds = array<i64: 1, 16>}, {transform_indices = @transform_2, window_bounds = array<i64: 1, 4, 4, 16>}, {pipeline_mode = #tpu.pipeline_mode<synchronous>, transform_indices = @transform_3, window_bounds = array<i64: 9, 16, 8>}, {transform_indices = @transform_4, window_bounds = array<i64: 1, 4, 4, 8>}, {transform_indices = @transform_5, window_bounds = array<i64: 1, 2, 8>}]} {
    %cst = arith.constant 0.000000e+00 : bf16
    %0 = vector.broadcast %cst : bf16 to vector<6x6x16xbf16>
    %c0 = arith.constant 0 : index
    %c0_0 = arith.constant 0 : index
    %c0_1 = arith.constant 0 : index
    %1 = vector.load %arg7[%c0, %c0_0, %c0_1] : memref<6x6x16xbf16, #tpu.memory_space<vmem>>, vector<6x6x16xbf16>
    tpu.vector_store %arg7[%c0, %c0_0, %c0_1], %0 {strides = array<i32>} : memref<6x6x16xbf16, #tpu.memory_space<vmem>>, vector<6x6x16xbf16>,
    %c0_2 = arith.constant 0 : index
    %c0_3 = arith.constant 0 : index
    %c0_4 = arith.constant 0 : index
    %c0_5 = arith.constant 0 : index
    %2 = vector.load %arg3[%c0_2, %c0_3, %c0_4, %c0_5] : memref<1x4x4x16xbf16, #tpu.memory_space<vmem>>, vector<1x4x4x16xbf16>
    %3 = vector.shape_cast %2 : vector<1x4x4x16xbf16> to vector<4x4x16xbf16>
    %4 = arith.extf %3 : vector<4x4x16xbf16> to vector<4x4x16xf32>
    %c0_6 = arith.constant 0 : index
    %c0_7 = arith.constant 0 : index
    %5 = vector.load %arg1[%c0_6, %c0_7] : memref<1x16xf32, #tpu.memory_space<vmem>>, vector<1x16xf32>
    %6 = vector.shape_cast %5 : vector<1x16xf32> to vector<1x1x16xf32>
    %7 = vector.broadcast %6 : vector<1x1x16xf32> to vector<4x4x16xf32>
    %8 = arith.mulf %4, %7 : vector<4x4x16xf32>
    %c0_8 = arith.constant 0 : index
    %c0_9 = arith.constant 0 : index
    %9 = vector.load %arg2[%c0_8, %c0_9] : memref<1x16xf32, #tpu.memory_space<vmem>>, vector<1x16xf32>
    %10 = vector.shape_cast %9 : vector<1x16xf32> to vector<1x1x16xf32>
    %11 = vector.broadcast %10 : vector<1x1x16xf32> to vector<4x4x16xf32>
    %12 = arith.addf %8, %11 : vector<4x4x16xf32>
    %cst_10 = arith.constant 0.000000e+00 : f32
    %13 = vector.broadcast %cst_10 : f32 to vector<4x4x16xf32>
    %14 = arith.maximumf %12, %13 : vector<4x4x16xf32>
    %15 = arith.truncf %14 : vector<4x4x16xf32> to vector<4x4x16xbf16>
    %c1 = arith.constant 1 : index
    %c1_11 = arith.constant 1 : index
    %c0_12 = arith.constant 0 : index
    %16 = vector.load %arg7[%c1, %c1_11, %c0_12] : memref<6x6x16xbf16, #tpu.memory_space<vmem>>, vector<4x4x16xbf16>
    tpu.vector_store %arg7[%c1, %c1_11, %c0_12], %15 {strides = array<i32>} : memref<6x6x16xbf16, #tpu.memory_space<vmem>>, vector<4x4x16xbf16>,
    %cst_13 = arith.constant 0.000000e+00 : f32
    %17 = vector.broadcast %cst_13 : f32 to vector<16x8xf32>
    %c0_14 = arith.constant 0 : index
    %c0_15 = arith.constant 0 : index
    %18 = vector.load %arg8[%c0_14, %c0_15] : memref<16x8xf32, #tpu.memory_space<vmem>>, vector<16x8xf32>
    tpu.vector_store %arg8[%c0_14, %c0_15], %17 {strides = array<i32>} : memref<16x8xf32, #tpu.memory_space<vmem>>, vector<16x8xf32>,
    %c0_16 = arith.constant 0 : index
    %c0_17 = arith.constant 0 : index
    %c0_18 = arith.constant 0 : index
    %19 = vector.load %arg7[%c0_16, %c0_17, %c0_18] : memref<6x6x16xbf16, #tpu.memory_space<vmem>>, vector<4x4x16xbf16>
    %20 = vector.shape_cast %19 : vector<4x4x16xbf16> to vector<16x16xbf16>
    %c0_19 = arith.constant 0 : index
    %c0_20 = arith.constant 0 : index
    %21 = vector.load %arg8[%c0_19, %c0_20] : memref<16x8xf32, #tpu.memory_space<vmem>>, vector<16x8xf32>
    %c0_21 = arith.constant 0 : index
    %c0_22 = arith.constant 0 : index
    %c0_23 = arith.constant 0 : index
    %22 = vector.load %arg4[%c0_21, %c0_22, %c0_23] : memref<9x16x8xbf16, #tpu.memory_space<vmem>>, vector<1x16x8xbf16>
    %23 = vector.shape_cast %22 : vector<1x16x8xbf16> to vector<16x8xbf16>
    %cst_24 = arith.constant dense<0.000000e+00> : vector<16x8xf32>
    %24 = tpu.matmul %20, %23, %cst_24 {dimension_numbers = #tpu.dot_dimension_numbers<[1], [0], [0], [1], [0, 0, 1, 1], [], []>} : vector<16x16xbf16>, vector<16x8xbf16>, vector<16x8xf32> -> vector<16x8xf32>
    %25 = arith.addf %21, %24 : vector<16x8xf32>
    %c0_25 = arith.constant 0 : index
    %c0_26 = arith.constant 0 : index
    %26 = vector.load %arg8[%c0_25, %c0_26] : memref<16x8xf32, #tpu.memory_space<vmem>>, vector<16x8xf32>
    tpu.vector_store %arg8[%c0_25, %c0_26], %25 {strides = array<i32>} : memref<16x8xf32, #tpu.memory_space<vmem>>, vector<16x8xf32>,
    %c0_27 = arith.constant 0 : index
    %c1_28 = arith.constant 1 : index
    %c0_29 = arith.constant 0 : index
    %27 = vector.load %arg7[%c0_27, %c1_28, %c0_29] : memref<6x6x16xbf16, #tpu.memory_space<vmem>>, vector<4x4x16xbf16>
    %28 = vector.shape_cast %27 : vector<4x4x16xbf16> to vector<16x16xbf16>
    %c0_30 = arith.constant 0 : index
    %c0_31 = arith.constant 0 : index
    %29 = vector.load %arg8[%c0_30, %c0_31] : memref<16x8xf32, #tpu.memory_space<vmem>>, vector<16x8xf32>
    %c1_32 = arith.constant 1 : index
    %c0_33 = arith.constant 0 : index
    %c0_34 = arith.constant 0 : index
    %30 = vector.load %arg4[%c1_32, %c0_33, %c0_34] : memref<9x16x8xbf16, #tpu.memory_space<vmem>>, vector<1x16x8xbf16>
    %31 = vector.shape_cast %30 : vector<1x16x8xbf16> to vector<16x8xbf16>
    %cst_35 = arith.constant dense<0.000000e+00> : vector<16x8xf32>
    %32 = tpu.matmul %28, %31, %cst_35 {dimension_numbers = #tpu.dot_dimension_numbers<[1], [0], [0], [1], [0, 0, 1, 1], [], []>} : vector<16x16xbf16>, vector<16x8xbf16>, vector<16x8xf32> -> vector<16x8xf32>
    %33 = arith.addf %29, %32 : vector<16x8xf32>
    %c0_36 = arith.constant 0 : index
    %c0_37 = arith.constant 0 : index
    %34 = vector.load %arg8[%c0_36, %c0_37] : memref<16x8xf32, #tpu.memory_space<vmem>>, vector<16x8xf32>
    tpu.vector_store %arg8[%c0_36, %c0_37], %33 {strides = array<i32>} : memref<16x8xf32, #tpu.memory_space<vmem>>, vector<16x8xf32>,
    %c0_38 = arith.constant 0 : index
    %c2 = arith.constant 2 : index
    %c0_39 = arith.constant 0 : index
    %35 = vector.load %arg7[%c0_38, %c2, %c0_39] : memref<6x6x16xbf16, #tpu.memory_space<vmem>>, vector<4x4x16xbf16>
    %36 = vector.shape_cast %35 : vector<4x4x16xbf16> to vector<16x16xbf16>
    %c0_40 = arith.constant 0 : index
    %c0_41 = arith.constant 0 : index
    %37 = vector.load %arg8[%c0_40, %c0_41] : memref<16x8xf32, #tpu.memory_space<vmem>>, vector<16x8xf32>
    %c2_42 = arith.constant 2 : index
    %c0_43 = arith.constant 0 : index
    %c0_44 = arith.constant 0 : index
    %38 = vector.load %arg4[%c2_42, %c0_43, %c0_44] : memref<9x16x8xbf16, #tpu.memory_space<vmem>>, vector<1x16x8xbf16>
    %39 = vector.shape_cast %38 : vector<1x16x8xbf16> to vector<16x8xbf16>
    %cst_45 = arith.constant dense<0.000000e+00> : vector<16x8xf32>
    %40 = tpu.matmul %36, %39, %cst_45 {dimension_numbers = #tpu.dot_dimension_numbers<[1], [0], [0], [1], [0, 0, 1, 1], [], []>} : vector<16x16xbf16>, vector<16x8xbf16>, vector<16x8xf32> -> vector<16x8xf32>
    %41 = arith.addf %37, %40 : vector<16x8xf32>
    %c0_46 = arith.constant 0 : index
    %c0_47 = arith.constant 0 : index
    %42 = vector.load %arg8[%c0_46, %c0_47] : memref<16x8xf32, #tpu.memory_space<vmem>>, vector<16x8xf32>
    tpu.vector_store %arg8[%c0_46, %c0_47], %41 {strides = array<i32>} : memref<16x8xf32, #tpu.memory_space<vmem>>, vector<16x8xf32>,
    %c1_48 = arith.constant 1 : index
    %c0_49 = arith.constant 0 : index
    %c0_50 = arith.constant 0 : index
    %43 = vector.load %arg7[%c1_48, %c0_49, %c0_50] : memref<6x6x16xbf16, #tpu.memory_space<vmem>>, vector<4x4x16xbf16>
    %44 = vector.shape_cast %43 : vector<4x4x16xbf16> to vector<16x16xbf16>
    %c0_51 = arith.constant 0 : index
    %c0_52 = arith.constant 0 : index
    %45 = vector.load %arg8[%c0_51, %c0_52] : memref<16x8xf32, #tpu.memory_space<vmem>>, vector<16x8xf32>
    %c3 = arith.constant 3 : index
    %c0_53 = arith.constant 0 : index
    %c0_54 = arith.constant 0 : index
    %46 = vector.load %arg4[%c3, %c0_53, %c0_54] : memref<9x16x8xbf16, #tpu.memory_space<vmem>>, vector<1x16x8xbf16>
    %47 = vector.shape_cast %46 : vector<1x16x8xbf16> to vector<16x8xbf16>
    %cst_55 = arith.constant dense<0.000000e+00> : vector<16x8xf32>
    %48 = tpu.matmul %44, %47, %cst_55 {dimension_numbers = #tpu.dot_dimension_numbers<[1], [0], [0], [1], [0, 0, 1, 1], [], []>} : vector<16x16xbf16>, vector<16x8xbf16>, vector<16x8xf32> -> vector<16x8xf32>
    %49 = arith.addf %45, %48 : vector<16x8xf32>
    %c0_56 = arith.constant 0 : index
    %c0_57 = arith.constant 0 : index
    %50 = vector.load %arg8[%c0_56, %c0_57] : memref<16x8xf32, #tpu.memory_space<vmem>>, vector<16x8xf32>
    tpu.vector_store %arg8[%c0_56, %c0_57], %49 {strides = array<i32>} : memref<16x8xf32, #tpu.memory_space<vmem>>, vector<16x8xf32>,
    %c1_58 = arith.constant 1 : index
    %c1_59 = arith.constant 1 : index
    %c0_60 = arith.constant 0 : index
    %51 = vector.load %arg7[%c1_58, %c1_59, %c0_60] : memref<6x6x16xbf16, #tpu.memory_space<vmem>>, vector<4x4x16xbf16>
    %52 = vector.shape_cast %51 : vector<4x4x16xbf16> to vector<16x16xbf16>
    %c0_61 = arith.constant 0 : index
    %c0_62 = arith.constant 0 : index
    %53 = vector.load %arg8[%c0_61, %c0_62] : memref<16x8xf32, #tpu.memory_space<vmem>>, vector<16x8xf32>
    %c4 = arith.constant 4 : index
    %c0_63 = arith.constant 0 : index
    %c0_64 = arith.constant 0 : index
    %54 = vector.load %arg4[%c4, %c0_63, %c0_64] : memref<9x16x8xbf16, #tpu.memory_space<vmem>>, vector<1x16x8xbf16>
    %55 = vector.shape_cast %54 : vector<1x16x8xbf16> to vector<16x8xbf16>
    %cst_65 = arith.constant dense<0.000000e+00> : vector<16x8xf32>
    %56 = tpu.matmul %52, %55, %cst_65 {dimension_numbers = #tpu.dot_dimension_numbers<[1], [0], [0], [1], [0, 0, 1, 1], [], []>} : vector<16x16xbf16>, vector<16x8xbf16>, vector<16x8xf32> -> vector<16x8xf32>
    %57 = arith.addf %53, %56 : vector<16x8xf32>
    %c0_66 = arith.constant 0 : index
    %c0_67 = arith.constant 0 : index
    %58 = vector.load %arg8[%c0_66, %c0_67] : memref<16x8xf32, #tpu.memory_space<vmem>>, vector<16x8xf32>
    tpu.vector_store %arg8[%c0_66, %c0_67], %57 {strides = array<i32>} : memref<16x8xf32, #tpu.memory_space<vmem>>, vector<16x8xf32>,
    %c1_68 = arith.constant 1 : index
    %c2_69 = arith.constant 2 : index
    %c0_70 = arith.constant 0 : index
    %59 = vector.load %arg7[%c1_68, %c2_69, %c0_70] : memref<6x6x16xbf16, #tpu.memory_space<vmem>>, vector<4x4x16xbf16>
    %60 = vector.shape_cast %59 : vector<4x4x16xbf16> to vector<16x16xbf16>
    %c0_71 = arith.constant 0 : index
    %c0_72 = arith.constant 0 : index
    %61 = vector.load %arg8[%c0_71, %c0_72] : memref<16x8xf32, #tpu.memory_space<vmem>>, vector<16x8xf32>
    %c5 = arith.constant 5 : index
    %c0_73 = arith.constant 0 : index
    %c0_74 = arith.constant 0 : index
    %62 = vector.load %arg4[%c5, %c0_73, %c0_74] : memref<9x16x8xbf16, #tpu.memory_space<vmem>>, vector<1x16x8xbf16>
    %63 = vector.shape_cast %62 : vector<1x16x8xbf16> to vector<16x8xbf16>
    %cst_75 = arith.constant dense<0.000000e+00> : vector<16x8xf32>
    %64 = tpu.matmul %60, %63, %cst_75 {dimension_numbers = #tpu.dot_dimension_numbers<[1], [0], [0], [1], [0, 0, 1, 1], [], []>} : vector<16x16xbf16>, vector<16x8xbf16>, vector<16x8xf32> -> vector<16x8xf32>
    %65 = arith.addf %61, %64 : vector<16x8xf32>
    %c0_76 = arith.constant 0 : index
    %c0_77 = arith.constant 0 : index
    %66 = vector.load %arg8[%c0_76, %c0_77] : memref<16x8xf32, #tpu.memory_space<vmem>>, vector<16x8xf32>
    tpu.vector_store %arg8[%c0_76, %c0_77], %65 {strides = array<i32>} : memref<16x8xf32, #tpu.memory_space<vmem>>, vector<16x8xf32>,
    %c2_78 = arith.constant 2 : index
    %c0_79 = arith.constant 0 : index
    %c0_80 = arith.constant 0 : index
    %67 = vector.load %arg7[%c2_78, %c0_79, %c0_80] : memref<6x6x16xbf16, #tpu.memory_space<vmem>>, vector<4x4x16xbf16>
    %68 = vector.shape_cast %67 : vector<4x4x16xbf16> to vector<16x16xbf16>
    %c0_81 = arith.constant 0 : index
    %c0_82 = arith.constant 0 : index
    %69 = vector.load %arg8[%c0_81, %c0_82] : memref<16x8xf32, #tpu.memory_space<vmem>>, vector<16x8xf32>
    %c6 = arith.constant 6 : index
    %c0_83 = arith.constant 0 : index
    %c0_84 = arith.constant 0 : index
    %70 = vector.load %arg4[%c6, %c0_83, %c0_84] : memref<9x16x8xbf16, #tpu.memory_space<vmem>>, vector<1x16x8xbf16>
    %71 = vector.shape_cast %70 : vector<1x16x8xbf16> to vector<16x8xbf16>
    %cst_85 = arith.constant dense<0.000000e+00> : vector<16x8xf32>
    %72 = tpu.matmul %68, %71, %cst_85 {dimension_numbers = #tpu.dot_dimension_numbers<[1], [0], [0], [1], [0, 0, 1, 1], [], []>} : vector<16x16xbf16>, vector<16x8xbf16>, vector<16x8xf32> -> vector<16x8xf32>
    %73 = arith.addf %69, %72 : vector<16x8xf32>
    %c0_86 = arith.constant 0 : index
    %c0_87 = arith.constant 0 : index
    %74 = vector.load %arg8[%c0_86, %c0_87] : memref<16x8xf32, #tpu.memory_space<vmem>>, vector<16x8xf32>
    tpu.vector_store %arg8[%c0_86, %c0_87], %73 {strides = array<i32>} : memref<16x8xf32, #tpu.memory_space<vmem>>, vector<16x8xf32>,
    %c2_88 = arith.constant 2 : index
    %c1_89 = arith.constant 1 : index
    %c0_90 = arith.constant 0 : index
    %75 = vector.load %arg7[%c2_88, %c1_89, %c0_90] : memref<6x6x16xbf16, #tpu.memory_space<vmem>>, vector<4x4x16xbf16>
    %76 = vector.shape_cast %75 : vector<4x4x16xbf16> to vector<16x16xbf16>
    %c0_91 = arith.constant 0 : index
    %c0_92 = arith.constant 0 : index
    %77 = vector.load %arg8[%c0_91, %c0_92] : memref<16x8xf32, #tpu.memory_space<vmem>>, vector<16x8xf32>
    %c7 = arith.constant 7 : index
    %c0_93 = arith.constant 0 : index
    %c0_94 = arith.constant 0 : index
    %78 = vector.load %arg4[%c7, %c0_93, %c0_94] : memref<9x16x8xbf16, #tpu.memory_space<vmem>>, vector<1x16x8xbf16>
    %79 = vector.shape_cast %78 : vector<1x16x8xbf16> to vector<16x8xbf16>
    %cst_95 = arith.constant dense<0.000000e+00> : vector<16x8xf32>
    %80 = tpu.matmul %76, %79, %cst_95 {dimension_numbers = #tpu.dot_dimension_numbers<[1], [0], [0], [1], [0, 0, 1, 1], [], []>} : vector<16x16xbf16>, vector<16x8xbf16>, vector<16x8xf32> -> vector<16x8xf32>
    %81 = arith.addf %77, %80 : vector<16x8xf32>
    %c0_96 = arith.constant 0 : index
    %c0_97 = arith.constant 0 : index
    %82 = vector.load %arg8[%c0_96, %c0_97] : memref<16x8xf32, #tpu.memory_space<vmem>>, vector<16x8xf32>
    tpu.vector_store %arg8[%c0_96, %c0_97], %81 {strides = array<i32>} : memref<16x8xf32, #tpu.memory_space<vmem>>, vector<16x8xf32>,
    %c2_98 = arith.constant 2 : index
    %c2_99 = arith.constant 2 : index
    %c0_100 = arith.constant 0 : index
    %83 = vector.load %arg7[%c2_98, %c2_99, %c0_100] : memref<6x6x16xbf16, #tpu.memory_space<vmem>>, vector<4x4x16xbf16>
    %84 = vector.shape_cast %83 : vector<4x4x16xbf16> to vector<16x16xbf16>
    %c0_101 = arith.constant 0 : index
    %c0_102 = arith.constant 0 : index
    %85 = vector.load %arg8[%c0_101, %c0_102] : memref<16x8xf32, #tpu.memory_space<vmem>>, vector<16x8xf32>
    %c8 = arith.constant 8 : index
    %c0_103 = arith.constant 0 : index
    %c0_104 = arith.constant 0 : index
    %86 = vector.load %arg4[%c8, %c0_103, %c0_104] : memref<9x16x8xbf16, #tpu.memory_space<vmem>>, vector<1x16x8xbf16>
    %87 = vector.shape_cast %86 : vector<1x16x8xbf16> to vector<16x8xbf16>
    %cst_105 = arith.constant dense<0.000000e+00> : vector<16x8xf32>
    %88 = tpu.matmul %84, %87, %cst_105 {dimension_numbers = #tpu.dot_dimension_numbers<[1], [0], [0], [1], [0, 0, 1, 1], [], []>} : vector<16x16xbf16>, vector<16x8xbf16>, vector<16x8xf32> -> vector<16x8xf32>
    %89 = arith.addf %85, %88 : vector<16x8xf32>
    %c0_106 = arith.constant 0 : index
    %c0_107 = arith.constant 0 : index
    %90 = vector.load %arg8[%c0_106, %c0_107] : memref<16x8xf32, #tpu.memory_space<vmem>>, vector<16x8xf32>
    tpu.vector_store %arg8[%c0_106, %c0_107], %89 {strides = array<i32>} : memref<16x8xf32, #tpu.memory_space<vmem>>, vector<16x8xf32>,
    %c0_108 = arith.constant 0 : index
    %c0_109 = arith.constant 0 : index
    %91 = vector.load %arg8[%c0_108, %c0_109] : memref<16x8xf32, #tpu.memory_space<vmem>>, vector<16x8xf32>
    %92 = vector.shape_cast %91 : vector<16x8xf32> to vector<1x4x4x8xf32>
    %93 = arith.truncf %92 : vector<1x4x4x8xf32> to vector<1x4x4x8xbf16>
    %c0_110 = arith.constant 0 : index
    %c0_111 = arith.constant 0 : index
    %c0_112 = arith.constant 0 : index
    %c0_113 = arith.constant 0 : index
    %94 = vector.load %arg5[%c0_110, %c0_111, %c0_112, %c0_113] : memref<1x4x4x8xbf16, #tpu.memory_space<vmem>>, vector<1x4x4x8xbf16>
    tpu.vector_store %arg5[%c0_110, %c0_111, %c0_112, %c0_113], %93 {strides = array<i32>} : memref<1x4x4x8xbf16, #tpu.memory_space<vmem>>, vector<1x4x4x8xbf16>,
    %cst_114 = arith.constant dense<0.000000e+00> : vector<8xf32>
    %95 = vector.multi_reduction <add>, %91, %cst_114 [0] : vector<16x8xf32> to vector<8xf32>
    %96 = vector.shape_cast %95 : vector<8xf32> to vector<1x8xf32>
    %97 = vector.shape_cast %96 : vector<1x8xf32> to vector<1x1x8xf32>
    %c0_115 = arith.constant 0 : index
    %c0_116 = arith.constant 0 : index
    %c0_117 = arith.constant 0 : index
    %98 = vector.load %arg6[%c0_115, %c0_116, %c0_117] : memref<1x2x8xf32, #tpu.memory_space<vmem>>, vector<1x1x8xf32>
    tpu.vector_store %arg6[%c0_115, %c0_116, %c0_117], %97 {strides = array<i32>} : memref<1x2x8xf32, #tpu.memory_space<vmem>>, vector<1x1x8xf32>,
    %99 = arith.mulf %91, %91 : vector<16x8xf32>
    %cst_118 = arith.constant dense<0.000000e+00> : vector<8xf32>
    %100 = vector.multi_reduction <add>, %99, %cst_118 [0] : vector<16x8xf32> to vector<8xf32>
    %101 = vector.shape_cast %100 : vector<8xf32> to vector<1x8xf32>
    %102 = vector.shape_cast %101 : vector<1x8xf32> to vector<1x1x8xf32>
    %c0_119 = arith.constant 0 : index
    %c1_120 = arith.constant 1 : index
    %c0_121 = arith.constant 0 : index
    %103 = vector.load %arg6[%c0_119, %c1_120, %c0_121] : memref<1x2x8xf32, #tpu.memory_space<vmem>>, vector<1x1x8xf32>
    tpu.vector_store %arg6[%c0_119, %c1_120, %c0_121], %102 {strides = array<i32>} : memref<1x2x8xf32, #tpu.memory_space<vmem>>, vector<1x1x8xf32>,
    return
  }
  func.func @transform_0(%arg0: i32) -> (i32, i32) {
    %c0_i32 = arith.constant 0 : i32
    %c0_i32_0 = arith.constant 0 : i32
    %c0_i32_1 = arith.constant 0 : i32
    return %c0_i32, %c0_i32_0 : i32, i32
  }
  func.func @transform_1(%arg0: i32) -> (i32, i32) {
    %c0_i32 = arith.constant 0 : i32
    %c0_i32_0 = arith.constant 0 : i32
    %c0_i32_1 = arith.constant 0 : i32
    return %c0_i32, %c0_i32_0 : i32, i32
  }
  func.func @transform_2(%arg0: i32) -> (i32, i32, i32, i32) {
    %c0_i32 = arith.constant 0 : i32
    %c0_i32_0 = arith.constant 0 : i32
    %c0_i32_1 = arith.constant 0 : i32
    %c0_i32_2 = arith.constant 0 : i32
    return %arg0, %c0_i32, %c0_i32_0, %c0_i32_1 : i32, i32, i32, i32
  }
  func.func @transform_3(%arg0: i32) -> (i32, i32, i32) {
    %c0_i32 = arith.constant 0 : i32
    %c0_i32_0 = arith.constant 0 : i32
    %c0_i32_1 = arith.constant 0 : i32
    %c0_i32_2 = arith.constant 0 : i32
    return %c0_i32, %c0_i32_0, %c0_i32_1 : i32, i32, i32
  }
  func.func @transform_4(%arg0: i32) -> (i32, i32, i32, i32) {
    %c0_i32 = arith.constant 0 : i32
    %c0_i32_0 = arith.constant 0 : i32
    %c0_i32_1 = arith.constant 0 : i32
    %c0_i32_2 = arith.constant 0 : i32
    return %arg0, %c0_i32, %c0_i32_0, %c0_i32_1 : i32, i32, i32, i32
  }
  func.func @transform_5(%arg0: i32) -> (i32, i32, i32) {
    %c0_i32 = arith.constant 0 : i32
    %c0_i32_0 = arith.constant 0 : i32
    %c0_i32_1 = arith.constant 0 : i32
    return %arg0, %c0_i32, %c0_i32_0 : i32, i32, i32
  }
}

module attributes {stable_mosaic.version = 11 : i64} {
  func.func @_head_kernel(%arg0: i32, %arg1: memref<1x32xf32, #tpu.memory_space<vmem>>, %arg2: memref<1x32xf32, #tpu.memory_space<vmem>>, %arg3: memref<2x16x32xbf16, #tpu.memory_space<vmem>>, %arg4: memref<32x128xbf16, #tpu.memory_space<vmem>>, %arg5: memref<1x128xf32, #tpu.memory_space<vmem>>, %arg6: memref<2x128xf32, #tpu.memory_space<vmem>>) attributes {dimension_semantics = [#tpu.dimension_semantics<arbitrary>], iteration_bounds = array<i64: 1>, scalar_prefetch = 0 : i64, scratch_operands = 0 : i64, tpu.core_type = #tpu.core_type<tc>, window_params = [{pipeline_mode = #tpu.pipeline_mode<synchronous>, transform_indices = @transform_0, window_bounds = array<i64: 1, 32>}, {pipeline_mode = #tpu.pipeline_mode<synchronous>, transform_indices = @transform_1, window_bounds = array<i64: 1, 32>}, {pipeline_mode = #tpu.pipeline_mode<synchronous>, transform_indices = @transform_2, window_bounds = array<i64: 2, 16, 32>}, {pipeline_mode = #tpu.pipeline_mode<synchronous>, transform_indices = @transform_3, window_bounds = array<i64: 32, 128>}, {pipeline_mode = #tpu.pipeline_mode<synchronous>, transform_indices = @transform_4, window_bounds = array<i64: 1, 128>}, {pipeline_mode = #tpu.pipeline_mode<synchronous>, transform_indices = @transform_5, window_bounds = array<i64: 2, 128>}]} {
    %c0 = arith.constant 0 : index
    %c0_0 = arith.constant 0 : index
    %c0_1 = arith.constant 0 : index
    %0 = vector.load %arg3[%c0, %c0_0, %c0_1] : memref<2x16x32xbf16, #tpu.memory_space<vmem>>, vector<2x16x32xbf16>
    %1 = arith.extf %0 : vector<2x16x32xbf16> to vector<2x16x32xf32>
    %c0_2 = arith.constant 0 : index
    %c0_3 = arith.constant 0 : index
    %2 = vector.load %arg1[%c0_2, %c0_3] : memref<1x32xf32, #tpu.memory_space<vmem>>, vector<1x32xf32>
    %3 = vector.shape_cast %2 : vector<1x32xf32> to vector<1x1x32xf32>
    %4 = vector.broadcast %3 : vector<1x1x32xf32> to vector<2x16x32xf32>
    %5 = arith.mulf %1, %4 : vector<2x16x32xf32>
    %c0_4 = arith.constant 0 : index
    %c0_5 = arith.constant 0 : index
    %6 = vector.load %arg2[%c0_4, %c0_5] : memref<1x32xf32, #tpu.memory_space<vmem>>, vector<1x32xf32>
    %7 = vector.shape_cast %6 : vector<1x32xf32> to vector<1x1x32xf32>
    %8 = vector.broadcast %7 : vector<1x1x32xf32> to vector<2x16x32xf32>
    %9 = arith.addf %5, %8 : vector<2x16x32xf32>
    %cst = arith.constant 0.000000e+00 : f32
    %10 = vector.broadcast %cst : f32 to vector<2x16x32xf32>
    %11 = arith.maximumf %9, %10 : vector<2x16x32xf32>
    %cst_6 = arith.constant dense<0.000000e+00> : vector<2x32xf32>
    %12 = vector.multi_reduction <add>, %11, %cst_6 [1] : vector<2x16x32xf32> to vector<2x32xf32>
    %cst_7 = arith.constant 1.600000e+01 : f32
    %13 = vector.broadcast %cst_7 : f32 to vector<2x32xf32>
    %14 = arith.divf %12, %13 : vector<2x32xf32>
    %15 = arith.truncf %14 : vector<2x32xf32> to vector<2x32xbf16>
    %c0_8 = arith.constant 0 : index
    %c0_9 = arith.constant 0 : index
    %16 = vector.load %arg4[%c0_8, %c0_9] : memref<32x128xbf16, #tpu.memory_space<vmem>>, vector<32x128xbf16>
    %cst_10 = arith.constant dense<0.000000e+00> : vector<2x128xf32>
    %17 = tpu.matmul %15, %16, %cst_10 {dimension_numbers = #tpu.dot_dimension_numbers<[1], [0], [0], [1], [0, 0, 1, 1], [], []>} : vector<2x32xbf16>, vector<32x128xbf16>, vector<2x128xf32> -> vector<2x128xf32>
    %c0_11 = arith.constant 0 : index
    %c0_12 = arith.constant 0 : index
    %18 = vector.load %arg5[%c0_11, %c0_12] : memref<1x128xf32, #tpu.memory_space<vmem>>, vector<1x128xf32>
    %19 = vector.broadcast %18 : vector<1x128xf32> to vector<2x128xf32>
    %20 = arith.addf %17, %19 : vector<2x128xf32>
    %c0_13 = arith.constant 0 : index
    %c0_14 = arith.constant 0 : index
    %21 = vector.load %arg6[%c0_13, %c0_14] : memref<2x128xf32, #tpu.memory_space<vmem>>, vector<2x128xf32>
    tpu.vector_store %arg6[%c0_13, %c0_14], %20 {strides = array<i32>} : memref<2x128xf32, #tpu.memory_space<vmem>>, vector<2x128xf32>,
    return
  }
  func.func @transform_0(%arg0: i32) -> (i32, i32) {
    %c0_i32 = arith.constant 0 : i32
    %c0_i32_0 = arith.constant 0 : i32
    %c0_i32_1 = arith.constant 0 : i32
    return %c0_i32, %c0_i32_0 : i32, i32
  }
  func.func @transform_1(%arg0: i32) -> (i32, i32) {
    %c0_i32 = arith.constant 0 : i32
    %c0_i32_0 = arith.constant 0 : i32
    %c0_i32_1 = arith.constant 0 : i32
    return %c0_i32, %c0_i32_0 : i32, i32
  }
  func.func @transform_2(%arg0: i32) -> (i32, i32, i32) {
    %c0_i32 = arith.constant 0 : i32
    %c0_i32_0 = arith.constant 0 : i32
    %c0_i32_1 = arith.constant 0 : i32
    %c0_i32_2 = arith.constant 0 : i32
    return %c0_i32, %c0_i32_0, %c0_i32_1 : i32, i32, i32
  }
  func.func @transform_3(%arg0: i32) -> (i32, i32) {
    %c0_i32 = arith.constant 0 : i32
    %c0_i32_0 = arith.constant 0 : i32
    %c0_i32_1 = arith.constant 0 : i32
    return %c0_i32, %c0_i32_0 : i32, i32
  }
  func.func @transform_4(%arg0: i32) -> (i32, i32) {
    %c0_i32 = arith.constant 0 : i32
    %c0_i32_0 = arith.constant 0 : i32
    %c0_i32_1 = arith.constant 0 : i32
    return %c0_i32, %c0_i32_0 : i32, i32
  }
  func.func @transform_5(%arg0: i32) -> (i32, i32) {
    %c0_i32 = arith.constant 0 : i32
    %c0_i32_0 = arith.constant 0 : i32
    %c0_i32_1 = arith.constant 0 : i32
    return %c0_i32, %c0_i32_0 : i32, i32
  }
}

</mosaic_0001>

<bundles_post_ra>
// kernel: densenet_forward.15
= control target key start
LH: loop header
LB: loop body
LE: loop exit
PB: predicated region body
PF: predicated region fallthrough
CT: control target
= control target key end

     0   :  { %vm24_vm0 = vcmask 130048   ;;  %v651_v1 = vmov 0.0   ;;  %vm175_vm1 = vcmask 261120   ;;  %vm413_vm2 = vcmask 125952   ;;  %s896_s3 = inlined_call_operand.vmem [shape: bf16[32,16], index: 3, kind: input, shape index: {}]   ;;  %s897_s0 = inlined_call_operand.vmem [shape: f32[1,32], index: 0, kind: input, shape index: {}]   ;;  %s898_s2 = inlined_call_operand.vmem [shape: bf16[128,32], index: 2, kind: input, shape index: {}]   ;;  %s899_s1 = inlined_call_operand.vmem [shape: f32[1,32], index: 1, kind: input, shape index: {}]   ;;  %s900_s4 = inlined_call_operand.vmem [shape: bf16[128,16], index: 4, kind: output, shape index: {0}]   ;;  %s901_s5 = inlined_call_operand.vmem [shape: f32[1,2,16], index: 5, kind: output, shape index: {1}]  }
   0x1   :  { %v649_v0 = vld [vmem:[%s896_s3] sm:$0xff]   ;;  %27 = vst.msk [vmem:[#allocation2 + $0x10] sm:$0xff] %vm24_vm0, %v651_v1  ;;  %25 = vst.msk [vmem:[#allocation2] sm:$0xff] %vm24_vm0, %v651_v1  ;;  %v650_v2 = vld [vmem:[%s896_s3 + $0x8] sm:$0xff]   ;;  %vm467_vm3 = vcmask 122880  }
   0x2   :  { %26 = vst.msk [vmem:[#allocation2 + $0x8] sm:$0xff] %vm24_vm0, %v651_v1  ;;  %28 = vst.msk [vmem:[#allocation2 + $0x18] sm:$0xff] %vm24_vm0, %v651_v1  ;;  %624 = vmatprep.subr.bf16.mxu0 %v649_v0  ;;  %v576_v3 = vld [vmem:[%s898_s2] sm:$0xff]   ;;  %644 = vmatprep.subr.bf16.mxu1 %v649_v0  ;;  %v607_v7 = vld [vmem:[%s898_s2 + $0x8] sm:$0xff]  }
   0x3   :  { %29 = vst.msk [vmem:[#allocation2 + $0x20] sm:$0xff] %vm24_vm0, %v651_v1  ;;  %30 = vst.msk [vmem:[#allocation2 + $0x28] sm:$0xff] %vm24_vm0, %v651_v1  ;;  %v710_v4 = vld [vmem:[%s897_s0] ss:$0 sm:$0xff]  ;;  %625 = vmatpush3.bf16.msra.mxu0 %v649_v0  ;;  %v577_v5 = vunpack.c.l.bf16 %v576_v3  ;;  %v578_v6 = vunpack.c.h.bf16 %v576_v3  ;;  %646 = vmatpush3.bf16.msra.mxu1 %v649_v0  ;;  %v608_v8 = vld [vmem:[%s898_s2 + $0x10] sm:$0xff]   ;;  %v581_v11 = vunpack.c.l.bf16 %v607_v7  ;;  %v582_v12 = vunpack.c.h.bf16 %v607_v7 }
   0x4   :  { %31 = vst.msk [vmem:[#allocation2 + $0x30] sm:$0xff] %vm24_vm0, %v651_v1  ;;  %32 = vst.msk [vmem:[#allocation2 + $0x38] sm:$0xff] %vm24_vm0, %v651_v1  ;;  %v609_v9 = vld [vmem:[%s898_s2 + $0x18] sm:$0xff]   ;;  %626 = vmatprep.subr.bf16.mxu0 %v650_v2  ;;  %v724_v10 = vld [vmem:[%s899_s1] ss:$0 sm:$0xff]  ;;  %v585_v13 = vunpack.c.l.bf16 %v608_v8  ;;  %v586_v14 = vunpack.c.h.bf16 %v608_v8  ;;  %645 = vmatprep.subr.bf16.mxu1 %v650_v2 }
   0x5   :  { %33 = vst.msk [vmem:[#allocation2 + $0x40] sm:$0xff] %vm24_vm0, %v651_v1  ;;  %34 = vst.msk [vmem:[#allocation2 + $0x48] sm:$0xff] %vm24_vm0, %v651_v1  ;;  %v80_v15 = vmul.f32 %v577_v5, %v710_v4  ;;  %v81_v16 = vmul.f32 %v578_v6, %v710_v4  ;;  %v589_v17 = vunpack.c.l.bf16 %v609_v9  ;;  %v590_v18 = vunpack.c.h.bf16 %v609_v9  ;;  %v610_v31 = vld [vmem:[%s898_s2 + $0x20] sm:$0xff]   ;;  %v611_v36 = vld [vmem:[%s898_s2 + $0x28] sm:$0xff]  }
   0x6   :  { %35 = vst.msk [vmem:[#allocation2 + $0x50] sm:$0xff] %vm24_vm0, %v651_v1  ;;  %36 = vst.msk [vmem:[#allocation2 + $0x58] sm:$0xff] %vm24_vm0, %v651_v1  ;;  %v82_v19 = vmul.f32 %v581_v11, %v710_v4  ;;  %v83_v20 = vmul.f32 %v582_v12, %v710_v4  ;;  %v84_v21 = vmul.f32 %v585_v13, %v710_v4  ;;  %v612_v41 = vld [vmem:[%s898_s2 + $0x30] sm:$0xff]   ;;  %v593_v44 = vunpack.c.l.bf16 %v610_v31  ;;  %v613_v45 = vld [vmem:[%s898_s2 + $0x38] sm:$0xff]  }
   0x7   :  { %37 = vst.msk [vmem:[#allocation2 + $0x60] sm:$0xff] %vm24_vm0, %v651_v1  ;;  %38 = vst.msk [vmem:[#allocation2 + $0x68] sm:$0xff] %vm24_vm0, %v651_v1  ;;  %v85_v22 = vmul.f32 %v586_v14, %v710_v4  ;;  %627 = vmatpush3.bf16.msra.mxu0 %v650_v2  ;;  %v103_v23 = vadd.f32 %v724_v10, %v80_v15  ;;  %v104_v24 = vadd.f32 %v724_v10, %v81_v16 }
   0x8   :  { %39 = vst.msk [vmem:[#allocation2 + $0x70] sm:$0xff] %vm24_vm0, %v651_v1  ;;  %40 = vst.msk [vmem:[#allocation2 + $0x78] sm:$0xff] %vm24_vm0, %v651_v1  ;;  %v86_v25 = vmul.f32 %v589_v17, %v710_v4  ;;  %v87_v26 = vmul.f32 %v590_v18, %v710_v4  ;;  %v105_v27 = vadd.f32 %v724_v10, %v82_v19  ;;  %647 = vmatpush3.bf16.msra.mxu1 %v650_v2 }
   0x9   :  { %v106_v28 = vadd.f32 %v724_v10, %v83_v20  ;;  %v107_v29 = vadd.f32 %v724_v10, %v84_v21  ;;  %v108_v30 = vadd.f32 %v724_v10, %v85_v22  ;;  %v119_v32 = vmax.f32 %v103_v23, 0.0  ;;  %v137_v22 = vld [vmem:[#allocation2 + $0x10] sm:$0xff]  ;;  %v135_v23 = vld [vmem:[#allocation2] sm:$0xff] }
   0xa   :  { %v120_v33 = vmax.f32 %v104_v24, 0.0  ;;  %v109_v34 = vadd.f32 %v724_v10, %v86_v25  ;;  %v110_v35 = vadd.f32 %v724_v10, %v87_v26  ;;  %v121_v37 = vmax.f32 %v105_v27, 0.0  ;;  %v138_v24 = vld [vmem:[#allocation2 + $0x18] sm:$0xff]  ;;  %v136_v27 = vld [vmem:[#allocation2 + $0x8] sm:$0xff] }
   0xb   :  { %v122_v38 = vmax.f32 %v106_v28, 0.0  ;;  %v123_v39 = vmax.f32 %v107_v29, 0.0  ;;  %v124_v40 = vmax.f32 %v108_v30, 0.0  ;;  %v594_v48 = vunpack.c.h.bf16 %v610_v31 }
   0xc   :  { %v151_v42 = vpack.c.bf16 %v120_v33, %v119_v32  ;;  %v125_v43 = vmax.f32 %v109_v34, 0.0  ;;  %v597_v49 = vunpack.c.l.bf16 %v611_v36  ;;  %v126_v50 = vmax.f32 %v110_v35, 0.0  ;;  %v141_v33 = vld [vmem:[#allocation2 + $0x30] sm:$0xff]  ;;  %v139_v34 = vld [vmem:[#allocation2 + $0x20] sm:$0xff] }
   0xd   :  { %v152_v46 = vpack.c.bf16 %v122_v38, %v121_v37  ;;  %v153_v47 = vpack.c.bf16 %v124_v40, %v123_v39  ;;  %v88_v51 = vmul.f32 %v593_v44, %v710_v4  ;;  %v598_v52 = vunpack.c.h.bf16 %v611_v36  ;;  %v145_v35 = vld [vmem:[#allocation2 + $0x50] sm:$0xff]  ;;  %v142_v37 = vld [vmem:[#allocation2 + $0x38] sm:$0xff]  ;;  %v140_v40 = vld [vmem:[#allocation2 + $0x28] sm:$0xff] }
   0xe   :  { %628 = vmatprep.mubr.msk.bf16.mxu0 %vm175_vm1, %v151_v42  ;;  %v601_v53 = vunpack.c.l.bf16 %v612_v41  ;;  %v89_v54 = vmul.f32 %v594_v48, %v710_v4  ;;  %v90_v55 = vmul.f32 %v597_v49, %v710_v4  ;;  %v602_v56 = vunpack.c.h.bf16 %v612_v41 }
   0xf   :  { %629 = vmatmul.mubr.msk.bf16.vlgmr.msra.gmra.mrb[0].mxu0 %vm175_vm1, %v152_v46  ;;  %v605_v57 = vunpack.c.l.bf16 %v613_v45  ;;  %v111_v58 = vadd.f32 %v724_v10, %v88_v51  ;;  %v91_v59 = vmul.f32 %v598_v52, %v710_v4  ;;  %v606_v61 = vunpack.c.h.bf16 %v613_v45 }
  0x10   :  { %632 = vmatprep.mubr.msk.bf16.mxu0 %vm175_vm1, %v153_v47  ;;  %v92_v60 = vmul.f32 %v601_v53, %v710_v4  ;;  %v112_v62 = vadd.f32 %v724_v10, %v89_v54  ;;  %v113_v63 = vadd.f32 %v724_v10, %v90_v55  ;;  %v93_v0 = vmul.f32 %v602_v56, %v710_v4  ;;  %v143_v56 = vld [vmem:[#allocation2 + $0x40] sm:$0xff] }
  0x11   :  { %v94_v1 = vmul.f32 %v605_v57, %v710_v4  ;;  %v127_v2 = vmax.f32 %v111_v58, 0.0  ;;  %v114_v3 = vadd.f32 %v724_v10, %v91_v59  ;;  %v95_v6 = vmul.f32 %v606_v61, %v710_v4  ;;  %v146_v57 = vld [vmem:[#allocation2 + $0x58] sm:$0xff] }
  0x12   :  { %v115_v5 = vadd.f32 %v724_v10, %v92_v60  ;;  %v154_v7 = vpack.c.bf16 %v126_v50, %v125_v43  ;;  %v128_v8 = vmax.f32 %v112_v62, 0.0  ;;  %v129_v9 = vmax.f32 %v113_v63, 0.0  ;;  %v144_v62 = vld [vmem:[#allocation2 + $0x48] sm:$0xff] }
  0x13   :  { %v116_v11 = vadd.f32 %v724_v10, %v93_v0  ;;  %v130_v12 = vmax.f32 %v114_v3, 0.0  ;;  %v117_v14 = vadd.f32 %v724_v10, %v94_v1  ;;  %v118_v15 = vadd.f32 %v724_v10, %v95_v6 }
  0x14   :  { %v131_v13 = vmax.f32 %v115_v5, 0.0  ;;  %v155_v16 = vpack.c.bf16 %v128_v8, %v127_v2  ;;  %v149_v8 = vld [vmem:[#allocation2 + $0x70] sm:$0xff] }
  0x15   :  { %v132_v17 = vmax.f32 %v116_v11, 0.0  ;;  %v156_v18 = vpack.c.bf16 %v130_v12, %v129_v9  ;;  %v133_v4 = vmax.f32 %v117_v14, 0.0  ;;  %v134_v20 = vmax.f32 %v118_v15, 0.0 }
  0x16   :  { %636 = vmatprep.mubr.msk.bf16.mxu1 %vm175_vm1, %v155_v16 }
  0x17   :  { %633 = vmatmul.mubr.msk.bf16.gmra.mrb[4].mxu0 %vm175_vm1, %v154_v7  ;;  %v157_v19 = vpack.c.bf16 %v132_v17, %v131_v13  ;;  %637 = vmatmul.mubr.msk.bf16.vlgmr.msra.gmra.mrb[0].mxu1 %vm175_vm1, %v156_v18  ;;  %v158_v21 = vpack.c.bf16 %v134_v20, %v133_v4 }
  0x19   :  { %640 = vmatprep.mubr.msk.bf16.mxu1 %vm175_vm1, %v157_v19 }
  0x1f   :  { %641 = vmatmul.mubr.msk.bf16.gmra.mrb[4].mxu1 %vm175_vm1, %v158_v21 }
  0xe2   :  { %v630_v10 = vpop.f32.mrb[0].mxu0 }
  0xe3   :  { %v299_v25 = vadd.f32 %v630_v10, %v137_v22  ;;  %v234_v26 = vpop.f32.mrb[1].mxu0 }
  0xe4   :  { %v297_v28 = vadd.f32 %v234_v26, %v135_v23  ;;  %v631_v29 = vpop.f32.mrb[2].mxu0 }
  0xe5   :  { %316 = vst.msk [vmem:[#allocation2 + $0x10] sm:$0xff] %vm24_vm0, %v299_v25  ;;  %v300_v30 = vadd.f32 %v631_v29, %v138_v24  ;;  %v237_v31 = vpop.f32.mrb[3].mxu0 }
  0xe6   :  { %314 = vst.msk [vmem:[#allocation2] sm:$0xff] %vm24_vm0, %v297_v28  ;;  %v298_v32 = vadd.f32 %v237_v31, %v136_v27 }
  0xe7   :  { %317 = vst.msk [vmem:[#allocation2 + $0x18] sm:$0xff] %vm24_vm0, %v300_v30 }
  0xe8   :  { %315 = vst.msk [vmem:[#allocation2 + $0x8] sm:$0xff] %vm24_vm0, %v298_v32 }
  0xea   :  { %v634_v36 = vpop.f32.mrb[4].mxu0  ;;  %v638_v41 = vpop.f32.mrb[0].mxu1 }
  0xeb   :  { %v303_v38 = vadd.f32 %v634_v36, %v141_v33  ;;  %v250_v39 = vpop.f32.mrb[5].mxu0  ;;  %v307_v45 = vadd.f32 %v638_v41, %v145_v35  ;;  %v266_v46 = vpop.f32.mrb[1].mxu1 }
  0xec   :  { %v335_v42 = vld [vmem:[#allocation2 + $0x10] sm:$0xff]  ;;  %v301_v43 = vadd.f32 %v250_v39, %v139_v34  ;;  %v635_v44 = vpop.f32.mrb[6].mxu0  ;;  %v639_v51 = vpop.f32.mrb[2].mxu1  ;;  %v305_v6 = vadd.f32 %v266_v46, %v143_v56 }
  0xed   :  { %v561_v47 = vpack.c.bf16 %v335_v42, %v335_v42  ;;  %v333_v48 = vld [vmem:[#allocation2] sm:$0xff]  ;;  %320 = vst.msk [vmem:[#allocation2 + $0x30] sm:$0xff] %vm24_vm0, %v303_v38  ;;  %v304_v49 = vadd.f32 %v635_v44, %v142_v37  ;;  %v253_v50 = vpop.f32.mrb[7].mxu0  ;;  %324 = vst.msk [vmem:[#allocation2 + $0x50] sm:$0xff] %vm24_vm0, %v307_v45  ;;  %v269_v58 = vpop.f32.mrb[3].mxu1  ;;  %v471_v59 = vmul.f32 %v335_v42, %v335_v42  ;;  %v433_v9 = vsel %vm24_vm0, %v335_v42, 0.0 }
  0xee   :  { %v559_v52 = vpack.c.bf16 %v333_v48, %v333_v48  ;;  %v469_v53 = vmul.f32 %v333_v48, %v333_v48  ;;  %v336_v54 = vld [vmem:[#allocation2 + $0x18] sm:$0xff]  ;;  %318 = vst.msk [vmem:[#allocation2 + $0x20] sm:$0xff] %vm24_vm0, %v301_v43  ;;  %v302_v55 = vadd.f32 %v253_v50, %v140_v40  ;;  %v430_v63 = vsel %vm24_vm0, %v333_v48, 0.0  ;;  %322 = vst.msk [vmem:[#allocation2 + $0x40] sm:$0xff] %vm24_vm0, %v305_v6 }
  0xef   :  { %416 = vst.msk [vmem:[%s900_s4 + $0x8] sm:$0xf] %vm413_vm2, %v561_v47  ;;  %v562_v60 = vpack.c.bf16 %v336_v54, %v336_v54  ;;  %v334_v61 = vld [vmem:[#allocation2 + $0x8] sm:$0xff]  ;;  %v472_v3 = vmul.f32 %v336_v54, %v336_v54  ;;  %v308_v7 = vadd.f32 %v639_v51, %v146_v57  ;;  %v306_v13 = vadd.f32 %v269_v58, %v144_v62 }
  0xf0   :  { %321 = vst.msk [vmem:[#allocation2 + $0x38] sm:$0xff] %vm24_vm0, %v304_v49  ;;  %v560_v0 = vpack.c.bf16 %v334_v61, %v334_v61  ;;  %v431_v1 = vsel %vm24_vm0, %v334_v61, 0.0  ;;  %v470_v2 = vmul.f32 %v334_v61, %v334_v61  ;;  %319 = vst.msk [vmem:[#allocation2 + $0x28] sm:$0xff] %vm24_vm0, %v302_v55  ;;  %v485_v11 = vsel %vm24_vm0, %v469_v53, 0.0 }
  0xf1   :  { %414 = vst.msk [vmem:[%s900_s4] sm:$0xf] %vm413_vm2, %v559_v52  ;;  %417 = vst.msk [vmem:[%s900_s4 + $0xc] sm:$0xf] %vm413_vm2, %v562_v60  ;;  %v432_v5 = vadd.f32 %v431_v1, %v430_v63  ;;  %v488_v17 = vsel %vm24_vm0, %v471_v59, 0.0  ;;  %v435_v20 = vsel %vm24_vm0, %v336_v54, 0.0 }
  0xf2   :  { %415 = vst.msk [vmem:[%s900_s4 + $0x4] sm:$0xf] %vm413_vm2, %v560_v0  ;;  %v486_v12 = vsel %vm24_vm0, %v470_v2, 0.0  ;;  %v642_v16 = vpop.f32.mrb[4].mxu1  ;;  %v490_v21 = vsel %vm24_vm0, %v472_v3, 0.0  ;;  %v147_v60 = vld [vmem:[#allocation2 + $0x60] sm:$0xff] }
  0xf3   :  { %v434_v14 = vadd.f32 %v433_v9, %v432_v5  ;;  %v487_v15 = vadd.f32 %v486_v12, %v485_v11  ;;  %325 = vst.msk [vmem:[#allocation2 + $0x58] sm:$0xff] %vm24_vm0, %v308_v7  ;;  %323 = vst.msk [vmem:[#allocation2 + $0x48] sm:$0xff] %vm24_vm0, %v306_v13  ;;  %v311_v19 = vadd.f32 %v642_v16, %v149_v8  ;;  %v282_v4 = vpop.f32.mrb[5].mxu1  ;;  %v150_v63 = vld [vmem:[#allocation2 + $0x78] sm:$0xff]  ;;  %v148_v0 = vld [vmem:[#allocation2 + $0x68] sm:$0xff] }
  0xf4   :  { %v339_v18 = vld [vmem:[#allocation2 + $0x30] sm:$0xff]  ;;  %v643_v24 = vpop.f32.mrb[6].mxu1  ;;  %v309_v8 = vadd.f32 %v282_v4, %v147_v60 }
  0xf5   :  { %v489_v22 = vadd.f32 %v488_v17, %v487_v15  ;;  %v565_v23 = vpack.c.bf16 %v339_v18, %v339_v18  ;;  %v337_v10 = vld [vmem:[#allocation2 + $0x20] sm:$0xff]  ;;  %v436_v26 = vadd.f32 %v435_v20, %v434_v14  ;;  %v343_v30 = vld [vmem:[#allocation2 + $0x50] sm:$0xff]  ;;  %328 = vst.msk [vmem:[#allocation2 + $0x70] sm:$0xff] %vm24_vm0, %v311_v19  ;;  %v285_v31 = vpop.f32.mrb[7].mxu1  ;;  %v475_v35 = vmul.f32 %v339_v18, %v339_v18 }
  0xf6   :  { %v563_v25 = vpack.c.bf16 %v337_v10, %v337_v10  ;;  %v437_v27 = vsel %vm24_vm0, %v337_v10, 0.0  ;;  %v473_v28 = vmul.f32 %v337_v10, %v337_v10  ;;  %v569_v42 = vpack.c.bf16 %v343_v30, %v343_v30  ;;  %v341_v45 = vld [vmem:[#allocation2 + $0x40] sm:$0xff]  ;;  %326 = vst.msk [vmem:[#allocation2 + $0x60] sm:$0xff] %vm24_vm0, %v309_v8 }
  0xf7   :  { %v340_v29 = vld [vmem:[#allocation2 + $0x38] sm:$0xff]  ;;  %420 = vst.msk [vmem:[%s900_s4 + $0x18] sm:$0xf] %vm413_vm2, %v565_v23  ;;  %v491_v32 = vadd.f32 %v490_v21, %v489_v22  ;;  %v338_v34 = vld [vmem:[#allocation2 + $0x28] sm:$0xff]  ;;  %v438_v36 = vadd.f32 %v437_v27, %v436_v26  ;;  %v441_v43 = vsel %vm24_vm0, %v339_v18, 0.0  ;;  %v567_v49 = vpack.c.bf16 %v341_v45, %v341_v45 }
  0xf8   :  { %v566_v33 = vpack.c.bf16 %v340_v29, %v340_v29  ;;  %418 = vst.msk [vmem:[%s900_s4 + $0x10] sm:$0xf] %vm413_vm2, %v563_v25  ;;  %v492_v37 = vsel %vm24_vm0, %v473_v28, 0.0  ;;  %v564_v38 = vpack.c.bf16 %v338_v34, %v338_v34  ;;  %v439_v40 = vsel %vm24_vm0, %v338_v34, 0.0  ;;  %424 = vst.msk [vmem:[%s900_s4 + $0x28] sm:$0xf] %vm413_vm2, %v569_v42 }
  0xf9   :  { %v493_v39 = vadd.f32 %v492_v37, %v491_v32  ;;  %v474_v41 = vmul.f32 %v338_v34, %v338_v34  ;;  %v440_v44 = vadd.f32 %v439_v40, %v438_v36  ;;  %v476_v47 = vmul.f32 %v340_v29, %v340_v29  ;;  %422 = vst.msk [vmem:[%s900_s4 + $0x20] sm:$0xf] %vm413_vm2, %v567_v49 }
  0xfa   :  { %421 = vst.msk [vmem:[%s900_s4 + $0x1c] sm:$0xf] %vm413_vm2, %v566_v33  ;;  %419 = vst.msk [vmem:[%s900_s4 + $0x14] sm:$0xf] %vm413_vm2, %v564_v38  ;;  %v344_v46 = vld [vmem:[#allocation2 + $0x58] sm:$0xff]  ;;  %v477_v50 = vmul.f32 %v341_v45, %v341_v45  ;;  %v342_v51 = vld [vmem:[#allocation2 + $0x48] sm:$0xff]  ;;  %v479_v9 = vmul.f32 %v343_v30, %v343_v30  ;;  %v312_v12 = vadd.f32 %v643_v24, %v150_v63 }
  0xfb   :  { %v494_v48 = vsel %vm24_vm0, %v474_v41, 0.0  ;;  %v442_v52 = vadd.f32 %v441_v43, %v440_v44  ;;  %v570_v54 = vpack.c.bf16 %v344_v46, %v344_v46  ;;  %v496_v55 = vsel %vm24_vm0, %v475_v35, 0.0 }
  0xfc   :  { %v495_v53 = vadd.f32 %v494_v48, %v493_v39  ;;  %v443_v56 = vsel %vm24_vm0, %v340_v29, 0.0  ;;  %v445_v57 = vsel %vm24_vm0, %v341_v45, 0.0  ;;  %v568_v58 = vpack.c.bf16 %v342_v51, %v342_v51  ;;  %v347_v59 = vld [vmem:[#allocation2 + $0x70] sm:$0xff]  ;;  %329 = vst.msk [vmem:[#allocation2 + $0x78] sm:$0xff] %vm24_vm0, %v312_v12 }
  0xfd   :  { %v444_v62 = vadd.f32 %v443_v56, %v442_v52  ;;  %425 = vst.msk [vmem:[%s900_s4 + $0x2c] sm:$0xf] %vm413_vm2, %v570_v54  ;;  %v498_v1 = vsel %vm24_vm0, %v476_v47, 0.0  ;;  %v500_v2 = vsel %vm24_vm0, %v477_v50, 0.0  ;;  %v478_v3 = vmul.f32 %v342_v51, %v342_v51  ;;  %v345_v24 = vld [vmem:[#allocation2 + $0x60] sm:$0xff] }
  0xfe   :  { %v497_v61 = vadd.f32 %v496_v55, %v495_v53  ;;  %423 = vst.msk [vmem:[%s900_s4 + $0x24] sm:$0xf] %vm413_vm2, %v568_v58  ;;  %v573_v5 = vpack.c.bf16 %v347_v59, %v347_v59  ;;  %v447_v11 = vsel %vm24_vm0, %v342_v51, 0.0  ;;  %v310_v13 = vadd.f32 %v285_v31, %v148_v0 }
  0xff   :  { %v446_v6 = vadd.f32 %v445_v57, %v444_v62  ;;  %v449_v16 = vsel %vm24_vm0, %v343_v30, 0.0  ;;  %v502_v17 = vsel %vm24_vm0, %v478_v3, 0.0  ;;  %v480_v18 = vmul.f32 %v344_v46, %v344_v46 }
 0x100   :  { %v499_v7 = vadd.f32 %v498_v1, %v497_v61  ;;  %428 = vst.msk [vmem:[%s900_s4 + $0x38] sm:$0xf] %vm413_vm2, %v573_v5  ;;  %v504_v20 = vsel %vm24_vm0, %v479_v9, 0.0  ;;  %v451_v21 = vsel %vm24_vm0, %v344_v46, 0.0  ;;  %v571_v26 = vpack.c.bf16 %v345_v24, %v345_v24 }
 0x101   :  { %v448_v15 = vadd.f32 %v447_v11, %v446_v6  ;;  %327 = vst.msk [vmem:[#allocation2 + $0x68] sm:$0xff] %vm24_vm0, %v310_v13  ;;  %v506_v10 = vsel %vm24_vm0, %v480_v18, 0.0  ;;  %v453_v27 = vsel %vm24_vm0, %v345_v24, 0.0  ;;  %v481_v28 = vmul.f32 %v345_v24, %v345_v24 }
 0x102   :  { %v501_v14 = vadd.f32 %v500_v2, %v499_v7  ;;  %v483_v31 = vmul.f32 %v347_v59, %v347_v59  ;;  %426 = vst.msk [vmem:[%s900_s4 + $0x30] sm:$0xf] %vm413_vm2, %v571_v26  ;;  %v457_v40 = vsel %vm24_vm0, %v347_v59, 0.0 }
 0x103   :  { %v450_v19 = vadd.f32 %v449_v16, %v448_v15  ;;  %v348_v29 = vld [vmem:[#allocation2 + $0x78] sm:$0xff]  ;;  %v508_v34 = vsel %vm24_vm0, %v481_v28, 0.0 }
 0x104   :  { %v503_v4 = vadd.f32 %v502_v17, %v501_v14  ;;  %v574_v33 = vpack.c.bf16 %v348_v29, %v348_v29  ;;  %v484_v41 = vmul.f32 %v348_v29, %v348_v29  ;;  %v512_v45 = vsel %vm24_vm0, %v483_v31, 0.0 }
 0x105   :  { %v452_v23 = vadd.f32 %v451_v21, %v450_v19  ;;  %v459_v46 = vsel %vm24_vm0, %v348_v29, 0.0 }
 0x106   :  { %v505_v22 = vadd.f32 %v504_v20, %v503_v4  ;;  %429 = vst.msk [vmem:[%s900_s4 + $0x3c] sm:$0xf] %vm413_vm2, %v574_v33  ;;  %v514_v49 = vsel %vm24_vm0, %v484_v41, 0.0 }
 0x107   :  { %v454_v32 = vadd.f32 %v453_v27, %v452_v23 }
 0x108   :  { %v507_v25 = vadd.f32 %v506_v10, %v505_v22  ;;  %v346_v30 = vld [vmem:[#allocation2 + $0x68] sm:$0xff] }
 0x109   :  { %v572_v35 = vpack.c.bf16 %v346_v30, %v346_v30  ;;  %v455_v36 = vsel %vm24_vm0, %v346_v30, 0.0  ;;  %v482_v37 = vmul.f32 %v346_v30, %v346_v30 }
 0x10a   :  { %v509_v38 = vadd.f32 %v508_v34, %v507_v25  ;;  %v456_v39 = vadd.f32 %v455_v36, %v454_v32 }
 0x10b   :  { %427 = vst.msk [vmem:[%s900_s4 + $0x34] sm:$0xf] %vm413_vm2, %v572_v35  ;;  %v510_v42 = vsel %vm24_vm0, %v482_v37, 0.0 }
 0x10c   :  { %v458_v43 = vadd.f32 %v457_v40, %v456_v39  ;;  %v511_v44 = vadd.f32 %v510_v42, %v509_v38 }
 0x10e   :  { %v460_v47 = vadd.f32 %v459_v46, %v458_v43  ;;  %v513_v48 = vadd.f32 %v512_v45, %v511_v44 }
 0x110   :  { %v461_v50 = vrot.slane %v460_v47, 4  ;;  %v515_v51 = vadd.f32 %v514_v49, %v513_v48 }
 0x112   :  { %v462_v52 = vadd.f32 %v461_v50, %v460_v47  ;;  %v516_v53 = vrot.slane %v515_v51, 4 }
 0x114   :  { %v463_v54 = vrot.slane %v462_v52, 2  ;;  %v517_v55 = vadd.f32 %v516_v53, %v515_v51 }
 0x116   :  { %v464_v56 = vadd.f32 %v463_v54, %v462_v52  ;;  %v518_v57 = vrot.slane %v517_v55, 2 }
 0x118   :  { %v465_v58 = vrot.slane %v464_v56, 1  ;;  %v519_v59 = vadd.f32 %v518_v57, %v517_v55 }
 0x11a   :  { %v466_v60 = vadd.f32 %v465_v58, %v464_v56  ;;  %v520_v61 = vrot.slane %v519_v59, 1 }
 0x11c   :  { %468 = vst.msk [vmem:[%s901_s5] sm:$0x1] %vm467_vm3, %v466_v60  ;;  %v521_v62 = vadd.f32 %v520_v61, %v519_v59 }
 0x11e   :  { %522 = vst.msk [vmem:[%s901_s5 + $0x1] sm:$0x1] %vm467_vm3, %v521_v62 }

// kernel: densenet_forward.14
= control target key start
LH: loop header
LB: loop body
LE: loop exit
PB: predicated region body
PF: predicated region fallthrough
CT: control target
= control target key end

     0   :  { %s4170_s15 = smov 0   ;;  %s6935_s0 = inlined_call_operand.vmem [shape: f32[1,16], index: 0, kind: input, shape index: {}]   ;;  %s6936_s1 = inlined_call_operand.vmem [shape: f32[1,16], index: 1, kind: input, shape index: {}]   ;;  %s6937_s2 = inlined_call_operand.vmem [shape: bf16[2,16,16,16], index: 2, kind: input, shape index: {}]   ;;  %s6938_s3 = inlined_call_operand.vmem [shape: bf16[2,8,8,16], index: 3, kind: output, shape index: {0}]   ;;  %s6939_s4 = inlined_call_operand.vmem [shape: f32[2,2,16], index: 4, kind: output, shape index: {1}]  }
   0x1 LB: > { %s3771_s16 = sadd.s32 4294967295, %s4141_s15   ;;  %p3775_p0 = scmp.ge.s32.totalorder %s4141_s15, 1  ;;  %s4141_s15 = sphi %s4170_s15, %s15_s15  }
   0x2   : > { %p165_p1 = scmp.lt.s32.totalorder %s4141_s15, 3 }
   0x4   : > { %p166_p2 = pnand %p3775_p0, %p165_p1 }
   0x6   : > { %169 = sbr.rel (%p166_p2) target bundleno = 452 (0x1c4), region = 32 }
   0xd   : > { %vm209_vm0 = vcmask 130048   ;;  %v578_v0 = vlaneseq  ;;  %p4180_p3 = scmp.lt.s32.totalorder %s3771_s16, 1  ;;  %v4143_v1 = vmov 0.0   ;;  %v4144_v2 = vmov 1983009808  }
   0xe   : > { %210 = vst.msk [vmem:[#allocation2] sm:$0xff] %vm209_vm0, %v4143_v1  ;;  %v576_v3 = vunpack.c.l.s4 %v4144_v2  ;;  %211 = vst.msk [vmem:[#allocation2 + $0x8] sm:$0xff] %vm209_vm0, %v4143_v1  ;;  %vm212_vm1 = vcmask 123904   ;;  %v4255_v11 = vld [vmem:[%s6935_s0] ss:$0 sm:$0xff]  ;;  %vm2665_vm2 = vcmask 1041409  }
   0xf   : > { %214 = vst.msk [vmem:[#allocation2 + $0x18] sm:$0xff] %vm209_vm0, %v4143_v1  ;;  %215 = vst.msk [vmem:[#allocation2 + $0x20] sm:$0xff] %vm209_vm0, %v4143_v1  ;;  %v579_v4 = vshrl.u32 %v578_v0, 7  ;;  %s7474_s16 = smov (!%p4180_p3, %s3771_s16), 1  ;;  %v4265_v18 = vld [vmem:[%s6936_s1] ss:$0 sm:$0xff] }
  0x10   : > { %217 = vst.msk [vmem:[#allocation2 + $0x30] sm:$0xff] %vm209_vm0, %v4143_v1  ;;  %218 = vst.msk [vmem:[#allocation2 + $0x38] sm:$0xff] %vm209_vm0, %v4143_v1  ;;  %v577_v5 = vunpack.c.0.s8 %v576_v3  ;;  %s3946_s18 = sshll.u32 %s7474_s16, 7  ;;  %vm2668_vm3 = vcmask 1042434   ;;  %vm2671_vm4 = vcmask 1043459   ;;  %vm2674_vm5 = vcmask 1044484  }
  0x11   : > { %220 = vst.msk [vmem:[#allocation2 + $0x48] sm:$0xff] %vm209_vm0, %v4143_v1  ;;  %221 = vst.msk [vmem:[#allocation2 + $0x50] sm:$0xff] %vm209_vm0, %v4143_v1  ;;  %s4247_s21 = scalar_lea.vmem %s6937_s2, %s3946_s18  ;;  %v4267_v21 = vsub.s32 0, %v579_v4  ;;  %vm2677_vm6 = vcmask 1045509   ;;  %vm2680_vm7 = vcmask 1046534   ;;  %vm2683_vm8 = vcmask 1047559  }
  0x12   : > { %223 = vst.msk [vmem:[#allocation2 + $0x60] sm:$0xff] %vm209_vm0, %v4143_v1  ;;  %224 = vst.msk [vmem:[#allocation2 + $0x68] sm:$0xff] %vm209_vm0, %v4143_v1  ;;  %v4242_v6 = vsub.s32 %v577_v5, %v579_v4  ;;  %v4013_v7 = vld [vmem:[%s4247_s21] sm:$0xff]   ;;  %v4076_v8 = vld [vmem:[%s4247_s21 + $0x8] sm:$0xff]   ;;  %vm2799_vm9 = vcmask 125952   ;;  %s3947_s26 = sshll.u32 %s7474_s16, 5 }
  0x13   : > { %226 = vst.msk [vmem:[#allocation2 + $0x78] sm:$0xff] %vm209_vm0, %v4143_v1  ;;  %227 = vst.msk [vmem:[#allocation2 + $0x80] sm:$0xff] %vm209_vm0, %v4143_v1  ;;  %v4078_v9 = vld [vmem:[%s4247_s21 + $0x18] sm:$0xff]   ;;  %v4014_v10 = vunpack.c.l.bf16 %v4013_v7  ;;  %v4015_v12 = vunpack.c.h.bf16 %v4013_v7  ;;  %v4018_v13 = vunpack.c.l.bf16 %v4076_v8  ;;  %v4019_v14 = vunpack.c.h.bf16 %v4076_v8  ;;  %v4080_v16 = vld [vmem:[%s4247_s21 + $0x28] sm:$0xff]   ;;  %s4890_s29 = scalar_lea.vmem %s6938_s3, %s3947_s26  ;;  %s3780_s30 = sshll.u32 %s7474_s16, 1 }
  0x14   : > { %229 = vst.msk [vmem:[#allocation2 + $0x90] sm:$0xff] %vm209_vm0, %v4143_v1  ;;  %230 = vst.msk [vmem:[#allocation2 + $0x98] sm:$0xff] %vm209_vm0, %v4143_v1  ;;  %v4026_v19 = vunpack.c.l.bf16 %v4078_v9  ;;  %v4027_v20 = vunpack.c.h.bf16 %v4078_v9  ;;  %v4034_v29 = vunpack.c.l.bf16 %v4080_v16  ;;  %v4035_v30 = vunpack.c.h.bf16 %v4080_v16  ;;  %v4082_v39 = vld [vmem:[%s4247_s21 + $0x38] sm:$0xff]   ;;  %v4084_v44 = vld [vmem:[%s4247_s21 + $0x48] sm:$0xff]   ;;  %s6837_s7 = scalar_lea.vmem %s6939_s4, %s3780_s30 }
  0x15   : > { %232 = vst.msk [vmem:[#allocation2 + $0xa8] sm:$0xff] %vm209_vm0, %v4143_v1  ;;  %233 = vst.msk [vmem:[#allocation2 + $0xb0] sm:$0xff] %vm209_vm0, %v4143_v1  ;;  %v4257_v15 = vld [vmem:[#allocation2] sm:$0xff]  ;;  %v4269_v22 = vld [vmem:[#allocation2 + $0x8] sm:$0xff]  ;;  %v336_v23 = vmul.f32 %v4014_v10, %v4255_v11  ;;  %v337_v24 = vmul.f32 %v4015_v12, %v4255_v11  ;;  %v338_v25 = vmul.f32 %v4018_v13, %v4255_v11  ;;  %v4042_v51 = vunpack.c.l.bf16 %v4082_v39 }
  0x16   : > { %235 = vst.msk [vmem:[#allocation2 + $0xc0] sm:$0xff] %vm209_vm0, %v4143_v1  ;;  %236 = vst.msk [vmem:[#allocation2 + $0xc8] sm:$0xff] %vm209_vm0, %v4143_v1  ;;  %v581_v17 = vrot.slane %v4257_v15, %v4242_v6  ;;  %v339_v26 = vmul.f32 %v4019_v14, %v4255_v11  ;;  %v574_v35 = vcombine.high %v4257_v15, %v4257_v15  ;;  %v4043_v52 = vunpack.c.h.bf16 %v4082_v39  ;;  %v4086_v53 = vld [vmem:[%s4247_s21 + $0x58] sm:$0xff]   ;;  %v4088_v16 = vld [vmem:[%s4247_s21 + $0x68] sm:$0xff]  }
  0x17   : > { %238 = vst.msk [vmem:[#allocation2 + $0xd8] sm:$0xff] %vm209_vm0, %v4143_v1  ;;  %239 = vst.msk [vmem:[#allocation2 + $0xe0] sm:$0xff] %vm209_vm0, %v4143_v1  ;;  %v375_v31 = vadd.f32 %v4265_v18, %v336_v23  ;;  %v376_v32 = vadd.f32 %v4265_v18, %v337_v24  ;;  %v377_v33 = vadd.f32 %v4265_v18, %v338_v25  ;;  %v4050_v56 = vunpack.c.l.bf16 %v4084_v44 }
  0x18   : > { %241 = vst.msk [vmem:[#allocation2 + $0xf0] sm:$0xff] %vm209_vm0, %v4143_v1  ;;  %242 = vst.msk [vmem:[#allocation2 + $0xf8] sm:$0xff] %vm209_vm0, %v4143_v1  ;;  %v4275_v27 = vcombine.high %v581_v17, %v581_v17  ;;  %v3800_v28 = vrot.slane %v581_v17, 9  ;;  %v378_v34 = vadd.f32 %v4265_v18, %v339_v26  ;;  %v591_v36 = vcombine.high %v4269_v22, %v4269_v22 }
  0x19   : > { %244 = vst.msk [vmem:[#allocation2 + $0x108] sm:$0xff] %vm209_vm0, %v4143_v1  ;;  %245 = vst.msk [vmem:[#allocation2 + $0x110] sm:$0xff] %vm209_vm0, %v4143_v1  ;;  %v342_v37 = vmul.f32 %v4026_v19, %v4255_v11  ;;  %v343_v38 = vmul.f32 %v4027_v20, %v4255_v11  ;;  %v407_v40 = vmax.f32 %v375_v31, 0.0  ;;  %v408_v41 = vmax.f32 %v376_v32, 0.0 }
  0x1a   : > { %247 = vst.msk [vmem:[#allocation2 + $0x120] sm:$0xff] %vm209_vm0, %v4143_v1  ;;  %248 = vst.msk [vmem:[#allocation2 + $0x128] sm:$0xff] %vm209_vm0, %v4143_v1  ;;  %v409_v42 = vmax.f32 %v377_v33, 0.0  ;;  %v410_v43 = vmax.f32 %v378_v34, 0.0  ;;  %v3801_v45 = vrot.slane %v4275_v27, 9  ;;  %v4290_v46 = vmax.f32 %v581_v17, %v3800_v28 }
  0x1b   : > { %250 = vst.msk [vmem:[#allocation2 + $0x138] sm:$0xff] %vm209_vm0, %v4143_v1  ;;  %251 = vst.msk [vmem:[#allocation2 + $0x140] sm:$0xff] %vm209_vm0, %v4143_v1  ;;  %v381_v47 = vadd.f32 %v4265_v18, %v342_v37  ;;  %v382_v48 = vadd.f32 %v4265_v18, %v343_v38  ;;  %v346_v49 = vmul.f32 %v4034_v29, %v4255_v11  ;;  %v4051_v57 = vunpack.c.h.bf16 %v4084_v44 }
  0x1c   : > { %253 = vst.msk [vmem:[#allocation2 + $0x150] sm:$0xff] %vm209_vm0, %v4143_v1  ;;  %254 = vst.msk [vmem:[#allocation2 + $0x158] sm:$0xff] %vm209_vm0, %v4143_v1  ;;  %v347_v50 = vmul.f32 %v4035_v30, %v4255_v11  ;;  %v350_v60 = vmul.f32 %v4042_v51, %v4255_v11  ;;  %v351_v61 = vmul.f32 %v4043_v52, %v4255_v11  ;;  %v4058_v0 = vunpack.c.l.bf16 %v4086_v53 }
  0x1d   : > { %256 = vst.msk [vmem:[#allocation2 + $0x168] sm:$0xff] %vm209_vm0, %v4143_v1  ;;  %257 = vst.msk [vmem:[#allocation2 + $0x170] sm:$0xff] %vm209_vm0, %v4143_v1  ;;  %v413_v54 = vmax.f32 %v381_v47, 0.0  ;;  %v414_v55 = vmax.f32 %v382_v48, 0.0  ;;  %v385_v58 = vadd.f32 %v4265_v18, %v346_v49  ;;  %v354_v62 = vmul.f32 %v4050_v56, %v4255_v11 }
  0x1e   : > { %259 = vst.msk [vmem:[#allocation2 + $0x180] sm:$0xff] %vm209_vm0, %v4143_v1  ;;  %260 = vst.msk [vmem:[#allocation2 + $0x188] sm:$0xff] %vm209_vm0, %v4143_v1  ;;  %v386_v59 = vadd.f32 %v4265_v18, %v347_v50  ;;  %v355_v63 = vmul.f32 %v4051_v57, %v4255_v11  ;;  %v389_v4 = vadd.f32 %v4265_v18, %v350_v60  ;;  %v4066_v34 = vunpack.c.l.bf16 %v4088_v16 }
  0x1f   : > { %216 = vst.msk [vmem:[#allocation2 + $0x28] sm:$0x3] %vm212_vm1, %v4143_v1  ;;  %213 = vst.msk [vmem:[#allocation2 + $0x10] sm:$0x3] %vm212_vm1, %v4143_v1  ;;  %v417_v2 = vmax.f32 %v385_v58, 0.0  ;;  %v390_v5 = vadd.f32 %v4265_v18, %v351_v61  ;;  %v393_v7 = vadd.f32 %v4265_v18, %v354_v62  ;;  %v358_v9 = vmul.f32 %v4058_v0, %v4255_v11 }
  0x20   : > { %219 = vst.msk [vmem:[#allocation2 + $0x40] sm:$0x3] %vm212_vm1, %v4143_v1  ;;  %222 = vst.msk [vmem:[#allocation2 + $0x58] sm:$0x3] %vm212_vm1, %v4143_v1  ;;  %v418_v3 = vmax.f32 %v386_v59, 0.0  ;;  %v394_v8 = vadd.f32 %v4265_v18, %v355_v63  ;;  %v4316_v12 = vrot.slane %v574_v35, %v4242_v6  ;;  %v4320_v13 = vrot.slane %v4269_v22, %v4242_v6 }
  0x21   : > { %225 = vst.msk [vmem:[#allocation2 + $0x70] sm:$0x3] %vm212_vm1, %v4143_v1  ;;  %228 = vst.msk [vmem:[#allocation2 + $0x88] sm:$0x3] %vm212_vm1, %v4143_v1  ;;  %v421_v14 = vmax.f32 %v389_v4, 0.0  ;;  %v422_v15 = vmax.f32 %v390_v5, 0.0  ;;  %v4326_v17 = vrot.slane %v591_v36, %v4242_v6  ;;  %v1680_v20 = vmax.f32 %v4290_v46, %v4275_v27 }
  0x22   : > { %231 = vst.msk [vmem:[#allocation2 + $0xa0] sm:$0x3] %vm212_vm1, %v4143_v1  ;;  %234 = vst.msk [vmem:[#allocation2 + $0xb8] sm:$0x3] %vm212_vm1, %v4143_v1  ;;  %v425_v25 = vmax.f32 %v393_v7, 0.0  ;;  %v426_v22 = vmax.f32 %v394_v8, 0.0  ;;  %v397_v30 = vadd.f32 %v4265_v18, %v358_v9  ;;  %v4340_v32 = vmax.f32 %v4275_v27, %v3801_v45 }
  0x23   : > { %237 = vst.msk [vmem:[#allocation2 + $0xd0] sm:$0x3] %vm212_vm1, %v4143_v1  ;;  %240 = vst.msk [vmem:[#allocation2 + $0xe8] sm:$0x3] %vm212_vm1, %v4143_v1  ;;  %v4067_v35 = vunpack.c.h.bf16 %v4088_v16  ;;  %v4079_v16 = vld [vmem:[%s4247_s21 + $0x20] sm:$0xff]   ;;  %vm3213_vm10 = vcmask 122880  }
  0x24   : > { %243 = vst.msk [vmem:[#allocation2 + $0x100] sm:$0x3] %vm212_vm1, %v4143_v1  ;;  %246 = vst.msk [vmem:[#allocation2 + $0x118] sm:$0x3] %vm212_vm1, %v4143_v1  ;;  %v429_v48 = vmax.f32 %v397_v30, 0.0 }
  0x25   : > { %249 = vst.msk [vmem:[#allocation2 + $0x130] sm:$0x3] %vm212_vm1, %v4143_v1  ;;  %252 = vst.msk [vmem:[#allocation2 + $0x148] sm:$0x3] %vm212_vm1, %v4143_v1 }
  0x26   : > { %255 = vst.msk [vmem:[#allocation2 + $0x160] sm:$0x3] %vm212_vm1, %v4143_v1  ;;  %258 = vst.msk [vmem:[#allocation2 + $0x178] sm:$0x3] %vm212_vm1, %v4143_v1 }
  0x27   : > { %261 = vst.msk [vmem:[#allocation2 + $0x190] sm:$0x3] %vm212_vm1, %v4143_v1  ;;  %v4059_v1 = vunpack.c.h.bf16 %v4086_v53  ;;  %v362_v53 = vmul.f32 %v4066_v34, %v4255_v11 }
  0x28   : > { %440 = vst.msk [vmem:[#allocation2 + $0x19] sm:$0xff] %vm209_vm0, %v407_v40  ;;  %441 = vst.msk [vmem:[#allocation2 + $0x21] sm:$0xff] %vm209_vm0, %v408_v41  ;;  %v4354_v41 = vld [vmem:[%s4247_s21 + $0x10] sm:$0xff]  }
  0x29   : > { %442 = vst.msk [vmem:[#allocation2 + $0x31] sm:$0xff] %vm209_vm0, %v409_v42  ;;  %443 = vst.msk [vmem:[#allocation2 + $0x39] sm:$0xff] %vm209_vm0, %v410_v43  ;;  %v359_v10 = vmul.f32 %v4059_v1, %v4255_v11  ;;  %v401_v63 = vadd.f32 %v4265_v18, %v362_v53 }
  0x2a   : > { %446 = vst.msk [vmem:[#allocation2 + $0x61] sm:$0xff] %vm209_vm0, %v413_v54  ;;  %447 = vst.msk [vmem:[#allocation2 + $0x69] sm:$0xff] %vm209_vm0, %v414_v55  ;;  %v363_v54 = vmul.f32 %v4067_v35, %v4255_v11  ;;  %v4022_v55 = vunpack.c.l.bf16 %v4354_v41 }
  0x2b   : > { %450 = vst.msk [vmem:[#allocation2 + $0x91] sm:$0xff] %vm209_vm0, %v417_v2  ;;  %451 = vst.msk [vmem:[#allocation2 + $0x99] sm:$0xff] %vm209_vm0, %v418_v3  ;;  %v398_v31 = vadd.f32 %v4265_v18, %v359_v10 }
  0x2c   : > { %454 = vst.msk [vmem:[#allocation2 + $0xc1] sm:$0xff] %vm209_vm0, %v421_v14  ;;  %455 = vst.msk [vmem:[#allocation2 + $0xc9] sm:$0xff] %vm209_vm0, %v422_v15  ;;  %v402_v0 = vadd.f32 %v4265_v18, %v363_v54  ;;  %v340_v1 = vmul.f32 %v4022_v55, %v4255_v11 }
  0x2d   : > { %458 = vst.msk [vmem:[#allocation2 + $0xf1] sm:$0xff] %vm209_vm0, %v425_v25  ;;  %459 = vst.msk [vmem:[#allocation2 + $0xf9] sm:$0xff] %vm209_vm0, %v426_v22  ;;  %v430_v49 = vmax.f32 %v398_v31, 0.0  ;;  %v433_v25 = vmax.f32 %v401_v63, 0.0  ;;  %v4081_v22 = vld [vmem:[%s4247_s21 + $0x30] sm:$0xff]  }
  0x2e   : > { %462 = vst.msk [vmem:[#allocation2 + $0x121] sm:$0xff] %vm209_vm0, %v429_v48  ;;  %v434_v31 = vmax.f32 %v402_v0, 0.0  ;;  %v379_v34 = vadd.f32 %v4265_v18, %v340_v1  ;;  %v4039_v48 = vunpack.c.h.bf16 %v4081_v22 }
  0x2f   : > { %v475_v19 = vld [vmem:[#allocation2 + $0x18] sm:$0xff]  ;;  %v4330_v23 = vld [vmem:[#allocation2 + $0x20] sm:$0xff]  ;;  %463 = vst.msk [vmem:[#allocation2 + $0x129] sm:$0xff] %vm209_vm0, %v430_v49  ;;  %466 = vst.msk [vmem:[#allocation2 + $0x151] sm:$0xff] %vm209_vm0, %v433_v25 }
  0x30   : > { %v478_v24 = vld [vmem:[#allocation2 + $0x30] sm:$0xff]  ;;  %v615_v26 = vcombine.high %v475_v19, %v475_v19  ;;  %v4333_v28 = vrot.slane %v475_v19, %v4242_v6  ;;  %v479_v29 = vld [vmem:[#allocation2 + $0x38] sm:$0xff]  ;;  %v4348_v36 = vrot.slane %v4330_v23, %v4242_v6  ;;  %467 = vst.msk [vmem:[#allocation2 + $0x159] sm:$0xff] %vm209_vm0, %v434_v31  ;;  %v349_v0 = vmul.f32 %v4039_v48, %v4255_v11 }
  0x31   : > { %v656_v37 = vcombine.high %v478_v24, %v478_v24  ;;  %v4351_v38 = vrot.slane %v478_v24, %v4242_v6  ;;  %v673_v39 = vcombine.high %v479_v29, %v479_v29  ;;  %v484_v27 = vld [vmem:[#allocation2 + $0x60] sm:$0xff]  ;;  %v485_v40 = vld [vmem:[#allocation2 + $0x68] sm:$0xff]  ;;  %v4367_v45 = vrot.slane %v479_v29, %v4242_v6 }
  0x32   : > { %v4357_v42 = vrot.slane %v615_v26, %v4242_v6  ;;  %v4361_v43 = vcombine.high %v4333_v28, %v4333_v28  ;;  %v4364_v44 = vmax.f32 %v1680_v20, %v4333_v28  ;;  %v738_v46 = vcombine.high %v484_v27, %v484_v27  ;;  %v490_v51 = vld [vmem:[#allocation2 + $0x90] sm:$0xff]  ;;  %v491_v52 = vld [vmem:[#allocation2 + $0x98] sm:$0xff]  ;;  %v4083_v26 = vld [vmem:[%s4247_s21 + $0x40] sm:$0xff]  }
  0x33   : > { %v755_v47 = vcombine.high %v485_v40, %v485_v40  ;;  %v4374_v56 = vrot.slane %v656_v37, %v4242_v6  ;;  %v4377_v57 = vrot.slane %v673_v39, %v4242_v6  ;;  %v820_v58 = vcombine.high %v490_v51, %v490_v51  ;;  %v496_v61 = vld [vmem:[#allocation2 + $0xc0] sm:$0xff]  ;;  %v497_v62 = vld [vmem:[#allocation2 + $0xc8] sm:$0xff] }
  0x34   : > { %v837_v59 = vcombine.high %v491_v52, %v491_v52  ;;  %v4382_v60 = vrot.slane %v484_v27, %v4242_v6  ;;  %v4388_v2 = vrot.slane %v738_v46, %v4242_v6  ;;  %v4391_v3 = vrot.slane %v485_v40, %v4242_v6  ;;  %v502_v7 = vld [vmem:[#allocation2 + $0xf0] sm:$0xff]  ;;  %v503_v15 = vld [vmem:[#allocation2 + $0xf8] sm:$0xff] }
  0x35   : > { %v4394_v4 = vrot.slane %v755_v47, %v4242_v6  ;;  %v4397_v5 = vrot.slane %v490_v51, %v4242_v6  ;;  %v4400_v8 = vrot.slane %v820_v58, %v4242_v6  ;;  %v4403_v9 = vrot.slane %v491_v52, %v4242_v6  ;;  %v508_v40 = vld [vmem:[#allocation2 + $0x120] sm:$0xff] }
  0x36   : > { %v4406_v10 = vrot.slane %v837_v59, %v4242_v6  ;;  %v902_v14 = vcombine.high %v496_v61, %v496_v61  ;;  %v4410_v19 = vrot.slane %v496_v61, %v4242_v6  ;;  %v919_v20 = vcombine.high %v497_v62, %v497_v62  ;;  %v4085_v61 = vld [vmem:[%s4247_s21 + $0x50] sm:$0xff]  }
  0x37   : > { %7087 = vst [vmem:[#allocation3_spill] sm:$0xff] %v4397_v5  ;;  %7088 = vst [vmem:[#allocation4_spill] sm:$0xff] %v4400_v8  ;;  %v984_v24 = vcombine.high %v502_v7, %v502_v7  ;;  %v4415_v29 = vrot.slane %v497_v62, %v4242_v6  ;;  %v4418_v30 = vrot.slane %v502_v7, %v4242_v6  ;;  %v4023_v37 = vunpack.c.h.bf16 %v4354_v41  ;;  %v509_v7 = vld [vmem:[#allocation2 + $0x128] sm:$0xff] }
  0x38   : > { %7089 = vst [vmem:[#allocation5_spill] sm:$0xff] %v4403_v9  ;;  %7090 = vst [vmem:[#allocation6_spill] sm:$0xff] %v4406_v10  ;;  %v1001_v35 = vcombine.high %v503_v15, %v503_v15  ;;  %v4030_v39 = vunpack.c.l.bf16 %v4079_v16  ;;  %v4031_v27 = vunpack.c.h.bf16 %v4079_v16  ;;  %v411_v46 = vmax.f32 %v379_v34, 0.0  ;;  %v514_v34 = vld [vmem:[#allocation2 + $0x150] sm:$0xff] }
  0x39   : > { %7091 = vst [vmem:[#allocation7_spill] sm:$0xff] %v4410_v19  ;;  %7092 = vst [vmem:[#allocation8_spill] sm:$0xff] %v4415_v29  ;;  %v4038_v47 = vunpack.c.l.bf16 %v4081_v22  ;;  %v4046_v49 = vunpack.c.l.bf16 %v4083_v26  ;;  %v4425_v51 = vrot.slane %v902_v14, %v4242_v6  ;;  %v4428_v52 = vrot.slane %v919_v20, %v4242_v6 }
  0x3a   : > { %7093 = vst [vmem:[#allocation9_spill] sm:$0xff] %v4418_v30  ;;  %v4431_v53 = vrot.slane %v984_v24, %v4242_v6  ;;  %v4434_v41 = vrot.slane %v503_v15, %v4242_v6  ;;  %444 = vst.msk [vmem:[#allocation2 + $0x49] sm:$0xff] %vm209_vm0, %v411_v46  ;;  %v341_v54 = vmul.f32 %v4023_v37, %v4255_v11  ;;  %v4047_v22 = vunpack.c.h.bf16 %v4083_v26  ;;  %v4087_v46 = vld [vmem:[%s4247_s21 + $0x60] sm:$0xff]  }
  0x3b   : > { %7094 = vst [vmem:[#allocation10_spill] sm:$0xff] %v4425_v51  ;;  %7095 = vst [vmem:[#allocation11_spill] sm:$0xff] %v4428_v52  ;;  %v344_v55 = vmul.f32 %v4030_v39, %v4255_v11  ;;  %v345_v58 = vmul.f32 %v4031_v27, %v4255_v11  ;;  %v348_v59 = vmul.f32 %v4038_v47, %v4255_v11  ;;  %v4054_v31 = vunpack.c.l.bf16 %v4085_v61 }
  0x3c   : > { %7096 = vst [vmem:[#allocation12_spill] sm:$0xff] %v4431_v53  ;;  %7097 = vst [vmem:[#allocation13_spill] sm:$0xff] %v4434_v41  ;;  %v4443_v62 = vrot.slane %v1001_v35, %v4242_v6  ;;  %v1066_v63 = vcombine.high %v508_v40, %v508_v40  ;;  %v352_v1 = vmul.f32 %v4046_v49, %v4255_v11  ;;  %v515_v49 = vld [vmem:[#allocation2 + $0x158] sm:$0xff] }
  0x3d   : > { %v380_v14 = vadd.f32 %v4265_v18, %v341_v54  ;;  %v383_v15 = vadd.f32 %v4265_v18, %v344_v55  ;;  %v384_v16 = vadd.f32 %v4265_v18, %v345_v58  ;;  %v387_v20 = vadd.f32 %v4265_v18, %v348_v59 }
  0x3e   : > { %7098 = vst [vmem:[#allocation14_spill] sm:$0xff] %v4443_v62  ;;  %v388_v24 = vadd.f32 %v4265_v18, %v349_v0  ;;  %v391_v25 = vadd.f32 %v4265_v18, %v352_v1  ;;  %v4455_v47 = vrot.slane %v508_v40, %v4242_v6  ;;  %v1083_v48 = vcombine.high %v509_v7, %v509_v7 }
  0x3f   : > { %v412_v35 = vmax.f32 %v380_v14, 0.0  ;;  %v415_v37 = vmax.f32 %v383_v15, 0.0  ;;  %v416_v39 = vmax.f32 %v384_v16, 0.0  ;;  %v419_v27 = vmax.f32 %v387_v20, 0.0 }
  0x40   : > { %7099 = vst [vmem:[#allocation15_spill] sm:$0xff] %v4455_v47  ;;  %v420_v54 = vmax.f32 %v388_v24, 0.0  ;;  %v423_v55 = vmax.f32 %v391_v25, 0.0  ;;  %v4458_v58 = vrot.slane %v1066_v63, %v4242_v6  ;;  %v4461_v59 = vrot.slane %v509_v7, %v4242_v6 }
  0x41   : > { %445 = vst.msk [vmem:[#allocation2 + $0x51] sm:$0xff] %vm209_vm0, %v412_v35  ;;  %448 = vst.msk [vmem:[#allocation2 + $0x79] sm:$0xff] %vm209_vm0, %v415_v37  ;;  %v353_v26 = vmul.f32 %v4047_v22, %v4255_v11  ;;  %v356_v40 = vmul.f32 %v4054_v31, %v4255_v11  ;;  %v1148_v0 = vcombine.high %v514_v34, %v514_v34  ;;  %v481_v1 = vld [vmem:[#allocation2 + $0x48] sm:$0xff]  ;;  %v4055_v63 = vunpack.c.h.bf16 %v4085_v61 }
  0x42   : > { %7100 = vst [vmem:[#allocation16_spill] sm:$0xff] %v4458_v58  ;;  %7101 = vst [vmem:[#allocation17_spill] sm:$0xff] %v4461_v59  ;;  %v4062_v7 = vunpack.c.l.bf16 %v4087_v46  ;;  %v4063_v14 = vunpack.c.h.bf16 %v4087_v46  ;;  %v1165_v15 = vcombine.high %v515_v49, %v515_v49  ;;  %v697_v16 = vcombine.high %v481_v1, %v481_v1 }
  0x43   : > { %449 = vst.msk [vmem:[#allocation2 + $0x81] sm:$0xff] %vm209_vm0, %v416_v39  ;;  %452 = vst.msk [vmem:[#allocation2 + $0xa9] sm:$0xff] %vm209_vm0, %v419_v27  ;;  %v4472_v20 = vrot.slane %v481_v1, %v4242_v6  ;;  %v392_v24 = vadd.f32 %v4265_v18, %v353_v26  ;;  %v395_v25 = vadd.f32 %v4265_v18, %v356_v40  ;;  %v4089_v40 = vld [vmem:[%s4247_s21 + $0x70] sm:$0xff]  }
  0x44   : > { %453 = vst.msk [vmem:[#allocation2 + $0xb1] sm:$0xff] %vm209_vm0, %v420_v54  ;;  %456 = vst.msk [vmem:[#allocation2 + $0xd9] sm:$0xff] %vm209_vm0, %v423_v55  ;;  %v357_v22 = vmul.f32 %v4055_v63, %v4255_v11  ;;  %v360_v31 = vmul.f32 %v4062_v7, %v4255_v11  ;;  %v361_v35 = vmul.f32 %v4063_v14, %v4255_v11  ;;  %v4090_v63 = vld [vmem:[%s4247_s21 + $0x78] sm:$0xff]  }
  0x45   : > { %7102 = vst [vmem:[#allocation18_spill] sm:$0xff] %v4472_v20  ;;  %v4480_v61 = vrot.slane %v1083_v48, %v4242_v6  ;;  %v4483_v37 = vrot.slane %v514_v34, %v4242_v6  ;;  %v4486_v39 = vrot.slane %v515_v49, %v4242_v6  ;;  %v424_v27 = vmax.f32 %v392_v24, 0.0 }
  0x46   : > { %v427_v46 = vmax.f32 %v395_v25, 0.0  ;;  %v396_v54 = vadd.f32 %v4265_v18, %v357_v22  ;;  %v399_v55 = vadd.f32 %v4265_v18, %v360_v31  ;;  %v400_v26 = vadd.f32 %v4265_v18, %v361_v35 }
  0x47   : > { %7103 = vst [vmem:[#allocation19_spill] sm:$0xff] %v4480_v61  ;;  %7104 = vst [vmem:[#allocation20_spill] sm:$0xff] %v4483_v37  ;;  %v4493_v1 = vrot.slane %v1148_v0, %v4242_v6  ;;  %v4496_v48 = vrot.slane %v1165_v15, %v4242_v6  ;;  %v4499_v34 = vrot.slane %v697_v16, %v4242_v6  ;;  %v4071_v49 = vunpack.c.h.bf16 %v4089_v40 }
  0x48   : > { %7105 = vst [vmem:[#allocation21_spill] sm:$0xff] %v4486_v39  ;;  %457 = vst.msk [vmem:[#allocation2 + $0xe1] sm:$0xff] %vm209_vm0, %v424_v27  ;;  %v4506_v7 = vcombine.high %v4472_v20, %v4472_v20  ;;  %v4508_v14 = vld [vmem:[#allocation2 + $0x50] sm:$0xff]  ;;  %v487_v24 = vld [vmem:[#allocation2 + $0x78] sm:$0xff]  ;;  %v428_v15 = vmax.f32 %v396_v54, 0.0  ;;  %v431_v25 = vmax.f32 %v399_v55, 0.0  ;;  %v4070_v27 = vunpack.c.l.bf16 %v4089_v40 }
  0x49   : > { %7106 = vst [vmem:[#allocation22_spill] sm:$0xff] %v4493_v1  ;;  %7107 = vst [vmem:[#allocation23_spill] sm:$0xff] %v4496_v48  ;;  %v432_v16 = vmax.f32 %v400_v26, 0.0  ;;  %v779_v22 = vcombine.high %v487_v24, %v487_v24  ;;  %v4514_v31 = vrot.slane %v487_v24, %v4242_v6  ;;  %v4075_v54 = vunpack.c.h.bf16 %v4090_v63 }
  0x4a   : > { %7108 = vst [vmem:[#allocation24_spill] sm:$0xff] %v4506_v7  ;;  %v4510_v0 = vld [vmem:[#allocation2 + $0x80] sm:$0xff]  ;;  %460 = vst.msk [vmem:[#allocation2 + $0x109] sm:$0xff] %vm209_vm0, %v427_v46  ;;  %v493_v35 = vld [vmem:[#allocation2 + $0xa8] sm:$0xff]  ;;  %v4074_v46 = vunpack.c.l.bf16 %v4090_v63  ;;  %v4523_v55 = vcombine.high %v4316_v12, %v4316_v12  ;;  %v4529_v40 = vrot.slane %v4508_v14, %v4242_v6  ;;  %v365_v1 = vmul.f32 %v4071_v49, %v4255_v11 }
  0x4b   : > { %7109 = vst [vmem:[#allocation25_spill] sm:$0xff] %v4514_v31  ;;  %v861_v50 = vcombine.high %v493_v35, %v493_v35  ;;  %v4516_v33 = vld [vmem:[#allocation2 + $0xb0] sm:$0xff]  ;;  %v499_v48 = vld [vmem:[#allocation2 + $0xd8] sm:$0xff]  ;;  %461 = vst.msk [vmem:[#allocation2 + $0x111] sm:$0xff] %vm209_vm0, %v428_v15  ;;  %v4534_v15 = vrot.slane %v493_v35, %v4242_v6  ;;  %v4541_v63 = vcombine.high %v4514_v31, %v4514_v31 }
  0x4c   : > { %7110 = vst [vmem:[#allocation26_spill] sm:$0xff] %v4516_v33  ;;  %464 = vst.msk [vmem:[#allocation2 + $0x139] sm:$0xff] %vm209_vm0, %v431_v25  ;;  %v4537_v25 = vrot.slane %v779_v22, %v4242_v6  ;;  %v4546_v26 = vrot.slane %v4510_v0, %v4242_v6  ;;  %v943_v24 = vcombine.high %v499_v48, %v499_v48 }
  0x4d   : > { %465 = vst.msk [vmem:[#allocation2 + $0x141] sm:$0xff] %vm209_vm0, %v432_v16  ;;  %7111 = vst [vmem:[#allocation27_spill] sm:$0xff] %v4529_v40  ;;  %v364_v35 = vmul.f32 %v4070_v27, %v4255_v11  ;;  %v4553_v22 = vrot.slane %v861_v50, %v4242_v6  ;;  %v4556_v37 = vrot.slane %v499_v48, %v4242_v6 }
  0x4e   : > { %7112 = vst [vmem:[#allocation28_spill] sm:$0xff] %v4534_v15  ;;  %7113 = vst [vmem:[#allocation29_spill] sm:$0xff] %v4537_v25  ;;  %v366_v16 = vmul.f32 %v4074_v46, %v4255_v11  ;;  %v367_v61 = vmul.f32 %v4075_v54, %v4255_v11  ;;  %v4562_v59 = vcombine.high %v4534_v15, %v4534_v15 }
  0x4f   : > { %7114 = vst [vmem:[#allocation30_spill] sm:$0xff] %v4541_v63  ;;  %7115 = vst [vmem:[#allocation31_spill] sm:$0xff] %v4546_v26  ;;  %v4567_v27 = vrot.slane %v4516_v33, %v4242_v6  ;;  %v4569_v49 = vld [vmem:[#allocation2 + $0xe0] sm:$0xff]  ;;  %v4573_v48 = vcombine.high %v4320_v13, %v4320_v13  ;;  %v403_v54 = vadd.f32 %v4265_v18, %v364_v35 }
  0x50   : > { %7116 = vst [vmem:[#allocation32_spill] sm:$0xff] %v4553_v22  ;;  %7117 = vst [vmem:[#allocation33_spill] sm:$0xff] %v4556_v37  ;;  %v4581_v39 = vcombine.high %v4326_v17, %v4326_v17  ;;  %v4584_v58 = vrot.slane %v943_v24, %v4242_v6  ;;  %v404_v62 = vadd.f32 %v4265_v18, %v365_v1  ;;  %v3806_v22 = vrot.slane %v4326_v17, 9 }
  0x51   : > { %7118 = vst [vmem:[#allocation34_spill] sm:$0xff] %v4562_v59  ;;  %7119 = vst [vmem:[#allocation35_spill] sm:$0xff] %v4567_v27  ;;  %v505_v50 = vld [vmem:[#allocation2 + $0x108] sm:$0xff]  ;;  %v405_v41 = vadd.f32 %v4265_v18, %v366_v16  ;;  %v406_v53 = vadd.f32 %v4265_v18, %v367_v61  ;;  %v4598_v24 = vrot.slane %v4569_v49, %v4242_v6  ;;  %v3805_v27 = vrot.slane %v4573_v48, 9 }
  0x52   : > { %7120 = vst [vmem:[#allocation36_spill] sm:$0xff] %v4569_v49  ;;  %v1025_v46 = vcombine.high %v505_v50, %v505_v50  ;;  %v4576_v11 = vrot.slane %v505_v50, %v4242_v6  ;;  %7122 = vst [vmem:[#allocation38_spill] sm:$0xff] %v4584_v58  ;;  %v4591_v50 = vcombine.high %v4556_v37, %v4556_v37  ;;  %v4600_v58 = vld [vmem:[#allocation2 + $0x110] sm:$0xff]  ;;  %v436_v37 = vmax.f32 %v404_v62, 0.0 }
  0x53   : > { %v511_v47 = vld [vmem:[#allocation2 + $0x138] sm:$0xff]  ;;  %7124 = vst [vmem:[#allocation40_spill] sm:$0xff] %v4598_v24  ;;  %7125 = vst [vmem:[#allocation41_spill] sm:$0xff] %v4600_v58  ;;  %v4613_v35 = vcombine.high %v4357_v42, %v4357_v42  ;;  %v437_v24 = vmax.f32 %v405_v41, 0.0  ;;  %v438_v59 = vmax.f32 %v406_v53, 0.0  ;;  %v7131_v41 = vcombine.high %v4330_v23, %v4330_v23 }
  0x54   : > { %7121 = vst [vmem:[#allocation37_spill] sm:$0xff] %v4576_v11  ;;  %7123 = vst [vmem:[#allocation39_spill] sm:$0xff] %v4591_v50  ;;  %v4603_v1 = vrot.slane %v1025_v46, %v4242_v6  ;;  %v4607_v18 = vcombine.high %v4576_v11, %v4576_v11  ;;  %v1107_v61 = vcombine.high %v511_v47, %v511_v47  ;;  %v4609_v16 = vld [vmem:[#allocation2 + $0x140] sm:$0xff]  ;;  %v435_v50 = vmax.f32 %v403_v54, 0.0 }
  0x55   : > { %7128 = vst [vmem:[#allocation44_spill] sm:$0xff] %v4609_v16  ;;  %v4616_v30 = vrot.slane %v511_v47, %v4242_v6  ;;  %469 = vst.msk [vmem:[#allocation2 + $0x171] sm:$0xff] %vm209_vm0, %v436_v37  ;;  %v4634_v62 = vrot.slane %v7131_v41, %v4242_v6  ;;  %v4638_v47 = vcombine.high %v4351_v38, %v4351_v38  ;;  %v3807_v49 = vrot.slane %v4581_v39, 9 }
  0x56   : > { %7126 = vst [vmem:[#allocation42_spill] sm:$0xff] %v4603_v1  ;;  %7127 = vst [vmem:[#allocation43_spill] sm:$0xff] %v4607_v18  ;;  %v4623_v18 = vrot.slane %v4600_v58, %v4242_v6  ;;  %v4642_v53 = vcombine.high %v4374_v56, %v4374_v56  ;;  %v4645_v54 = vrot.slane %v1107_v61, %v4242_v6  ;;  %v3802_v1 = vrot.slane %v4316_v12, 9 }
  0x57   : > { %7129 = vst [vmem:[#allocation45_spill] sm:$0xff] %v4616_v30  ;;  %468 = vst.msk [vmem:[#allocation2 + $0x169] sm:$0xff] %vm209_vm0, %v435_v50  ;;  %v4649_v37 = vrot.slane %v4609_v16, %v4242_v6  ;;  %v4654_v23 = vcombine.high %v4367_v45, %v4367_v45  ;;  %v4658_v50 = vcombine.high %v4377_v57, %v4377_v57  ;;  %v1440_v61 = vrot.slane %v4351_v38, 7 }
  0x58   : > { %7130 = vst [vmem:[#allocation46_spill] sm:$0xff] %v4623_v18  ;;  %470 = vst.msk [vmem:[#allocation2 + $0x181] sm:$0xff] %vm209_vm0, %v437_v24  ;;  %v4662_v24 = vcombine.high %v4616_v30, %v4616_v30  ;;  %v4667_v41 = vcombine.high %v4348_v36, %v4348_v36  ;;  %v4677_v15 = vcombine.high %v4634_v62, %v4634_v62  ;;  %v1442_v30 = vrot.slane %v4638_v47, 7 }
  0x59   : > { %7132 = vst [vmem:[#allocation47_spill] sm:$0xff] %v4645_v54  ;;  %7133 = vst [vmem:[#allocation48_spill] sm:$0xff] %v4649_v37  ;;  %v1444_v37 = vrot.slane %v4374_v56, 7  ;;  %v1446_v54 = vrot.slane %v4642_v53, 7  ;;  %v1450_v11 = vrot.slane %v4654_v23, 7  ;;  %v1452_v18 = vrot.slane %v4377_v57, 7 }
  0x5a   : > { %471 = vst.msk [vmem:[#allocation2 + $0x189] sm:$0xff] %vm209_vm0, %v438_v59  ;;  %7134 = vst [vmem:[#allocation49_spill] sm:$0xff] %v4662_v24  ;;  %v7135_v59 = vcombine.high %v4508_v14, %v4508_v14  ;;  %v3803_v24 = vrot.slane %v4523_v55, 9  ;;  %v1448_v14 = vrot.slane %v4367_v45, 7  ;;  %v1454_v16 = vrot.slane %v4658_v50, 7 }
  0x5b   : > { %v4699_v51 = vrot.slane %v1440_v61, 2  ;;  %v4701_v19 = vrot.slane %v1442_v30, 2  ;;  %v4703_v63 = vrot.slane %v1444_v37, 2  ;;  %v4705_v31 = vrot.slane %v1446_v54, 2 }
  0x5c   : > { %v4673_v46 = vrot.slane %v7135_v59, %v4242_v6  ;;  %v3804_v59 = vrot.slane %v4320_v13, 9  ;;  %v4710_v10 = vrot.slane %v1448_v14, 2  ;;  %v4712_v9 = vrot.slane %v1450_v11, 2 }
  0x5d   : > { %v4716_v61 = vrot.slane %v1452_v18, 2  ;;  %v4718_v30 = vrot.slane %v1454_v16, 2  ;;  %v1618_v37 = vmax.f32 %v4316_v12, %v3802_v1  ;;  %v1621_v11 = vmax.f32 %v4573_v48, %v3805_v27 }
  0x5e   : > { %7136 = vst [vmem:[#allocation50_spill] sm:$0xff] %v4673_v46  ;;  %v4692_v58 = vcombine.high %v4673_v46, %v4673_v46  ;;  %v517_v52 = vld [vmem:[#allocation2 + $0x168] sm:$0xff]  ;;  %v4697_v29 = vld [vmem:[#allocation2 + $0x170] sm:$0xff]  ;;  %v1620_v14 = vmax.f32 %v4320_v13, %v3804_v59  ;;  %v1622_v18 = vmax.f32 %v4326_v17, %v3806_v22  ;;  %v1623_v16 = vmax.f32 %v4581_v39, %v3807_v49 }
  0x5f   : > { %7137 = vst [vmem:[#allocation51_spill] sm:$0xff] %v4697_v29  ;;  %v1189_v26 = vcombine.high %v517_v52, %v517_v52  ;;  %v4708_v25 = vrot.slane %v517_v52, %v4242_v6  ;;  %v520_v33 = vld [vmem:[#allocation2 + $0x180] sm:$0xff]  ;;  %v4723_v54 = vrot.slane %v4697_v29, %v4242_v6  ;;  %v1619_v52 = vmax.f32 %v4523_v55, %v3803_v24  ;;  %v3783_v59 = vld.sshfl [vmem:[#allocation2 + $0x10] sm:$0x3 pattern:$0x76325410] }
  0x60   : > { %v1230_v5 = vcombine.high %v520_v33, %v520_v33  ;;  %v4729_v46 = vrot.slane %v520_v33, %v4242_v6  ;;  %v1624_v27 = vmax.f32 %v4351_v38, %v4699_v51  ;;  %v1625_v33 = vmax.f32 %v4638_v47, %v4701_v19 }
  0x61   : > { %7138 = vst [vmem:[#allocation52_spill] sm:$0xff] %v4708_v25  ;;  %7139 = vst [vmem:[#allocation53_spill] sm:$0xff] %v4723_v54  ;;  %v4734_v1 = vrot.slane %v1189_v26, %v4242_v6  ;;  %v4738_v8 = vcombine.high %v4708_v25, %v4708_v25  ;;  %v1626_v22 = vmax.f32 %v4374_v56, %v4703_v63 }
  0x62   : > { %7140 = vst [vmem:[#allocation54_spill] sm:$0xff] %v4729_v46  ;;  %v1627_v26 = vmax.f32 %v4642_v53, %v4705_v31  ;;  %v1681_v49 = vmax.f32 %v4340_v32, %v4316_v12  ;;  %v1683_v24 = vmax.f32 %v1619_v52, %v4320_v13  ;;  %v1684_v25 = vmax.f32 %v1620_v14, %v4573_v48  ;;  %v3785_v32 = vld.sshfl [vmem:[#allocation2 + $0x40] sm:$0x3 pattern:$0x76325410] }
  0x63   : > { %7141 = vst [vmem:[#allocation55_spill] sm:$0xff] %v4734_v1  ;;  %7142 = vst [vmem:[#allocation56_spill] sm:$0xff] %v4738_v8  ;;  %v1682_v8 = vmax.f32 %v1618_v37, %v4523_v55  ;;  %v1685_v46 = vmax.f32 %v1621_v11, %v4326_v17  ;;  %v4756_v54 = vrot.slane %v1230_v5, %v4242_v6 }
  0x64   : > { %v1628_v1 = vmax.f32 %v4367_v45, %v4710_v10  ;;  %v1686_v29 = vmax.f32 %v1622_v18, %v4581_v39  ;;  %v1687_v7 = vmax.f32 %v1623_v16, %v3783_v59  ;;  %v1631_v13 = vmax.f32 %v4658_v50, %v4718_v30 }
  0x65   : > { %7143 = vst [vmem:[#allocation57_spill] sm:$0xff] %v4756_v54  ;;  %v4768_v17 = vmax.f32 %v1624_v27, %v4638_v47  ;;  %v4771_v5 = vmax.f32 %v1625_v33, %v4374_v56  ;;  %v4774_v55 = vmax.f32 %v1626_v22, %v4642_v53  ;;  %v4777_v39 = vmax.f32 %v1627_v26, %v4367_v45  ;;  %v3784_v26 = vld.sshfl [vmem:[#allocation2 + $0x28] sm:$0x3 pattern:$0x76325410] }
  0x66   : > { %v1745_v48 = vmax.f32 %v1681_v49, %v4361_v43  ;;  %v1746_v37 = vmax.f32 %v1682_v8, %v4357_v42  ;;  %v1747_v52 = vmax.f32 %v1683_v24, %v4613_v35  ;;  %v1748_v14 = vmax.f32 %v1684_v25, %v4348_v36 }
  0x67   : > { %7144 = vst [vmem:[#allocation58_spill] sm:$0xff] %v4768_v17  ;;  %7145 = vst [vmem:[#allocation59_spill] sm:$0xff] %v4771_v5  ;;  %v1749_v11 = vmax.f32 %v1685_v46, %v4667_v41  ;;  %v1750_v18 = vmax.f32 %v1686_v29, %v4634_v62  ;;  %v1751_v16 = vmax.f32 %v1687_v7, %v4677_v15  ;;  %v3809_v59 = vrot.slane %v4361_v43, 9 }
  0x68   : > { %7146 = vst [vmem:[#allocation60_spill] sm:$0xff] %v4774_v55  ;;  %7147 = vst [vmem:[#allocation61_spill] sm:$0xff] %v4777_v39  ;;  %v3810_v27 = vrot.slane %v4357_v42, 9  ;;  %v3811_v33 = vrot.slane %v4613_v35, 9  ;;  %v3812_v22 = vrot.slane %v4348_v36, 9  ;;  %v3813_v8 = vrot.slane %v4667_v41, 9 }
  0x69   : > { %v3814_v24 = vrot.slane %v4634_v62, 9  ;;  %v4793_v25 = vmax.f32 %v1628_v1, %v4654_v23  ;;  %v3815_v29 = vrot.slane %v4677_v15, 9  ;;  %v7149_v7 = vrot.slane %v4333_v28, 9 }
  0x6a   : > { %v2001_v49 = vmax.f32 %v1745_v48, %v3809_v59  ;;  %v2002_v12 = vmax.f32 %v1746_v37, %v3810_v27  ;;  %v2003_v54 = vmax.f32 %v1747_v52, %v3811_v33  ;;  %v2004_v39 = vmax.f32 %v1748_v14, %v3812_v22 }
  0x6b   : > { %7148 = vst [vmem:[#allocation62_spill] sm:$0xff] %v4793_v25  ;;  %v2000_v46 = vmax.f32 %v4364_v44, %v7149_v7  ;;  %v2005_v55 = vmax.f32 %v1749_v11, %v3813_v8  ;;  %v4799_v5 = vmax.f32 %v1631_v13, %v3785_v32  ;;  %v2006_v17 = vmax.f32 %v1750_v18, %v3814_v24 }
  0x6c   : > { %v2007_v20 = vmax.f32 %v1751_v16, %v3815_v29  ;;  %v2065_v1 = vmax.f32 %v2001_v49, %v4357_v42  ;;  %v2066_v25 = vmax.f32 %v2002_v12, %v4613_v35  ;;  %v2067_v28 = vmax.f32 %v2003_v54, %v4348_v36 }
  0x6d   : > { %v2064_v40 = vmax.f32 %v2000_v46, %v4361_v43  ;;  %v2068_v44 = vmax.f32 %v2004_v39, %v4667_v41  ;;  %v2069_v48 = vmax.f32 %v2005_v55, %v4634_v62  ;;  %v2070_v37 = vmax.f32 %v2006_v17, %v4677_v15 }
  0x6e   : > { %v2071_v52 = vmax.f32 %v2007_v20, %v3784_v26  ;;  %v2129_v14 = vmax.f32 %v2065_v1, %v4638_v47  ;;  %v2130_v11 = vmax.f32 %v2066_v25, %v4374_v56  ;;  %v2131_v43 = vmax.f32 %v2067_v28, %v4642_v53 }
  0x6f   : > { %v2128_v13 = vmax.f32 %v2064_v40, %v4351_v38  ;;  %v2132_v42 = vmax.f32 %v2068_v44, %v4367_v45  ;;  %v2133_v35 = vmax.f32 %v2069_v48, %v4654_v23  ;;  %v2134_v36 = vmax.f32 %v2070_v37, %v4377_v57 }
  0x70   : > { %v2135_v41 = vmax.f32 %v2071_v52, %v4658_v50  ;;  %v2217_v20 = vmax.f32 %v2129_v14, %v4701_v19  ;;  %v2218_v38 = vmax.f32 %v2130_v11, %v4703_v63  ;;  %v2219_v40 = vmax.f32 %v2131_v43, %v4705_v31 }
  0x71   : > { %v2216_v62 = vmax.f32 %v2128_v13, %v4699_v51  ;;  %v2220_v15 = vmax.f32 %v2132_v42, %v4710_v10  ;;  %v2221_v54 = vmax.f32 %v2133_v35, %v4712_v9  ;;  %v2222_v12 = vmax.f32 %v2134_v36, %v4716_v61 }
  0x72   : > { %v2223_v17 = vmax.f32 %v2135_v41, %v4718_v30  ;;  %v2281_v39 = vmax.f32 %v2217_v20, %v4374_v56  ;;  %v2282_v51 = vmax.f32 %v2218_v38, %v4642_v53  ;;  %v2283_v19 = vmax.f32 %v2219_v40, %v4367_v45 }
  0x73   : > { %v2280_v55 = vmax.f32 %v2216_v62, %v4638_v47  ;;  %v2284_v63 = vmax.f32 %v2220_v15, %v4654_v23  ;;  %v4830_v10 = vmax.f32 %v2221_v54, %v4377_v57  ;;  %v4833_v31 = vmax.f32 %v2222_v12, %v4658_v50 }
  0x74   : > { %v4835_v18 = vmax.f32 %v2223_v17, %v3785_v32  ;;  %v3949_v47 = vpack.c.bf16 %v2281_v39, %v2281_v39  ;;  %v3950_v16 = vpack.c.bf16 %v2282_v51, %v2282_v51  ;;  %v3951_v56 = vpack.c.bf16 %v2283_v19, %v2283_v19 }
  0x75   : > { %v3948_v30 = vpack.c.bf16 %v2280_v55, %v2280_v55  ;;  %v3952_v59 = vpack.c.bf16 %v2284_v63, %v2284_v63  ;;  %v3953_v45 = vpack.c.bf16 %v4830_v10, %v4830_v10  ;;  %v3954_v53 = vpack.c.bf16 %v4833_v31, %v4833_v31 }
  0x76   : > { %v3955_v27 = vpack.c.bf16 %v4835_v18, %v4835_v18  ;;  %v2601_v32 = vunpack.c.l.b16 %v3949_v47  ;;  %v2602_v22 = vunpack.c.l.b16 %v3950_v16  ;;  %v2603_v8 = vunpack.c.l.b16 %v3951_v56 }
  0x77   : > { %v2600_v33 = vunpack.c.l.b16 %v3948_v30  ;;  %v2604_v24 = vunpack.c.l.b16 %v3952_v59  ;;  %v2605_v26 = vunpack.c.l.b16 %v3953_v45  ;;  %v2606_v25 = vunpack.c.l.b16 %v3954_v53  ;;  %v3787_v59 = vld.sshfl [vmem:[#allocation2 + $0x70] sm:$0x3 pattern:$0x76325410] }
  0x78   : > { %v2607_v29 = vunpack.c.l.b16 %v3955_v27  ;;  %v2875_v7 = vrot.slane %v2280_v55, %v4267_v21  ;;  %v2664_v46 = vrot.slane %v2601_v32, 7  ;;  %v2667_v49 = vrot.slane %v2602_v22, 6  ;;  %v7170_v22 = vld [vmem:[#allocation50_spill] sm:$0xff] }
  0x79   : > { %v2670_v1 = vrot.slane %v2603_v8, 5  ;;  %v2673_v28 = vrot.slane %v2604_v24, 4  ;;  %v2676_v44 = vrot.slane %v2605_v26, 3  ;;  %v2679_v48 = vrot.slane %v2606_v25, 2 }
  0x7a   : > { %v2682_v37 = vrot.slane %v2607_v29, 1  ;;  %v2879_v52 = vrot.slane %v2281_v39, %v4267_v21  ;;  %v2666_v13 = vsel %vm2665_vm2, %v2664_v46, %v2600_v33  ;;  %v2883_v14 = vrot.slane %v2282_v51, %v4267_v21 }
  0x7b   : > { %v2887_v11 = vrot.slane %v2283_v19, %v4267_v21  ;;  %v2891_v43 = vrot.slane %v2284_v63, %v4267_v21  ;;  %v2669_v42 = vsel %vm2668_vm3, %v2667_v49, %v2666_v13  ;;  %v2895_v35 = vrot.slane %v4830_v10, %v4267_v21 }
  0x7c   : > { %v2899_v36 = vrot.slane %v4833_v31, %v4267_v21  ;;  %v2903_v41 = vrot.slane %v4835_v18, %v4267_v21  ;;  %v2672_v62 = vsel %vm2671_vm4, %v2670_v1, %v2669_v42  ;;  %v3128_v20 = vsel %vm2665_vm2, %v2879_v52, %v2875_v7 }
  0x7d   : > { %v4858_v38 = vmul.f32 %v2280_v55, %v2280_v55  ;;  %v4860_v40 = vmul.f32 %v2281_v39, %v2281_v39  ;;  %v2675_v15 = vsel %vm2674_vm5, %v2673_v28, %v2672_v62  ;;  %v3129_v54 = vsel %vm2668_vm3, %v2883_v14, %v3128_v20 }
  0x7e   : > { %v4865_v12 = vmul.f32 %v2282_v51, %v2282_v51  ;;  %v4867_v17 = vmul.f32 %v2283_v19, %v2283_v19  ;;  %v2678_v30 = vsel %vm2677_vm6, %v2676_v44, %v2675_v15  ;;  %v3130_v47 = vsel %vm2671_vm4, %v2887_v11, %v3129_v54 }
  0x7f   : > { %7150 = vst [vmem:[#allocation63_spill] sm:$0xff] %v4858_v38  ;;  %7151 = vst [vmem:[#allocation64_spill] sm:$0xff] %v4860_v40  ;;  %v4871_v16 = vmul.f32 %v2284_v63, %v2284_v63  ;;  %v4875_v55 = vmul.f32 %v4830_v10, %v4830_v10  ;;  %v2681_v39 = vsel %vm2680_vm7, %v2679_v48, %v2678_v30  ;;  %v3823_v46 = vrot.slane %v4692_v58, 9 }
  0x80   : > { %7152 = vst [vmem:[#allocation65_spill] sm:$0xff] %v4865_v12  ;;  %7153 = vst [vmem:[#allocation66_spill] sm:$0xff] %v4867_v17  ;;  %v3131_v56 = vsel %vm2674_vm5, %v2891_v43, %v3130_v47  ;;  %v4881_v51 = vmul.f32 %v4833_v31, %v4833_v31  ;;  %v4885_v19 = vmul.f32 %v4835_v18, %v4835_v18  ;;  %v1460_v28 = vrot.slane %v4388_v2, 7 }
  0x81   : > { %7154 = vst [vmem:[#allocation67_spill] sm:$0xff] %v4871_v16  ;;  %7155 = vst [vmem:[#allocation68_spill] sm:$0xff] %v4875_v55  ;;  %v2684_v63 = vsel %vm2683_vm8, %v2682_v37, %v2681_v39  ;;  %v3132_v10 = vsel %vm2677_vm6, %v2895_v35, %v3131_v56  ;;  %v7159_v24 = vmax.f32 %v4654_v23, %v4712_v9  ;;  %v1464_v44 = vrot.slane %v4391_v3, 7 }
  0x82   : > { %7156 = vst [vmem:[#allocation69_spill] sm:$0xff] %v4881_v51  ;;  %7157 = vst [vmem:[#allocation70_spill] sm:$0xff] %v4885_v19  ;;  %v2783_v45 = vpack.c.b16 %v2684_v63, %v2684_v63  ;;  %v3133_v18 = vsel %vm2680_vm7, %v2899_v36, %v3132_v10  ;;  %v1759_v25 = vmax.f32 %v4799_v5, %v4692_v58  ;;  %v1456_v5 = vrot.slane %v4382_v60, 7  ;;  %v7162_v63 = vld [vmem:[#allocation27_spill] sm:$0xff] }
  0x83   : > { %v4904_v33 = vsel %vm2683_vm8, %v2903_v41, %v3133_v18  ;;  %v4916_v26 = vmax.f32 %v7159_v24, %v4377_v57  ;;  %v4926_v7 = vcombine.high %v4382_v60, %v4382_v60  ;;  %v4931_v49 = vcombine.high %v4388_v2, %v4388_v2 }
  0x84   : > { %7158 = vst [vmem:[#allocation71_spill] sm:$0xff] %v4904_v33  ;;  %2800 = vst.msk [vmem:[%s4890_s29] sm:$0xf] %vm2799_vm9, %v2783_v45  ;;  %v4935_v9 = vcombine.high %v4391_v3, %v4391_v3  ;;  %v4939_v23 = vcombine.high %v4394_v4, %v4394_v4  ;;  %v7160_v48 = vcombine.high %v4510_v0, %v4510_v0  ;;  %v1468_v14 = vrot.slane %v4394_v4, 7 }
  0x85   : > { %v1458_v1 = vrot.slane %v4926_v7, 7  ;;  %v1462_v52 = vrot.slane %v4931_v49, 7  ;;  %v4954_v11 = vrot.slane %v1456_v5, 2  ;;  %v4958_v42 = vrot.slane %v1460_v28, 2  ;;  %v7164_v28 = vld [vmem:[#allocation58_spill] sm:$0xff] }
  0x86   : > { %v4949_v37 = vrot.slane %v7160_v48, %v4242_v6  ;;  %v1466_v13 = vrot.slane %v4935_v9, 7  ;;  %v4960_v35 = vrot.slane %v1464_v44, 2  ;;  %v4966_v0 = vrot.slane %v1468_v14, 2  ;;  %v7165_v48 = vld [vmem:[#allocation24_spill] sm:$0xff] }
  0x87   : > { %v4956_v43 = vrot.slane %v1458_v1, 2  ;;  %v4962_v36 = vrot.slane %v1462_v52, 2  ;;  %v1470_v62 = vrot.slane %v4939_v23, 7  ;;  %v713_v20 = vcombine.high %v4499_v34, %v4499_v34  ;;  %v7163_v1 = vld [vmem:[#allocation18_spill] sm:$0xff]  ;;  %v7166_v52 = vld [vmem:[#allocation59_spill] sm:$0xff]  ;;  %v7167_v14 = vld [vmem:[#allocation60_spill] sm:$0xff] }
  0x88   : > { %v4964_v41 = vrot.slane %v1466_v13, 2  ;;  %v1632_v15 = vmax.f32 %v4382_v60, %v4954_v11  ;;  %v1634_v30 = vmax.f32 %v4388_v2, %v4958_v42  ;;  %v7161_v47 = vmax.f32 %v4377_v57, %v4716_v61 }
  0x89   : > { %v1633_v54 = vmax.f32 %v4926_v7, %v4956_v43  ;;  %v2015_v56 = vmax.f32 %v1759_v25, %v3823_v46  ;;  %v729_v10 = vcombine.high %v7162_v63, %v7162_v63  ;;  %v4983_v45 = vrot.slane %v1470_v62, 2 }
  0x8a   : > { %v1694_v39 = vmax.f32 %v7161_v47, %v4658_v50  ;;  %v4987_v18 = vcombine.high %v4949_v37, %v4949_v37  ;;  %v1635_v24 = vmax.f32 %v4931_v49, %v4962_v36  ;;  %v1636_v5 = vmax.f32 %v4391_v3, %v4960_v35  ;;  %v7168_v47 = vld [vmem:[#allocation61_spill] sm:$0xff] }
  0x8b   : > { %v4998_v61 = vmax.f32 %v1632_v15, %v4926_v7  ;;  %v5001_v25 = vmax.f32 %v1633_v54, %v4388_v2  ;;  %v5004_v46 = vmax.f32 %v1634_v30, %v4931_v49  ;;  %v1752_v44 = vmax.f32 %v7164_v28, %v7163_v1  ;;  %v7169_v54 = vld [vmem:[#allocation62_spill] sm:$0xff] }
  0x8c   : > { %v1753_v13 = vmax.f32 %v7166_v52, %v7165_v48  ;;  %v1754_v62 = vmax.f32 %v7167_v14, %v4499_v34  ;;  %v1755_v29 = vmax.f32 %v7168_v47, %v713_v20  ;;  %v1639_v15 = vmax.f32 %v4939_v23, %v4983_v45 }
  0x8d   : > { %v1756_v8 = vmax.f32 %v7169_v54, %v7162_v63  ;;  %v1757_v30 = vmax.f32 %v4916_v26, %v729_v10  ;;  %v1758_v32 = vmax.f32 %v1694_v39, %v7170_v22  ;;  %v3817_v28 = vrot.slane %v7165_v48, 9 }
  0x8e   : > { %v3818_v27 = vrot.slane %v4499_v34, 9  ;;  %v3819_v52 = vrot.slane %v713_v20, 9  ;;  %v3820_v53 = vrot.slane %v7162_v63, 9  ;;  %v5023_v14 = vmax.f32 %v1635_v24, %v4391_v3 }
  0x8f   : > { %v5026_v47 = vmax.f32 %v1636_v5, %v4935_v9  ;;  %v3821_v31 = vrot.slane %v729_v10, 9  ;;  %v3822_v54 = vrot.slane %v7170_v22, 9  ;;  %v7171_v26 = vrot.slane %v7163_v1, 9 }
  0x90   : > { %v2009_v50 = vmax.f32 %v1753_v13, %v3817_v28  ;;  %v2010_v57 = vmax.f32 %v1754_v62, %v3818_v27  ;;  %v2011_v19 = vmax.f32 %v1755_v29, %v3819_v52  ;;  %v5031_v51 = vmax.f32 %v1639_v15, %v3787_v59  ;;  %v3786_v24 = vld.sshfl [vmem:[#allocation2 + $0x58] sm:$0x3 pattern:$0x76325410] }
  0x91   : > { %v2008_v39 = vmax.f32 %v1752_v44, %v7171_v26  ;;  %v2012_v55 = vmax.f32 %v1756_v8, %v3820_v53  ;;  %v2013_v16 = vmax.f32 %v1757_v30, %v3821_v31  ;;  %v2014_v17 = vmax.f32 %v1758_v32, %v3822_v54 }
  0x92   : > { %v2073_v5 = vmax.f32 %v2009_v50, %v4499_v34  ;;  %v2074_v40 = vmax.f32 %v2010_v57, %v713_v20  ;;  %v2075_v38 = vmax.f32 %v2011_v19, %v7162_v63  ;;  %v2079_v27 = vmax.f32 %v2015_v56, %v3786_v24 }
  0x93   : > { %v2072_v12 = vmax.f32 %v2008_v39, %v7165_v48  ;;  %v2076_v33 = vmax.f32 %v2012_v55, %v729_v10  ;;  %v2077_v1 = vmax.f32 %v2013_v16, %v7170_v22  ;;  %v2078_v44 = vmax.f32 %v2014_v17, %v4692_v58 }
  0x94   : > { %v2137_v53 = vmax.f32 %v2073_v5, %v4926_v7  ;;  %v2138_v31 = vmax.f32 %v2074_v40, %v4388_v2  ;;  %v2139_v32 = vmax.f32 %v2075_v38, %v4931_v49  ;;  %v2143_v55 = vmax.f32 %v2079_v27, %v4939_v23 }
  0x95   : > { %v2136_v29 = vmax.f32 %v2072_v12, %v4382_v60  ;;  %v2140_v8 = vmax.f32 %v2076_v33, %v4391_v3  ;;  %v2141_v34 = vmax.f32 %v2077_v1, %v4935_v9  ;;  %v2142_v19 = vmax.f32 %v2078_v44, %v4394_v4 }
  0x96   : > { %v2225_v58 = vmax.f32 %v2137_v53, %v4956_v43  ;;  %v2226_v60 = vmax.f32 %v2138_v31, %v4958_v42  ;;  %v2227_v12 = vmax.f32 %v2139_v32, %v4962_v36  ;;  %v2231_v33 = vmax.f32 %v2143_v55, %v4983_v45 }
  0x97   : > { %v2224_v16 = vmax.f32 %v2136_v29, %v4954_v11  ;;  %v2228_v40 = vmax.f32 %v2140_v8, %v4960_v35  ;;  %v2229_v38 = vmax.f32 %v2141_v34, %v4964_v41  ;;  %v2230_v17 = vmax.f32 %v2142_v19, %v4966_v0 }
  0x98   : > { %v2289_v20 = vmax.f32 %v2225_v58, %v4388_v2  ;;  %v2290_v11 = vmax.f32 %v2226_v60, %v4931_v49  ;;  %v2291_v43 = vmax.f32 %v2227_v12, %v4391_v3  ;;  %v2295_v56 = vmax.f32 %v2231_v33, %v3787_v59 }
  0x99   : > { %v2288_v22 = vmax.f32 %v2224_v16, %v4926_v7  ;;  %v2292_v42 = vmax.f32 %v2228_v40, %v4935_v9  ;;  %v2293_v36 = vmax.f32 %v2229_v38, %v4394_v4  ;;  %v2294_v35 = vmax.f32 %v2230_v17, %v4939_v23 }
  0x9a   : > { %v3957_v10 = vpack.c.bf16 %v2289_v20, %v2289_v20  ;;  %v3958_v57 = vpack.c.bf16 %v2290_v11, %v2290_v11  ;;  %v3959_v50 = vpack.c.bf16 %v2291_v43, %v2291_v43  ;;  %v3963_v13 = vpack.c.bf16 %v2295_v56, %v2295_v56 }
  0x9b   : > { %v3956_v63 = vpack.c.bf16 %v2288_v22, %v2288_v22  ;;  %v3960_v45 = vpack.c.bf16 %v2292_v42, %v2292_v42  ;;  %v3961_v48 = vpack.c.bf16 %v2293_v36, %v2293_v36  ;;  %v3962_v7 = vpack.c.bf16 %v2294_v35, %v2294_v35 }
  0x9c   : > { %v2609_v62 = vunpack.c.l.b16 %v3957_v10  ;;  %v2610_v49 = vunpack.c.l.b16 %v3958_v57  ;;  %v2611_v15 = vunpack.c.l.b16 %v3959_v50  ;;  %v2615_v52 = vunpack.c.l.b16 %v3963_v13 }
  0x9d   : > { %v2608_v2 = vunpack.c.l.b16 %v3956_v63  ;;  %v2612_v3 = vunpack.c.l.b16 %v3960_v45  ;;  %v2613_v30 = vunpack.c.l.b16 %v3961_v48  ;;  %v2614_v28 = vunpack.c.l.b16 %v3962_v7 }
  0x9e   : > { %v2685_v54 = vrot.slane %v2609_v62, 7  ;;  %v2687_v26 = vrot.slane %v2610_v49, 6  ;;  %v2689_v39 = vrot.slane %v2611_v15, 5  ;;  %v2907_v59 = vrot.slane %v2288_v22, %v4267_v21 }
  0x9f   : > { %v2691_v24 = vrot.slane %v2612_v3, 4  ;;  %v2693_v5 = vrot.slane %v2613_v30, 3  ;;  %v2695_v1 = vrot.slane %v2614_v28, 2  ;;  %v2697_v44 = vrot.slane %v2615_v52, 1 }
  0xa0   : > { %v2686_v27 = vsel %vm2665_vm2, %v2685_v54, %v2608_v2  ;;  %v2911_v29 = vrot.slane %v2289_v20, %v4267_v21  ;;  %v2915_v53 = vrot.slane %v2290_v11, %v4267_v21  ;;  %v2919_v31 = vrot.slane %v2291_v43, %v4267_v21 }
  0xa1   : > { %v2688_v32 = vsel %vm2668_vm3, %v2687_v26, %v2686_v27  ;;  %v2923_v8 = vrot.slane %v2292_v42, %v4267_v21  ;;  %v2927_v34 = vrot.slane %v2293_v36, %v4267_v21  ;;  %v2931_v19 = vrot.slane %v2294_v35, %v4267_v21  ;;  %v7182_v26 = vld [vmem:[#allocation3_spill] sm:$0xff] }
  0xa2   : > { %v2690_v55 = vsel %vm2671_vm4, %v2689_v39, %v2688_v32  ;;  %v2935_v16 = vrot.slane %v2295_v56, %v4267_v21  ;;  %v3135_v58 = vsel %vm2665_vm2, %v2911_v29, %v2907_v59  ;;  %v5073_v60 = vmul.f32 %v2288_v22, %v2288_v22  ;;  %v7184_v59 = vld [vmem:[#allocation5_spill] sm:$0xff] }
  0xa3   : > { %v2692_v12 = vsel %vm2674_vm5, %v2691_v24, %v2690_v55  ;;  %v3136_v40 = vsel %vm2668_vm3, %v2915_v53, %v3135_v58  ;;  %v5077_v38 = vmul.f32 %v2289_v20, %v2289_v20  ;;  %v5079_v17 = vmul.f32 %v2290_v11, %v2290_v11  ;;  %v7185_v24 = vld [vmem:[#allocation6_spill] sm:$0xff] }
  0xa4   : > { %7172 = vst [vmem:[#allocation27_spill] sm:$0xff] %v5073_v60  ;;  %v2694_v33 = vsel %vm2677_vm6, %v2693_v5, %v2692_v12  ;;  %v3137_v63 = vsel %vm2671_vm4, %v2919_v31, %v3136_v40  ;;  %v5083_v10 = vmul.f32 %v2291_v43, %v2291_v43  ;;  %v5085_v57 = vmul.f32 %v2292_v42, %v2292_v42  ;;  %v3788_v60 = vld.sshfl [vmem:[#allocation2 + $0x88] sm:$0x3 pattern:$0x76325410] }
  0xa5   : > { %7173 = vst [vmem:[#allocation18_spill] sm:$0xff] %v5077_v38  ;;  %7174 = vst [vmem:[#allocation58_spill] sm:$0xff] %v5079_v17  ;;  %v2696_v50 = vsel %vm2680_vm7, %v2695_v1, %v2694_v33  ;;  %v3138_v22 = vsel %vm2674_vm5, %v2923_v8, %v3137_v63  ;;  %v5089_v45 = vmul.f32 %v2293_v36, %v2293_v36  ;;  %v3831_v54 = vrot.slane %v4987_v18, 9  ;;  %v7186_v8 = vld [vmem:[#allocation26_spill] sm:$0xff] }
  0xa6   : > { %7175 = vst [vmem:[#allocation24_spill] sm:$0xff] %v5083_v10  ;;  %7176 = vst [vmem:[#allocation59_spill] sm:$0xff] %v5085_v57  ;;  %v5091_v48 = vmul.f32 %v2294_v35, %v2294_v35  ;;  %v2698_v20 = vsel %vm2683_vm8, %v2697_v44, %v2696_v50  ;;  %v3139_v11 = vsel %vm2677_vm6, %v2927_v34, %v3138_v22  ;;  %v1472_v1 = vrot.slane %v7182_v26, 7 }
  0xa7   : > { %7177 = vst [vmem:[#allocation60_spill] sm:$0xff] %v5089_v45  ;;  %v5095_v7 = vmul.f32 %v2295_v56, %v2295_v56  ;;  %v2784_v42 = vpack.c.b16 %v2698_v20, %v2698_v20  ;;  %v3140_v13 = vsel %vm2680_vm7, %v2931_v19, %v3139_v11  ;;  %v7181_v15 = vmax.f32 %v4935_v9, %v4964_v41  ;;  %v7183_v9 = vld [vmem:[#allocation4_spill] sm:$0xff] }
  0xa8   : > { %7178 = vst [vmem:[#allocation61_spill] sm:$0xff] %v5091_v48  ;;  %v5105_v35 = vsel %vm2683_vm8, %v2935_v16, %v3140_v13  ;;  %v1767_v30 = vmax.f32 %v5031_v51, %v4987_v18  ;;  %v5130_v39 = vcombine.high %v7182_v26, %v7182_v26  ;;  %v5134_v41 = vcombine.high %v7183_v9, %v7183_v9 }
  0xa9   : > { %7179 = vst [vmem:[#allocation62_spill] sm:$0xff] %v5095_v7  ;;  %7180 = vst [vmem:[#allocation50_spill] sm:$0xff] %v5105_v35  ;;  %v5117_v3 = vmax.f32 %v7181_v15, %v4394_v4  ;;  %v5138_v51 = vcombine.high %v7184_v59, %v7184_v59  ;;  %v5142_v5 = vcombine.high %v7185_v24, %v7185_v24  ;;  %v1476_v44 = vrot.slane %v7183_v9, 7 }
  0xaa   : > { %2801 = vst.msk [vmem:[%s4890_s29 + $0x4] sm:$0xf] %vm2799_vm9, %v2784_v42  ;;  %v1480_v27 = vrot.slane %v7184_v59, 7  ;;  %v1474_v29 = vrot.slane %v5130_v39, 7  ;;  %v1478_v53 = vrot.slane %v5134_v41, 7  ;;  %v1484_v32 = vrot.slane %v7185_v24, 7 }
  0xab   : > { %v1482_v31 = vrot.slane %v5138_v51, 7  ;;  %v7187_v34 = vcombine.high %v7186_v8, %v7186_v8  ;;  %v5157_v55 = vrot.slane %v1472_v1, 2  ;;  %v5159_v16 = vrot.slane %v1476_v44, 2  ;;  %v7189_v1 = vld [vmem:[#allocation29_spill] sm:$0xff] }
  0xac   : > { %v5161_v58 = vrot.slane %v1480_v27, 2  ;;  %v5163_v12 = vrot.slane %v1474_v29, 2  ;;  %v5165_v40 = vrot.slane %v1478_v53, 2  ;;  %v5169_v63 = vrot.slane %v1484_v32, 2  ;;  %v7190_v27 = vld [vmem:[#allocation31_spill] sm:$0xff] }
  0xad   : > { %v5155_v19 = vrot.slane %v7187_v34, %v4242_v6  ;;  %v5167_v33 = vrot.slane %v1482_v31, 2  ;;  %v1486_v50 = vrot.slane %v5142_v5, 7  ;;  %v1640_v22 = vmax.f32 %v7182_v26, %v5157_v55  ;;  %v7191_v34 = vld [vmem:[#allocation25_spill] sm:$0xff] }
  0xae   : > { %v1642_v20 = vmax.f32 %v7183_v9, %v5159_v16  ;;  %v1644_v11 = vmax.f32 %v7184_v59, %v5161_v58  ;;  %v7188_v42 = vmax.f32 %v4394_v4, %v4966_v0  ;;  %v2023_v15 = vmax.f32 %v1767_v30, %v3831_v54 }
  0xaf   : > { %v795_v44 = vcombine.high %v7189_v1, %v7189_v1  ;;  %v811_v29 = vcombine.high %v7190_v27, %v7190_v27  ;;  %v5188_v53 = vcombine.high %v5155_v19, %v5155_v19  ;;  %v5190_v31 = vrot.slane %v1486_v50, 2 }
  0xb0   : > { %v1702_v13 = vmax.f32 %v7188_v42, %v4939_v23  ;;  %v1641_v32 = vmax.f32 %v5130_v39, %v5163_v12  ;;  %v1643_v4 = vmax.f32 %v5134_v41, %v5165_v40  ;;  %v5201_v30 = vmax.f32 %v1640_v22, %v5130_v39  ;;  %v7192_v42 = vld [vmem:[#allocation30_spill] sm:$0xff]  ;;  %v3789_v23 = vld.sshfl [vmem:[#allocation2 + $0xa0] sm:$0x3 pattern:$0x76325410] }
  0xb1   : > { %v5204_v54 = vmax.f32 %v1642_v20, %v5134_v41  ;;  %v5207_v8 = vmax.f32 %v1644_v11, %v5138_v51  ;;  %v1760_v50 = vmax.f32 %v4998_v61, %v7191_v34  ;;  %v1761_v52 = vmax.f32 %v5001_v25, %v7192_v42 }
  0xb2   : > { %v1762_v28 = vmax.f32 %v5004_v46, %v7189_v1  ;;  %v1763_v49 = vmax.f32 %v5023_v14, %v795_v44  ;;  %v1764_v22 = vmax.f32 %v5026_v47, %v7190_v27  ;;  %v1765_v20 = vmax.f32 %v5117_v3, %v811_v29 }
  0xb3   : > { %v1766_v56 = vmax.f32 %v1702_v13, %v4949_v37  ;;  %v1647_v11 = vmax.f32 %v5142_v5, %v5190_v31  ;;  %v3825_v61 = vrot.slane %v7192_v42, 9  ;;  %v3826_v62 = vrot.slane %v7189_v1, 9 }
  0xb4   : > { %v3827_v25 = vrot.slane %v795_v44, 9  ;;  %v5225_v36 = vmax.f32 %v1641_v32, %v7183_v9  ;;  %v3828_v46 = vrot.slane %v7190_v27, 9  ;;  %v3829_v14 = vrot.slane %v811_v29, 9 }
  0xb5   : > { %v3830_v47 = vrot.slane %v4949_v37, 9  ;;  %v5230_v3 = vmax.f32 %v1643_v4, %v7184_v59  ;;  %v7193_v13 = vrot.slane %v7191_v34, 9  ;;  %v2017_v43 = vmax.f32 %v1761_v52, %v3825_v61 }
  0xb6   : > { %v2018_v0 = vmax.f32 %v1762_v28, %v3826_v62  ;;  %v2019_v7 = vmax.f32 %v1763_v49, %v3827_v25  ;;  %v2020_v48 = vmax.f32 %v1764_v22, %v3828_v46  ;;  %v2021_v45 = vmax.f32 %v1765_v20, %v3829_v14 }
  0xb7   : > { %v2016_v2 = vmax.f32 %v1760_v50, %v7193_v13  ;;  %v2022_v57 = vmax.f32 %v1766_v56, %v3830_v47  ;;  %v5234_v32 = vmax.f32 %v1647_v11, %v3789_v23  ;;  %v2081_v17 = vmax.f32 %v2017_v43, %v7189_v1 }
  0xb8   : > { %v2082_v38 = vmax.f32 %v2018_v0, %v795_v44  ;;  %v2083_v4 = vmax.f32 %v2019_v7, %v7190_v27  ;;  %v2084_v35 = vmax.f32 %v2020_v48, %v811_v29  ;;  %v2085_v34 = vmax.f32 %v2021_v45, %v4949_v37 }
  0xb9   : > { %v2080_v10 = vmax.f32 %v2016_v2, %v7192_v42  ;;  %v2086_v62 = vmax.f32 %v2022_v57, %v4987_v18  ;;  %v2087_v28 = vmax.f32 %v2023_v15, %v3788_v60  ;;  %v2145_v56 = vmax.f32 %v2081_v17, %v5130_v39 }
  0xba   : > { %v2146_v52 = vmax.f32 %v2082_v38, %v7183_v9  ;;  %v2147_v2 = vmax.f32 %v2083_v4, %v5134_v41  ;;  %v2148_v43 = vmax.f32 %v2084_v35, %v7184_v59  ;;  %v2149_v1 = vmax.f32 %v2085_v34, %v5138_v51 }
  0xbb   : > { %v2144_v49 = vmax.f32 %v2080_v10, %v7182_v26  ;;  %v2150_v7 = vmax.f32 %v2086_v62, %v7185_v24  ;;  %v2151_v48 = vmax.f32 %v2087_v28, %v5142_v5  ;;  %v2233_v18 = vmax.f32 %v2145_v56, %v5163_v12 }
  0xbc   : > { %v2234_v60 = vmax.f32 %v2146_v52, %v5159_v16  ;;  %v2235_v17 = vmax.f32 %v2147_v2, %v5165_v40  ;;  %v2236_v38 = vmax.f32 %v2148_v43, %v5161_v58  ;;  %v2237_v10 = vmax.f32 %v2149_v1, %v5167_v33  ;;  %v7220_v2 = vld [vmem:[#allocation28_spill] sm:$0xff] }
  0xbd   : > { %v2232_v37 = vmax.f32 %v2144_v49, %v5157_v55  ;;  %v2238_v57 = vmax.f32 %v2150_v7, %v5169_v63  ;;  %v2239_v45 = vmax.f32 %v2151_v48, %v5190_v31  ;;  %v5261_v26 = vmax.f32 %v2233_v18, %v7183_v9  ;;  %v7221_v49 = vld [vmem:[#allocation34_spill] sm:$0xff] }
  0xbe   : > { %v5264_v55 = vmax.f32 %v2234_v60, %v5134_v41  ;;  %v5267_v16 = vmax.f32 %v2235_v17, %v7184_v59  ;;  %v5270_v58 = vmax.f32 %v2236_v38, %v5138_v51  ;;  %v5273_v12 = vmax.f32 %v2237_v10, %v7185_v24 }
  0xbf   : > { %v5258_v35 = vmax.f32 %v2232_v37, %v5130_v39  ;;  %7195 = vst [vmem:[#allocation4_spill] sm:$0xff] %v5261_v26  ;;  %v5276_v40 = vmax.f32 %v2238_v57, %v5142_v5  ;;  %v5278_v39 = vmax.f32 %v2239_v45, %v3789_v23  ;;  %v3965_v41 = vpack.c.bf16 %v5261_v26, %v5261_v26  ;;  %v7219_v37 = vld [vmem:[#allocation35_spill] sm:$0xff] }
  0xc0   : > { %7196 = vst [vmem:[#allocation5_spill] sm:$0xff] %v5264_v55  ;;  %7197 = vst [vmem:[#allocation6_spill] sm:$0xff] %v5267_v16  ;;  %v3966_v59 = vpack.c.bf16 %v5264_v55, %v5264_v55  ;;  %v3967_v15 = vpack.c.bf16 %v5267_v16, %v5267_v16  ;;  %v3968_v44 = vpack.c.bf16 %v5270_v58, %v5270_v58 }
  0xc1   : > { %7194 = vst [vmem:[#allocation3_spill] sm:$0xff] %v5258_v35  ;;  %7198 = vst [vmem:[#allocation26_spill] sm:$0xff] %v5270_v58  ;;  %v3964_v9 = vpack.c.bf16 %v5258_v35, %v5258_v35  ;;  %v3969_v27 = vpack.c.bf16 %v5273_v12, %v5273_v12  ;;  %v3970_v29 = vpack.c.bf16 %v5276_v40, %v5276_v40  ;;  %v2617_v0 = vunpack.c.l.b16 %v3965_v41 }
  0xc2   : > { %7199 = vst [vmem:[#allocation29_spill] sm:$0xff] %v5273_v12  ;;  %7200 = vst [vmem:[#allocation31_spill] sm:$0xff] %v5276_v40  ;;  %v3971_v31 = vpack.c.bf16 %v5278_v39, %v5278_v39  ;;  %v2618_v50 = vunpack.c.l.b16 %v3966_v59  ;;  %v2619_v42 = vunpack.c.l.b16 %v3967_v15  ;;  %v2620_v22 = vunpack.c.l.b16 %v3968_v44 }
  0xc3   : > { %7201 = vst [vmem:[#allocation25_spill] sm:$0xff] %v5278_v39  ;;  %v2616_v23 = vunpack.c.l.b16 %v3964_v9  ;;  %v2621_v20 = vunpack.c.l.b16 %v3969_v27  ;;  %v2622_v11 = vunpack.c.l.b16 %v3970_v29  ;;  %v2699_v25 = vrot.slane %v2617_v0, 7 }
  0xc4   : > { %v2623_v61 = vunpack.c.l.b16 %v3971_v31  ;;  %v2701_v46 = vrot.slane %v2618_v50, 6  ;;  %v2703_v47 = vrot.slane %v2619_v42, 5  ;;  %v2705_v13 = vrot.slane %v2620_v22, 4 }
  0xc5   : > { %v2707_v4 = vrot.slane %v2621_v20, 3  ;;  %v2709_v34 = vrot.slane %v2622_v11, 2  ;;  %v2700_v62 = vsel %vm2665_vm2, %v2699_v25, %v2616_v23  ;;  %v5317_v18 = vmul.f32 %v5258_v35, %v5258_v35 }
  0xc6   : > { %v2711_v28 = vrot.slane %v2623_v61, 1  ;;  %v2702_v52 = vsel %vm2668_vm3, %v2701_v46, %v2700_v62  ;;  %v5322_v17 = vmul.f32 %v5261_v26, %v5261_v26  ;;  %v5326_v38 = vmul.f32 %v5264_v55, %v5264_v55  ;;  %v7211_v46 = vld [vmem:[#allocation7_spill] sm:$0xff]  ;;  %v7213_v62 = vld [vmem:[#allocation8_spill] sm:$0xff] }
  0xc7   : > { %v2704_v7 = vsel %vm2671_vm4, %v2703_v47, %v2702_v52  ;;  %7202 = vst [vmem:[#allocation30_spill] sm:$0xff] %v5317_v18  ;;  %v5330_v10 = vmul.f32 %v5267_v16, %v5267_v16  ;;  %v5335_v45 = vmul.f32 %v5270_v58, %v5270_v58  ;;  %v5339_v9 = vmul.f32 %v5273_v12, %v5273_v12  ;;  %v3790_v16 = vld.sshfl [vmem:[#allocation2 + $0xb8] sm:$0x3 pattern:$0x76325410] }
  0xc8   : > { %v2706_v60 = vsel %vm2674_vm5, %v2705_v13, %v2704_v7  ;;  %7203 = vst [vmem:[#allocation72_spill] sm:$0xff] %v5322_v17  ;;  %7204 = vst [vmem:[#allocation73_spill] sm:$0xff] %v5326_v38  ;;  %v5343_v41 = vmul.f32 %v5276_v40, %v5276_v40  ;;  %v5348_v15 = vmul.f32 %v5278_v39, %v5278_v39  ;;  %v3839_v25 = vrot.slane %v5188_v53, 9  ;;  %v7212_v13 = vld [vmem:[#allocation10_spill] sm:$0xff] }
  0xc9   : > { %7205 = vst [vmem:[#allocation74_spill] sm:$0xff] %v5330_v10  ;;  %v2708_v57 = vsel %vm2677_vm6, %v2707_v4, %v2706_v60  ;;  %7206 = vst [vmem:[#allocation75_spill] sm:$0xff] %v5335_v45  ;;  %v7210_v11 = vmax.f32 %v5138_v51, %v5167_v33  ;;  %v5376_v47 = vcombine.high %v7211_v46, %v7211_v46  ;;  %v7214_v33 = vld [vmem:[#allocation11_spill] sm:$0xff]  ;;  %v1488_v52 = vrot.slane %v7211_v46, 7 }
  0xca   : > { %7207 = vst [vmem:[#allocation76_spill] sm:$0xff] %v5339_v9  ;;  %7208 = vst [vmem:[#allocation77_spill] sm:$0xff] %v5343_v41  ;;  %v2710_v59 = vsel %vm2680_vm7, %v2709_v34, %v2708_v57  ;;  %v5380_v4 = vcombine.high %v7212_v13, %v7212_v13  ;;  %v1775_v34 = vmax.f32 %v5234_v32, %v5188_v53  ;;  %v1492_v60 = vrot.slane %v7212_v13, 7 }
  0xcb   : > { %7209 = vst [vmem:[#allocation78_spill] sm:$0xff] %v5348_v15  ;;  %v2712_v29 = vsel %vm2683_vm8, %v2711_v28, %v2710_v59  ;;  %v5371_v61 = vmax.f32 %v7210_v11, %v7185_v24  ;;  %v5388_v51 = vcombine.high %v7213_v62, %v7213_v62  ;;  %v5392_v28 = vcombine.high %v7214_v33, %v7214_v33  ;;  %v7215_v59 = vld [vmem:[#allocation36_spill] sm:$0xff] }
  0xcc   : > { %v2785_v50 = vpack.c.b16 %v2712_v29, %v2712_v29  ;;  %v1490_v7 = vrot.slane %v5376_v47, 7  ;;  %v1494_v57 = vrot.slane %v5380_v4, 7  ;;  %v1496_v32 = vrot.slane %v7213_v62, 7 }
  0xcd   : > { %v7216_v29 = vcombine.high %v7215_v59, %v7215_v59  ;;  %v5405_v11 = vrot.slane %v1488_v52, 2  ;;  %v1498_v20 = vrot.slane %v5388_v51, 7  ;;  %v1500_v22 = vrot.slane %v7214_v33, 7 }
  0xce   : > { %2802 = vst.msk [vmem:[%s4890_s29 + $0x8] sm:$0xf] %vm2799_vm9, %v2785_v50  ;;  %v5409_v42 = vrot.slane %v1490_v7, 2  ;;  %v5411_v0 = vrot.slane %v1492_v60, 2  ;;  %v5413_v23 = vrot.slane %v1494_v57, 2  ;;  %v5415_v31 = vrot.slane %v1496_v32, 2 }
  0xcf   : > { %v5403_v50 = vrot.slane %v7216_v29, %v4242_v6  ;;  %v5417_v27 = vrot.slane %v1498_v20, 2  ;;  %v5419_v44 = vrot.slane %v1500_v22, 2  ;;  %v1502_v59 = vrot.slane %v5392_v28, 7  ;;  %v7218_v60 = vld [vmem:[#allocation32_spill] sm:$0xff] }
  0xd0   : > { %v1648_v52 = vmax.f32 %v7211_v46, %v5405_v11  ;;  %v7217_v7 = vmax.f32 %v7185_v24, %v5169_v63  ;;  %v877_v57 = vcombine.high %v7218_v60, %v7218_v60  ;;  %v1649_v32 = vmax.f32 %v5376_v47, %v5409_v42 }
  0xd1   : > { %v1650_v22 = vmax.f32 %v7212_v13, %v5411_v0  ;;  %v2031_v20 = vmax.f32 %v1775_v34, %v3839_v25  ;;  %v893_v48 = vcombine.high %v7219_v37, %v7219_v37  ;;  %v5438_v1 = vcombine.high %v5403_v50, %v5403_v50 }
  0xd2   : > { %v1710_v29 = vmax.f32 %v7217_v7, %v5142_v5  ;;  %v5440_v43 = vrot.slane %v1502_v59, 2  ;;  %v1651_v24 = vmax.f32 %v5380_v4, %v5413_v23  ;;  %v1652_v5 = vmax.f32 %v7213_v62, %v5415_v31 }
  0xd3   : > { %v5451_v34 = vmax.f32 %v1648_v52, %v5376_v47  ;;  %v5454_v7 = vmax.f32 %v1649_v32, %v7212_v13  ;;  %v5457_v59 = vmax.f32 %v1650_v22, %v5380_v4  ;;  %v1768_v56 = vmax.f32 %v5201_v30, %v7220_v2 }
  0xd4   : > { %v1769_v14 = vmax.f32 %v5225_v36, %v7221_v49  ;;  %v1770_v63 = vmax.f32 %v5204_v54, %v7218_v60  ;;  %v1771_v25 = vmax.f32 %v5230_v3, %v877_v57  ;;  %v1772_v52 = vmax.f32 %v5207_v8, %v7219_v37 }
  0xd5   : > { %v1655_v32 = vmax.f32 %v5392_v28, %v5440_v43  ;;  %v1773_v22 = vmax.f32 %v5371_v61, %v893_v48  ;;  %v1774_v15 = vmax.f32 %v1710_v29, %v5155_v19  ;;  %v3833_v30 = vrot.slane %v7221_v49, 9  ;;  %v3791_v29 = vld.sshfl [vmem:[#allocation2 + $0xd0] sm:$0x3 pattern:$0x76325410] }
  0xd6   : > { %v3834_v41 = vrot.slane %v7218_v60, 9  ;;  %v3835_v36 = vrot.slane %v877_v57, 9  ;;  %v3836_v9 = vrot.slane %v7219_v37, 9  ;;  %v3837_v54 = vrot.slane %v893_v48, 9 }
  0xd7   : > { %v5476_v3 = vmax.f32 %v1651_v24, %v7213_v62  ;;  %v5479_v8 = vmax.f32 %v1652_v5, %v5388_v51  ;;  %v3838_v45 = vrot.slane %v5155_v19, 9  ;;  %v7222_v61 = vrot.slane %v7220_v2, 9 }
  0xd8   : > { %v2025_v38 = vmax.f32 %v1769_v14, %v3833_v30  ;;  %v2026_v17 = vmax.f32 %v1770_v63, %v3834_v41  ;;  %v2027_v18 = vmax.f32 %v1771_v25, %v3835_v36  ;;  %v2028_v39 = vmax.f32 %v1772_v52, %v3836_v9 }
  0xd9   : > { %v2024_v10 = vmax.f32 %v1768_v56, %v7222_v61  ;;  %v5484_v40 = vmax.f32 %v1655_v32, %v3791_v29  ;;  %v2029_v12 = vmax.f32 %v1773_v22, %v3837_v54  ;;  %v2030_v58 = vmax.f32 %v1774_v15, %v3838_v45 }
  0xda   : > { %v2089_v5 = vmax.f32 %v2025_v38, %v7218_v60  ;;  %v2090_v55 = vmax.f32 %v2026_v17, %v877_v57  ;;  %v2091_v26 = vmax.f32 %v2027_v18, %v7219_v37  ;;  %v2092_v35 = vmax.f32 %v2028_v39, %v893_v48 }
  0xdb   : > { %v2088_v24 = vmax.f32 %v2024_v10, %v7221_v49  ;;  %v2093_v56 = vmax.f32 %v2029_v12, %v5155_v19  ;;  %v2094_v14 = vmax.f32 %v2030_v58, %v5188_v53  ;;  %v2095_v2 = vmax.f32 %v2031_v20, %v3790_v16 }
  0xdc   : > { %v2153_v41 = vmax.f32 %v2089_v5, %v5376_v47  ;;  %v2154_v45 = vmax.f32 %v2090_v55, %v7212_v13  ;;  %v2155_v49 = vmax.f32 %v2091_v26, %v5380_v4  ;;  %v2156_v10 = vmax.f32 %v2092_v35, %v7213_v62 }
  0xdd   : > { %v2152_v9 = vmax.f32 %v2088_v24, %v7211_v46  ;;  %v2157_v17 = vmax.f32 %v2093_v56, %v5388_v51  ;;  %v2158_v37 = vmax.f32 %v2094_v14, %v7214_v33  ;;  %v2159_v39 = vmax.f32 %v2095_v2, %v5392_v28  ;;  %v7250_v2 = vld [vmem:[#allocation39_spill] sm:$0xff] }
  0xde   : > { %v2241_v53 = vmax.f32 %v2153_v41, %v5409_v42  ;;  %v2242_v16 = vmax.f32 %v2154_v45, %v5411_v0  ;;  %v2243_v58 = vmax.f32 %v2155_v49, %v5413_v23  ;;  %v2244_v55 = vmax.f32 %v2156_v10, %v5415_v31 }
  0xdf   : > { %v2240_v19 = vmax.f32 %v2152_v9, %v5405_v11  ;;  %v2245_v26 = vmax.f32 %v2157_v17, %v5417_v27  ;;  %v2246_v35 = vmax.f32 %v2158_v37, %v5419_v44  ;;  %v2247_v12 = vmax.f32 %v2159_v39, %v5440_v43 }
  0xe0   : > { %v5511_v18 = vmax.f32 %v2241_v53, %v7212_v13  ;;  %v5514_v38 = vmax.f32 %v2242_v16, %v5380_v4  ;;  %v5517_v15 = vmax.f32 %v2243_v58, %v7213_v62  ;;  %v5520_v31 = vmax.f32 %v2244_v55, %v5388_v51 }
  0xe1   : > { %v5508_v48 = vmax.f32 %v2240_v19, %v5376_v47  ;;  %v5523_v23 = vmax.f32 %v2245_v26, %v7214_v33  ;;  %v5526_v43 = vmax.f32 %v2246_v35, %v5392_v28  ;;  %v5528_v0 = vmax.f32 %v2247_v12, %v3791_v29 }
  0xe2   : > { %7224 = vst [vmem:[#allocation10_spill] sm:$0xff] %v5511_v18  ;;  %7225 = vst [vmem:[#allocation8_spill] sm:$0xff] %v5514_v38  ;;  %v3973_v46 = vpack.c.bf16 %v5511_v18, %v5511_v18  ;;  %v3974_v47 = vpack.c.bf16 %v5514_v38, %v5514_v38  ;;  %v3975_v13 = vpack.c.bf16 %v5517_v15, %v5517_v15 }
  0xe3   : > { %7223 = vst [vmem:[#allocation7_spill] sm:$0xff] %v5508_v48  ;;  %7226 = vst [vmem:[#allocation11_spill] sm:$0xff] %v5517_v15  ;;  %v3972_v42 = vpack.c.bf16 %v5508_v48, %v5508_v48  ;;  %v3976_v4 = vpack.c.bf16 %v5520_v31, %v5520_v31  ;;  %v3977_v62 = vpack.c.bf16 %v5523_v23, %v5523_v23 }
  0xe4   : > { %7227 = vst [vmem:[#allocation36_spill] sm:$0xff] %v5520_v31  ;;  %7228 = vst [vmem:[#allocation32_spill] sm:$0xff] %v5523_v23  ;;  %v3978_v11 = vpack.c.bf16 %v5526_v43, %v5526_v43  ;;  %v3979_v60 = vpack.c.bf16 %v5528_v0, %v5528_v0  ;;  %v2625_v20 = vunpack.c.l.b16 %v3973_v46  ;;  %v2626_v63 = vunpack.c.l.b16 %v3974_v47 }
  0xe5   : > { %7229 = vst [vmem:[#allocation35_spill] sm:$0xff] %v5526_v43  ;;  %7230 = vst [vmem:[#allocation28_spill] sm:$0xff] %v5528_v0  ;;  %v2624_v57 = vunpack.c.l.b16 %v3972_v42  ;;  %v2627_v25 = vunpack.c.l.b16 %v3975_v13  ;;  %v2628_v52 = vunpack.c.l.b16 %v3976_v4  ;;  %v2629_v32 = vunpack.c.l.b16 %v3977_v62 }
  0xe6   : > { %v2630_v22 = vunpack.c.l.b16 %v3978_v11  ;;  %v2631_v30 = vunpack.c.l.b16 %v3979_v60  ;;  %v2713_v54 = vrot.slane %v2625_v20, 7  ;;  %v2715_v61 = vrot.slane %v2626_v63, 6 }
  0xe7   : > { %v2717_v29 = vrot.slane %v2627_v25, 5  ;;  %v2719_v24 = vrot.slane %v2628_v52, 4  ;;  %v2721_v5 = vrot.slane %v2629_v32, 3  ;;  %v5567_v53 = vmul.f32 %v5508_v48, %v5508_v48 }
  0xe8   : > { %v2723_v56 = vrot.slane %v2630_v22, 2  ;;  %v2725_v14 = vrot.slane %v2631_v30, 1  ;;  %v2714_v9 = vsel %vm2665_vm2, %v2713_v54, %v2624_v57  ;;  %v5571_v16 = vmul.f32 %v5511_v18, %v5511_v18 }
  0xe9   : > { %v2716_v10 = vsel %vm2668_vm3, %v2715_v61, %v2714_v9  ;;  %7231 = vst [vmem:[#allocation34_spill] sm:$0xff] %v5567_v53  ;;  %v5575_v58 = vmul.f32 %v5514_v38, %v5514_v38  ;;  %v5580_v26 = vmul.f32 %v5517_v15, %v5517_v15  ;;  %v5584_v35 = vmul.f32 %v5520_v31, %v5520_v31  ;;  %v3792_v53 = vld.sshfl [vmem:[#allocation2 + $0xe8] sm:$0x3 pattern:$0x76325410] }
  0xea   : > { %v2718_v19 = vsel %vm2671_vm4, %v2717_v29, %v2716_v10  ;;  %7232 = vst [vmem:[#allocation79_spill] sm:$0xff] %v5571_v16  ;;  %v5588_v12 = vmul.f32 %v5523_v23, %v5523_v23  ;;  %v5593_v46 = vmul.f32 %v5526_v43, %v5526_v43  ;;  %v5597_v47 = vmul.f32 %v5528_v0, %v5528_v0  ;;  %v7240_v29 = vld [vmem:[#allocation9_spill] sm:$0xff] }
  0xeb   : > { %7233 = vst [vmem:[#allocation80_spill] sm:$0xff] %v5575_v58  ;;  %v2720_v55 = vsel %vm2674_vm5, %v2719_v24, %v2718_v19  ;;  %7234 = vst [vmem:[#allocation81_spill] sm:$0xff] %v5580_v26  ;;  %v7239_v52 = vmax.f32 %v5388_v51, %v5417_v27  ;;  %v1783_v22 = vmax.f32 %v5484_v40, %v5438_v1  ;;  %v3847_v61 = vrot.slane %v5438_v1, 9  ;;  %v7242_v27 = vld [vmem:[#allocation13_spill] sm:$0xff]  ;;  %v7243_v40 = vld [vmem:[#allocation14_spill] sm:$0xff] }
  0xec   : > { %7235 = vst [vmem:[#allocation82_spill] sm:$0xff] %v5584_v35  ;;  %7236 = vst [vmem:[#allocation83_spill] sm:$0xff] %v5588_v12  ;;  %v2722_v42 = vsel %vm2677_vm6, %v2721_v5, %v2720_v55  ;;  %v5628_v24 = vcombine.high %v7240_v29, %v7240_v29  ;;  %v7241_v5 = vld [vmem:[#allocation12_spill] sm:$0xff]  ;;  %v5636_v51 = vcombine.high %v7242_v27, %v7242_v27  ;;  %v1504_v9 = vrot.slane %v7240_v29, 7 }
  0xed   : > { %7237 = vst [vmem:[#allocation84_spill] sm:$0xff] %v5593_v46  ;;  %7238 = vst [vmem:[#allocation85_spill] sm:$0xff] %v5597_v47  ;;  %v2724_v4 = vsel %vm2680_vm7, %v2723_v56, %v2722_v42  ;;  %v5619_v32 = vmax.f32 %v7239_v52, %v7214_v33  ;;  %v5632_v56 = vcombine.high %v7241_v5, %v7241_v5  ;;  %v1508_v10 = vrot.slane %v7241_v5, 7  ;;  %v7244_v52 = vld [vmem:[#allocation41_spill] sm:$0xff] }
  0xee   : > { %v2726_v57 = vsel %vm2683_vm8, %v2725_v14, %v2724_v4  ;;  %v5642_v14 = vcombine.high %v7243_v40, %v7243_v40  ;;  %v1512_v19 = vrot.slane %v7242_v27, 7  ;;  %v1506_v55 = vrot.slane %v5628_v24, 7  ;;  %v3793_v47 = vld.sshfl [vmem:[#allocation2 + $0x100] sm:$0x3 pattern:$0x76325410] }
  0xef   : > { %v2786_v30 = vpack.c.b16 %v2726_v57, %v2726_v57  ;;  %v1510_v42 = vrot.slane %v5632_v56, 7  ;;  %v1514_v4 = vrot.slane %v5636_v51, 7  ;;  %v1516_v57 = vrot.slane %v7243_v40, 7 }
  0xf0   : > { %v5657_v25 = vrot.slane %v1504_v9, 2  ;;  %v5659_v63 = vrot.slane %v1508_v10, 2  ;;  %v5661_v20 = vrot.slane %v1512_v19, 2  ;;  %v5663_v60 = vrot.slane %v1506_v55, 2 }
  0xf1   : > { %2803 = vst.msk [vmem:[%s4890_s29 + $0xc] sm:$0xf] %vm2799_vm9, %v2786_v30  ;;  %v7245_v30 = vcombine.high %v7244_v52, %v7244_v52  ;;  %v5665_v11 = vrot.slane %v1510_v42, 2  ;;  %v5667_v62 = vrot.slane %v1514_v4, 2  ;;  %v5669_v13 = vrot.slane %v1516_v57, 2  ;;  %v7247_v4 = vld [vmem:[#allocation38_spill] sm:$0xff] }
  0xf2   : > { %v1518_v39 = vrot.slane %v5642_v14, 7  ;;  %v1656_v52 = vmax.f32 %v7240_v29, %v5657_v25  ;;  %v1658_v9 = vmax.f32 %v7241_v5, %v5659_v63  ;;  %v1660_v10 = vmax.f32 %v7242_v27, %v5661_v20 }
  0xf3   : > { %v5655_v54 = vrot.slane %v7245_v30, %v4242_v6  ;;  %v7246_v19 = vmax.f32 %v7214_v33, %v5419_v44  ;;  %v2039_v42 = vmax.f32 %v1783_v22, %v3847_v61  ;;  %v959_v57 = vcombine.high %v7247_v4, %v7247_v4  ;;  %v7248_v30 = vld [vmem:[#allocation40_spill] sm:$0xff] }
  0xf4   : > { %v975_v37 = vcombine.high %v7248_v30, %v7248_v30  ;;  %v5690_v49 = vrot.slane %v1518_v39, 2  ;;  %v1657_v45 = vmax.f32 %v5628_v24, %v5663_v60  ;;  %v1659_v44 = vmax.f32 %v5632_v56, %v5665_v11 }
  0xf5   : > { %v1718_v55 = vmax.f32 %v7246_v19, %v5392_v28  ;;  %v5688_v17 = vcombine.high %v5655_v54, %v5655_v54  ;;  %v5701_v22 = vmax.f32 %v1656_v52, %v5628_v24  ;;  %v5704_v61 = vmax.f32 %v1658_v9, %v5632_v56  ;;  %v7249_v19 = vld [vmem:[#allocation33_spill] sm:$0xff] }
  0xf6   : > { %v5707_v39 = vmax.f32 %v1660_v10, %v5636_v51  ;;  %v1776_v41 = vmax.f32 %v5451_v34, %v7249_v19  ;;  %v1777_v36 = vmax.f32 %v5454_v7, %v7250_v2  ;;  %v1778_v33 = vmax.f32 %v5457_v59, %v7247_v4 }
  0xf7   : > { %v1779_v28 = vmax.f32 %v5476_v3, %v959_v57  ;;  %v1780_v52 = vmax.f32 %v5479_v8, %v7248_v30  ;;  %v1781_v9 = vmax.f32 %v5619_v32, %v975_v37  ;;  %v1782_v10 = vmax.f32 %v1718_v55, %v5403_v50 }
  0xf8   : > { %v1663_v46 = vmax.f32 %v5642_v14, %v5690_v49  ;;  %v3841_v34 = vrot.slane %v7250_v2, 9  ;;  %v3842_v7 = vrot.slane %v7247_v4, 9  ;;  %v3843_v12 = vrot.slane %v959_v57, 9 }
  0xf9   : > { %v5725_v59 = vmax.f32 %v1657_v45, %v7241_v5  ;;  %v3844_v3 = vrot.slane %v7248_v30, 9  ;;  %v3845_v35 = vrot.slane %v975_v37, 9  ;;  %v3846_v8 = vrot.slane %v5403_v50, 9 }
  0xfa   : > { %v5730_v32 = vmax.f32 %v1659_v44, %v7242_v27  ;;  %v7251_v55 = vrot.slane %v7249_v19, 9  ;;  %v2033_v58 = vmax.f32 %v1777_v36, %v3841_v34  ;;  %v2034_v16 = vmax.f32 %v1778_v33, %v3842_v7 }
  0xfb   : > { %v2035_v0 = vmax.f32 %v1779_v28, %v3843_v12  ;;  %v2036_v43 = vmax.f32 %v1780_v52, %v3844_v3  ;;  %v2037_v23 = vmax.f32 %v1781_v9, %v3845_v35  ;;  %v2038_v31 = vmax.f32 %v1782_v10, %v3846_v8 }
  0xfc   : > { %v2032_v26 = vmax.f32 %v1776_v41, %v7251_v55  ;;  %v5734_v45 = vmax.f32 %v1663_v46, %v3793_v47  ;;  %v2097_v38 = vmax.f32 %v2033_v58, %v7247_v4  ;;  %v2098_v18 = vmax.f32 %v2034_v16, %v959_v57 }
  0xfd   : > { %v2099_v44 = vmax.f32 %v2035_v0, %v7248_v30  ;;  %v2100_v48 = vmax.f32 %v2036_v43, %v975_v37  ;;  %v2101_v19 = vmax.f32 %v2037_v23, %v5403_v50  ;;  %v2102_v36 = vmax.f32 %v2038_v31, %v5438_v1 }
  0xfe   : > { %v2096_v15 = vmax.f32 %v2032_v26, %v7250_v2  ;;  %v2103_v41 = vmax.f32 %v2039_v42, %v3792_v53  ;;  %v2161_v35 = vmax.f32 %v2097_v38, %v5628_v24  ;;  %v2162_v46 = vmax.f32 %v2098_v18, %v7241_v5 }
  0xff   : > { %v2163_v33 = vmax.f32 %v2099_v44, %v5632_v56  ;;  %v2164_v2 = vmax.f32 %v2100_v48, %v7242_v27  ;;  %v2165_v16 = vmax.f32 %v2101_v19, %v5636_v51  ;;  %v2166_v0 = vmax.f32 %v2102_v36, %v7243_v40 }
 0x100   : > { %v2160_v12 = vmax.f32 %v2096_v15, %v7240_v29  ;;  %v2167_v43 = vmax.f32 %v2103_v41, %v5642_v14  ;;  %v2249_v1 = vmax.f32 %v2161_v35, %v5663_v60  ;;  %v2250_v15 = vmax.f32 %v2162_v46, %v5659_v63 }
 0x101   : > { %v2251_v38 = vmax.f32 %v2163_v33, %v5665_v11  ;;  %v2252_v18 = vmax.f32 %v2164_v2, %v5661_v20  ;;  %v2253_v31 = vmax.f32 %v2165_v16, %v5667_v62  ;;  %v2254_v48 = vmax.f32 %v2166_v0, %v5669_v13  ;;  %v7278_v33 = vld [vmem:[#allocation37_spill] sm:$0xff] }
 0x102   : > { %v2248_v50 = vmax.f32 %v2160_v12, %v5657_v25  ;;  %v2255_v23 = vmax.f32 %v2167_v43, %v5690_v49  ;;  %v5761_v53 = vmax.f32 %v2249_v1, %v7241_v5  ;;  %v5764_v58 = vmax.f32 %v2250_v15, %v5632_v56  ;;  %v7279_v12 = vld [vmem:[#allocation43_spill] sm:$0xff] }
 0x103   : > { %v5767_v26 = vmax.f32 %v2251_v38, %v7242_v27  ;;  %v5770_v11 = vmax.f32 %v2252_v18, %v5636_v51  ;;  %v5773_v60 = vmax.f32 %v2253_v31, %v7243_v40  ;;  %v5776_v49 = vmax.f32 %v2254_v48, %v5642_v14 }
 0x104   : > { %v5758_v37 = vmax.f32 %v2248_v50, %v5628_v24  ;;  %7253 = vst [vmem:[#allocation12_spill] sm:$0xff] %v5761_v53  ;;  %7254 = vst [vmem:[#allocation13_spill] sm:$0xff] %v5764_v58  ;;  %v5778_v20 = vmax.f32 %v2255_v23, %v3793_v47  ;;  %v3981_v25 = vpack.c.bf16 %v5761_v53, %v5761_v53  ;;  %v7277_v50 = vld [vmem:[#allocation46_spill] sm:$0xff] }
 0x105   : > { %7255 = vst [vmem:[#allocation14_spill] sm:$0xff] %v5767_v26  ;;  %7256 = vst [vmem:[#allocation41_spill] sm:$0xff] %v5770_v11  ;;  %v3982_v29 = vpack.c.bf16 %v5764_v58, %v5764_v58  ;;  %v3983_v24 = vpack.c.bf16 %v5767_v26, %v5767_v26  ;;  %v3984_v5 = vpack.c.bf16 %v5770_v11, %v5770_v11 }
 0x106   : > { %7252 = vst [vmem:[#allocation9_spill] sm:$0xff] %v5758_v37  ;;  %7257 = vst [vmem:[#allocation38_spill] sm:$0xff] %v5773_v60  ;;  %v3980_v63 = vpack.c.bf16 %v5758_v37, %v5758_v37  ;;  %v3985_v56 = vpack.c.bf16 %v5773_v60, %v5773_v60  ;;  %v3986_v47 = vpack.c.bf16 %v5776_v49, %v5776_v49  ;;  %v2633_v4 = vunpack.c.l.b16 %v3981_v25 }
 0x107   : > { %7258 = vst [vmem:[#allocation40_spill] sm:$0xff] %v5776_v49  ;;  %7259 = vst [vmem:[#allocation33_spill] sm:$0xff] %v5778_v20  ;;  %v3987_v27 = vpack.c.bf16 %v5778_v20, %v5778_v20  ;;  %v2634_v57 = vunpack.c.l.b16 %v3982_v29  ;;  %v2635_v30 = vunpack.c.l.b16 %v3983_v24  ;;  %v2636_v28 = vunpack.c.l.b16 %v3984_v5 }
 0x108   : > { %v2632_v42 = vunpack.c.l.b16 %v3980_v63  ;;  %v2637_v52 = vunpack.c.l.b16 %v3985_v56  ;;  %v2638_v9 = vunpack.c.l.b16 %v3986_v47  ;;  %v2727_v34 = vrot.slane %v2633_v4, 7 }
 0x109   : > { %v2639_v10 = vunpack.c.l.b16 %v3987_v27  ;;  %v2729_v7 = vrot.slane %v2634_v57, 6  ;;  %v2731_v8 = vrot.slane %v2635_v30, 5  ;;  %v2733_v55 = vrot.slane %v2636_v28, 4 }
 0x10a   : > { %v2735_v44 = vrot.slane %v2637_v52, 3  ;;  %v2737_v19 = vrot.slane %v2638_v9, 2  ;;  %v2728_v36 = vsel %vm2665_vm2, %v2727_v34, %v2632_v42  ;;  %v5817_v1 = vmul.f32 %v5758_v37, %v5758_v37 }
 0x10b   : > { %v2739_v41 = vrot.slane %v2639_v10, 1  ;;  %v2730_v46 = vsel %vm2668_vm3, %v2729_v7, %v2728_v36  ;;  %v5822_v38 = vmul.f32 %v5761_v53, %v5761_v53  ;;  %v5826_v18 = vmul.f32 %v5764_v58, %v5764_v58  ;;  %v7269_v7 = vld [vmem:[#allocation15_spill] sm:$0xff]  ;;  %v7271_v36 = vld [vmem:[#allocation17_spill] sm:$0xff] }
 0x10c   : > { %v2732_v0 = vsel %vm2671_vm4, %v2731_v8, %v2730_v46  ;;  %7260 = vst [vmem:[#allocation39_spill] sm:$0xff] %v5817_v1  ;;  %v5830_v31 = vmul.f32 %v5767_v26, %v5767_v26  ;;  %v5835_v23 = vmul.f32 %v5770_v11, %v5770_v11  ;;  %v5839_v63 = vmul.f32 %v5773_v60, %v5773_v60 }
 0x10d   : > { %v2734_v15 = vsel %vm2674_vm5, %v2733_v55, %v2732_v0  ;;  %7261 = vst [vmem:[#allocation86_spill] sm:$0xff] %v5822_v38  ;;  %7262 = vst [vmem:[#allocation87_spill] sm:$0xff] %v5826_v18  ;;  %v5843_v25 = vmul.f32 %v5776_v49, %v5776_v49  ;;  %v5848_v24 = vmul.f32 %v5778_v20, %v5778_v20  ;;  %v3855_v34 = vrot.slane %v5688_v17, 9  ;;  %v7270_v55 = vld [vmem:[#allocation16_spill] sm:$0xff] }
 0x10e   : > { %7263 = vst [vmem:[#allocation88_spill] sm:$0xff] %v5830_v31  ;;  %v2736_v48 = vsel %vm2677_vm6, %v2735_v44, %v2734_v15  ;;  %7264 = vst [vmem:[#allocation89_spill] sm:$0xff] %v5835_v23  ;;  %v7268_v9 = vmax.f32 %v5636_v51, %v5667_v62  ;;  %v5876_v8 = vcombine.high %v7269_v7, %v7269_v7  ;;  %v7272_v51 = vld [vmem:[#allocation19_spill] sm:$0xff]  ;;  %v1520_v46 = vrot.slane %v7269_v7, 7 }
 0x10f   : > { %7265 = vst [vmem:[#allocation90_spill] sm:$0xff] %v5839_v63  ;;  %7266 = vst [vmem:[#allocation91_spill] sm:$0xff] %v5843_v25  ;;  %v2738_v29 = vsel %vm2680_vm7, %v2737_v19, %v2736_v48  ;;  %v5880_v44 = vcombine.high %v7270_v55, %v7270_v55  ;;  %v1791_v19 = vmax.f32 %v5734_v45, %v5688_v17  ;;  %v1524_v15 = vrot.slane %v7270_v55, 7 }
 0x110   : > { %7267 = vst [vmem:[#allocation92_spill] sm:$0xff] %v5848_v24  ;;  %v2740_v47 = vsel %vm2683_vm8, %v2739_v41, %v2738_v29  ;;  %v5871_v10 = vmax.f32 %v7268_v9, %v7243_v40  ;;  %v5888_v62 = vcombine.high %v7271_v36, %v7271_v36  ;;  %v5892_v41 = vcombine.high %v7272_v51, %v7272_v51  ;;  %v7273_v29 = vld [vmem:[#allocation44_spill] sm:$0xff]  ;;  %v3795_v24 = vld.sshfl [vmem:[#allocation2 + $0x130] sm:$0x3 pattern:$0x76325410] }
 0x111   : > { %v2787_v57 = vpack.c.b16 %v2740_v47, %v2740_v47  ;;  %v1522_v0 = vrot.slane %v5876_v8, 7  ;;  %v1526_v48 = vrot.slane %v5880_v44, 7  ;;  %v1528_v45 = vrot.slane %v7271_v36, 7 }
 0x112   : > { %v7274_v47 = vcombine.high %v7273_v29, %v7273_v29  ;;  %v5905_v9 = vrot.slane %v1520_v46, 2  ;;  %v1530_v52 = vrot.slane %v5888_v62, 7  ;;  %v1532_v28 = vrot.slane %v7272_v51, 7 }
 0x113   : > { %2804 = vst.msk [vmem:[%s4890_s29 + $0x10] sm:$0xf] %vm2799_vm9, %v2787_v57  ;;  %v5909_v30 = vrot.slane %v1522_v0, 2  ;;  %v5911_v4 = vrot.slane %v1524_v15, 2  ;;  %v5913_v42 = vrot.slane %v1526_v48, 2  ;;  %v5915_v27 = vrot.slane %v1528_v45, 2 }
 0x114   : > { %v5903_v57 = vrot.slane %v7274_v47, %v4242_v6  ;;  %v5917_v56 = vrot.slane %v1530_v52, 2  ;;  %v5919_v5 = vrot.slane %v1532_v28, 2  ;;  %v1534_v29 = vrot.slane %v5892_v41, 7  ;;  %v7276_v15 = vld [vmem:[#allocation42_spill] sm:$0xff] }
 0x115   : > { %v1664_v46 = vmax.f32 %v7269_v7, %v5905_v9  ;;  %v7275_v0 = vmax.f32 %v7243_v40, %v5669_v13  ;;  %v1041_v48 = vcombine.high %v7276_v15, %v7276_v15  ;;  %v1665_v45 = vmax.f32 %v5876_v8, %v5909_v30 }
 0x116   : > { %v1666_v28 = vmax.f32 %v7270_v55, %v5911_v4  ;;  %v2047_v52 = vmax.f32 %v1791_v19, %v3855_v34  ;;  %v1057_v43 = vcombine.high %v7277_v50, %v7277_v50  ;;  %v5938_v16 = vcombine.high %v5903_v57, %v5903_v57 }
 0x117   : > { %v1726_v47 = vmax.f32 %v7275_v0, %v5642_v14  ;;  %v5940_v2 = vrot.slane %v1534_v29, 2  ;;  %v1667_v13 = vmax.f32 %v5880_v44, %v5913_v42  ;;  %v1668_v40 = vmax.f32 %v7271_v36, %v5915_v27 }
 0x118   : > { %v5951_v19 = vmax.f32 %v1664_v46, %v5876_v8  ;;  %v5954_v0 = vmax.f32 %v1665_v45, %v7270_v55  ;;  %v5957_v29 = vmax.f32 %v1666_v28, %v5880_v44  ;;  %v1784_v35 = vmax.f32 %v5701_v22, %v7278_v33 }
 0x119   : > { %v1785_v3 = vmax.f32 %v5725_v59, %v7279_v12  ;;  %v1786_v14 = vmax.f32 %v5704_v61, %v7276_v15  ;;  %v1787_v34 = vmax.f32 %v5730_v32, %v1041_v48  ;;  %v1788_v46 = vmax.f32 %v5707_v39, %v7277_v50 }
 0x11a   : > { %v1671_v45 = vmax.f32 %v5892_v41, %v5940_v2  ;;  %v1789_v28 = vmax.f32 %v5871_v10, %v1057_v43  ;;  %v1790_v25 = vmax.f32 %v1726_v47, %v5655_v54  ;;  %v3849_v22 = vrot.slane %v7279_v12, 9  ;;  %v3794_v47 = vld.sshfl [vmem:[#allocation2 + $0x118] sm:$0x3 pattern:$0x76325410] }
 0x11b   : > { %v3850_v59 = vrot.slane %v7276_v15, 9  ;;  %v3851_v63 = vrot.slane %v1041_v48, 9  ;;  %v3852_v61 = vrot.slane %v7277_v50, 9  ;;  %v3853_v23 = vrot.slane %v1057_v43, 9 }
 0x11c   : > { %v5976_v32 = vmax.f32 %v1667_v13, %v7271_v36  ;;  %v5979_v39 = vmax.f32 %v1668_v40, %v5888_v62  ;;  %v3854_v31 = vrot.slane %v5655_v54, 9  ;;  %v7280_v10 = vrot.slane %v7278_v33, 9 }
 0x11d   : > { %v2041_v38 = vmax.f32 %v1785_v3, %v3849_v22  ;;  %v2042_v1 = vmax.f32 %v1786_v14, %v3850_v59  ;;  %v2043_v20 = vmax.f32 %v1787_v34, %v3851_v63  ;;  %v2044_v49 = vmax.f32 %v1788_v46, %v3852_v61  ;;  %v7307_v22 = vld [vmem:[#allocation49_spill] sm:$0xff] }
 0x11e   : > { %v2040_v18 = vmax.f32 %v1784_v35, %v7280_v10  ;;  %v5984_v60 = vmax.f32 %v1671_v45, %v3795_v24  ;;  %v2045_v11 = vmax.f32 %v1789_v28, %v3853_v23  ;;  %v2046_v26 = vmax.f32 %v1790_v25, %v3854_v31 }
 0x11f   : > { %v2105_v58 = vmax.f32 %v2041_v38, %v7276_v15  ;;  %v2106_v40 = vmax.f32 %v2042_v1, %v1041_v48  ;;  %v2107_v53 = vmax.f32 %v2043_v20, %v7277_v50  ;;  %v2108_v37 = vmax.f32 %v2044_v49, %v1057_v43 }
 0x120   : > { %v2104_v13 = vmax.f32 %v2040_v18, %v7279_v12  ;;  %v2109_v33 = vmax.f32 %v2045_v11, %v5655_v54  ;;  %v2110_v35 = vmax.f32 %v2046_v26, %v5688_v17  ;;  %v2111_v3 = vmax.f32 %v2047_v52, %v3794_v47 }
 0x121   : > { %v2169_v14 = vmax.f32 %v2105_v58, %v5876_v8  ;;  %v2170_v23 = vmax.f32 %v2106_v40, %v7270_v55  ;;  %v2171_v31 = vmax.f32 %v2107_v53, %v5880_v44  ;;  %v2172_v12 = vmax.f32 %v2108_v37, %v7271_v36 }
 0x122   : > { %v2168_v63 = vmax.f32 %v2104_v13, %v7269_v7  ;;  %v2173_v1 = vmax.f32 %v2109_v33, %v5888_v62  ;;  %v2174_v20 = vmax.f32 %v2110_v35, %v7272_v51  ;;  %v2175_v49 = vmax.f32 %v2111_v3, %v5892_v41 }
 0x123   : > { %v2257_v17 = vmax.f32 %v2169_v14, %v5909_v30  ;;  %v2258_v26 = vmax.f32 %v2170_v23, %v5911_v4  ;;  %v2259_v58 = vmax.f32 %v2171_v31, %v5913_v42  ;;  %v2260_v11 = vmax.f32 %v2172_v12, %v5915_v27 }
 0x124   : > { %v2256_v54 = vmax.f32 %v2168_v63, %v5905_v9  ;;  %v2261_v53 = vmax.f32 %v2173_v1, %v5917_v56  ;;  %v2262_v37 = vmax.f32 %v2174_v20, %v5919_v5  ;;  %v2263_v43 = vmax.f32 %v2175_v49, %v5940_v2 }
 0x125   : > { %v6011_v38 = vmax.f32 %v2257_v17, %v7270_v55  ;;  %v6014_v18 = vmax.f32 %v2258_v26, %v5880_v44  ;;  %v6017_v25 = vmax.f32 %v2259_v58, %v7271_v36  ;;  %v6020_v27 = vmax.f32 %v2260_v11, %v5888_v62 }
 0x126   : > { %v6008_v50 = vmax.f32 %v2256_v54, %v5876_v8  ;;  %v6023_v42 = vmax.f32 %v2261_v53, %v7272_v51  ;;  %v6026_v2 = vmax.f32 %v2262_v37, %v5892_v41  ;;  %v6028_v4 = vmax.f32 %v2263_v43, %v3795_v24 }
 0x127   : > { %7281 = vst [vmem:[#allocation15_spill] sm:$0xff] %v6011_v38  ;;  %7282 = vst [vmem:[#allocation16_spill] sm:$0xff] %v6014_v18  ;;  %v3989_v7 = vpack.c.bf16 %v6011_v38, %v6011_v38  ;;  %v3990_v8 = vpack.c.bf16 %v6014_v18, %v6014_v18  ;;  %v3991_v55 = vpack.c.bf16 %v6017_v25, %v6017_v25 }
 0x128   : > { %7283 = vst [vmem:[#allocation17_spill] sm:$0xff] %v6017_v25  ;;  %7284 = vst [vmem:[#allocation19_spill] sm:$0xff] %v6020_v27  ;;  %v3988_v30 = vpack.c.bf16 %v6008_v50, %v6008_v50  ;;  %v3992_v44 = vpack.c.bf16 %v6020_v27, %v6020_v27  ;;  %v7288_v24 = vmax.f32 %v5888_v62, %v5917_v56  ;;  %v3863_v56 = vrot.slane %v5938_v16, 9 }
 0x129   : > { %7285 = vst [vmem:[#allocation44_spill] sm:$0xff] %v6023_v42  ;;  %7286 = vst [vmem:[#allocation42_spill] sm:$0xff] %v6026_v2  ;;  %v3993_v9 = vpack.c.bf16 %v6023_v42, %v6023_v42  ;;  %v3994_v15 = vpack.c.bf16 %v6026_v2, %v6026_v2  ;;  %v3995_v48 = vpack.c.bf16 %v6028_v4, %v6028_v4  ;;  %v2641_v52 = vunpack.c.l.b16 %v3989_v7 }
 0x12a   : > { %7287 = vst [vmem:[#allocation46_spill] sm:$0xff] %v6028_v4  ;;  %v6044_v36 = vmax.f32 %v7288_v24, %v7272_v51  ;;  %v2642_v34 = vunpack.c.l.b16 %v3990_v8  ;;  %v2643_v46 = vunpack.c.l.b16 %v3991_v55  ;;  %v2644_v45 = vunpack.c.l.b16 %v3992_v44  ;;  %v7295_v55 = vld [vmem:[#allocation20_spill] sm:$0xff] }
 0x12b   : > { %v1799_v28 = vmax.f32 %v5984_v60, %v5938_v16  ;;  %v2640_v62 = vunpack.c.l.b16 %v3988_v30  ;;  %v2645_v59 = vunpack.c.l.b16 %v3993_v9  ;;  %v2741_v61 = vrot.slane %v2641_v52, 7  ;;  %v7298_v52 = vld [vmem:[#allocation21_spill] sm:$0xff] }
 0x12c   : > { %v2743_v10 = vrot.slane %v2642_v34, 6  ;;  %v2745_v47 = vrot.slane %v2643_v46, 5  ;;  %v2646_v13 = vunpack.c.l.b16 %v3994_v15  ;;  %v2647_v40 = vunpack.c.l.b16 %v3995_v48  ;;  %v7297_v15 = vld [vmem:[#allocation22_spill] sm:$0xff]  ;;  %v7306_v60 = vld [vmem:[#allocation45_spill] sm:$0xff] }
 0x12d   : > { %v2747_v33 = vrot.slane %v2644_v45, 4  ;;  %v2742_v3 = vsel %vm2665_vm2, %v2741_v61, %v2640_v62  ;;  %v7289_v20 = vmax.f32 %v7272_v51, %v5919_v5  ;;  %v2749_v17 = vrot.slane %v2645_v59, 3  ;;  %v7299_v45 = vld [vmem:[#allocation23_spill] sm:$0xff] }
 0x12e   : > { %v2744_v23 = vsel %vm2668_vm3, %v2743_v10, %v2742_v3  ;;  %v6082_v26 = vmul.f32 %v6008_v50, %v6008_v50  ;;  %v6084_v58 = vmax.f32 %v1799_v28, %v3863_v56  ;;  %v2751_v53 = vrot.slane %v2646_v13, 2  ;;  %v7300_v13 = vld [vmem:[#allocation51_spill] sm:$0xff] }
 0x12f   : > { %v6077_v49 = vmax.f32 %v7289_v20, %v5892_v41  ;;  %v2746_v54 = vsel %vm2671_vm4, %v2745_v47, %v2744_v23  ;;  %v2753_v37 = vrot.slane %v2647_v40, 1  ;;  %v6090_v5 = vmul.f32 %v6011_v38, %v6011_v38  ;;  %v6184_v41 = vld.sshfl [vmem:[#allocation2 + $0x160] sm:$0x3 pattern:$0x76325410] }
 0x130   : > { %7290 = vst [vmem:[#allocation37_spill] sm:$0xff] %v6082_v26  ;;  %v2748_v11 = vsel %vm2674_vm5, %v2747_v33, %v2746_v54  ;;  %v6094_v51 = vmul.f32 %v6014_v18, %v6014_v18  ;;  %v6101_v7 = vmul.f32 %v6017_v25, %v6017_v25  ;;  %v6105_v8 = vmul.f32 %v6020_v27, %v6020_v27 }
 0x131   : > { %v2750_v43 = vsel %vm2677_vm6, %v2749_v17, %v2748_v11  ;;  %7291 = vst [vmem:[#allocation43_spill] sm:$0xff] %v6090_v5  ;;  %v6109_v44 = vcombine.high %v7295_v55, %v7295_v55  ;;  %v6114_v9 = vmul.f32 %v6023_v42, %v6023_v42  ;;  %v6118_v48 = vcombine.high %v7297_v15, %v7297_v15 }
 0x132   : > { %7292 = vst [vmem:[#allocation93_spill] sm:$0xff] %v6094_v51  ;;  %v2752_v30 = vsel %vm2680_vm7, %v2751_v53, %v2750_v43  ;;  %7293 = vst [vmem:[#allocation94_spill] sm:$0xff] %v6101_v7  ;;  %v6122_v34 = vcombine.high %v7298_v52, %v7298_v52  ;;  %v6126_v28 = vcombine.high %v7299_v45, %v7299_v45  ;;  %v1536_v56 = vrot.slane %v7295_v55, 7 }
 0x133   : > { %7294 = vst [vmem:[#allocation95_spill] sm:$0xff] %v6105_v8  ;;  %v2754_v24 = vsel %vm2683_vm8, %v2753_v37, %v2752_v30  ;;  %7296 = vst [vmem:[#allocation20_spill] sm:$0xff] %v6114_v9  ;;  %v1538_v62 = vrot.slane %v6109_v44, 7  ;;  %v1540_v59 = vrot.slane %v7297_v15, 7  ;;  %v1542_v61 = vrot.slane %v6118_v48, 7 }
 0x134   : > { %v2788_v46 = vpack.c.b16 %v2754_v24, %v2754_v24  ;;  %v1544_v10 = vrot.slane %v7298_v52, 7  ;;  %v1546_v47 = vrot.slane %v6122_v34, 7  ;;  %v7301_v40 = vcombine.high %v7300_v13, %v7300_v13  ;;  %v3796_v7 = vld.sshfl [vmem:[#allocation2 + $0x148] sm:$0x3 pattern:$0x76325410] }
 0x135   : > { %v6142_v3 = vrot.slane %v1536_v56, 2  ;;  %v6144_v23 = vrot.slane %v1538_v62, 2  ;;  %v1548_v20 = vrot.slane %v7299_v45, 7  ;;  %v6147_v54 = vrot.slane %v1540_v59, 2  ;;  %v7304_v62 = vld [vmem:[#allocation47_spill] sm:$0xff] }
 0x136   : > { %2805 = vst.msk [vmem:[%s4890_s29 + $0x14] sm:$0xf] %vm2799_vm9, %v2788_v46  ;;  %v6140_v33 = vrot.slane %v7301_v40, %v4242_v6  ;;  %v6149_v17 = vrot.slane %v1542_v61, 2  ;;  %v6151_v11 = vrot.slane %v1544_v10, 2  ;;  %v6153_v53 = vrot.slane %v1546_v47, 2  ;;  %v7305_v61 = vld [vmem:[#allocation48_spill] sm:$0xff] }
 0x137   : > { %v6155_v37 = vrot.slane %v1548_v20, 2  ;;  %v1550_v43 = vrot.slane %v6126_v28, 7  ;;  %v1672_v30 = vmax.f32 %v7295_v55, %v6142_v3  ;;  %v1673_v24 = vmax.f32 %v6109_v44, %v6144_v23 }
 0x138   : > { %v6164_v46 = vmul.f32 %v6026_v2, %v6026_v2  ;;  %v6168_v56 = vmul.f32 %v6028_v4, %v6028_v4  ;;  %v1123_v59 = vcombine.high %v7304_v62, %v7304_v62  ;;  %v1139_v10 = vcombine.high %v7305_v61, %v7305_v61 }
 0x139   : > { %v6176_v47 = vcombine.high %v6140_v33, %v6140_v33  ;;  %v6178_v13 = vrot.slane %v1550_v43, 2  ;;  %v1674_v40 = vmax.f32 %v7297_v15, %v6147_v54  ;;  %v1675_v20 = vmax.f32 %v6118_v48, %v6149_v17 }
 0x13a   : > { %7302 = vst [vmem:[#allocation22_spill] sm:$0xff] %v6164_v46  ;;  %7303 = vst [vmem:[#allocation21_spill] sm:$0xff] %v6168_v56  ;;  %v6193_v43 = vmax.f32 %v1672_v30, %v6109_v44  ;;  %v6198_v63 = vmax.f32 %v1673_v24, %v7297_v15  ;;  %v1792_v35 = vmax.f32 %v5951_v19, %v7306_v60  ;;  %v3857_v19 = vrot.slane %v7307_v22, 9 }
 0x13b   : > { %v1679_v14 = vmax.f32 %v6126_v28, %v6178_v13  ;;  %v1793_v1 = vmax.f32 %v5954_v0, %v7307_v22  ;;  %v1794_v12 = vmax.f32 %v5957_v29, %v7304_v62  ;;  %v1795_v31 = vmax.f32 %v5976_v32, %v1123_v59 }
 0x13c   : > { %v1796_v30 = vmax.f32 %v5979_v39, %v7305_v61  ;;  %v1797_v26 = vmax.f32 %v6044_v36, %v1139_v10  ;;  %v1798_v24 = vmax.f32 %v6077_v49, %v5903_v57  ;;  %v3858_v0 = vrot.slane %v7304_v62, 9 }
 0x13d   : > { %v6211_v56 = vmax.f32 %v1679_v14, %v6184_v41  ;;  %v3859_v46 = vrot.slane %v1123_v59, 9  ;;  %v3860_v29 = vrot.slane %v7305_v61, 9  ;;  %v3861_v9 = vrot.slane %v1139_v10, 9 }
 0x13e   : > { %v3862_v32 = vrot.slane %v5903_v57, 9  ;;  %v6220_v39 = vmax.f32 %v1674_v40, %v6118_v48  ;;  %v6223_v36 = vmax.f32 %v1675_v20, %v7298_v52  ;;  %v7308_v14 = vrot.slane %v7306_v60, 9 }
 0x13f   : > { %v2049_v49 = vmax.f32 %v1793_v1, %v3857_v19  ;;  %v2050_v51 = vmax.f32 %v1794_v12, %v3858_v0  ;;  %v2051_v5 = vmax.f32 %v1795_v31, %v3859_v46  ;;  %v2052_v4 = vmax.f32 %v1796_v30, %v3860_v29 }
 0x140   : > { %v2048_v8 = vmax.f32 %v1792_v35, %v7308_v14  ;;  %v2053_v2 = vmax.f32 %v1797_v26, %v3861_v9  ;;  %v1807_v42 = vmax.f32 %v6211_v56, %v6176_v47  ;;  %v2054_v27 = vmax.f32 %v1798_v24, %v3862_v32 }
 0x141   : > { %v2113_v40 = vmax.f32 %v2049_v49, %v7304_v62  ;;  %v2114_v18 = vmax.f32 %v2050_v51, %v1123_v59  ;;  %v2115_v20 = vmax.f32 %v2051_v5, %v7305_v61  ;;  %v2116_v38 = vmax.f32 %v2052_v4, %v1139_v10 }
 0x142   : > { %v2112_v25 = vmax.f32 %v2048_v8, %v7307_v22  ;;  %v2117_v35 = vmax.f32 %v2053_v2, %v5903_v57  ;;  %v2118_v60 = vmax.f32 %v2054_v27, %v5938_v16  ;;  %v2119_v31 = vmax.f32 %v6084_v58, %v3796_v7 }
 0x143   : > { %v2177_v1 = vmax.f32 %v2113_v40, %v6109_v44  ;;  %v2178_v26 = vmax.f32 %v2114_v18, %v7297_v15  ;;  %v2179_v22 = vmax.f32 %v2115_v20, %v6118_v48  ;;  %v2180_v8 = vmax.f32 %v2116_v38, %v7298_v52 }
 0x144   : > { %v2176_v12 = vmax.f32 %v2112_v25, %v7295_v55  ;;  %v2181_v51 = vmax.f32 %v2117_v35, %v6122_v34  ;;  %v2182_v4 = vmax.f32 %v2118_v60, %v7299_v45  ;;  %v2183_v57 = vmax.f32 %v2119_v31, %v6126_v28 }
 0x145   : > { %v2265_v27 = vmax.f32 %v2177_v1, %v6144_v23  ;;  %v2266_v25 = vmax.f32 %v2178_v26, %v6147_v54  ;;  %v2267_v2 = vmax.f32 %v2179_v22, %v6149_v17  ;;  %v2268_v18 = vmax.f32 %v2180_v8, %v6151_v11 }
 0x146   : > { %v2264_v16 = vmax.f32 %v2176_v12, %v6142_v3  ;;  %v2269_v58 = vmax.f32 %v2181_v51, %v6153_v53  ;;  %v2270_v38 = vmax.f32 %v2182_v4, %v6155_v37  ;;  %v2271_v5 = vmax.f32 %v2183_v57, %v6178_v13 }
 0x147   : > { %v6255_v55 = vmax.f32 %v2265_v27, %v7297_v15  ;;  %v6258_v9 = vmax.f32 %v2266_v25, %v6118_v48  ;;  %v6261_v3 = vmax.f32 %v2267_v2, %v7298_v52  ;;  %v6264_v23 = vmax.f32 %v2268_v18, %v6122_v34  ;;  %v7313_v2 = vld [vmem:[#allocation53_spill] sm:$0xff] }
 0x148   : > { %v6252_v7 = vmax.f32 %v2264_v16, %v6109_v44  ;;  %v6267_v54 = vmax.f32 %v2269_v58, %v7299_v45  ;;  %v6270_v17 = vmax.f32 %v2270_v38, %v6126_v28  ;;  %v6273_v44 = vmax.f32 %v2271_v5, %v6184_v41  ;;  %v7314_v38 = vld [vmem:[#allocation54_spill] sm:$0xff] }
 0x149   : > { %v3997_v48 = vpack.c.bf16 %v6255_v55, %v6255_v55  ;;  %v3998_v46 = vpack.c.bf16 %v6258_v9, %v6258_v9  ;;  %v3999_v56 = vpack.c.bf16 %v6261_v3, %v6261_v3  ;;  %v4000_v62 = vpack.c.bf16 %v6264_v23, %v6264_v23 }
 0x14a   : > { %v3996_v15 = vpack.c.bf16 %v6252_v7, %v6252_v7  ;;  %v4001_v59 = vpack.c.bf16 %v6267_v54, %v6267_v54  ;;  %v3871_v41 = vrot.slane %v6176_v47, 9  ;;  %v4002_v61 = vpack.c.bf16 %v6270_v17, %v6270_v17 }
 0x14b   : > { %v4003_v10 = vpack.c.bf16 %v6273_v44, %v6273_v44  ;;  %v2649_v13 = vunpack.c.l.b16 %v3997_v48  ;;  %v2650_v30 = vunpack.c.l.b16 %v3998_v46  ;;  %v2651_v24 = vunpack.c.l.b16 %v3999_v56 }
 0x14c   : > { %v2652_v19 = vunpack.c.l.b16 %v4000_v62  ;;  %v2653_v0 = vunpack.c.l.b16 %v4001_v59  ;;  %v2648_v29 = vunpack.c.l.b16 %v3996_v15  ;;  %v2654_v32 = vunpack.c.l.b16 %v4002_v61  ;;  %v7315_v15 = vld [vmem:[#allocation57_spill] sm:$0xff]  ;;  %v7316_v59 = vld [vmem:[#allocation52_spill] sm:$0xff] }
 0x14d   : > { %v2655_v14 = vunpack.c.l.b16 %v4003_v10  ;;  %v2755_v49 = vrot.slane %v2649_v13, 7  ;;  %v7309_v40 = vmax.f32 %v7298_v52, %v6151_v11  ;;  %v7310_v35 = vmax.f32 %v6122_v34, %v6153_v53  ;;  %v7317_v61 = vld [vmem:[#allocation56_spill] sm:$0xff] }
 0x14e   : > { %v2757_v31 = vrot.slane %v2650_v30, 6  ;;  %v2759_v12 = vrot.slane %v2651_v24, 5  ;;  %v7311_v1 = vmax.f32 %v7299_v45, %v6155_v37  ;;  %v2063_v22 = vmax.f32 %v1807_v42, %v3871_v41  ;;  %v7312_v37 = vld [vmem:[#allocation55_spill] sm:$0xff] }
 0x14f   : > { %v1740_v20 = vmax.f32 %v7309_v40, %v6122_v34  ;;  %v1741_v60 = vmax.f32 %v7310_v35, %v7299_v45  ;;  %v2756_v8 = vsel %vm2665_vm2, %v2755_v49, %v2648_v29  ;;  %v3067_v51 = vrot.slane %v6252_v7, %v4267_v21  ;;  %v521_v34 = vld [vmem:[#allocation2 + $0x188] sm:$0xff]  ;;  %v3798_v29 = vld.sshfl [vmem:[#allocation2 + $0x178] sm:$0x3 pattern:$0x76325410] }
 0x150   : > { %v1742_v26 = vmax.f32 %v7311_v1, %v6126_v28  ;;  %v2758_v52 = vsel %vm2668_vm3, %v2757_v31, %v2756_v8  ;;  %v2761_v11 = vrot.slane %v2652_v19, 4  ;;  %v2763_v4 = vrot.slane %v2653_v0, 3 }
 0x151   : > { %v2765_v57 = vrot.slane %v2654_v32, 2  ;;  %v2760_v53 = vsel %vm2671_vm4, %v2759_v12, %v2758_v52  ;;  %v2767_v16 = vrot.slane %v2655_v14, 1  ;;  %v6311_v27 = vmul.f32 %v6252_v7, %v6252_v7 }
 0x152   : > { %v6315_v42 = vmul.f32 %v6255_v55, %v6255_v55  ;;  %v2762_v45 = vsel %vm2674_vm5, %v2761_v11, %v2760_v53  ;;  %v6320_v28 = vmul.f32 %v6258_v9, %v6258_v9  ;;  %v1205_v25 = vcombine.high %v7312_v37, %v7312_v37 }
 0x153   : > { %v1221_v18 = vcombine.high %v7313_v2, %v7313_v2  ;;  %v2764_v58 = vsel %vm2677_vm6, %v2763_v4, %v2762_v45  ;;  %v6329_v5 = vcombine.high %v7314_v38, %v7314_v38  ;;  %v6333_v48 = vcombine.high %v7315_v15, %v7315_v15 }
 0x154   : > { %v1247_v46 = vcombine.high %v521_v34, %v521_v34  ;;  %v2766_v56 = vsel %vm2680_vm7, %v2765_v57, %v2764_v58  ;;  %v6337_v62 = vrot.slane %v521_v34, %v4242_v6  ;;  %v1800_v41 = vmax.f32 %v6193_v43, %v7316_v59 }
 0x155   : > { %v1801_v10 = vmax.f32 %v6198_v63, %v7317_v61  ;;  %v2768_v13 = vsel %vm2683_vm8, %v2767_v16, %v2766_v56  ;;  %v1802_v24 = vmax.f32 %v6220_v39, %v7312_v37  ;;  %v1803_v19 = vmax.f32 %v6223_v36, %v1205_v25 }
 0x156   : > { %v1261_v30 = vrot.slane %v1247_v46, %v4242_v6  ;;  %v2789_v0 = vpack.c.b16 %v2768_v13, %v2768_v13  ;;  %v1262_v32 = vcombine.high %v6337_v62, %v6337_v62  ;;  %v1804_v14 = vmax.f32 %v1740_v20, %v7313_v2 }
 0x157   : > { %v1805_v43 = vmax.f32 %v1741_v60, %v1221_v18  ;;  %v1806_v63 = vmax.f32 %v1742_v26, %v6140_v33  ;;  %v3865_v40 = vrot.slane %v7317_v61, 9  ;;  %v3866_v6 = vrot.slane %v7312_v37, 9 }
 0x158   : > { %v1263_v49 = vcombine.high %v1261_v30, %v1261_v30  ;;  %2806 = vst.msk [vmem:[%s4890_s29 + $0x18] sm:$0xf] %vm2799_vm9, %v2789_v0  ;;  %v3867_v39 = vrot.slane %v1205_v25, 9  ;;  %v3868_v36 = vrot.slane %v7313_v2, 9  ;;  %v3869_v35 = vrot.slane %v1221_v18, 9 }
 0x159   : > { %v3870_v31 = vrot.slane %v6140_v33, 9  ;;  %v7318_v12 = vrot.slane %v7316_v59, 9  ;;  %v2057_v20 = vmax.f32 %v1801_v10, %v3865_v40  ;;  %v2058_v60 = vmax.f32 %v1802_v24, %v3866_v6 }
 0x15a   : > { %v2127_v8 = vmax.f32 %v2063_v22, %v3798_v29  ;;  %v2059_v52 = vmax.f32 %v1803_v19, %v3867_v39  ;;  %v2060_v26 = vmax.f32 %v1804_v14, %v3868_v36  ;;  %v2061_v11 = vmax.f32 %v1805_v43, %v3869_v35  ;;  %v3799_v14 = vld.sshfl [vmem:[#allocation2 + $0x190] sm:$0x3 pattern:$0x76325410] }
 0x15b   : > { %v2056_v1 = vmax.f32 %v1800_v41, %v7318_v12  ;;  %v2062_v4 = vmax.f32 %v1806_v63, %v3870_v31  ;;  %v2121_v34 = vmax.f32 %v2057_v20, %v7312_v37  ;;  %v2122_v53 = vmax.f32 %v2058_v60, %v1205_v25 }
 0x15c   : > { %v2191_v16 = vmax.f32 %v2127_v8, %v1263_v49  ;;  %v2123_v45 = vmax.f32 %v2059_v52, %v7313_v2  ;;  %v2124_v58 = vmax.f32 %v2060_v26, %v1221_v18  ;;  %v2125_v46 = vmax.f32 %v2061_v11, %v6140_v33 }
 0x15d   : > { %v2120_v57 = vmax.f32 %v2056_v1, %v7317_v61  ;;  %v2126_v56 = vmax.f32 %v2062_v4, %v6176_v47  ;;  %v2185_v22 = vmax.f32 %v2121_v34, %v6329_v5  ;;  %v2186_v41 = vmax.f32 %v2122_v53, %v7315_v15 }
 0x15e   : > { %v3872_v10 = vrot.slane %v7314_v38, 9  ;;  %v2187_v61 = vmax.f32 %v2123_v45, %v6333_v48  ;;  %v2188_v37 = vmax.f32 %v2124_v58, %v6337_v62  ;;  %v2189_v25 = vmax.f32 %v2125_v46, %v1262_v32 }
 0x15f   : > { %v2184_v59 = vmax.f32 %v2120_v57, %v7314_v38  ;;  %v2190_v13 = vmax.f32 %v2126_v56, %v1261_v30  ;;  %v3873_v2 = vrot.slane %v6329_v5, 9  ;;  %v3874_v33 = vrot.slane %v7315_v15, 9 }
 0x160   : > { %v3875_v47 = vrot.slane %v6333_v48, 9  ;;  %v3876_v18 = vrot.slane %v6337_v62, 9  ;;  %v3877_v24 = vrot.slane %v1262_v32, 9  ;;  %v3878_v19 = vrot.slane %v1261_v30, 9 }
 0x161   : > { %v3879_v0 = vrot.slane %v1263_v49, 9  ;;  %v2272_v29 = vmax.f32 %v2184_v59, %v3872_v10  ;;  %v2273_v38 = vmax.f32 %v2185_v22, %v3873_v2  ;;  %v2274_v43 = vmax.f32 %v2186_v41, %v3874_v33 }
 0x162   : > { %v2275_v63 = vmax.f32 %v2187_v61, %v3875_v47  ;;  %v2276_v40 = vmax.f32 %v2188_v37, %v3876_v18  ;;  %v2277_v6 = vmax.f32 %v2189_v25, %v3877_v24  ;;  %v2278_v39 = vmax.f32 %v2190_v13, %v3878_v19 }
 0x163   : > { %v2279_v36 = vmax.f32 %v2191_v16, %v3879_v0  ;;  %v6376_v35 = vmax.f32 %v2272_v29, %v6329_v5  ;;  %v6379_v31 = vmax.f32 %v2273_v38, %v7315_v15  ;;  %v6382_v12 = vmax.f32 %v2274_v43, %v6333_v48 }
 0x164   : > { %v6385_v1 = vmax.f32 %v2275_v63, %v6337_v62  ;;  %v6387_v20 = vmax.f32 %v2276_v40, %v1262_v32  ;;  %v6389_v60 = vmax.f32 %v2277_v6, %v1261_v30  ;;  %v6391_v8 = vmax.f32 %v2278_v39, %v1263_v49  ;;  %v7319_v39 = vld [vmem:[#allocation3_spill] sm:$0xff] }
 0x165   : > { %v6393_v52 = vmax.f32 %v2279_v36, %v3799_v14  ;;  %v4004_v5 = vpack.c.bf16 %v6376_v35, %v6376_v35  ;;  %v4005_v15 = vpack.c.bf16 %v6379_v31, %v6379_v31  ;;  %v4006_v48 = vpack.c.bf16 %v6382_v12, %v6382_v12 }
 0x166   : > { %v4007_v62 = vpack.c.bf16 %v6385_v1, %v6385_v1  ;;  %v4008_v30 = vpack.c.bf16 %v6387_v20, %v6387_v20  ;;  %v4009_v32 = vpack.c.bf16 %v6389_v60, %v6389_v60  ;;  %v4010_v49 = vpack.c.bf16 %v6391_v8, %v6391_v8 }
 0x167   : > { %v4011_v26 = vpack.c.bf16 %v6393_v52, %v6393_v52  ;;  %v2656_v11 = vunpack.c.l.b16 %v4004_v5  ;;  %v2657_v4 = vunpack.c.l.b16 %v4005_v15  ;;  %v2658_v57 = vunpack.c.l.b16 %v4006_v48  ;;  %v7321_v5 = vld [vmem:[#allocation4_spill] sm:$0xff] }
 0x168   : > { %v2659_v34 = vunpack.c.l.b16 %v4007_v62  ;;  %v2660_v53 = vunpack.c.l.b16 %v4008_v30  ;;  %v6413_v16 = vmul.f32 %v6261_v3, %v6261_v3  ;;  %v2661_v45 = vunpack.c.l.b16 %v4009_v32  ;;  %v7323_v30 = vld [vmem:[#allocation5_spill] sm:$0xff] }
 0x169   : > { %v2662_v58 = vunpack.c.l.b16 %v4010_v49  ;;  %v2663_v46 = vunpack.c.l.b16 %v4011_v26  ;;  %v6417_v56 = vmul.f32 %v6264_v23, %v6264_v23  ;;  %v2769_v59 = vrot.slane %v2657_v4, 7  ;;  %v7325_v26 = vld [vmem:[#allocation7_spill] sm:$0xff]  ;;  %v7327_v4 = vld [vmem:[#allocation10_spill] sm:$0xff] }
 0x16a   : > { %v2771_v22 = vrot.slane %v2658_v57, 6  ;;  %v2773_v41 = vrot.slane %v2659_v34, 5  ;;  %v2775_v10 = vrot.slane %v2660_v53, 4  ;;  %v2777_v61 = vrot.slane %v2661_v45, 3  ;;  %v7329_v53 = vld [vmem:[#allocation9_spill] sm:$0xff] }
 0x16b   : > { %v2779_v37 = vrot.slane %v2662_v58, 2  ;;  %v2781_v25 = vrot.slane %v2663_v46, 1  ;;  %v2770_v13 = vsel %vm2665_vm2, %v2769_v59, %v2656_v11  ;;  %v3071_v2 = vrot.slane %v6255_v55, %v4267_v21  ;;  %v7331_v58 = vld [vmem:[#allocation12_spill] sm:$0xff] }
 0x16c   : > { %v3075_v33 = vrot.slane %v6258_v9, %v4267_v21  ;;  %v3079_v47 = vrot.slane %v6261_v3, %v4267_v21  ;;  %v2772_v18 = vsel %vm2668_vm3, %v2771_v22, %v2770_v13  ;;  %v3083_v24 = vrot.slane %v6264_v23, %v4267_v21 }
 0x16d   : > { %v3087_v19 = vrot.slane %v6267_v54, %v4267_v21  ;;  %v3091_v0 = vrot.slane %v6270_v17, %v4267_v21  ;;  %v2774_v29 = vsel %vm2671_vm4, %v2773_v41, %v2772_v18  ;;  %v3095_v55 = vrot.slane %v6273_v44, %v4267_v21  ;;  %v7333_v41 = vld [vmem:[#allocation6_spill] sm:$0xff] }
 0x16e   : > { %v3099_v9 = vrot.slane %v6376_v35, %v4267_v21  ;;  %v3103_v3 = vrot.slane %v6379_v31, %v4267_v21  ;;  %v2776_v14 = vsel %vm2674_vm5, %v2775_v10, %v2774_v29  ;;  %v3107_v23 = vrot.slane %v6382_v12, %v4267_v21  ;;  %v7337_v29 = vld [vmem:[#allocation13_spill] sm:$0xff] }
 0x16f   : > { %v3111_v38 = vrot.slane %v6385_v1, %v4267_v21  ;;  %v3115_v43 = vrot.slane %v6387_v20, %v4267_v21  ;;  %v2778_v63 = vsel %vm2677_vm6, %v2777_v61, %v2776_v14  ;;  %v3119_v40 = vrot.slane %v6389_v60, %v4267_v21 }
 0x170   : > { %v3123_v6 = vrot.slane %v6391_v8, %v4267_v21  ;;  %v7320_v36 = vrot.slane %v7319_v39, %v4267_v21  ;;  %v7322_v15 = vrot.slane %v7321_v5, %v4267_v21  ;;  %v2780_v62 = vsel %vm2680_vm7, %v2779_v37, %v2778_v63  ;;  %v7335_v37 = vld [vmem:[#allocation8_spill] sm:$0xff] }
 0x171   : > { %v7324_v32 = vrot.slane %v7323_v30, %v4267_v21  ;;  %v7326_v11 = vrot.slane %v7325_v26, %v4267_v21  ;;  %v7328_v57 = vrot.slane %v7327_v4, %v4267_v21  ;;  %v7330_v45 = vrot.slane %v7329_v53, %v4267_v21  ;;  %v7343_v30 = vld [vmem:[#allocation14_spill] sm:$0xff]  ;;  %v7345_v26 = vld [vmem:[#allocation29_spill] sm:$0xff] }
 0x172   : > { %v3142_v48 = vsel %vm2665_vm2, %v7322_v15, %v7320_v36  ;;  %v7332_v46 = vrot.slane %v7331_v58, %v4267_v21  ;;  %v2782_v22 = vsel %vm2683_vm8, %v2781_v25, %v2780_v62  ;;  %v7334_v10 = vrot.slane %v7333_v41, %v4267_v21  ;;  %v7339_v36 = vld [vmem:[#allocation26_spill] sm:$0xff]  ;;  %v7341_v15 = vld [vmem:[#allocation11_spill] sm:$0xff] }
 0x173   : > { %v3143_v49 = vsel %vm2668_vm3, %v7324_v32, %v3142_v48  ;;  %v3149_v34 = vsel %vm2665_vm2, %v7328_v57, %v7326_v11  ;;  %v7336_v13 = vrot.slane %v7335_v37, %v4267_v21  ;;  %v7338_v14 = vrot.slane %v7337_v29, %v4267_v21  ;;  %v7347_v57 = vld [vmem:[#allocation36_spill] sm:$0xff] }
 0x174   : > { %v3156_v59 = vsel %vm2665_vm2, %v7332_v46, %v7330_v45  ;;  %v3144_v61 = vsel %vm2671_vm4, %v7334_v10, %v3143_v49  ;;  %v2790_v39 = vpack.c.b16 %v2782_v22, %v2782_v22  ;;  %v7340_v5 = vrot.slane %v7339_v36, %v4267_v21  ;;  %v7349_v45 = vld [vmem:[#allocation41_spill] sm:$0xff]  ;;  %v7352_v22 = vld [vmem:[#allocation15_spill] sm:$0xff] }
 0x175   : > { %v3150_v18 = vsel %vm2668_vm3, %v7336_v13, %v3149_v34  ;;  %v3157_v63 = vsel %vm2668_vm3, %v7338_v14, %v3156_v59  ;;  %v7342_v48 = vrot.slane %v7341_v15, %v4267_v21  ;;  %v7344_v32 = vrot.slane %v7343_v30, %v4267_v21  ;;  %v7362_v15 = vld [vmem:[#allocation25_spill] sm:$0xff]  ;;  %v7364_v30 = vld [vmem:[#allocation35_spill] sm:$0xff] }
 0x176   : > { %v3145_v25 = vsel %vm2674_vm5, %v7340_v5, %v3144_v61  ;;  %v7346_v11 = vrot.slane %v7345_v26, %v4267_v21  ;;  %v7348_v34 = vrot.slane %v7347_v57, %v4267_v21  ;;  %v7350_v58 = vrot.slane %v7349_v45, %v4267_v21  ;;  %2807 = vst.msk [vmem:[%s4890_s29 + $0x1c] sm:$0xf] %vm2799_vm9, %v2790_v39  ;;  %v7354_v61 = vld [vmem:[#allocation31_spill] sm:$0xff]  ;;  %v7360_v5 = vld [vmem:[#allocation16_spill] sm:$0xff]  ;;  %v7368_v57 = vld [vmem:[#allocation17_spill] sm:$0xff] }
 0x177   : > { %v3151_v62 = vsel %vm2671_vm4, %v7342_v48, %v3150_v18  ;;  %v3158_v49 = vsel %vm2671_vm4, %v7344_v32, %v3157_v63  ;;  %v7351_v59 = vrot.slane %v6008_v50, %v4267_v21  ;;  %v7353_v41 = vrot.slane %v7352_v22, %v4267_v21  ;;  %v7356_v18 = vld [vmem:[#allocation32_spill] sm:$0xff]  ;;  %v7358_v63 = vld [vmem:[#allocation38_spill] sm:$0xff] }
 0x178   : > { %v3146_v4 = vsel %vm2677_vm6, %v7346_v11, %v3145_v25  ;;  %v3152_v53 = vsel %vm2674_vm5, %v7348_v34, %v3151_v62  ;;  %v3159_v46 = vsel %vm2674_vm5, %v7350_v58, %v3158_v49  ;;  %v7355_v37 = vrot.slane %v7354_v61, %v4267_v21  ;;  %v7366_v26 = vld [vmem:[#allocation40_spill] sm:$0xff] }
 0x179   : > { %v3163_v10 = vsel %vm2665_vm2, %v7353_v41, %v7351_v59  ;;  %v7357_v29 = vrot.slane %v7356_v18, %v4267_v21  ;;  %v7359_v50 = vrot.slane %v7358_v63, %v4267_v21  ;;  %v7361_v25 = vrot.slane %v7360_v5, %v4267_v21  ;;  %v7370_v45 = vld [vmem:[#allocation28_spill] sm:$0xff]  ;;  %v7372_v59 = vld [vmem:[#allocation33_spill] sm:$0xff] }
 0x17a   : > { %v3147_v13 = vsel %vm2680_vm7, %v7355_v37, %v3146_v4  ;;  %v7363_v48 = vrot.slane %v7362_v15, %v4267_v21  ;;  %v7365_v32 = vrot.slane %v7364_v30, %v4267_v21  ;;  %v7367_v11 = vrot.slane %v7366_v26, %v4267_v21  ;;  %v7376_v18 = vld [vmem:[#allocation44_spill] sm:$0xff]  ;;  %v7382_v30 = vld [vmem:[#allocation46_spill] sm:$0xff] }
 0x17b   : > { %v3153_v14 = vsel %vm2677_vm6, %v7357_v29, %v3152_v53  ;;  %v3160_v36 = vsel %vm2677_vm6, %v7359_v50, %v3159_v46  ;;  %v3164_v39 = vsel %vm2668_vm3, %v7361_v25, %v3163_v10  ;;  %v7369_v34 = vrot.slane %v7368_v57, %v4267_v21  ;;  %v7374_v10 = vld [vmem:[#allocation19_spill] sm:$0xff]  ;;  %v7379_v25 = vld [vmem:[#allocation42_spill] sm:$0xff] }
 0x17c   : > { %v3148_v62 = vsel %vm2683_vm8, %v7363_v48, %v3147_v13  ;;  %v3154_v49 = vsel %vm2680_vm7, %v7365_v32, %v3153_v14  ;;  %v3161_v4 = vsel %vm2680_vm7, %v7367_v11, %v3160_v36  ;;  %v7371_v58 = vrot.slane %v7370_v45, %v4267_v21  ;;  %v7378_v36 = vld [vmem:[#allocation71_spill] sm:$0xff] }
 0x17d   : > { %v3165_v53 = vsel %vm2671_vm4, %v7369_v34, %v3164_v39  ;;  %v7373_v22 = vrot.slane %v7372_v59, %v4267_v21  ;;  %v7375_v61 = vrot.slane %v7374_v10, %v4267_v21  ;;  %v3170_v13 = vsel %vm2665_vm2, %v3071_v2, %v3067_v51  ;;  %v7381_v2 = vld [vmem:[#allocation50_spill] sm:$0xff]  ;;  %v7384_v59 = vld [vmem:[#allocation43_spill] sm:$0xff] }
 0x17e   : > { %v3155_v46 = vsel %vm2683_vm8, %v7371_v58, %v3154_v49  ;;  %v7377_v29 = vrot.slane %v7376_v18, %v4267_v21  ;;  %v3171_v63 = vsel %vm2668_vm3, %v3075_v33, %v3170_v13  ;;  %v3177_v50 = vsel %vm2665_vm2, %v3103_v3, %v3099_v9  ;;  %v7386_v10 = vld [vmem:[#allocation94_spill] sm:$0xff] }
 0x17f   : > { %v3162_v41 = vsel %vm2683_vm8, %v7373_v22, %v3161_v4  ;;  %v3166_v37 = vsel %vm2674_vm5, %v7375_v61, %v3165_v53  ;;  %v3192_v5 = vsel %vm209_vm0, %v7378_v36, 0.0  ;;  %v7380_v39 = vrot.slane %v7379_v25, %v4267_v21 }
 0x180   : > { %v3167_v14 = vsel %vm2677_vm6, %v7377_v29, %v3166_v37  ;;  %v3172_v7 = vsel %vm2671_vm4, %v3079_v47, %v3171_v63  ;;  %v3178_v51 = vsel %vm2668_vm3, %v3107_v23, %v3177_v50  ;;  %v3193_v48 = vsel %vm209_vm0, %v7381_v2, 0.0  ;;  %v7389_v29 = vld [vmem:[#allocation22_spill] sm:$0xff] }
 0x181   : > { %v3168_v15 = vsel %vm2680_vm7, %v7380_v39, %v3167_v14  ;;  %v7383_v33 = vrot.slane %v7382_v30, %v4267_v21  ;;  %v3173_v3 = vsel %vm2674_vm5, %v3083_v24, %v3172_v7  ;;  %v3179_v32 = vsel %vm2671_vm4, %v3111_v38, %v3178_v51  ;;  %v7390_v14 = vld [vmem:[#allocation21_spill] sm:$0xff] }
 0x182   : > { %v3194_v49 = vadd.f32 %v3193_v48, %v3192_v5  ;;  %v3127_v26 = vrot.slane %v6393_v52, %v4267_v21  ;;  %v3174_v47 = vsel %vm2677_vm6, %v3087_v19, %v3173_v3  ;;  %v3180_v23 = vsel %vm2674_vm5, %v3115_v43, %v3179_v32  ;;  %v7391_v3 = vld [vmem:[#allocation63_spill] sm:$0xff] }
 0x183   : > { %v3169_v9 = vsel %vm2683_vm8, %v7383_v33, %v3168_v15  ;;  %v3195_v11 = vsel %vm209_vm0, %v3148_v62, 0.0  ;;  %v6601_v4 = vmul.f32 %v6267_v54, %v6267_v54  ;;  %v3175_v57 = vsel %vm2680_vm7, %v3091_v0, %v3174_v47 }
 0x184   : > { %v3181_v24 = vsel %vm2677_vm6, %v3119_v40, %v3180_v23  ;;  %v3196_v34 = vadd.f32 %v3195_v11, %v3194_v49  ;;  %v6607_v38 = vmul.f32 %v6270_v17, %v6270_v17  ;;  %v3176_v53 = vsel %vm2683_vm8, %v3095_v55, %v3175_v57  ;;  %v7393_v49 = vld [vmem:[#allocation64_spill] sm:$0xff]  ;;  %v7395_v23 = vld [vmem:[#allocation27_spill] sm:$0xff]  ;;  %v7397_v57 = vld [vmem:[#allocation18_spill] sm:$0xff] }
 0x185   : > { %v3182_v19 = vsel %vm2680_vm7, %v3123_v6, %v3181_v24  ;;  %v3197_v43 = vsel %vm209_vm0, %v3155_v46, 0.0  ;;  %v6614_v62 = vmul.f32 %v6273_v44, %v6273_v44  ;;  %v6618_v54 = vmul.f32 %v6376_v35, %v6376_v35 }
 0x186   : > { %v3198_v0 = vadd.f32 %v3197_v43, %v3196_v34  ;;  %v3199_v40 = vsel %vm209_vm0, %v3162_v41, 0.0  ;;  %v3183_v17 = vsel %vm2683_vm8, %v3127_v26, %v3182_v19  ;;  %v3201_v45 = vsel %vm209_vm0, %v3169_v9, 0.0  ;;  %v7385_v41 = vld [vmem:[#allocation93_spill] sm:$0xff] }
 0x187   : > { %v3203_v55 = vsel %vm209_vm0, %v3176_v53, 0.0  ;;  %v6626_v6 = vmul.f32 %v6379_v31, %v6379_v31  ;;  %v6630_v44 = vmul.f32 %v6382_v12, %v6382_v12  ;;  %v6634_v35 = vmul.f32 %v6385_v1, %v6385_v1  ;;  %v7387_v12 = vld [vmem:[#allocation95_spill] sm:$0xff]  ;;  %v7388_v1 = vld [vmem:[#allocation20_spill] sm:$0xff]  ;;  %v7399_v19 = vld [vmem:[#allocation65_spill] sm:$0xff] }
 0x188   : > { %v3200_v58 = vadd.f32 %v3199_v40, %v3198_v0  ;;  %v6638_v46 = vmul.f32 %v6387_v20, %v6387_v20  ;;  %v3510_v22 = vrot.slane %v7384_v59, %v4267_v21  ;;  %v3514_v31 = vrot.slane %v7385_v41, %v4267_v21  ;;  %v7401_v0 = vld [vmem:[#allocation58_spill] sm:$0xff] }
 0x189   : > { %v3518_v61 = vrot.slane %v7386_v10, %v4267_v21  ;;  %v3522_v37 = vrot.slane %v7387_v12, %v4267_v21  ;;  %v3526_v18 = vrot.slane %v7388_v1, %v4267_v21  ;;  %v3530_v20 = vrot.slane %v7389_v29, %v4267_v21  ;;  %v7407_v59 = vld [vmem:[#allocation66_spill] sm:$0xff] }
 0x18a   : > { %v3202_v13 = vadd.f32 %v3201_v45, %v3200_v58  ;;  %v3534_v63 = vrot.slane %v7390_v14, %v4267_v21  ;;  %v3538_v50 = vrot.slane %v6311_v27, %v4267_v21  ;;  %v3542_v36 = vrot.slane %v6315_v42, %v4267_v21  ;;  %v7403_v45 = vld [vmem:[#allocation30_spill] sm:$0xff] }
 0x18b   : > { %v3546_v5 = vrot.slane %v6320_v28, %v4267_v21  ;;  %v3550_v25 = vrot.slane %v6413_v16, %v4267_v21  ;;  %v3554_v15 = vrot.slane %v6417_v56, %v4267_v21  ;;  %v3558_v7 = vrot.slane %v6601_v4, %v4267_v21  ;;  %v7471_v16 = vld [vmem:[#allocation92_spill] sm:$0xff] }
 0x18c   : > { %v3204_v39 = vadd.f32 %v3203_v55, %v3202_v13  ;;  %v3562_v51 = vrot.slane %v6607_v38, %v4267_v21  ;;  %v3205_v27 = vsel %vm209_vm0, %v3183_v17, 0.0  ;;  %v6671_v42 = vmul.f32 %v6389_v60, %v6389_v60 }
 0x18d   : > { %v6675_v28 = vmul.f32 %v6391_v8, %v6391_v8  ;;  %v3566_v2 = vrot.slane %v6614_v62, %v4267_v21  ;;  %v3570_v30 = vrot.slane %v6618_v54, %v4267_v21  ;;  %v3574_v33 = vrot.slane %v6626_v6, %v4267_v21  ;;  %v7405_v6 = vld [vmem:[#allocation72_spill] sm:$0xff] }
 0x18e   : > { %v3206_v48 = vadd.f32 %v3205_v27, %v3204_v39  ;;  %v3578_v9 = vrot.slane %v6630_v44, %v4267_v21  ;;  %v3582_v60 = vrot.slane %v6634_v35, %v4267_v21  ;;  %v3586_v8 = vrot.slane %v6638_v46, %v4267_v21  ;;  %v7409_v27 = vld [vmem:[#allocation24_spill] sm:$0xff] }
 0x18f   : > { %v7392_v32 = vrot.slane %v7391_v3, %v4267_v21  ;;  %v7394_v26 = vrot.slane %v7393_v49, %v4267_v21  ;;  %v7396_v11 = vrot.slane %v7395_v23, %v4267_v21  ;;  %v7398_v24 = vrot.slane %v7397_v57, %v4267_v21  ;;  %v7411_v49 = vld [vmem:[#allocation73_spill] sm:$0xff]  ;;  %v7413_v23 = vld [vmem:[#allocation34_spill] sm:$0xff]  ;;  %v7415_v57 = vld [vmem:[#allocation79_spill] sm:$0xff] }
 0x190   : > { %v3207_v53 = vrot.slane %v3206_v48, 4  ;;  %v7400_v43 = vrot.slane %v7399_v19, %v4267_v21  ;;  %v7402_v40 = vrot.slane %v7401_v0, %v4267_v21  ;;  %v7404_v55 = vrot.slane %v7403_v45, %v4267_v21 }
 0x191   : > { %v3599_v47 = vsel %vm2665_vm2, %v7394_v26, %v7392_v32  ;;  %v3606_v34 = vsel %vm2665_vm2, %v7398_v24, %v7396_v11  ;;  %v7406_v58 = vrot.slane %v7405_v6, %v4267_v21  ;;  %v7408_v13 = vrot.slane %v7407_v59, %v4267_v21 }
 0x192   : > { %v3600_v54 = vsel %vm2668_vm3, %v7400_v43, %v3599_v47  ;;  %v3607_v17 = vsel %vm2668_vm3, %v7402_v40, %v3606_v34  ;;  %v7410_v3 = vrot.slane %v7409_v27, %v4267_v21  ;;  %v7412_v26 = vrot.slane %v7411_v49, %v4267_v21  ;;  %v7417_v43 = vld [vmem:[#allocation67_spill] sm:$0xff]  ;;  %v7429_v49 = vld [vmem:[#allocation80_spill] sm:$0xff] }
 0x193   : > { %v3613_v44 = vsel %vm2665_vm2, %v7406_v58, %v7404_v55  ;;  %v3601_v39 = vsel %vm2671_vm4, %v7408_v13, %v3600_v54  ;;  %v7414_v11 = vrot.slane %v7413_v23, %v4267_v21  ;;  %v7416_v24 = vrot.slane %v7415_v57, %v4267_v21  ;;  %v7419_v40 = vld [vmem:[#allocation59_spill] sm:$0xff]  ;;  %v7421_v55 = vld [vmem:[#allocation74_spill] sm:$0xff] }
 0x194   : > { %v3608_v32 = vsel %vm2671_vm4, %v7410_v3, %v3607_v17  ;;  %v3614_v47 = vsel %vm2668_vm3, %v7412_v26, %v3613_v44  ;;  %v3208_v19 = vadd.f32 %v3207_v53, %v3206_v48  ;;  %v7418_v54 = vrot.slane %v7417_v43, %v4267_v21  ;;  %v7423_v44 = vld [vmem:[#allocation68_spill] sm:$0xff]  ;;  %v7427_v27 = vld [vmem:[#allocation75_spill] sm:$0xff]  ;;  %v7433_v43 = vld [vmem:[#allocation61_spill] sm:$0xff] }
 0x195   : > { %v3620_v34 = vsel %vm2665_vm2, %v7416_v24, %v7414_v11  ;;  %v7420_v17 = vrot.slane %v7419_v40, %v4267_v21  ;;  %v7422_v6 = vrot.slane %v7421_v55, %v4267_v21  ;;  %v7424_v59 = vrot.slane %v7423_v44, %v4267_v21  ;;  %v7425_v53 = vld [vmem:[#allocation60_spill] sm:$0xff]  ;;  %v7431_v11 = vld [vmem:[#allocation69_spill] sm:$0xff]  ;;  %v7437_v55 = vld [vmem:[#allocation70_spill] sm:$0xff] }
 0x196   : > { %v3602_v0 = vsel %vm2674_vm5, %v7418_v54, %v3601_v39  ;;  %v7426_v13 = vrot.slane %v7425_v53, %v4267_v21  ;;  %v7428_v3 = vrot.slane %v7427_v27, %v4267_v21  ;;  %v7430_v26 = vrot.slane %v7429_v49, %v4267_v21  ;;  %v7435_v40 = vld [vmem:[#allocation76_spill] sm:$0xff]  ;;  %v7445_v49 = vld [vmem:[#allocation78_spill] sm:$0xff] }
 0x197   : > { %v3609_v45 = vsel %vm2674_vm5, %v7420_v17, %v3608_v32  ;;  %v3615_v58 = vsel %vm2671_vm4, %v7422_v6, %v3614_v47  ;;  %v3603_v48 = vsel %vm2677_vm6, %v7424_v59, %v3602_v0  ;;  %v3209_v23 = vrot.slane %v3208_v19, 2 }
 0x198   : > { %v3610_v39 = vsel %vm2677_vm6, %v7426_v13, %v3609_v45  ;;  %v3616_v32 = vsel %vm2674_vm5, %v7428_v3, %v3615_v58  ;;  %v3621_v47 = vsel %vm2668_vm3, %v7430_v26, %v3620_v34  ;;  %v7432_v57 = vrot.slane %v7431_v11, %v4267_v21  ;;  %v7439_v58 = vld [vmem:[#allocation62_spill] sm:$0xff] }
 0x199   : > { %v7434_v54 = vrot.slane %v7433_v43, %v4267_v21  ;;  %v7436_v17 = vrot.slane %v7435_v40, %v4267_v21  ;;  %v7438_v6 = vrot.slane %v7437_v55, %v4267_v21  ;;  %v7440_v44 = vrot.slane %v7439_v58, %v4267_v21  ;;  %v7451_v40 = vld [vmem:[#allocation86_spill] sm:$0xff]  ;;  %v7455_v55 = vld [vmem:[#allocation87_spill] sm:$0xff] }
 0x19a   : > { %v3604_v24 = vsel %vm2680_vm7, %v7432_v57, %v3603_v48  ;;  %v7441_v48 = vld [vmem:[#allocation77_spill] sm:$0xff]  ;;  %v7446_v26 = vrot.slane %v7445_v49, %v4267_v21  ;;  %v7447_v57 = vld [vmem:[#allocation82_spill] sm:$0xff] }
 0x19b   : > { %v3611_v0 = vsel %vm2680_vm7, %v7434_v54, %v3610_v39  ;;  %v3617_v45 = vsel %vm2677_vm6, %v7436_v17, %v3616_v32  ;;  %v3605_v34 = vsel %vm2683_vm8, %v7438_v6, %v3604_v24  ;;  %v7442_v53 = vrot.slane %v7441_v48, %v4267_v21  ;;  %v7443_v39 = vld [vmem:[#allocation81_spill] sm:$0xff]  ;;  %v7449_v54 = vld [vmem:[#allocation39_spill] sm:$0xff] }
 0x19c   : > { %v3612_v59 = vsel %vm2683_vm8, %v7440_v44, %v3611_v0  ;;  %v7444_v27 = vrot.slane %v7443_v39, %v4267_v21  ;;  %v3210_v32 = vadd.f32 %v3209_v23, %v3208_v19  ;;  %v7448_v24 = vrot.slane %v7447_v57, %v4267_v21  ;;  %v7457_v44 = vld [vmem:[#allocation37_spill] sm:$0xff] }
 0x19d   : > { %v3618_v13 = vsel %vm2680_vm7, %v7442_v53, %v3617_v45  ;;  %v7450_v0 = vrot.slane %v7449_v54, %v4267_v21  ;;  %v7452_v17 = vrot.slane %v7451_v40, %v4267_v21  ;;  %v7453_v45 = vld [vmem:[#allocation83_spill] sm:$0xff]  ;;  %v7456_v6 = vrot.slane %v7455_v55, %v4267_v21  ;;  %v7465_v54 = vld [vmem:[#allocation89_spill] sm:$0xff] }
 0x19e   : > { %v3622_v3 = vsel %vm2671_vm4, %v7444_v27, %v3621_v47  ;;  %v3619_v11 = vsel %vm2683_vm8, %v7446_v26, %v3618_v13  ;;  %v7454_v19 = vrot.slane %v7453_v45, %v4267_v21  ;;  %v7458_v48 = vrot.slane %v7457_v44, %v4267_v21  ;;  %v7459_v27 = vld [vmem:[#allocation84_spill] sm:$0xff]  ;;  %v7469_v55 = vld [vmem:[#allocation91_spill] sm:$0xff] }
 0x19f   : > { %v3623_v43 = vsel %vm2674_vm5, %v7448_v24, %v3622_v3  ;;  %v3627_v47 = vsel %vm2665_vm2, %v7452_v17, %v7450_v0  ;;  %v3641_v13 = vsel %vm2665_vm2, %v3542_v36, %v3538_v50  ;;  %v3211_v39 = vrot.slane %v3210_v32, 1  ;;  %v7461_v26 = vld [vmem:[#allocation88_spill] sm:$0xff] }
 0x1a0   : > { %v3624_v23 = vsel %vm2677_vm6, %v7454_v19, %v3623_v43  ;;  %v3628_v58 = vsel %vm2668_vm3, %v7456_v6, %v3627_v47  ;;  %v3634_v53 = vsel %vm2665_vm2, %v3510_v22, %v7458_v48  ;;  %v7460_v3 = vrot.slane %v7459_v27, %v4267_v21  ;;  %v7463_v22 = vld [vmem:[#allocation85_spill] sm:$0xff]  ;;  %v7467_v47 = vld [vmem:[#allocation90_spill] sm:$0xff] }
 0x1a1   : > { %v7462_v57 = vrot.slane %v7461_v26, %v4267_v21  ;;  %v3635_v43 = vsel %vm2668_vm3, %v3514_v31, %v3634_v53  ;;  %v7464_v50 = vrot.slane %v7463_v22, %v4267_v21  ;;  %v7466_v0 = vrot.slane %v7465_v54, %v4267_v21 }
 0x1a2   : > { %v3625_v49 = vsel %vm2680_vm7, %v7460_v3, %v3624_v23  ;;  %v3636_v41 = vsel %vm2671_vm4, %v3518_v61, %v3635_v43  ;;  %v3642_v31 = vsel %vm2668_vm3, %v3546_v5, %v3641_v13  ;;  %v3212_v17 = vadd.f32 %v3211_v39, %v3210_v32 }
 0x1a3   : > { %v3629_v24 = vsel %vm2671_vm4, %v7462_v57, %v3628_v58  ;;  %v3626_v36 = vsel %vm2683_vm8, %v7464_v50, %v3625_v49  ;;  %v7468_v45 = vrot.slane %v7467_v47, %v4267_v21  ;;  %v3637_v23 = vsel %vm2674_vm5, %v3522_v37, %v3636_v41 }
 0x1a4   : > { %v3630_v40 = vsel %vm2674_vm5, %v7466_v0, %v3629_v24  ;;  %v3643_v10 = vsel %vm2671_vm4, %v3550_v25, %v3642_v31  ;;  %v7470_v61 = vrot.slane %v7469_v55, %v4267_v21  ;;  %v3638_v32 = vsel %vm2677_vm6, %v3526_v18, %v3637_v23  ;;  %3214 = vst.msk [vmem:[%s6837_s7] sm:$0x1] %vm3213_vm10, %v3212_v17 }
 0x1a5   : > { %v3631_v19 = vsel %vm2677_vm6, %v7468_v45, %v3630_v40  ;;  %v3644_v12 = vsel %vm2674_vm5, %v3554_v15, %v3643_v10  ;;  %v3648_v37 = vsel %vm2665_vm2, %v3574_v33, %v3570_v30  ;;  %v7472_v25 = vrot.slane %v7471_v16, %v4267_v21 }
 0x1a6   : > { %v3632_v5 = vsel %vm2680_vm7, %v7470_v61, %v3631_v19  ;;  %v3639_v1 = vsel %vm2680_vm7, %v3530_v20, %v3638_v32  ;;  %v3645_v56 = vsel %vm2677_vm6, %v3558_v7, %v3644_v12  ;;  %v3649_v18 = vsel %vm2668_vm3, %v3578_v9, %v3648_v37 }
 0x1a7   : > { %v3633_v6 = vsel %vm2683_vm8, %v7472_v25, %v3632_v5  ;;  %v3590_v15 = vrot.slane %v6671_v42, %v4267_v21  ;;  %v3640_v30 = vsel %vm2683_vm8, %v3534_v63, %v3639_v1  ;;  %v3646_v29 = vsel %vm2680_vm7, %v3562_v51, %v3645_v56 }
 0x1a8   : > { %v3650_v4 = vsel %vm2671_vm4, %v3582_v60, %v3649_v18  ;;  %v3647_v20 = vsel %vm2683_vm8, %v3566_v2, %v3646_v29  ;;  %v3663_v63 = vsel %vm209_vm0, %v3605_v34, 0.0  ;;  %v3664_v38 = vsel %vm209_vm0, %v3612_v59, 0.0 }
 0x1a9   : > { %v3651_v14 = vsel %vm2674_vm5, %v3586_v8, %v3650_v4  ;;  %v3278_v7 = vmul.f32 %v6393_v52, %v6393_v52  ;;  %v3665_v35 = vadd.f32 %v3664_v38, %v3663_v63  ;;  %v3594_v51 = vrot.slane %v6675_v28, %v4267_v21 }
 0x1aa   : > { %v3666_v62 = vsel %vm209_vm0, %v3619_v11, 0.0  ;;  %v3652_v42 = vsel %vm2677_vm6, %v3590_v15, %v3651_v14  ;;  %v3668_v46 = vsel %vm209_vm0, %v3626_v36, 0.0  ;;  %v3670_v8 = vsel %vm209_vm0, %v3633_v6, 0.0 }
 0x1ab   : > { %v3667_v2 = vadd.f32 %v3666_v62, %v3665_v35  ;;  %v3598_v33 = vrot.slane %v3278_v7, %v4267_v21  ;;  %v3653_v60 = vsel %vm2680_vm7, %v3594_v51, %v3652_v42  ;;  %v3672_v34 = vsel %vm209_vm0, %v3640_v30, 0.0 }
 0x1ac   : > { %v3674_v11 = vsel %vm209_vm0, %v3647_v20, 0.0 }
 0x1ad   : > { %v3669_v9 = vadd.f32 %v3668_v46, %v3667_v2  ;;  %v3654_v28 = vsel %vm2683_vm8, %v3598_v33, %v3653_v60 }
 0x1ae   : > { %v3676_v44 = vsel %vm209_vm0, %v3654_v28, 0.0 }
 0x1af   : > { %v3671_v52 = vadd.f32 %v3670_v8, %v3669_v9 }
 0x1b1   : > { %v3673_v59 = vadd.f32 %v3672_v34, %v3671_v52 }
 0x1b3   : > { %v3675_v58 = vadd.f32 %v3674_v11, %v3673_v59 }
 0x1b5   : > { %v3677_v48 = vadd.f32 %v3676_v44, %v3675_v58 }
 0x1b7   : > { %v3678_v53 = vrot.slane %v3677_v48, 4 }
 0x1b9   : > { %v3679_v21 = vadd.f32 %v3678_v53, %v3677_v48 }
 0x1bb   : > { %v3680_v13 = vrot.slane %v3679_v21, 2 }
 0x1bd   : > { %v3681_v39 = vadd.f32 %v3680_v13, %v3679_v21 }
 0x1bf   : > { %v3682_v27 = vrot.slane %v3681_v39, 1 }
 0x1c1   : > { %v3683_v3 = vadd.f32 %v3682_v27, %v3681_v39 }
 0x1c3   : > { %3684 = vst.msk [vmem:[%s6837_s7 + $0x1] sm:$0x1] %vm3213_vm10, %v3683_v3 }
 0x1c4 PF: > { %s15_s15 = sadd.s32 1, %s4141_s15  }
 0x1c5   : > { %p12_p4 = scmp.ge.s32.totalorder %s15_s15, 4  }
 0x1c7   :  { %14 = sbr.rel (!%p12_p4) target bundleno = 1 (0x1), region = 75 }

// kernel: densenet_forward.13
= control target key start
LH: loop header
LB: loop body
LE: loop exit
PB: predicated region body
PF: predicated region fallthrough
CT: control target
= control target key end

     0   :  { %vm24_vm0 = vcmask 130048   ;;  %vm516_vm1 = vcmask 1040384   ;;  %v1957_v3 = vmov 0.0   ;;  %v1958_v9 = vmov 0   ;;  %s3336_s3 = inlined_call_operand.vmem [shape: bf16[49,16], index: 3, kind: input, shape index: {}]   ;;  %s3337_s2 = inlined_call_operand.vmem [shape: f32[512,49], index: 2, kind: input, shape index: {}]   ;;  %s3338_s0 = inlined_call_operand.vmem [shape: f32[1,49], index: 0, kind: input, shape index: {}]   ;;  %s3339_s1 = inlined_call_operand.vmem [shape: f32[1,49], index: 1, kind: input, shape index: {}]   ;;  %s3340_s4 = inlined_call_operand.vmem [shape: bf16[512,16], index: 4, kind: output, shape index: {0}]   ;;  %s3341_s5 = inlined_call_operand.vmem [shape: f32[1,2,16], index: 5, kind: output, shape index: {1}]  }
   0x1   :  { %v1992_v0 = vld [vmem:[%s3336_s3] sm:$0xff]   ;;  %v1997_v1 = vld [vmem:[%s3336_s3 + $0x8] sm:$0xff]   ;;  %v2003_v2 = vld [vmem:[%s3336_s3 + $0x10] sm:$0xff]   ;;  %27 = vst.msk [vmem:[#allocation2 + $0x10] sm:$0xff] %vm24_vm0, %v1957_v3  ;;  %v518_v10 = vsel %vm516_vm1, 65535, %v1958_v9  ;;  %vm419_vm2 = vcmask 400384  }
   0x2   :  { %1871 = vmatprep.subr.bf16.mxu0 %v1992_v0  ;;  %1943 = vmatprep.subr.bf16.mxu1 %v1992_v0  ;;  %25 = vst.msk [vmem:[#allocation2] sm:$0xff] %vm24_vm0, %v1957_v3  ;;  %26 = vst.msk [vmem:[#allocation2 + $0x8] sm:$0xff] %vm24_vm0, %v1957_v3  ;;  %v1956_v4 = vld [vmem:[%s3336_s3 + $0x18] ss:$0 sps:$4 sm:$0x11]   ;;  %v89_v5 = vld [vmem:[%s3337_s2] sm:$0xff] }
   0x3   :  { %28 = vst.msk [vmem:[#allocation2 + $0x18] sm:$0xff] %vm24_vm0, %v1957_v3  ;;  %29 = vst.msk [vmem:[#allocation2 + $0x20] sm:$0xff] %vm24_vm0, %v1957_v3  ;;  %1872 = vmatpush3.bf16.msra.mxu0 %v1992_v0  ;;  %1947 = vmatpush3.bf16.msra.mxu1 %v1992_v0  ;;  %v90_v6 = vld [vmem:[%s3337_s2 + $0x8] sm:$0xff]  ;;  %v2149_v7 = vld [vmem:[%s3338_s0] ss:$0 sm:$0xff]  ;;  %v520_v23 = vand.u32 %v1956_v4, %v518_v10  ;;  %vm1263_vm3 = vcmask 125952  }
   0x4   :  { %30 = vst.msk [vmem:[#allocation2 + $0x28] sm:$0xff] %vm24_vm0, %v1957_v3  ;;  %31 = vst.msk [vmem:[#allocation2 + $0x30] sm:$0xff] %vm24_vm0, %v1957_v3  ;;  %1873 = vmatprep.subr.bf16.mxu0 %v1997_v1  ;;  %v2154_v8 = vld [vmem:[%s3339_s1] ss:$0 sm:$0xff]  ;;  %1944 = vmatprep.subr.bf16.mxu1 %v1997_v1  ;;  %v160_v11 = vmul.f32 %v2149_v7, %v89_v5  ;;  %v161_v12 = vmul.f32 %v2149_v7, %v90_v6  ;;  %v91_v13 = vld [vmem:[%s3337_s2 + $0x10] sm:$0xff]  ;;  %vm1461_vm4 = vcmask 122880  }
   0x5   :  { %32 = vst.msk [vmem:[#allocation2 + $0x38] sm:$0xff] %vm24_vm0, %v1957_v3  ;;  %33 = vst.msk [vmem:[#allocation2 + $0x40] sm:$0xff] %vm24_vm0, %v1957_v3  ;;  %v92_v14 = vld [vmem:[%s3337_s2 + $0x18] sm:$0xff]  ;;  %v93_v15 = vld [vmem:[%s3337_s2 + $0x20] sm:$0xff]  ;;  %v162_v16 = vmul.f32 %v2149_v7, %v91_v13 }
   0x6   :  { %34 = vst.msk [vmem:[#allocation2 + $0x48] sm:$0xff] %vm24_vm0, %v1957_v3  ;;  %35 = vst.msk [vmem:[#allocation2 + $0x50] sm:$0xff] %vm24_vm0, %v1957_v3  ;;  %v163_v17 = vmul.f32 %v2149_v7, %v92_v14  ;;  %v94_v18 = vld [vmem:[%s3337_s2 + $0x28] sm:$0xff]  ;;  %v231_v19 = vadd.f32 %v2154_v8, %v160_v11  ;;  %v232_v20 = vadd.f32 %v2154_v8, %v161_v12  ;;  %v95_v29 = vld [vmem:[%s3337_s2 + $0x30] sm:$0xff] }
   0x7   :  { %36 = vst.msk [vmem:[#allocation2 + $0x58] sm:$0xff] %vm24_vm0, %v1957_v3  ;;  %37 = vst.msk [vmem:[#allocation2 + $0x60] sm:$0xff] %vm24_vm0, %v1957_v3  ;;  %1874 = vmatpush3.bf16.msra.mxu0 %v1997_v1  ;;  %v164_v21 = vmul.f32 %v2149_v7, %v93_v15  ;;  %v165_v22 = vmul.f32 %v2149_v7, %v94_v18  ;;  %1948 = vmatpush3.bf16.msra.mxu1 %v1997_v1  ;;  %v96_v30 = vld [vmem:[%s3337_s2 + $0x38] sm:$0xff]  ;;  %v97_v31 = vld [vmem:[%s3337_s2 + $0x40] sm:$0xff] }
   0x8   :  { %38 = vst.msk [vmem:[#allocation2 + $0x68] sm:$0xff] %vm24_vm0, %v1957_v3  ;;  %39 = vst.msk [vmem:[#allocation2 + $0x70] sm:$0xff] %vm24_vm0, %v1957_v3  ;;  %1875 = vmatprep.subr.bf16.mxu0 %v2003_v2  ;;  %v359_v24 = vpack.c.bf16 %v232_v20, %v231_v19  ;;  %v233_v25 = vadd.f32 %v2154_v8, %v162_v16  ;;  %v234_v26 = vadd.f32 %v2154_v8, %v163_v17  ;;  %v98_v32 = vld [vmem:[%s3337_s2 + $0x48] sm:$0xff]  ;;  %v99_v39 = vld [vmem:[%s3337_s2 + $0x50] sm:$0xff] }
   0x9   :  { %40 = vst.msk [vmem:[#allocation2 + $0x78] sm:$0xff] %vm24_vm0, %v1957_v3  ;;  %41 = vst.msk [vmem:[#allocation2 + $0x80] sm:$0xff] %vm24_vm0, %v1957_v3  ;;  %1945 = vmatprep.subr.bf16.mxu1 %v2003_v2  ;;  %v235_v27 = vadd.f32 %v2154_v8, %v164_v21  ;;  %v236_v28 = vadd.f32 %v2154_v8, %v165_v22  ;;  %v166_v34 = vmul.f32 %v2149_v7, %v95_v29  ;;  %v100_v42 = vld [vmem:[%s3337_s2 + $0x58] sm:$0xff]  ;;  %v101_v45 = vld [vmem:[%s3337_s2 + $0x60] sm:$0xff] }
   0xa   :  { %42 = vst.msk [vmem:[#allocation2 + $0x88] sm:$0xff] %vm24_vm0, %v1957_v3  ;;  %43 = vst.msk [vmem:[#allocation2 + $0x90] sm:$0xff] %vm24_vm0, %v1957_v3  ;;  %1879 = vmatprep.mubr.msk.bf16.mxu0 %vm419_vm2, %v359_v24  ;;  %v360_v33 = vpack.c.bf16 %v234_v26, %v233_v25  ;;  %v167_v35 = vmul.f32 %v2149_v7, %v96_v30  ;;  %v168_v37 = vmul.f32 %v2149_v7, %v97_v31  ;;  %v102_v47 = vld [vmem:[%s3337_s2 + $0x68] sm:$0xff]  ;;  %v121_v49 = vld [vmem:[%s3337_s2 + $0x100] sm:$0xff] }
   0xb   :  { %44 = vst.msk [vmem:[#allocation2 + $0x98] sm:$0xff] %vm24_vm0, %v1957_v3  ;;  %45 = vst.msk [vmem:[#allocation2 + $0xa0] sm:$0xff] %vm24_vm0, %v1957_v3  ;;  %1876 = vmatpush3.bf16.msra.mxu0 %v2003_v2  ;;  %1949 = vmatpush3.bf16.msra.mxu1 %v2003_v2  ;;  %v361_v36 = vpack.c.bf16 %v236_v28, %v235_v27  ;;  %v169_v38 = vmul.f32 %v2149_v7, %v98_v32  ;;  %v103_v52 = vld [vmem:[%s3337_s2 + $0x70] sm:$0xff]  ;;  %v104_v53 = vld [vmem:[%s3337_s2 + $0x78] sm:$0xff] }
   0xc   :  { %46 = vst.msk [vmem:[#allocation2 + $0xa8] sm:$0xff] %vm24_vm0, %v1957_v3  ;;  %47 = vst.msk [vmem:[#allocation2 + $0xb0] sm:$0xff] %vm24_vm0, %v1957_v3  ;;  %1877 = vmatprep.subr.bf16.mxu0 %v520_v23  ;;  %1946 = vmatprep.subr.bf16.mxu1 %v520_v23  ;;  %v237_v40 = vadd.f32 %v2154_v8, %v166_v34  ;;  %v238_v41 = vadd.f32 %v2154_v8, %v167_v35  ;;  %v122_v54 = vld [vmem:[%s3337_s2 + $0x108] sm:$0xff]  ;;  %v123_v57 = vld [vmem:[%s3337_s2 + $0x110] sm:$0xff] }
   0xd   :  { %48 = vst.msk [vmem:[#allocation2 + $0xb8] sm:$0xff] %vm24_vm0, %v1957_v3  ;;  %49 = vst.msk [vmem:[#allocation2 + $0xc0] sm:$0xff] %vm24_vm0, %v1957_v3  ;;  %v239_v43 = vadd.f32 %v2154_v8, %v168_v37  ;;  %v240_v44 = vadd.f32 %v2154_v8, %v169_v38  ;;  %v170_v46 = vmul.f32 %v2149_v7, %v99_v39  ;;  %v124_v58 = vld [vmem:[%s3337_s2 + $0x118] sm:$0xff]  ;;  %v125_v61 = vld [vmem:[%s3337_s2 + $0x120] sm:$0xff] }
   0xe   :  { %50 = vst.msk [vmem:[#allocation2 + $0xc8] sm:$0xff] %vm24_vm0, %v1957_v3  ;;  %51 = vst.msk [vmem:[#allocation2 + $0xd0] sm:$0xff] %vm24_vm0, %v1957_v3  ;;  %v171_v48 = vmul.f32 %v2149_v7, %v100_v42  ;;  %v362_v50 = vpack.c.bf16 %v238_v41, %v237_v40  ;;  %v172_v51 = vmul.f32 %v2149_v7, %v101_v45  ;;  %v126_v62 = vld [vmem:[%s3337_s2 + $0x128] sm:$0xff]  ;;  %v128_v4 = vld [vmem:[%s3337_s2 + $0x138] sm:$0xff] }
   0xf   :  { %52 = vst.msk [vmem:[#allocation2 + $0xd8] sm:$0xff] %vm24_vm0, %v1957_v3  ;;  %53 = vst.msk [vmem:[#allocation2 + $0xe0] sm:$0xff] %vm24_vm0, %v1957_v3  ;;  %1878 = vmatpush3.bf16.msra.mxu0 %v520_v23  ;;  %1950 = vmatpush3.bf16.msra.mxu1 %v520_v23  ;;  %v363_v55 = vpack.c.bf16 %v240_v44, %v239_v43  ;;  %v173_v56 = vmul.f32 %v2149_v7, %v102_v47  ;;  %v129_v11 = vld [vmem:[%s3337_s2 + $0x140] sm:$0xff]  ;;  %v130_v17 = vld [vmem:[%s3337_s2 + $0x148] sm:$0xff] }
  0x10   :  { %54 = vst.msk [vmem:[#allocation2 + $0xe8] sm:$0xff] %vm24_vm0, %v1957_v3  ;;  %55 = vst.msk [vmem:[#allocation2 + $0xf0] sm:$0xff] %vm24_vm0, %v1957_v3  ;;  %v241_v59 = vadd.f32 %v2154_v8, %v170_v46  ;;  %v192_v60 = vmul.f32 %v2149_v7, %v121_v49  ;;  %v242_v63 = vadd.f32 %v2154_v8, %v171_v48  ;;  %v105_v13 = vld [vmem:[%s3337_s2 + $0x80] sm:$0xff]  ;;  %v106_v18 = vld [vmem:[%s3337_s2 + $0x88] sm:$0xff] }
  0x11   :  { %56 = vst.msk [vmem:[#allocation2 + $0xf8] sm:$0xff] %vm24_vm0, %v1957_v3  ;;  %57 = vst.msk [vmem:[#allocation2 + $0x100] sm:$0xff] %vm24_vm0, %v1957_v3  ;;  %v174_v0 = vmul.f32 %v2149_v7, %v103_v52  ;;  %v175_v1 = vmul.f32 %v2149_v7, %v104_v53  ;;  %v193_v2 = vmul.f32 %v2149_v7, %v122_v54  ;;  %v107_v34 = vld [vmem:[%s3337_s2 + $0x90] sm:$0xff]  ;;  %v108_v35 = vld [vmem:[%s3337_s2 + $0x98] sm:$0xff] }
  0x12   :  { %58 = vst.msk [vmem:[#allocation2 + $0x108] sm:$0xff] %vm24_vm0, %v1957_v3  ;;  %59 = vst.msk [vmem:[#allocation2 + $0x110] sm:$0xff] %vm24_vm0, %v1957_v3  ;;  %1880 = vmatmul.mubr.msk.bf16.vlgmr.msra.gmra.mrb[0].mxu0 %vm419_vm2, %v360_v33  ;;  %v243_v5 = vadd.f32 %v2154_v8, %v172_v51  ;;  %v263_v6 = vadd.f32 %v2154_v8, %v192_v60  ;;  %v194_v9 = vmul.f32 %v2149_v7, %v123_v57  ;;  %v110_v39 = vld [vmem:[%s3337_s2 + $0xa8] sm:$0xff]  ;;  %v131_v42 = vld [vmem:[%s3337_s2 + $0x150] sm:$0xff] }
  0x13   :  { %60 = vst.msk [vmem:[#allocation2 + $0x118] sm:$0xff] %vm24_vm0, %v1957_v3  ;;  %61 = vst.msk [vmem:[#allocation2 + $0x120] sm:$0xff] %vm24_vm0, %v1957_v3  ;;  %1883 = vmatprep.mubr.msk.bf16.mxu0 %vm419_vm2, %v361_v36  ;;  %v195_v10 = vmul.f32 %v2149_v7, %v124_v58  ;;  %v244_v12 = vadd.f32 %v2154_v8, %v173_v56  ;;  %v264_v14 = vadd.f32 %v2154_v8, %v193_v2  ;;  %v109_v36 = vld [vmem:[%s3337_s2 + $0xa0] sm:$0xff]  ;;  %v132_v43 = vld [vmem:[%s3337_s2 + $0x158] sm:$0xff] }
  0x14   :  { %62 = vst.msk [vmem:[#allocation2 + $0x128] sm:$0xff] %vm24_vm0, %v1957_v3  ;;  %63 = vst.msk [vmem:[#allocation2 + $0x130] sm:$0xff] %vm24_vm0, %v1957_v3  ;;  %v196_v15 = vmul.f32 %v2149_v7, %v125_v61  ;;  %v197_v16 = vmul.f32 %v2149_v7, %v126_v62  ;;  %v265_v19 = vadd.f32 %v2154_v8, %v194_v9  ;;  %v133_v47 = vld [vmem:[%s3337_s2 + $0x160] sm:$0xff]  ;;  %v134_v48 = vld [vmem:[%s3337_s2 + $0x168] sm:$0xff] }
  0x15   :  { %64 = vst.msk [vmem:[#allocation2 + $0x138] sm:$0xff] %vm24_vm0, %v1957_v3  ;;  %65 = vst.msk [vmem:[#allocation2 + $0x140] sm:$0xff] %vm24_vm0, %v1957_v3  ;;  %v266_v20 = vadd.f32 %v2154_v8, %v195_v10  ;;  %v199_v22 = vmul.f32 %v2149_v7, %v128_v4  ;;  %v375_v23 = vpack.c.bf16 %v264_v14, %v263_v6  ;;  %v135_v60 = vld [vmem:[%s3337_s2 + $0x170] sm:$0xff]  ;;  %v136_v62 = vld [vmem:[%s3337_s2 + $0x178] sm:$0xff] }
  0x16   :  { %66 = vst.msk [vmem:[#allocation2 + $0x148] sm:$0xff] %vm24_vm0, %v1957_v3  ;;  %67 = vst.msk [vmem:[#allocation2 + $0x150] sm:$0xff] %vm24_vm0, %v1957_v3  ;;  %v267_v24 = vadd.f32 %v2154_v8, %v196_v15  ;;  %v268_v25 = vadd.f32 %v2154_v8, %v197_v16  ;;  %v200_v26 = vmul.f32 %v2149_v7, %v129_v11  ;;  %v149_v6 = vld [vmem:[%s3337_s2 + $0x1e0] sm:$0xff]  ;;  %v150_v9 = vld [vmem:[%s3337_s2 + $0x1e8] sm:$0xff] }
  0x17   :  { %68 = vst.msk [vmem:[#allocation2 + $0x158] sm:$0xff] %vm24_vm0, %v1957_v3  ;;  %69 = vst.msk [vmem:[#allocation2 + $0x160] sm:$0xff] %vm24_vm0, %v1957_v3  ;;  %v364_v27 = vpack.c.bf16 %v242_v63, %v241_v59  ;;  %v176_v28 = vmul.f32 %v2149_v7, %v105_v13  ;;  %v376_v29 = vpack.c.bf16 %v266_v20, %v265_v19  ;;  %1911 = vmatprep.mubr.msk.bf16.mxu1 %vm419_vm2, %v375_v23  ;;  %v147_v63 = vld [vmem:[%s3337_s2 + $0x1d0] sm:$0xff]  ;;  %v152_v15 = vld [vmem:[%s3337_s2 + $0x1f8] sm:$0xff] }
  0x18   :  { %70 = vst.msk [vmem:[#allocation2 + $0x168] sm:$0xff] %vm24_vm0, %v1957_v3  ;;  %71 = vst.msk [vmem:[#allocation2 + $0x170] sm:$0xff] %vm24_vm0, %v1957_v3  ;;  %v201_v30 = vmul.f32 %v2149_v7, %v130_v17  ;;  %v365_v31 = vpack.c.bf16 %v244_v12, %v243_v5  ;;  %v177_v32 = vmul.f32 %v2149_v7, %v106_v18  ;;  %v137_v5 = vld [vmem:[%s3337_s2 + $0x180] sm:$0xff]  ;;  %v151_v14 = vld [vmem:[%s3337_s2 + $0x1f0] sm:$0xff] }
  0x19   :  { %72 = vst.msk [vmem:[#allocation2 + $0x178] sm:$0xff] %vm24_vm0, %v1957_v3  ;;  %73 = vst.msk [vmem:[#allocation2 + $0x180] sm:$0xff] %vm24_vm0, %v1957_v3  ;;  %v377_v33 = vpack.c.bf16 %v268_v25, %v267_v24  ;;  %1912 = vmatmul.mubr.msk.bf16.vlgmr.msra.gmra.mrb[0].mxu1 %vm419_vm2, %v376_v29  ;;  %v270_v38 = vadd.f32 %v2154_v8, %v199_v22  ;;  %v271_v40 = vadd.f32 %v2154_v8, %v200_v26  ;;  %v138_v18 = vld [vmem:[%s3337_s2 + $0x188] sm:$0xff]  ;;  %v111_v25 = vld [vmem:[%s3337_s2 + $0xb0] sm:$0xff] }
  0x1a   :  { %74 = vst.msk [vmem:[#allocation2 + $0x188] sm:$0xff] %vm24_vm0, %v1957_v3  ;;  %75 = vst.msk [vmem:[#allocation2 + $0x190] sm:$0xff] %vm24_vm0, %v1957_v3  ;;  %1884 = vmatmul.mubr.msk.bf16.gmra.mrb[4].mxu0 %vm419_vm2, %v362_v50  ;;  %v272_v41 = vadd.f32 %v2154_v8, %v201_v30  ;;  %v245_v44 = vadd.f32 %v2154_v8, %v174_v0  ;;  %v246_v45 = vadd.f32 %v2154_v8, %v175_v1  ;;  %v148_v0 = vld [vmem:[%s3337_s2 + $0x1d8] sm:$0xff] }
  0x1b   :  { %76 = vst.msk [vmem:[#allocation2 + $0x198] sm:$0xff] %vm24_vm0, %v1957_v3  ;;  %77 = vst.msk [vmem:[#allocation2 + $0x1a0] sm:$0xff] %vm24_vm0, %v1957_v3  ;;  %1887 = vmatprep.mubr.msk.bf16.mxu0 %vm419_vm2, %v363_v55  ;;  %1915 = vmatprep.mubr.msk.bf16.mxu1 %vm419_vm2, %v377_v33  ;;  %v247_v46 = vadd.f32 %v2154_v8, %v176_v28  ;;  %v248_v49 = vadd.f32 %v2154_v8, %v177_v32  ;;  %v112_v26 = vld [vmem:[%s3337_s2 + $0xb8] sm:$0xff]  ;;  %v114_v32 = vld [vmem:[%s3337_s2 + $0xc8] sm:$0xff] }
  0x1c   :  { %78 = vst.msk [vmem:[#allocation2 + $0x1a8] sm:$0xff] %vm24_vm0, %v1957_v3  ;;  %79 = vst.msk [vmem:[#allocation2 + $0x1b0] sm:$0xff] %vm24_vm0, %v1957_v3  ;;  %v178_v50 = vmul.f32 %v2149_v7, %v107_v34  ;;  %v179_v51 = vmul.f32 %v2149_v7, %v108_v35  ;;  %v180_v52 = vmul.f32 %v2149_v7, %v109_v36 }
  0x1d   :  { %80 = vst.msk [vmem:[#allocation2 + $0x1b8] sm:$0xff] %vm24_vm0, %v1957_v3  ;;  %81 = vst.msk [vmem:[#allocation2 + $0x1c0] sm:$0xff] %vm24_vm0, %v1957_v3  ;;  %v181_v53 = vmul.f32 %v2149_v7, %v110_v39  ;;  %v202_v55 = vmul.f32 %v2149_v7, %v131_v42  ;;  %v203_v56 = vmul.f32 %v2149_v7, %v132_v43 }
  0x1e   :  { %82 = vst.msk [vmem:[#allocation2 + $0x1c8] sm:$0xff] %vm24_vm0, %v1957_v3  ;;  %83 = vst.msk [vmem:[#allocation2 + $0x1d0] sm:$0xff] %vm24_vm0, %v1957_v3  ;;  %v379_v57 = vpack.c.bf16 %v272_v41, %v271_v40  ;;  %v204_v58 = vmul.f32 %v2149_v7, %v133_v47  ;;  %v205_v59 = vmul.f32 %v2149_v7, %v134_v48 }
  0x1f   :  { %84 = vst.msk [vmem:[#allocation2 + $0x1d8] sm:$0xff] %vm24_vm0, %v1957_v3  ;;  %85 = vst.msk [vmem:[#allocation2 + $0x1e0] sm:$0xff] %vm24_vm0, %v1957_v3  ;;  %v366_v61 = vpack.c.bf16 %v246_v45, %v245_v44  ;;  %v367_v1 = vpack.c.bf16 %v248_v49, %v247_v46  ;;  %v249_v2 = vadd.f32 %v2154_v8, %v178_v50 }
  0x20   :  { %86 = vst.msk [vmem:[#allocation2 + $0x1e8] sm:$0xff] %vm24_vm0, %v1957_v3  ;;  %87 = vst.msk [vmem:[#allocation2 + $0x1f0] sm:$0xff] %vm24_vm0, %v1957_v3  ;;  %v251_v4 = vadd.f32 %v2154_v8, %v180_v52  ;;  %v252_v10 = vadd.f32 %v2154_v8, %v181_v53  ;;  %v273_v11 = vadd.f32 %v2154_v8, %v202_v55  ;;  %v139_v53 = vld [vmem:[%s3337_s2 + $0x190] sm:$0xff] }
  0x21   :  { %88 = vst.msk [vmem:[#allocation2 + $0x1f8] sm:$0xff] %vm24_vm0, %v1957_v3  ;;  %v127_v3 = vld [vmem:[%s3337_s2 + $0x130] sm:$0xff]  ;;  %v274_v12 = vadd.f32 %v2154_v8, %v203_v56  ;;  %v206_v13 = vmul.f32 %v2149_v7, %v135_v60  ;;  %v275_v16 = vadd.f32 %v2154_v8, %v204_v58  ;;  %v276_v17 = vadd.f32 %v2154_v8, %v205_v59  ;;  %v142_v58 = vld [vmem:[%s3337_s2 + $0x1a8] sm:$0xff] }
  0x22   :  { %v198_v21 = vmul.f32 %v2149_v7, %v127_v3  ;;  %1888 = vmatmul.mubr.msk.bf16.gmra.mrb[8].mxu0 %vm419_vm2, %v364_v27  ;;  %v250_v3 = vadd.f32 %v2154_v8, %v179_v51  ;;  %v218_v19 = vmul.f32 %v2149_v7, %v147_v63  ;;  %v219_v20 = vmul.f32 %v2149_v7, %v148_v0  ;;  %v117_v63 = vld [vmem:[%s3337_s2 + $0xe0] sm:$0xff]  ;;  %v118_v0 = vld [vmem:[%s3337_s2 + $0xe8] sm:$0xff] }
  0x23   :  { %1891 = vmatprep.mubr.msk.bf16.mxu0 %vm419_vm2, %v365_v31  ;;  %v208_v22 = vmul.f32 %v2149_v7, %v137_v5  ;;  %v220_v23 = vmul.f32 %v2149_v7, %v149_v6  ;;  %v221_v24 = vmul.f32 %v2149_v7, %v150_v9  ;;  %v222_v29 = vmul.f32 %v2149_v7, %v151_v14  ;;  %v113_v31 = vld [vmem:[%s3337_s2 + $0xc0] sm:$0xff] }
  0x24   :  { %v269_v37 = vadd.f32 %v2154_v8, %v198_v21  ;;  %v207_v21 = vmul.f32 %v2149_v7, %v136_v62  ;;  %v2396_v27 = vadd.f32 %v2154_v8, %v218_v19  ;;  %v2399_v28 = vadd.f32 %v2154_v8, %v219_v20  ;;  %v116_v62 = vld [vmem:[%s3337_s2 + $0xd8] sm:$0xff]  ;;  %v143_v19 = vld [vmem:[%s3337_s2 + $0x1b0] sm:$0xff] }
  0x25   :  { %v223_v30 = vmul.f32 %v2149_v7, %v152_v15  ;;  %v380_v33 = vpack.c.bf16 %v274_v12, %v273_v11  ;;  %v209_v34 = vmul.f32 %v2149_v7, %v138_v18  ;;  %v2411_v35 = vadd.f32 %v2154_v8, %v220_v23  ;;  %v144_v20 = vld [vmem:[%s3337_s2 + $0x1b8] sm:$0xff]  ;;  %v145_v23 = vld [vmem:[%s3337_s2 + $0x1c0] sm:$0xff] }
  0x26   :  { %v378_v54 = vpack.c.bf16 %v270_v38, %v269_v37  ;;  %v2414_v36 = vadd.f32 %v2154_v8, %v221_v24  ;;  %v381_v37 = vpack.c.bf16 %v276_v17, %v275_v16  ;;  %v388_v38 = vpack.c.bf16 %v2399_v28, %v2396_v27  ;;  %v146_v24 = vld [vmem:[%s3337_s2 + $0x1c8] sm:$0xff] }
  0x27   :  { %v2419_v39 = vadd.f32 %v2154_v8, %v222_v29  ;;  %v2422_v40 = vadd.f32 %v2154_v8, %v223_v30  ;;  %v368_v41 = vpack.c.bf16 %v250_v3, %v249_v2  ;;  %v182_v42 = vmul.f32 %v2149_v7, %v111_v25  ;;  %v119_v29 = vld [vmem:[%s3337_s2 + $0xf0] sm:$0xff]  ;;  %v120_v30 = vld [vmem:[%s3337_s2 + $0xf8] sm:$0xff] }
  0x28   :  { %1916 = vmatmul.mubr.msk.bf16.gmra.mrb[4].mxu1 %vm419_vm2, %v378_v54  ;;  %v183_v43 = vmul.f32 %v2149_v7, %v112_v26  ;;  %v389_v44 = vpack.c.bf16 %v2414_v36, %v2411_v35  ;;  %v369_v45 = vpack.c.bf16 %v252_v10, %v251_v4  ;;  %v184_v46 = vmul.f32 %v2149_v7, %v113_v31  ;;  %v140_v54 = vld [vmem:[%s3337_s2 + $0x198] sm:$0xff] }
  0x29   :  { %1919 = vmatprep.mubr.msk.bf16.mxu1 %vm419_vm2, %v379_v57  ;;  %v185_v47 = vmul.f32 %v2149_v7, %v114_v32  ;;  %v390_v48 = vpack.c.bf16 %v2422_v40, %v2419_v39  ;;  %v277_v49 = vadd.f32 %v2154_v8, %v206_v13  ;;  %v278_v50 = vadd.f32 %v2154_v8, %v207_v21  ;;  %v141_v57 = vld [vmem:[%s3337_s2 + $0x1a0] sm:$0xff]  ;;  %v301_v39 = vld [vmem:[#allocation2 + $0x30] sm:$0xff] }
  0x2a   :  { %1892 = vmatmul.mubr.msk.bf16.gmra.mrb[12].mxu0 %vm419_vm2, %v366_v61  ;;  %v279_v51 = vadd.f32 %v2154_v8, %v208_v22  ;;  %v280_v52 = vadd.f32 %v2154_v8, %v209_v34  ;;  %v253_v55 = vadd.f32 %v2154_v8, %v182_v42  ;;  %v254_v56 = vadd.f32 %v2154_v8, %v183_v43  ;;  %v115_v61 = vld [vmem:[%s3337_s2 + $0xd0] sm:$0xff]  ;;  %v299_v40 = vld [vmem:[#allocation2 + $0x20] sm:$0xff] }
  0x2b   :  { %1895 = vmatprep.mubr.msk.bf16.mxu0 %vm419_vm2, %v367_v1  ;;  %v255_v59 = vadd.f32 %v2154_v8, %v184_v46  ;;  %v256_v60 = vadd.f32 %v2154_v8, %v185_v47  ;;  %v382_v1 = vpack.c.bf16 %v278_v50, %v277_v49  ;;  %v210_v2 = vmul.f32 %v2149_v7, %v139_v53 }
  0x2c   :  { %v211_v3 = vmul.f32 %v2149_v7, %v140_v54  ;;  %v383_v4 = vpack.c.bf16 %v280_v52, %v279_v51  ;;  %v212_v5 = vmul.f32 %v2149_v7, %v141_v57  ;;  %v213_v6 = vmul.f32 %v2149_v7, %v142_v58  ;;  %v298_v58 = vld [vmem:[#allocation2 + $0x18] sm:$0xff] }
  0x2d   :  { %v370_v9 = vpack.c.bf16 %v254_v56, %v253_v55  ;;  %v186_v10 = vmul.f32 %v2149_v7, %v115_v61  ;;  %v187_v11 = vmul.f32 %v2149_v7, %v116_v62  ;;  %v371_v12 = vpack.c.bf16 %v256_v60, %v255_v59  ;;  %v295_v56 = vld [vmem:[#allocation2] sm:$0xff]  ;;  %v296_v61 = vld [vmem:[#allocation2 + $0x8] sm:$0xff] }
  0x2e   :  { %v188_v13 = vmul.f32 %v2149_v7, %v117_v63  ;;  %v189_v14 = vmul.f32 %v2149_v7, %v118_v0  ;;  %v281_v15 = vadd.f32 %v2154_v8, %v210_v2  ;;  %v282_v16 = vadd.f32 %v2154_v8, %v211_v3  ;;  %v300_v0 = vld [vmem:[#allocation2 + $0x28] sm:$0xff] }
  0x2f   :  { %v283_v17 = vadd.f32 %v2154_v8, %v212_v5  ;;  %v284_v18 = vadd.f32 %v2154_v8, %v213_v6  ;;  %v257_v21 = vadd.f32 %v2154_v8, %v186_v10  ;;  %v258_v22 = vadd.f32 %v2154_v8, %v187_v11 }
  0x30   :  { %1920 = vmatmul.mubr.msk.bf16.gmra.mrb[8].mxu1 %vm419_vm2, %v380_v33  ;;  %v259_v25 = vadd.f32 %v2154_v8, %v188_v13  ;;  %v260_v26 = vadd.f32 %v2154_v8, %v189_v14  ;;  %v384_v31 = vpack.c.bf16 %v282_v16, %v281_v15  ;;  %v214_v32 = vmul.f32 %v2149_v7, %v143_v19  ;;  %v329_v14 = vld [vmem:[#allocation2 + $0x110] sm:$0xff] }
  0x31   :  { %1923 = vmatprep.mubr.msk.bf16.mxu1 %vm419_vm2, %v381_v37  ;;  %v215_v33 = vmul.f32 %v2149_v7, %v144_v20  ;;  %v385_v34 = vpack.c.bf16 %v284_v18, %v283_v17  ;;  %v216_v37 = vmul.f32 %v2149_v7, %v145_v23  ;;  %v372_v42 = vpack.c.bf16 %v258_v22, %v257_v21  ;;  %v327_v18 = vld [vmem:[#allocation2 + $0x100] sm:$0xff]  ;;  %v305_v23 = vld [vmem:[#allocation2 + $0x50] sm:$0xff] }
  0x32   :  { %1896 = vmatmul.mubr.msk.bf16.gmra.mrb[16].mxu0 %vm419_vm2, %v368_v41  ;;  %v217_v41 = vmul.f32 %v2149_v7, %v146_v24  ;;  %v190_v43 = vmul.f32 %v2149_v7, %v119_v29  ;;  %v373_v46 = vpack.c.bf16 %v260_v26, %v259_v25  ;;  %v285_v47 = vadd.f32 %v2154_v8, %v214_v32  ;;  %v330_v25 = vld [vmem:[#allocation2 + $0x118] sm:$0xff] }
  0x33   :  { %1899 = vmatprep.mubr.msk.bf16.mxu0 %vm419_vm2, %v369_v45  ;;  %v191_v45 = vmul.f32 %v2149_v7, %v120_v30  ;;  %v286_v49 = vadd.f32 %v2154_v8, %v215_v33  ;;  %v287_v50 = vadd.f32 %v2154_v8, %v216_v37  ;;  %v303_v30 = vld [vmem:[#allocation2 + $0x40] sm:$0xff]  ;;  %v328_v33 = vld [vmem:[#allocation2 + $0x108] sm:$0xff] }
  0x34   :  { %v288_v51 = vadd.f32 %v2154_v8, %v217_v41  ;;  %v261_v52 = vadd.f32 %v2154_v8, %v190_v43 }
  0x35   :  { %v262_v53 = vadd.f32 %v2154_v8, %v191_v45  ;;  %v386_v7 = vpack.c.bf16 %v286_v49, %v285_v47  ;;  %v297_v8 = vld [vmem:[#allocation2 + $0x10] sm:$0xff] }
  0x36   :  { %v387_v54 = vpack.c.bf16 %v288_v51, %v287_v50 }
  0x37   :  { %v374_v55 = vpack.c.bf16 %v262_v53, %v261_v52 }
  0x38   :  { %1924 = vmatmul.mubr.msk.bf16.gmra.mrb[12].mxu1 %vm419_vm2, %v382_v1 }
  0x39   :  { %1927 = vmatprep.mubr.msk.bf16.mxu1 %vm419_vm2, %v383_v4 }
  0x3a   :  { %1900 = vmatmul.mubr.msk.bf16.gmra.mrb[20].mxu0 %vm419_vm2, %v370_v9 }
  0x3b   :  { %1903 = vmatprep.mubr.msk.bf16.mxu0 %vm419_vm2, %v371_v12 }
  0x40   :  { %1928 = vmatmul.mubr.msk.bf16.gmra.mrb[16].mxu1 %vm419_vm2, %v384_v31 }
  0x41   :  { %1931 = vmatprep.mubr.msk.bf16.mxu1 %vm419_vm2, %v385_v34 }
  0x42   :  { %1904 = vmatmul.mubr.msk.bf16.gmra.mrb[24].mxu0 %vm419_vm2, %v372_v42 }
  0x43   :  { %1907 = vmatprep.mubr.msk.bf16.mxu0 %vm419_vm2, %v373_v46 }
  0x48   :  { %1932 = vmatmul.mubr.msk.bf16.gmra.mrb[20].mxu1 %vm419_vm2, %v386_v7 }
  0x49   :  { %1935 = vmatprep.mubr.msk.bf16.mxu1 %vm419_vm2, %v387_v54 }
  0x4a   :  { %1908 = vmatmul.mubr.msk.bf16.gmra.mrb[28].mxu0 %vm419_vm2, %v374_v55 }
  0x50   :  { %1936 = vmatmul.mubr.msk.bf16.gmra.mrb[24].mxu1 %vm419_vm2, %v388_v38 }
  0x51   :  { %1939 = vmatprep.mubr.msk.bf16.mxu1 %vm419_vm2, %v389_v44 }
  0x58   :  { %1940 = vmatmul.mubr.msk.bf16.gmra.mrb[28].mxu1 %vm419_vm2, %v390_v48  ;;  %v302_v48 = vld [vmem:[#allocation2 + $0x38] sm:$0xff] }
  0xe5   :  { %v1881_v57 = vpop.f32.mrb[0].mxu0 }
  0xe6   :  { %v813_v59 = vadd.f32 %v1881_v57, %v297_v8  ;;  %v556_v60 = vpop.f32.mrb[1].mxu0 }
  0xe7   :  { %v811_v27 = vadd.f32 %v556_v60, %v295_v56  ;;  %v1882_v28 = vpop.f32.mrb[2].mxu0 }
  0xe8   :  { %878 = vst.msk [vmem:[#allocation2 + $0x10] sm:$0xff] %vm24_vm0, %v813_v59  ;;  %v814_v38 = vadd.f32 %v1882_v28, %v298_v58  ;;  %v559_v35 = vpop.f32.mrb[3].mxu0 }
  0xe9   :  { %876 = vst.msk [vmem:[#allocation2] sm:$0xff] %vm24_vm0, %v811_v27  ;;  %v812_v36 = vadd.f32 %v559_v35, %v296_v61 }
  0xea   :  { %879 = vst.msk [vmem:[#allocation2 + $0x18] sm:$0xff] %vm24_vm0, %v814_v38 }
  0xeb   :  { %877 = vst.msk [vmem:[#allocation2 + $0x8] sm:$0xff] %vm24_vm0, %v812_v36 }
  0xec   :  { %v1913_v24 = vpop.f32.mrb[0].mxu1 }
  0xed   :  { %v1885_v44 = vpop.f32.mrb[4].mxu0  ;;  %v845_v31 = vadd.f32 %v1913_v24, %v329_v14  ;;  %v684_v32 = vpop.f32.mrb[1].mxu1 }
  0xee   :  { %v817_v62 = vadd.f32 %v1885_v44, %v301_v39  ;;  %v572_v63 = vpop.f32.mrb[5].mxu0  ;;  %v843_v43 = vadd.f32 %v684_v32, %v327_v18  ;;  %v1914_v45 = vpop.f32.mrb[2].mxu1  ;;  %v306_v39 = vld [vmem:[#allocation2 + $0x58] sm:$0xff] }
  0xef   :  { %v945_v1 = vld [vmem:[#allocation2 + $0x10] sm:$0xff]  ;;  %v815_v2 = vadd.f32 %v572_v63, %v299_v40  ;;  %v1886_v3 = vpop.f32.mrb[6].mxu0  ;;  %910 = vst.msk [vmem:[#allocation2 + $0x110] sm:$0xff] %vm24_vm0, %v845_v31  ;;  %v846_v51 = vadd.f32 %v1914_v45, %v330_v25  ;;  %v687_v52 = vpop.f32.mrb[3].mxu1  ;;  %v304_v63 = vld [vmem:[#allocation2 + $0x48] sm:$0xff]  ;;  %v310_v18 = vld [vmem:[#allocation2 + $0x78] sm:$0xff] }
  0xf0   :  { %v1773_v4 = vpack.c.bf16 %v945_v1, %v945_v1  ;;  %v943_v5 = vld [vmem:[#allocation2] sm:$0xff]  ;;  %882 = vst.msk [vmem:[#allocation2 + $0x30] sm:$0xff] %vm24_vm0, %v817_v62  ;;  %v818_v6 = vadd.f32 %v1886_v3, %v302_v48  ;;  %v575_v9 = vpop.f32.mrb[7].mxu0  ;;  %v1465_v15 = vmul.f32 %v945_v1, %v945_v1  ;;  %v1331_v26 = vsel %vm24_vm0, %v945_v1, 0.0  ;;  %908 = vst.msk [vmem:[#allocation2 + $0x100] sm:$0xff] %vm24_vm0, %v843_v43 }
  0xf1   :  { %v1771_v10 = vpack.c.bf16 %v943_v5, %v943_v5  ;;  %v1463_v11 = vmul.f32 %v943_v5, %v943_v5  ;;  %v946_v12 = vld [vmem:[#allocation2 + $0x18] sm:$0xff]  ;;  %880 = vst.msk [vmem:[#allocation2 + $0x20] sm:$0xff] %vm24_vm0, %v815_v2  ;;  %v816_v13 = vadd.f32 %v575_v9, %v300_v0  ;;  %v1328_v19 = vsel %vm24_vm0, %v943_v5, 0.0  ;;  %911 = vst.msk [vmem:[#allocation2 + $0x118] sm:$0xff] %vm24_vm0, %v846_v51  ;;  %v333_v0 = vld [vmem:[#allocation2 + $0x130] sm:$0xff] }
  0xf2   :  { %1266 = vst.msk [vmem:[%s3340_s4 + $0x8] sm:$0xf] %vm1263_vm3, %v1773_v4  ;;  %v1774_v16 = vpack.c.bf16 %v946_v12, %v946_v12  ;;  %v944_v17 = vld [vmem:[#allocation2 + $0x8] sm:$0xff]  ;;  %v1466_v37 = vmul.f32 %v946_v12, %v946_v12  ;;  %v1530_v53 = vsel %vm24_vm0, %v1465_v15, 0.0  ;;  %v1333_v7 = vsel %vm24_vm0, %v946_v12, 0.0  ;;  %v309_v4 = vld [vmem:[#allocation2 + $0x70] sm:$0xff] }
  0xf3   :  { %883 = vst.msk [vmem:[#allocation2 + $0x38] sm:$0xff] %vm24_vm0, %v818_v6  ;;  %v1772_v20 = vpack.c.bf16 %v944_v17, %v944_v17  ;;  %v1329_v21 = vsel %vm24_vm0, %v944_v17, 0.0  ;;  %v1464_v22 = vmul.f32 %v944_v17, %v944_v17  ;;  %881 = vst.msk [vmem:[#allocation2 + $0x28] sm:$0xff] %vm24_vm0, %v816_v13  ;;  %v1527_v34 = vsel %vm24_vm0, %v1463_v11, 0.0  ;;  %v307_v12 = vld [vmem:[#allocation2 + $0x60] sm:$0xff] }
  0xf4   :  { %1264 = vst.msk [vmem:[%s3340_s4] sm:$0xf] %vm1263_vm3, %v1771_v10  ;;  %1267 = vst.msk [vmem:[%s3340_s4 + $0xc] sm:$0xf] %vm1263_vm3, %v1774_v16  ;;  %v1330_v29 = vadd.f32 %v1329_v21, %v1328_v19  ;;  %v844_v56 = vadd.f32 %v687_v52, %v328_v33  ;;  %v1532_v27 = vsel %vm24_vm0, %v1466_v37, 0.0  ;;  %v308_v37 = vld [vmem:[#allocation2 + $0x68] sm:$0xff] }
  0xf5   :  { %1265 = vst.msk [vmem:[%s3340_s4 + $0x4] sm:$0xf] %vm1263_vm3, %v1772_v20  ;;  %v1528_v41 = vsel %vm24_vm0, %v1464_v22, 0.0  ;;  %v1889_v42 = vpop.f32.mrb[8].mxu0 }
  0xf6   :  { %v1332_v46 = vadd.f32 %v1331_v26, %v1330_v29  ;;  %v1529_v47 = vadd.f32 %v1528_v41, %v1527_v34  ;;  %v821_v49 = vadd.f32 %v1889_v42, %v305_v23  ;;  %v588_v50 = vpop.f32.mrb[9].mxu0  ;;  %909 = vst.msk [vmem:[#allocation2 + $0x108] sm:$0xff] %vm24_vm0, %v844_v56  ;;  %v2597_v19 = vld [vmem:[#allocation2 + $0x110] sm:$0xff] }
  0xf7   :  { %v949_v54 = vld [vmem:[#allocation2 + $0x30] sm:$0xff]  ;;  %v819_v55 = vadd.f32 %v588_v50, %v303_v30  ;;  %v1890_v8 = vpop.f32.mrb[10].mxu0  ;;  %v1805_v26 = vpack.c.bf16 %v2597_v19, %v2597_v19 }
  0xf8   :  { %v1334_v57 = vadd.f32 %v1333_v7, %v1332_v46  ;;  %v1531_v58 = vadd.f32 %v1530_v53, %v1529_v47  ;;  %v1777_v59 = vpack.c.bf16 %v949_v54, %v949_v54  ;;  %v947_v60 = vld [vmem:[#allocation2 + $0x20] sm:$0xff]  ;;  %886 = vst.msk [vmem:[#allocation2 + $0x50] sm:$0xff] %vm24_vm0, %v821_v49  ;;  %v591_v61 = vpop.f32.mrb[11].mxu0  ;;  %v1469_v1 = vmul.f32 %v949_v54, %v949_v54  ;;  %v2624_v7 = vld [vmem:[#allocation2 + $0x118] sm:$0xff] }
  0xf9   :  { %v1775_v28 = vpack.c.bf16 %v947_v60, %v947_v60  ;;  %v1335_v38 = vsel %vm24_vm0, %v947_v60, 0.0  ;;  %v1467_v35 = vmul.f32 %v947_v60, %v947_v60  ;;  %884 = vst.msk [vmem:[#allocation2 + $0x40] sm:$0xff] %vm24_vm0, %v819_v55  ;;  %v822_v11 = vadd.f32 %v1890_v8, %v306_v39  ;;  %v2620_v49 = vld [vmem:[#allocation2 + $0x100] sm:$0xff] }
  0xfa   :  { %v950_v36 = vld [vmem:[#allocation2 + $0x38] sm:$0xff]  ;;  %v1533_v40 = vadd.f32 %v1532_v27, %v1531_v58  ;;  %1270 = vst.msk [vmem:[%s3340_s4 + $0x18] sm:$0xf] %vm1263_vm3, %v1777_v59  ;;  %v1336_v44 = vadd.f32 %v1335_v38, %v1334_v57  ;;  %v948_v62 = vld [vmem:[#allocation2 + $0x28] sm:$0xff]  ;;  %v1339_v14 = vsel %vm24_vm0, %v949_v54, 0.0  ;;  %v820_v16 = vadd.f32 %v591_v61, %v304_v63  ;;  %v313_v58 = vld [vmem:[#allocation2 + $0x90] sm:$0xff] }
  0xfb   :  { %v1778_v48 = vpack.c.bf16 %v950_v36, %v950_v36  ;;  %1268 = vst.msk [vmem:[%s3340_s4 + $0x10] sm:$0xf] %vm1263_vm3, %v1775_v28  ;;  %v1534_v2 = vsel %vm24_vm0, %v1467_v35, 0.0  ;;  %v1776_v3 = vpack.c.bf16 %v948_v62, %v948_v62  ;;  %v1917_v5 = vpop.f32.mrb[4].mxu1  ;;  %v1337_v9 = vsel %vm24_vm0, %v948_v62, 0.0  ;;  %v311_v28 = vld [vmem:[#allocation2 + $0x80] sm:$0xff] }
  0xfc   :  { %v1535_v6 = vadd.f32 %v1534_v2, %v1533_v40  ;;  %v1468_v10 = vmul.f32 %v948_v62, %v948_v62  ;;  %v2590_v13 = vpop.f32.mrb[5].mxu1  ;;  %v1338_v15 = vadd.f32 %v1337_v9, %v1336_v44  ;;  %v849_v20 = vadd.f32 %v1917_v5, %v333_v0  ;;  %887 = vst.msk [vmem:[#allocation2 + $0x58] sm:$0xff] %vm24_vm0, %v822_v11 }
  0xfd   :  { %1271 = vst.msk [vmem:[%s3340_s4 + $0x1c] sm:$0xf] %vm1263_vm3, %v1778_v48  ;;  %1269 = vst.msk [vmem:[%s3340_s4 + $0x14] sm:$0xf] %vm1263_vm3, %v1776_v3  ;;  %v1893_v17 = vpop.f32.mrb[12].mxu0  ;;  %v2599_v21 = vpop.f32.mrb[6].mxu1  ;;  %v1470_v22 = vmul.f32 %v950_v36, %v950_v36  ;;  %v1803_v59 = vpack.c.bf16 %v2620_v49, %v2620_v49  ;;  %v1806_v38 = vpack.c.bf16 %v2624_v7, %v2624_v7 }
  0xfe   :  { %v1536_v23 = vsel %vm24_vm0, %v1468_v10, 0.0  ;;  %v825_v24 = vadd.f32 %v1893_v17, %v309_v4  ;;  %v604_v25 = vpop.f32.mrb[13].mxu0  ;;  %v2605_v29 = vpop.f32.mrb[7].mxu1  ;;  %v1340_v30 = vadd.f32 %v1339_v14, %v1338_v15  ;;  %885 = vst.msk [vmem:[#allocation2 + $0x48] sm:$0xff] %vm24_vm0, %v820_v16  ;;  %914 = vst.msk [vmem:[#allocation2 + $0x130] sm:$0xff] %vm24_vm0, %v849_v20  ;;  %v1538_v41 = vsel %vm24_vm0, %v1469_v1, 0.0 }
  0xff   :  { %v1537_v31 = vadd.f32 %v1536_v23, %v1535_v6  ;;  %v2607_v32 = vld [vmem:[#allocation2 + $0x50] sm:$0xff]  ;;  %v823_v33 = vadd.f32 %v604_v25, %v307_v12  ;;  %v1894_v34 = vpop.f32.mrb[14].mxu0  ;;  %v1341_v42 = vsel %vm24_vm0, %v950_v36, 0.0  ;;  %1298 = vst.msk [vmem:[%s3340_s4 + $0x88] sm:$0xf] %vm1263_vm3, %v1805_v26  ;;  %v1540_v54 = vsel %vm24_vm0, %v1470_v22, 0.0 }
 0x100   :  { %v1781_v43 = vpack.c.bf16 %v2607_v32, %v2607_v32  ;;  %v951_v45 = vld [vmem:[#allocation2 + $0x40] sm:$0xff]  ;;  %890 = vst.msk [vmem:[#allocation2 + $0x70] sm:$0xff] %vm24_vm0, %v825_v24  ;;  %v826_v46 = vadd.f32 %v1894_v34, %v310_v18  ;;  %v607_v47 = vpop.f32.mrb[15].mxu0  ;;  %v1342_v52 = vadd.f32 %v1341_v42, %v1340_v30  ;;  %v2632_v56 = vld [vmem:[#allocation2 + $0x108] sm:$0xff]  ;;  %v1473_v48 = vmul.f32 %v2607_v32, %v2607_v32  ;;  %v314_v17 = vld [vmem:[#allocation2 + $0x98] sm:$0xff] }
 0x101   :  { %v1539_v50 = vadd.f32 %v1538_v41, %v1537_v31  ;;  %v1779_v51 = vpack.c.bf16 %v951_v45, %v951_v45  ;;  %v1343_v53 = vsel %vm24_vm0, %v951_v45, 0.0  ;;  %888 = vst.msk [vmem:[#allocation2 + $0x60] sm:$0xff] %vm24_vm0, %v823_v33  ;;  %v1471_v55 = vmul.f32 %v951_v45, %v951_v45 }
 0x102   :  { %1274 = vst.msk [vmem:[%s3340_s4 + $0x28] sm:$0xf] %vm1263_vm3, %v1781_v43  ;;  %v824_v8 = vadd.f32 %v607_v47, %v308_v37  ;;  %v1344_v61 = vadd.f32 %v1343_v53, %v1342_v52  ;;  %1296 = vst.msk [vmem:[%s3340_s4 + $0x80] sm:$0xf] %vm1263_vm3, %v1803_v59  ;;  %v1804_v40 = vpack.c.bf16 %v2632_v56, %v2632_v56  ;;  %v1347_v20 = vsel %vm24_vm0, %v2607_v32, 0.0  ;;  %v312_v32 = vld [vmem:[#allocation2 + $0x88] sm:$0xff] }
 0x103   :  { %891 = vst.msk [vmem:[#allocation2 + $0x78] sm:$0xff] %vm24_vm0, %v826_v46  ;;  %v1541_v57 = vadd.f32 %v1540_v54, %v1539_v50  ;;  %v2640_v60 = vpop.f32.mrb[8].mxu1  ;;  %v1542_v27 = vsel %vm24_vm0, %v1471_v55, 0.0  ;;  %v954_v36 = vld [vmem:[#allocation2 + $0x58] sm:$0xff]  ;;  %v1546_v33 = vsel %vm24_vm0, %v1473_v48, 0.0  ;;  %v317_v43 = vld [vmem:[#allocation2 + $0xb0] sm:$0xff] }
 0x104   :  { %1272 = vst.msk [vmem:[%s3340_s4 + $0x20] sm:$0xf] %vm1263_vm3, %v1779_v51  ;;  %v2646_v35 = vpop.f32.mrb[9].mxu1  ;;  %v1782_v63 = vpack.c.bf16 %v954_v36, %v954_v36  ;;  %1299 = vst.msk [vmem:[%s3340_s4 + $0x8c] sm:$0xf] %vm1263_vm3, %v1806_v38  ;;  %v1474_v12 = vmul.f32 %v954_v36, %v954_v36  ;;  %v1349_v34 = vsel %vm24_vm0, %v954_v36, 0.0 }
 0x105   :  { %889 = vst.msk [vmem:[#allocation2 + $0x68] sm:$0xff] %vm24_vm0, %v824_v8  ;;  %v1897_v39 = vpop.f32.mrb[16].mxu0  ;;  %v2654_v44 = vpop.f32.mrb[10].mxu1  ;;  %v1543_v62 = vadd.f32 %v1542_v27, %v1541_v57  ;;  %v952_v0 = vld [vmem:[#allocation2 + $0x48] sm:$0xff]  ;;  %v315_v52 = vld [vmem:[#allocation2 + $0xa0] sm:$0xff] }
 0x106   :  { %v829_v1 = vadd.f32 %v1897_v39, %v313_v58  ;;  %v620_v2 = vpop.f32.mrb[17].mxu0  ;;  %v2662_v3 = vpop.f32.mrb[11].mxu1  ;;  %v1780_v4 = vpack.c.bf16 %v952_v0, %v952_v0  ;;  %v1345_v5 = vsel %vm24_vm0, %v952_v0, 0.0  ;;  %v1472_v6 = vmul.f32 %v952_v0, %v952_v0  ;;  %1297 = vst.msk [vmem:[%s3340_s4 + $0x84] sm:$0xf] %vm1263_vm3, %v1804_v40 }
 0x107   :  { %v2665_v9 = vld [vmem:[#allocation2 + $0x70] sm:$0xff]  ;;  %v827_v10 = vadd.f32 %v620_v2, %v311_v28  ;;  %v1898_v11 = vpop.f32.mrb[18].mxu0  ;;  %1275 = vst.msk [vmem:[%s3340_s4 + $0x2c] sm:$0xf] %vm1263_vm3, %v1782_v63  ;;  %v1346_v14 = vadd.f32 %v1345_v5, %v1344_v61  ;;  %v1548_v46 = vsel %vm24_vm0, %v1474_v12, 0.0  ;;  %v318_v63 = vld [vmem:[#allocation2 + $0xb8] sm:$0xff] }
 0x108   :  { %v1785_v15 = vpack.c.bf16 %v2665_v9, %v2665_v9  ;;  %v955_v16 = vld [vmem:[#allocation2 + $0x60] sm:$0xff]  ;;  %894 = vst.msk [vmem:[#allocation2 + $0x90] sm:$0xff] %vm24_vm0, %v829_v1  ;;  %v623_v18 = vpop.f32.mrb[19].mxu0  ;;  %v1544_v22 = vsel %vm24_vm0, %v1472_v6, 0.0  ;;  %v830_v42 = vadd.f32 %v1898_v11, %v314_v17  ;;  %v1477_v39 = vmul.f32 %v2665_v9, %v2665_v9  ;;  %v316_v1 = vld [vmem:[#allocation2 + $0xa8] sm:$0xff]  ;;  %v2728_v12 = vld [vmem:[#allocation2 + $0x130] sm:$0xff] }
 0x109   :  { %1273 = vst.msk [vmem:[%s3340_s4 + $0x24] sm:$0xf] %vm1263_vm3, %v1780_v4  ;;  %v1783_v23 = vpack.c.bf16 %v955_v16, %v955_v16  ;;  %v1348_v25 = vadd.f32 %v1347_v20, %v1346_v14  ;;  %v1545_v26 = vadd.f32 %v1544_v22, %v1543_v62  ;;  %v1475_v30 = vmul.f32 %v955_v16, %v955_v16 }
 0x10a   :  { %v2685_v24 = vld [vmem:[#allocation2 + $0x78] sm:$0xff]  ;;  %892 = vst.msk [vmem:[#allocation2 + $0x80] sm:$0xff] %vm24_vm0, %v827_v10  ;;  %v1351_v37 = vsel %vm24_vm0, %v955_v16, 0.0  ;;  %895 = vst.msk [vmem:[#allocation2 + $0x98] sm:$0xff] %vm24_vm0, %v830_v42  ;;  %v828_v57 = vadd.f32 %v623_v18, %v312_v32  ;;  %v1355_v14 = vsel %vm24_vm0, %v2665_v9, 0.0 }
 0x10b   :  { %1278 = vst.msk [vmem:[%s3340_s4 + $0x38] sm:$0xf] %vm1263_vm3, %v1785_v15  ;;  %v1786_v31 = vpack.c.bf16 %v2685_v24, %v2685_v24  ;;  %1276 = vst.msk [vmem:[%s3340_s4 + $0x30] sm:$0xf] %vm1263_vm3, %v1783_v23  ;;  %v2701_v45 = vpop.f32.mrb[12].mxu1  ;;  %v1547_v47 = vadd.f32 %v1546_v33, %v1545_v26  ;;  %v1350_v50 = vadd.f32 %v1349_v34, %v1348_v25  ;;  %v1550_v54 = vsel %vm24_vm0, %v1475_v30, 0.0 }
 0x10c   :  { %v956_v41 = vld [vmem:[#allocation2 + $0x68] sm:$0xff]  ;;  %v2708_v53 = vpop.f32.mrb[13].mxu1  ;;  %893 = vst.msk [vmem:[#allocation2 + $0x88] sm:$0xff] %vm24_vm0, %v828_v57  ;;  %v1478_v4 = vmul.f32 %v2685_v24, %v2685_v24  ;;  %v331_v23 = vld [vmem:[#allocation2 + $0x120] sm:$0xff]  ;;  %v1554_v25 = vsel %vm24_vm0, %v1477_v39, 0.0  ;;  %v1357_v26 = vsel %vm24_vm0, %v2685_v24, 0.0 }
 0x10d   :  { %1279 = vst.msk [vmem:[%s3340_s4 + $0x3c] sm:$0xf] %vm1263_vm3, %v1786_v31  ;;  %v1784_v51 = vpack.c.bf16 %v956_v41, %v956_v41  ;;  %v1353_v55 = vsel %vm24_vm0, %v956_v41, 0.0  ;;  %v1476_v8 = vmul.f32 %v956_v41, %v956_v41  ;;  %v1901_v58 = vpop.f32.mrb[20].mxu0  ;;  %v2713_v59 = vpop.f32.mrb[14].mxu1  ;;  %v1352_v61 = vadd.f32 %v1351_v37, %v1350_v50  ;;  %v321_v30 = vld [vmem:[#allocation2 + $0xd0] sm:$0xff] }
 0x10e   :  { %v1549_v27 = vadd.f32 %v1548_v46, %v1547_v47  ;;  %v833_v28 = vadd.f32 %v1901_v58, %v317_v43  ;;  %v636_v38 = vpop.f32.mrb[21].mxu0  ;;  %v2719_v36 = vpop.f32.mrb[15].mxu1  ;;  %v1809_v31 = vpack.c.bf16 %v2728_v12, %v2728_v12  ;;  %v1556_v33 = vsel %vm24_vm0, %v1478_v4, 0.0  ;;  %v319_v39 = vld [vmem:[#allocation2 + $0xc0] sm:$0xff]  ;;  %v320_v4 = vld [vmem:[#allocation2 + $0xc8] sm:$0xff] }
 0x10f   :  { %1277 = vst.msk [vmem:[%s3340_s4 + $0x34] sm:$0xf] %vm1263_vm3, %v1784_v51  ;;  %v1552_v40 = vsel %vm24_vm0, %v1476_v8, 0.0  ;;  %v961_v48 = vld [vmem:[#allocation2 + $0x90] sm:$0xff]  ;;  %v831_v62 = vadd.f32 %v636_v38, %v315_v52  ;;  %v1902_v0 = vpop.f32.mrb[22].mxu0  ;;  %v1354_v5 = vadd.f32 %v1353_v55, %v1352_v61  ;;  %v847_v50 = vadd.f32 %v2590_v13, %v331_v23 }
 0x110   :  { %v1551_v2 = vadd.f32 %v1550_v54, %v1549_v27  ;;  %v1789_v6 = vpack.c.bf16 %v961_v48, %v961_v48  ;;  %898 = vst.msk [vmem:[#allocation2 + $0xb0] sm:$0xff] %vm24_vm0, %v833_v28  ;;  %v639_v11 = vpop.f32.mrb[23].mxu0  ;;  %v834_v20 = vadd.f32 %v1902_v0, %v318_v63  ;;  %v1481_v42 = vmul.f32 %v961_v48, %v961_v48 }
 0x111   :  { %v959_v10 = vld [vmem:[#allocation2 + $0x80] sm:$0xff]  ;;  %896 = vst.msk [vmem:[#allocation2 + $0xa0] sm:$0xff] %vm24_vm0, %v831_v62  ;;  %v1356_v17 = vadd.f32 %v1355_v14, %v1354_v5  ;;  %v832_v22 = vadd.f32 %v639_v11, %v316_v1  ;;  %v962_v41 = vld [vmem:[#allocation2 + $0x98] sm:$0xff]  ;;  %v1363_v61 = vsel %vm24_vm0, %v961_v48, 0.0  ;;  %912 = vst.msk [vmem:[#allocation2 + $0x120] sm:$0xff] %vm24_vm0, %v847_v50 }
 0x112   :  { %v1787_v15 = vpack.c.bf16 %v959_v10, %v959_v10  ;;  %v1479_v16 = vmul.f32 %v959_v10, %v959_v10  ;;  %v1553_v18 = vadd.f32 %v1552_v40, %v1551_v2  ;;  %1282 = vst.msk [vmem:[%s3340_s4 + $0x48] sm:$0xf] %vm1263_vm3, %v1789_v6  ;;  %v1359_v9 = vsel %vm24_vm0, %v959_v10, 0.0  ;;  %1302 = vst.msk [vmem:[%s3340_s4 + $0x98] sm:$0xf] %vm1263_vm3, %v1809_v31  ;;  %v322_v40 = vld [vmem:[#allocation2 + $0xd8] sm:$0xff] }
 0x113   :  { %v2747_v32 = vpop.f32.mrb[16].mxu1  ;;  %v1358_v37 = vadd.f32 %v1357_v26, %v1356_v17  ;;  %899 = vst.msk [vmem:[#allocation2 + $0xb8] sm:$0xff] %vm24_vm0, %v834_v20  ;;  %897 = vst.msk [vmem:[#allocation2 + $0xa8] sm:$0xff] %vm24_vm0, %v832_v22  ;;  %v1790_v46 = vpack.c.bf16 %v962_v41, %v962_v41  ;;  %v960_v55 = vld [vmem:[#allocation2 + $0x88] sm:$0xff]  ;;  %v1482_v0 = vmul.f32 %v962_v41, %v962_v41  ;;  %v334_v6 = vld [vmem:[#allocation2 + $0x138] sm:$0xff]  ;;  %v1562_v10 = vsel %vm24_vm0, %v1481_v42, 0.0 }
 0x114   :  { %1280 = vst.msk [vmem:[%s3340_s4 + $0x40] sm:$0xf] %vm1263_vm3, %v1787_v15  ;;  %v1555_v34 = vadd.f32 %v1554_v25, %v1553_v18  ;;  %v2752_v24 = vpop.f32.mrb[17].mxu1  ;;  %v1558_v43 = vsel %vm24_vm0, %v1479_v16, 0.0  ;;  %v1788_v27 = vpack.c.bf16 %v960_v55, %v960_v55  ;;  %v1361_v28 = vsel %vm24_vm0, %v960_v55, 0.0 }
 0x115   :  { %v1905_v47 = vpop.f32.mrb[24].mxu0  ;;  %v2760_v51 = vpop.f32.mrb[18].mxu1  ;;  %v1360_v52 = vadd.f32 %v1359_v9, %v1358_v37  ;;  %1283 = vst.msk [vmem:[%s3340_s4 + $0x4c] sm:$0xf] %vm1263_vm3, %v1790_v46  ;;  %v1480_v13 = vmul.f32 %v960_v55, %v960_v55  ;;  %v1365_v11 = vsel %vm24_vm0, %v962_v41, 0.0  ;;  %v850_v31 = vadd.f32 %v2599_v21, %v334_v6 }
 0x116   :  { %v1557_v54 = vadd.f32 %v1556_v33, %v1555_v34  ;;  %v837_v8 = vadd.f32 %v1905_v47, %v321_v30  ;;  %v652_v57 = vpop.f32.mrb[25].mxu0  ;;  %v2762_v58 = vpop.f32.mrb[19].mxu1  ;;  %1281 = vst.msk [vmem:[%s3340_s4 + $0x44] sm:$0xf] %vm1263_vm3, %v1788_v27  ;;  %v325_v30 = vld [vmem:[#allocation2 + $0xf0] sm:$0xff]  ;;  %v1564_v34 = vsel %vm24_vm0, %v1482_v0, 0.0 }
 0x117   :  { %v2770_v38 = vld [vmem:[#allocation2 + $0xb0] sm:$0xff]  ;;  %v1906_v62 = vpop.f32.mrb[26].mxu0  ;;  %v1362_v1 = vadd.f32 %v1361_v28, %v1360_v52  ;;  %v1560_v14 = vsel %vm24_vm0, %v1480_v13, 0.0  ;;  %v835_v20 = vadd.f32 %v652_v57, %v319_v39  ;;  %915 = vst.msk [vmem:[#allocation2 + $0x138] sm:$0xff] %vm24_vm0, %v850_v31  ;;  %v326_v13 = vld [vmem:[#allocation2 + $0xf8] sm:$0xff]  ;;  %v324_v39 = vld [vmem:[#allocation2 + $0xe8] sm:$0xff] }
 0x118   :  { %v1559_v63 = vadd.f32 %v1558_v43, %v1557_v54  ;;  %v1793_v48 = vpack.c.bf16 %v2770_v38, %v2770_v38  ;;  %v963_v2 = vld [vmem:[#allocation2 + $0xa0] sm:$0xff]  ;;  %902 = vst.msk [vmem:[#allocation2 + $0xd0] sm:$0xff] %vm24_vm0, %v837_v8  ;;  %v655_v5 = vpop.f32.mrb[27].mxu0  ;;  %v838_v26 = vadd.f32 %v1906_v62, %v322_v40  ;;  %v1485_v47 = vmul.f32 %v2770_v38, %v2770_v38 }
 0x119   :  { %v1791_v15 = vpack.c.bf16 %v963_v2, %v963_v2  ;;  %v1364_v16 = vadd.f32 %v1363_v61, %v1362_v1  ;;  %v1483_v18 = vmul.f32 %v963_v2, %v963_v2  ;;  %v1367_v22 = vsel %vm24_vm0, %v963_v2, 0.0  ;;  %900 = vst.msk [vmem:[#allocation2 + $0xc0] sm:$0xff] %vm24_vm0, %v835_v20  ;;  %v323_v43 = vld [vmem:[#allocation2 + $0xe0] sm:$0xff]  ;;  %v332_v2 = vld [vmem:[#allocation2 + $0x128] sm:$0xff] }
 0x11a   :  { %v1561_v17 = vadd.f32 %v1560_v14, %v1559_v63  ;;  %1286 = vst.msk [vmem:[%s3340_s4 + $0x58] sm:$0xf] %vm1263_vm3, %v1793_v48  ;;  %v966_v23 = vld [vmem:[#allocation2 + $0xb8] sm:$0xff]  ;;  %v964_v25 = vld [vmem:[#allocation2 + $0xa8] sm:$0xff]  ;;  %v836_v9 = vadd.f32 %v655_v5, %v320_v4  ;;  %v2812_v40 = vld [vmem:[#allocation2 + $0x120] sm:$0xff] }
 0x11b   :  { %1284 = vst.msk [vmem:[%s3340_s4 + $0x50] sm:$0xf] %vm1263_vm3, %v1791_v15  ;;  %v2793_v33 = vpop.f32.mrb[20].mxu1  ;;  %v1366_v41 = vadd.f32 %v1365_v11, %v1364_v16  ;;  %v1794_v42 = vpack.c.bf16 %v966_v23, %v966_v23  ;;  %v1566_v50 = vsel %vm24_vm0, %v1483_v18, 0.0  ;;  %v1792_v52 = vpack.c.bf16 %v964_v25, %v964_v25  ;;  %v337_v14 = vld [vmem:[#allocation2 + $0x150] sm:$0xff]  ;;  %v335_v15 = vld [vmem:[#allocation2 + $0x140] sm:$0xff] }
 0x11c   :  { %v1563_v37 = vadd.f32 %v1562_v10, %v1561_v17  ;;  %v2797_v46 = vpop.f32.mrb[21].mxu1  ;;  %v1369_v21 = vsel %vm24_vm0, %v964_v25, 0.0  ;;  %903 = vst.msk [vmem:[#allocation2 + $0xd8] sm:$0xff] %vm24_vm0, %v838_v26  ;;  %901 = vst.msk [vmem:[#allocation2 + $0xc8] sm:$0xff] %vm24_vm0, %v836_v9  ;;  %v1484_v61 = vmul.f32 %v964_v25, %v964_v25  ;;  %v1807_v48 = vpack.c.bf16 %v2812_v40, %v2812_v40  ;;  %v338_v16 = vld [vmem:[#allocation2 + $0x158] sm:$0xff] }
 0x11d   :  { %v1909_v54 = vpop.f32.mrb[28].mxu0  ;;  %v2806_v55 = vpop.f32.mrb[22].mxu1  ;;  %v1368_v8 = vadd.f32 %v1367_v22, %v1366_v41  ;;  %1287 = vst.msk [vmem:[%s3340_s4 + $0x5c] sm:$0xf] %vm1263_vm3, %v1794_v42  ;;  %1285 = vst.msk [vmem:[%s3340_s4 + $0x54] sm:$0xf] %vm1263_vm3, %v1792_v52  ;;  %v1486_v18 = vmul.f32 %v966_v23, %v966_v23  ;;  %v854_v41 = vadd.f32 %v2654_v44, %v338_v16 }
 0x11e   :  { %v1565_v57 = vadd.f32 %v1564_v34, %v1563_v37  ;;  %v841_v27 = vadd.f32 %v1909_v54, %v325_v30  ;;  %v668_v28 = vpop.f32.mrb[29].mxu0  ;;  %v2814_v62 = vpop.f32.mrb[23].mxu1  ;;  %v1568_v6 = vsel %vm24_vm0, %v1484_v61, 0.0  ;;  %v1371_v17 = vsel %vm24_vm0, %v2770_v38, 0.0  ;;  %1300 = vst.msk [vmem:[%s3340_s4 + $0x90] sm:$0xf] %vm1263_vm3, %v1807_v48 }
 0x11f   :  { %v2820_v63 = vld [vmem:[#allocation2 + $0xd0] sm:$0xff]  ;;  %v839_v0 = vadd.f32 %v668_v28, %v323_v43  ;;  %v1910_v1 = vpop.f32.mrb[30].mxu0  ;;  %v1370_v5 = vadd.f32 %v1369_v21, %v1368_v8  ;;  %v1570_v25 = vsel %vm24_vm0, %v1485_v47, 0.0  ;;  %v848_v38 = vadd.f32 %v2605_v29, %v332_v2  ;;  %919 = vst.msk [vmem:[#allocation2 + $0x158] sm:$0xff] %vm24_vm0, %v854_v41  ;;  %v2877_v2 = vld [vmem:[#allocation2 + $0x138] sm:$0xff] }
 0x120   :  { %v1567_v4 = vadd.f32 %v1566_v50, %v1565_v57  ;;  %v1797_v10 = vpack.c.bf16 %v2820_v63, %v2820_v63  ;;  %906 = vst.msk [vmem:[#allocation2 + $0xf0] sm:$0xff] %vm24_vm0, %v841_v27  ;;  %v671_v11 = vpop.f32.mrb[31].mxu0  ;;  %v842_v20 = vadd.f32 %v1910_v1, %v326_v13  ;;  %v1373_v30 = vsel %vm24_vm0, %v966_v23, 0.0  ;;  %v967_v31 = vld [vmem:[#allocation2 + $0xc0] sm:$0xff] }
 0x121   :  { %904 = vst.msk [vmem:[#allocation2 + $0xe0] sm:$0xff] %vm24_vm0, %v839_v0  ;;  %v840_v22 = vadd.f32 %v671_v11, %v324_v39  ;;  %v1372_v26 = vadd.f32 %v1371_v17, %v1370_v5  ;;  %v853_v34 = vadd.f32 %v2640_v60, %v337_v14  ;;  %v851_v37 = vadd.f32 %v2646_v35, %v335_v15 }
 0x122   :  { %v1569_v9 = vadd.f32 %v1568_v6, %v1567_v4  ;;  %1290 = vst.msk [vmem:[%s3340_s4 + $0x68] sm:$0xf] %vm1263_vm3, %v1797_v10  ;;  %v1795_v47 = vpack.c.bf16 %v967_v31, %v967_v31  ;;  %v1375_v29 = vsel %vm24_vm0, %v967_v31, 0.0  ;;  %v1572_v54 = vsel %vm24_vm0, %v1486_v18, 0.0 }
 0x123   :  { %907 = vst.msk [vmem:[#allocation2 + $0xf8] sm:$0xff] %vm24_vm0, %v842_v20  ;;  %905 = vst.msk [vmem:[#allocation2 + $0xe8] sm:$0xff] %vm24_vm0, %v840_v22  ;;  %v2847_v42 = vpop.f32.mrb[24].mxu1  ;;  %v1374_v50 = vadd.f32 %v1373_v30, %v1372_v26  ;;  %v970_v52 = vld [vmem:[#allocation2 + $0xd8] sm:$0xff]  ;;  %v968_v23 = vld [vmem:[#allocation2 + $0xc8] sm:$0xff]  ;;  %v1487_v60 = vmul.f32 %v967_v31, %v967_v31  ;;  %v1489_v13 = vmul.f32 %v2820_v63, %v2820_v63  ;;  %v2875_v48 = vsel %vm24_vm0, %v2597_v19, 0.0 }
 0x124   :  { %v1571_v43 = vadd.f32 %v1570_v25, %v1569_v9  ;;  %913 = vst.msk [vmem:[#allocation2 + $0x128] sm:$0xff] %vm24_vm0, %v848_v38  ;;  %v2851_v21 = vpop.f32.mrb[25].mxu1  ;;  %v1798_v8 = vpack.c.bf16 %v970_v52, %v970_v52  ;;  %918 = vst.msk [vmem:[#allocation2 + $0x150] sm:$0xff] %vm24_vm0, %v853_v34  ;;  %v1796_v61 = vpack.c.bf16 %v968_v23, %v968_v23  ;;  %v1377_v27 = vsel %vm24_vm0, %v968_v23, 0.0 }
 0x125   :  { %916 = vst.msk [vmem:[#allocation2 + $0x140] sm:$0xff] %vm24_vm0, %v851_v37  ;;  %v2857_v35 = vpop.f32.mrb[26].mxu1  ;;  %v1376_v44 = vadd.f32 %v1375_v29, %v1374_v50  ;;  %v1574_v39 = vsel %vm24_vm0, %v1487_v60, 0.0  ;;  %v1488_v0 = vmul.f32 %v968_v23, %v968_v23  ;;  %v1497_v11 = vmul.f32 %v2597_v19, %v2597_v19 }
 0x126   :  { %1288 = vst.msk [vmem:[%s3340_s4 + $0x60] sm:$0xf] %vm1263_vm3, %v1795_v47  ;;  %v1573_v57 = vadd.f32 %v1572_v54, %v1571_v43  ;;  %v2864_v28 = vpop.f32.mrb[27].mxu1  ;;  %1291 = vst.msk [vmem:[%s3340_s4 + $0x6c] sm:$0xf] %vm1263_vm3, %v1798_v8  ;;  %v1379_v14 = vsel %vm24_vm0, %v2820_v63, 0.0  ;;  %v1490_v15 = vmul.f32 %v970_v52, %v970_v52  ;;  %v1810_v19 = vpack.c.bf16 %v2877_v2, %v2877_v2 }
 0x127   :  { %v973_v1 = vld [vmem:[#allocation2 + $0xf0] sm:$0xff]  ;;  %1289 = vst.msk [vmem:[%s3340_s4 + $0x64] sm:$0xf] %vm1263_vm3, %v1796_v61  ;;  %v1378_v5 = vadd.f32 %v1377_v27, %v1376_v44  ;;  %v1576_v16 = vsel %vm24_vm0, %v1488_v0, 0.0  ;;  %v1578_v9 = vsel %vm24_vm0, %v1489_v13, 0.0  ;;  %v1381_v63 = vsel %vm24_vm0, %v970_v52, 0.0 }
 0x128   :  { %v1575_v4 = vadd.f32 %v1574_v39, %v1573_v57  ;;  %v1801_v6 = vpack.c.bf16 %v973_v1, %v973_v1  ;;  %v971_v10 = vld [vmem:[#allocation2 + $0xe0] sm:$0xff]  ;;  %v2906_v47 = vsel %vm24_vm0, %v1497_v11, 0.0  ;;  %1303 = vst.msk [vmem:[%s3340_s4 + $0x9c] sm:$0xf] %vm1263_vm3, %v1810_v19  ;;  %v1580_v52 = vsel %vm24_vm0, %v1490_v15, 0.0 }
 0x129   :  { %v1799_v17 = vpack.c.bf16 %v971_v10, %v971_v10  ;;  %v1380_v18 = vadd.f32 %v1379_v14, %v1378_v5  ;;  %v1491_v22 = vmul.f32 %v971_v10, %v971_v10  ;;  %v1383_v38 = vsel %vm24_vm0, %v971_v10, 0.0  ;;  %v2942_v10 = vld [vmem:[#allocation2 + $0x158] sm:$0xff] }
 0x12a   :  { %v1577_v20 = vadd.f32 %v1576_v16, %v1575_v4  ;;  %1294 = vst.msk [vmem:[%s3340_s4 + $0x78] sm:$0xf] %vm1263_vm3, %v1801_v6  ;;  %v974_v25 = vld [vmem:[#allocation2 + $0xf8] sm:$0xff]  ;;  %v972_v26 = vld [vmem:[#allocation2 + $0xe8] sm:$0xff]  ;;  %v1495_v61 = vmul.f32 %v2620_v49, %v2620_v49  ;;  %v1493_v0 = vmul.f32 %v973_v1, %v973_v1  ;;  %v1496_v5 = vmul.f32 %v2632_v56, %v2632_v56 }
 0x12b   :  { %1292 = vst.msk [vmem:[%s3340_s4 + $0x70] sm:$0xf] %vm1263_vm3, %v1799_v17  ;;  %v1802_v30 = vpack.c.bf16 %v974_v25, %v974_v25  ;;  %v2901_v31 = vld [vmem:[#allocation2 + $0x128] sm:$0xff]  ;;  %v2903_v34 = vpop.f32.mrb[28].mxu1  ;;  %v1382_v41 = vadd.f32 %v1381_v63, %v1380_v18  ;;  %v1800_v43 = vpack.c.bf16 %v972_v26, %v972_v26  ;;  %v2912_v50 = vld [vmem:[#allocation2 + $0x150] sm:$0xff]  ;;  %v1582_v23 = vsel %vm24_vm0, %v1491_v22, 0.0 }
 0x12c   :  { %v1579_v37 = vadd.f32 %v1578_v9, %v1577_v20  ;;  %v2914_v29 = vpop.f32.mrb[29].mxu1  ;;  %v1385_v54 = vsel %vm24_vm0, %v972_v26, 0.0  ;;  %v1492_v60 = vmul.f32 %v972_v26, %v972_v26  ;;  %v1808_v27 = vpack.c.bf16 %v2901_v31, %v2901_v31  ;;  %v2933_v13 = vld [vmem:[#allocation2 + $0x140] sm:$0xff]  ;;  %v336_v17 = vld [vmem:[#allocation2 + $0x148] sm:$0xff]  ;;  %v341_v26 = vld [vmem:[#allocation2 + $0x170] sm:$0xff] }
 0x12d   :  { %1295 = vst.msk [vmem:[%s3340_s4 + $0x7c] sm:$0xf] %vm1263_vm3, %v1802_v30  ;;  %v2923_v8 = vpop.f32.mrb[30].mxu1  ;;  %v1384_v44 = vadd.f32 %v1383_v38, %v1382_v41  ;;  %1293 = vst.msk [vmem:[%s3340_s4 + $0x74] sm:$0xf] %vm1263_vm3, %v1800_v43  ;;  %v1813_v6 = vpack.c.bf16 %v2912_v50, %v2912_v50  ;;  %v1391_v15 = vsel %vm24_vm0, %v2620_v49, 0.0  ;;  %v2948_v16 = vmul.f32 %v2624_v7, %v2624_v7 }
 0x12e   :  { %v1581_v57 = vadd.f32 %v1580_v52, %v1579_v37  ;;  %v2935_v39 = vpop.f32.mrb[31].mxu1  ;;  %v1584_v4 = vsel %vm24_vm0, %v1492_v60, 0.0  ;;  %1301 = vst.msk [vmem:[%s3340_s4 + $0x94] sm:$0xf] %vm1263_vm3, %v1808_v27  ;;  %v1387_v18 = vsel %vm24_vm0, %v973_v1, 0.0  ;;  %v1494_v20 = vmul.f32 %v974_v25, %v974_v25  ;;  %v339_v38 = vld [vmem:[#allocation2 + $0x160] sm:$0xff] }
 0x12f   :  { %v1386_v14 = vadd.f32 %v1385_v54, %v1384_v44  ;;  %v1393_v22 = vsel %vm24_vm0, %v2632_v56, 0.0  ;;  %1306 = vst.msk [vmem:[%s3340_s4 + $0xa8] sm:$0xf] %vm1263_vm3, %v1813_v6  ;;  %v1811_v49 = vpack.c.bf16 %v2933_v13, %v2933_v13  ;;  %v1590_v63 = vsel %vm24_vm0, %v1495_v61, 0.0  ;;  %v342_v30 = vld [vmem:[#allocation2 + $0x178] sm:$0xff]  ;;  %v340_v37 = vld [vmem:[#allocation2 + $0x168] sm:$0xff] }
 0x130   :  { %v1583_v11 = vadd.f32 %v1582_v23, %v1581_v57  ;;  %v1814_v1 = vpack.c.bf16 %v2942_v10, %v2942_v10  ;;  %v1586_v56 = vsel %vm24_vm0, %v1493_v0, 0.0  ;;  %v1389_v41 = vsel %vm24_vm0, %v974_v25, 0.0  ;;  %v345_v23 = vld [vmem:[#allocation2 + $0x190] sm:$0xff]  ;;  %v343_v54 = vld [vmem:[#allocation2 + $0x180] sm:$0xff]  ;;  %v346_v60 = vld [vmem:[#allocation2 + $0x198] sm:$0xff] }
 0x131   :  { %v1388_v19 = vadd.f32 %v1387_v18, %v1386_v14  ;;  %v1592_v43 = vsel %vm24_vm0, %v1496_v5, 0.0  ;;  %1304 = vst.msk [vmem:[%s3340_s4 + $0xa0] sm:$0xf] %vm1263_vm3, %v1811_v49  ;;  %v852_v52 = vadd.f32 %v2662_v3, %v336_v17  ;;  %v2976_v61 = vmul.f32 %v2812_v40, %v2812_v40  ;;  %v344_v27 = vld [vmem:[#allocation2 + $0x188] sm:$0xff]  ;;  %v349_v0 = vld [vmem:[#allocation2 + $0x1b0] sm:$0xff]  ;;  %v350_v14 = vld [vmem:[#allocation2 + $0x1b8] sm:$0xff] }
 0x132   :  { %v1585_v9 = vadd.f32 %v1584_v4, %v1583_v11  ;;  %1307 = vst.msk [vmem:[%s3340_s4 + $0xac] sm:$0xf] %vm1263_vm3, %v1814_v1  ;;  %v857_v25 = vadd.f32 %v2701_v45, %v341_v26  ;;  %v347_v4 = vld [vmem:[#allocation2 + $0x1a0] sm:$0xff]  ;;  %v1588_v3 = vsel %vm24_vm0, %v1494_v20, 0.0  ;;  %v855_v5 = vadd.f32 %v2708_v53, %v339_v38  ;;  %v348_v17 = vld [vmem:[#allocation2 + $0x1a8] sm:$0xff]  ;;  %v353_v18 = vld [vmem:[#allocation2 + $0x1d0] sm:$0xff] }
 0x133   :  { %v1390_v57 = vadd.f32 %v1389_v41, %v1388_v19  ;;  %917 = vst.msk [vmem:[#allocation2 + $0x148] sm:$0xff] %vm24_vm0, %v852_v52  ;;  %v858_v6 = vadd.f32 %v2713_v59, %v342_v30  ;;  %v856_v11 = vadd.f32 %v2719_v36, %v340_v37  ;;  %v861_v45 = vadd.f32 %v2747_v32, %v345_v23  ;;  %v351_v20 = vld [vmem:[#allocation2 + $0x1c0] sm:$0xff]  ;;  %v352_v1 = vld [vmem:[#allocation2 + $0x1c8] sm:$0xff]  ;;  %v357_v32 = vld [vmem:[#allocation2 + $0x1f0] sm:$0xff] }
 0x134   :  { %v1587_v44 = vadd.f32 %v1586_v56, %v1585_v9  ;;  %922 = vst.msk [vmem:[#allocation2 + $0x170] sm:$0xff] %vm24_vm0, %v857_v25  ;;  %v859_v26 = vadd.f32 %v2752_v24, %v343_v54  ;;  %v354_v9 = vld [vmem:[#allocation2 + $0x1d8] sm:$0xff]  ;;  %920 = vst.msk [vmem:[#allocation2 + $0x160] sm:$0xff] %vm24_vm0, %v855_v5  ;;  %v862_v53 = vadd.f32 %v2760_v51, %v346_v60  ;;  %v355_v38 = vld [vmem:[#allocation2 + $0x1e0] sm:$0xff] }
 0x135   :  { %v1392_v49 = vadd.f32 %v1391_v15, %v1390_v57  ;;  %923 = vst.msk [vmem:[#allocation2 + $0x178] sm:$0xff] %vm24_vm0, %v858_v6  ;;  %921 = vst.msk [vmem:[#allocation2 + $0x168] sm:$0xff] %vm24_vm0, %v856_v11  ;;  %v860_v59 = vadd.f32 %v2762_v58, %v344_v27  ;;  %v865_v36 = vadd.f32 %v2793_v33, %v349_v0  ;;  %v358_v41 = vld [vmem:[#allocation2 + $0x1f8] sm:$0xff]  ;;  %v356_v51 = vld [vmem:[#allocation2 + $0x1e8] sm:$0xff]  ;;  %v1403_v27 = vsel %vm24_vm0, %v2728_v12, 0.0 }
 0x136   :  { %v1589_v19 = vadd.f32 %v1588_v3, %v1587_v44  ;;  %v863_v15 = vadd.f32 %v2797_v46, %v347_v4  ;;  %926 = vst.msk [vmem:[#allocation2 + $0x190] sm:$0xff] %vm24_vm0, %v861_v45  ;;  %924 = vst.msk [vmem:[#allocation2 + $0x180] sm:$0xff] %vm24_vm0, %v859_v26  ;;  %v866_v37 = vadd.f32 %v2806_v55, %v350_v14  ;;  %v1405_v45 = vsel %vm24_vm0, %v2877_v2, 0.0 }
 0x137   :  { %v1394_v30 = vadd.f32 %v1393_v22, %v1392_v49  ;;  %v864_v56 = vadd.f32 %v2814_v62, %v348_v17  ;;  %927 = vst.msk [vmem:[#allocation2 + $0x198] sm:$0xff] %vm24_vm0, %v862_v53  ;;  %925 = vst.msk [vmem:[#allocation2 + $0x188] sm:$0xff] %vm24_vm0, %v860_v59  ;;  %v869_v58 = vadd.f32 %v2847_v42, %v353_v18  ;;  %v1397_v42 = vsel %vm24_vm0, %v2624_v7, 0.0 }
 0x138   :  { %v1591_v24 = vadd.f32 %v1590_v63, %v1589_v19  ;;  %930 = vst.msk [vmem:[#allocation2 + $0x1b0] sm:$0xff] %vm24_vm0, %v865_v36  ;;  %928 = vst.msk [vmem:[#allocation2 + $0x1a0] sm:$0xff] %vm24_vm0, %v863_v15  ;;  %v867_v33 = vadd.f32 %v2851_v21, %v351_v20  ;;  %v870_v46 = vadd.f32 %v2857_v35, %v354_v9  ;;  %v1399_v21 = vsel %vm24_vm0, %v2812_v40, 0.0 }
 0x139   :  { %v868_v55 = vadd.f32 %v2864_v28, %v352_v1  ;;  %v1396_v62 = vadd.f32 %v2875_v48, %v1394_v30  ;;  %931 = vst.msk [vmem:[#allocation2 + $0x1b8] sm:$0xff] %vm24_vm0, %v866_v37  ;;  %929 = vst.msk [vmem:[#allocation2 + $0x1a8] sm:$0xff] %vm24_vm0, %v864_v56  ;;  %v873_v63 = vadd.f32 %v2903_v34, %v357_v32  ;;  %v1596_v7 = vsel %vm24_vm0, %v2948_v16, 0.0 }
 0x13a   :  { %v1593_v22 = vadd.f32 %v1592_v43, %v1591_v24  ;;  %v871_v52 = vadd.f32 %v2914_v29, %v355_v38  ;;  %934 = vst.msk [vmem:[#allocation2 + $0x1d0] sm:$0xff] %vm24_vm0, %v869_v58  ;;  %932 = vst.msk [vmem:[#allocation2 + $0x1c0] sm:$0xff] %vm24_vm0, %v867_v33  ;;  %v874_v35 = vadd.f32 %v2923_v8, %v358_v41  ;;  %v984_v29 = vld [vmem:[#allocation2 + $0x148] sm:$0xff]  ;;  %v1598_v40 = vsel %vm24_vm0, %v2976_v61, 0.0 }
 0x13b   :  { %935 = vst.msk [vmem:[#allocation2 + $0x1d8] sm:$0xff] %vm24_vm0, %v870_v46  ;;  %933 = vst.msk [vmem:[#allocation2 + $0x1c8] sm:$0xff] %vm24_vm0, %v868_v55  ;;  %v872_v28 = vadd.f32 %v2935_v39, %v356_v51  ;;  %v1398_v34 = vadd.f32 %v1397_v42, %v1396_v62  ;;  %v1500_v43 = vmul.f32 %v2901_v31, %v2901_v31  ;;  %v3034_v23 = vld [vmem:[#allocation2 + $0x170] sm:$0xff]  ;;  %v3040_v60 = vld [vmem:[#allocation2 + $0x160] sm:$0xff]  ;;  %v1401_v61 = vsel %vm24_vm0, %v2901_v31, 0.0 }
 0x13c   :  { %v1595_v48 = vadd.f32 %v2906_v47, %v1593_v22  ;;  %938 = vst.msk [vmem:[#allocation2 + $0x1f0] sm:$0xff] %vm24_vm0, %v873_v63  ;;  %936 = vst.msk [vmem:[#allocation2 + $0x1e0] sm:$0xff] %vm24_vm0, %v871_v52  ;;  %v1812_v8 = vpack.c.bf16 %v984_v29, %v984_v29  ;;  %v1817_v54 = vpack.c.bf16 %v3034_v23, %v3034_v23  ;;  %v3042_v16 = vld [vmem:[#allocation2 + $0x178] sm:$0xff]  ;;  %v3044_v44 = vld [vmem:[#allocation2 + $0x168] sm:$0xff]  ;;  %v1407_v26 = vsel %vm24_vm0, %v2933_v13, 0.0 }
 0x13d   :  { %939 = vst.msk [vmem:[#allocation2 + $0x1f8] sm:$0xff] %vm24_vm0, %v874_v35  ;;  %937 = vst.msk [vmem:[#allocation2 + $0x1e8] sm:$0xff] %vm24_vm0, %v872_v28  ;;  %v1400_v47 = vadd.f32 %v1399_v21, %v1398_v34  ;;  %v1501_v57 = vmul.f32 %v2728_v12, %v2728_v12  ;;  %v1815_v25 = vpack.c.bf16 %v3040_v60, %v3040_v60  ;;  %v3064_v3 = vld [vmem:[#allocation2 + $0x190] sm:$0xff]  ;;  %v1600_v6 = vsel %vm24_vm0, %v1500_v43, 0.0  ;;  %v3077_v14 = vld [vmem:[#allocation2 + $0x180] sm:$0xff] }
 0x13e   :  { %v1597_v39 = vadd.f32 %v1596_v7, %v1595_v48  ;;  %1305 = vst.msk [vmem:[%s3340_s4 + $0xa4] sm:$0xf] %vm1263_vm3, %v1812_v8  ;;  %1310 = vst.msk [vmem:[%s3340_s4 + $0xb8] sm:$0xf] %vm1263_vm3, %v1817_v54  ;;  %v1818_v31 = vpack.c.bf16 %v3042_v16, %v3042_v16  ;;  %v1502_v5 = vmul.f32 %v2877_v2, %v2877_v2  ;;  %v3083_v49 = vld [vmem:[#allocation2 + $0x198] sm:$0xff]  ;;  %v3098_v59 = vld [vmem:[#allocation2 + $0x188] sm:$0xff] }
 0x13f   :  { %v1402_v4 = vadd.f32 %v1401_v61, %v1400_v47  ;;  %v1503_v12 = vmul.f32 %v2933_v13, %v2933_v13  ;;  %1308 = vst.msk [vmem:[%s3340_s4 + $0xb0] sm:$0xf] %vm1263_vm3, %v1815_v25  ;;  %v1816_v11 = vpack.c.bf16 %v3044_v44, %v3044_v44  ;;  %v1602_v19 = vsel %vm24_vm0, %v1501_v57, 0.0  ;;  %v3108_v32 = vld [vmem:[#allocation2 + $0x1b0] sm:$0xff]  ;;  %v3114_v30 = vld [vmem:[#allocation2 + $0x1a0] sm:$0xff] }
 0x140   :  { %v1599_v0 = vadd.f32 %v1598_v40, %v1597_v39  ;;  %1311 = vst.msk [vmem:[%s3340_s4 + $0xbc] sm:$0xf] %vm1263_vm3, %v1818_v31  ;;  %v1821_v20 = vpack.c.bf16 %v3064_v3, %v3064_v3  ;;  %v1819_v53 = vpack.c.bf16 %v3077_v14, %v3077_v14  ;;  %v1604_v2 = vsel %vm24_vm0, %v1502_v5, 0.0  ;;  %v3129_v55 = vld [vmem:[#allocation2 + $0x1b8] sm:$0xff]  ;;  %v3142_v52 = vld [vmem:[#allocation2 + $0x1a8] sm:$0xff] }
 0x141   :  { %v1404_v17 = vadd.f32 %v1403_v27, %v1402_v4  ;;  %1309 = vst.msk [vmem:[%s3340_s4 + $0xb4] sm:$0xf] %vm1263_vm3, %v1816_v11  ;;  %v1606_v36 = vsel %vm24_vm0, %v1503_v12, 0.0  ;;  %v1504_v13 = vmul.f32 %v984_v29, %v984_v29  ;;  %v1822_v15 = vpack.c.bf16 %v3083_v49, %v3083_v49  ;;  %v3148_v35 = vld [vmem:[#allocation2 + $0x1d0] sm:$0xff]  ;;  %v3163_v8 = vld [vmem:[#allocation2 + $0x1c0] sm:$0xff] }
 0x142   :  { %v1601_v18 = vadd.f32 %v1600_v6, %v1599_v0  ;;  %1314 = vst.msk [vmem:[%s3340_s4 + $0xc8] sm:$0xf] %vm1263_vm3, %v1821_v20  ;;  %1312 = vst.msk [vmem:[%s3340_s4 + $0xc0] sm:$0xf] %vm1263_vm3, %v1819_v53  ;;  %v1505_v37 = vmul.f32 %v2912_v50, %v2912_v50  ;;  %v1409_v56 = vsel %vm24_vm0, %v984_v29, 0.0  ;;  %v1820_v41 = vpack.c.bf16 %v3098_v59, %v3098_v59  ;;  %v3181_v25 = vld [vmem:[#allocation2 + $0x1c8] sm:$0xff] }
 0x143   :  { %v1406_v1 = vadd.f32 %v1405_v45, %v1404_v17  ;;  %1315 = vst.msk [vmem:[%s3340_s4 + $0xcc] sm:$0xf] %vm1263_vm3, %v1822_v15  ;;  %v1411_v51 = vsel %vm24_vm0, %v2912_v50, 0.0  ;;  %v1825_v46 = vpack.c.bf16 %v3108_v32, %v3108_v32  ;;  %v1506_v62 = vmul.f32 %v2942_v10, %v2942_v10  ;;  %v3197_v11 = vld [vmem:[#allocation2 + $0x1f0] sm:$0xff] }
 0x144   :  { %v1603_v9 = vadd.f32 %v1602_v19, %v1601_v18  ;;  %v1608_v22 = vsel %vm24_vm0, %v1504_v13, 0.0  ;;  %v1507_v63 = vmul.f32 %v3040_v60, %v3040_v60  ;;  %1313 = vst.msk [vmem:[%s3340_s4 + $0xc4] sm:$0xf] %vm1263_vm3, %v1820_v41  ;;  %v1823_v50 = vpack.c.bf16 %v3114_v30, %v3114_v30  ;;  %v3210_v19 = vld [vmem:[#allocation2 + $0x1e0] sm:$0xff]  ;;  %v3216_v20 = vld [vmem:[#allocation2 + $0x1f8] sm:$0xff] }
 0x145   :  { %v1408_v38 = vadd.f32 %v1407_v26, %v1406_v1  ;;  %1318 = vst.msk [vmem:[%s3340_s4 + $0xd8] sm:$0xf] %vm1263_vm3, %v1825_v46  ;;  %v1610_v28 = vsel %vm24_vm0, %v1505_v37, 0.0  ;;  %v1413_v48 = vsel %vm24_vm0, %v2942_v10, 0.0  ;;  %v1415_v34 = vsel %vm24_vm0, %v3040_v60, 0.0  ;;  %v3175_v60 = vld [vmem:[#allocation2 + $0x1d8] sm:$0xff] }
 0x146   :  { %v1605_v24 = vadd.f32 %v1604_v2, %v1603_v9  ;;  %1316 = vst.msk [vmem:[%s3340_s4 + $0xd0] sm:$0xf] %vm1263_vm3, %v1823_v50  ;;  %v1826_v29 = vpack.c.bf16 %v3129_v55, %v3129_v55  ;;  %v1824_v43 = vpack.c.bf16 %v3142_v52, %v3142_v52  ;;  %v1612_v10 = vsel %vm24_vm0, %v1506_v62, 0.0 }
 0x147   :  { %v1410_v33 = vadd.f32 %v1409_v56, %v1408_v38  ;;  %v1614_v47 = vsel %vm24_vm0, %v1507_v63, 0.0  ;;  %v1508_v39 = vmul.f32 %v3044_v44, %v3044_v44  ;;  %v1829_v54 = vpack.c.bf16 %v3148_v35, %v3148_v35  ;;  %v3231_v38 = vld [vmem:[#allocation2 + $0x1e8] sm:$0xff] }
 0x148   :  { %v1607_v58 = vadd.f32 %v1606_v36, %v1605_v24  ;;  %1319 = vst.msk [vmem:[%s3340_s4 + $0xdc] sm:$0xf] %vm1263_vm3, %v1826_v29  ;;  %1317 = vst.msk [vmem:[%s3340_s4 + $0xd4] sm:$0xf] %vm1263_vm3, %v1824_v43  ;;  %v1509_v27 = vmul.f32 %v3034_v23, %v3034_v23  ;;  %v1417_v0 = vsel %vm24_vm0, %v3044_v44, 0.0  ;;  %v1827_v4 = vpack.c.bf16 %v3163_v8, %v3163_v8 }
 0x149   :  { %v1412_v42 = vadd.f32 %v1411_v51, %v1410_v33  ;;  %1322 = vst.msk [vmem:[%s3340_s4 + $0xe8] sm:$0xf] %vm1263_vm3, %v1829_v54  ;;  %v1419_v31 = vsel %vm24_vm0, %v3034_v23, 0.0  ;;  %v1830_v12 = vpack.c.bf16 %v3175_v60, %v3175_v60  ;;  %v1510_v44 = vmul.f32 %v3042_v16, %v3042_v16 }
 0x14a   :  { %v1609_v21 = vadd.f32 %v1608_v22, %v1607_v58  ;;  %v1616_v17 = vsel %vm24_vm0, %v1508_v39, 0.0  ;;  %v1511_v18 = vmul.f32 %v3077_v14, %v3077_v14  ;;  %1320 = vst.msk [vmem:[%s3340_s4 + $0xe0] sm:$0xf] %vm1263_vm3, %v1827_v4  ;;  %v1828_v23 = vpack.c.bf16 %v3181_v25, %v3181_v25 }
 0x14b   :  { %v1414_v40 = vadd.f32 %v1413_v48, %v1412_v42  ;;  %1323 = vst.msk [vmem:[%s3340_s4 + $0xec] sm:$0xf] %vm1263_vm3, %v1830_v12  ;;  %v1618_v9 = vsel %vm24_vm0, %v1509_v27, 0.0  ;;  %v1421_v1 = vsel %vm24_vm0, %v3042_v16, 0.0  ;;  %v1423_v53 = vsel %vm24_vm0, %v3077_v14, 0.0 }
 0x14c   :  { %v1611_v7 = vadd.f32 %v1610_v28, %v1609_v21  ;;  %1321 = vst.msk [vmem:[%s3340_s4 + $0xe4] sm:$0xf] %vm1263_vm3, %v1828_v23  ;;  %v1833_v2 = vpack.c.bf16 %v3197_v11, %v3197_v11  ;;  %v1831_v15 = vpack.c.bf16 %v3210_v19, %v3210_v19  ;;  %v1620_v16 = vsel %vm24_vm0, %v1510_v44, 0.0 }
 0x14d   :  { %v1416_v57 = vadd.f32 %v1415_v34, %v1414_v40  ;;  %v1622_v24 = vsel %vm24_vm0, %v1511_v18, 0.0  ;;  %v1512_v14 = vmul.f32 %v3098_v59, %v3098_v59  ;;  %v1834_v37 = vpack.c.bf16 %v3216_v20, %v3216_v20 }
 0x14e   :  { %v1613_v61 = vadd.f32 %v1612_v10, %v1611_v7  ;;  %1326 = vst.msk [vmem:[%s3340_s4 + $0xf8] sm:$0xf] %vm1263_vm3, %v1833_v2  ;;  %1324 = vst.msk [vmem:[%s3340_s4 + $0xf0] sm:$0xf] %vm1263_vm3, %v1831_v15  ;;  %v1513_v51 = vmul.f32 %v3064_v3, %v3064_v3  ;;  %v1425_v58 = vsel %vm24_vm0, %v3098_v59, 0.0  ;;  %v1832_v33 = vpack.c.bf16 %v3231_v38, %v3231_v38 }
 0x14f   :  { %v1418_v6 = vadd.f32 %v1417_v0, %v1416_v57  ;;  %1327 = vst.msk [vmem:[%s3340_s4 + $0xfc] sm:$0xf] %vm1263_vm3, %v1834_v37  ;;  %v1427_v22 = vsel %vm24_vm0, %v3064_v3, 0.0  ;;  %v1514_v63 = vmul.f32 %v3083_v49, %v3083_v49  ;;  %v1624_v50 = vsel %vm24_vm0, %v1512_v14, 0.0 }
 0x150   :  { %v1615_v5 = vadd.f32 %v1614_v47, %v1613_v61  ;;  %v1515_v59 = vmul.f32 %v3114_v30, %v3114_v30  ;;  %1325 = vst.msk [vmem:[%s3340_s4 + $0xf4] sm:$0xf] %vm1263_vm3, %v1832_v33  ;;  %v1626_v28 = vsel %vm24_vm0, %v1513_v51, 0.0  ;;  %v1429_v3 = vsel %vm24_vm0, %v3083_v49, 0.0 }
 0x151   :  { %v1420_v45 = vadd.f32 %v1419_v31, %v1418_v6  ;;  %v1431_v48 = vsel %vm24_vm0, %v3114_v30, 0.0  ;;  %v1628_v7 = vsel %vm24_vm0, %v1514_v63, 0.0  ;;  %v1516_v43 = vmul.f32 %v3142_v52, %v3142_v52 }
 0x152   :  { %v1617_v26 = vadd.f32 %v1616_v17, %v1615_v5  ;;  %v1630_v40 = vsel %vm24_vm0, %v1515_v59, 0.0  ;;  %v1517_v39 = vmul.f32 %v3108_v32, %v3108_v32  ;;  %v1433_v49 = vsel %vm24_vm0, %v3142_v52, 0.0 }
 0x153   :  { %v1422_v13 = vadd.f32 %v1421_v1, %v1420_v45  ;;  %v1435_v30 = vsel %vm24_vm0, %v3108_v32, 0.0  ;;  %v1518_v61 = vmul.f32 %v3129_v55, %v3129_v55  ;;  %v1632_v27 = vsel %vm24_vm0, %v1516_v43, 0.0 }
 0x154   :  { %v1619_v36 = vadd.f32 %v1618_v9, %v1617_v26  ;;  %v1519_v0 = vmul.f32 %v3163_v8, %v3163_v8  ;;  %v1634_v5 = vsel %vm24_vm0, %v1517_v39, 0.0  ;;  %v1437_v52 = vsel %vm24_vm0, %v3129_v55, 0.0 }
 0x155   :  { %v1424_v56 = vadd.f32 %v1423_v53, %v1422_v13  ;;  %v1439_v6 = vsel %vm24_vm0, %v3163_v8, 0.0  ;;  %v1636_v44 = vsel %vm24_vm0, %v1518_v61, 0.0  ;;  %v1520_v18 = vmul.f32 %v3181_v25, %v3181_v25 }
 0x156   :  { %v1621_v41 = vadd.f32 %v1620_v16, %v1619_v36  ;;  %v1638_v17 = vsel %vm24_vm0, %v1519_v0, 0.0  ;;  %v1521_v26 = vmul.f32 %v3148_v35, %v3148_v35  ;;  %v1441_v55 = vsel %vm24_vm0, %v3181_v25, 0.0 }
 0x157   :  { %v1426_v62 = vadd.f32 %v1425_v58, %v1424_v56  ;;  %v1443_v8 = vsel %vm24_vm0, %v3148_v35, 0.0  ;;  %v1522_v53 = vmul.f32 %v3175_v60, %v3175_v60  ;;  %v1640_v2 = vsel %vm24_vm0, %v1520_v18, 0.0 }
 0x158   :  { %v1623_v46 = vadd.f32 %v1622_v24, %v1621_v41  ;;  %v1523_v36 = vmul.f32 %v3210_v19, %v3210_v19  ;;  %v1642_v16 = vsel %vm24_vm0, %v1521_v26, 0.0  ;;  %v1445_v25 = vsel %vm24_vm0, %v3175_v60, 0.0 }
 0x159   :  { %v1428_v42 = vadd.f32 %v1427_v22, %v1426_v62  ;;  %v1447_v24 = vsel %vm24_vm0, %v3210_v19, 0.0  ;;  %v1644_v37 = vsel %vm24_vm0, %v1522_v53, 0.0  ;;  %v1524_v41 = vmul.f32 %v3231_v38, %v3231_v38 }
 0x15a   :  { %v1625_v21 = vadd.f32 %v1624_v50, %v1623_v46  ;;  %v1646_v56 = vsel %vm24_vm0, %v1523_v36, 0.0  ;;  %v1525_v33 = vmul.f32 %v3197_v11, %v3197_v11  ;;  %v1449_v60 = vsel %vm24_vm0, %v3231_v38, 0.0 }
 0x15b   :  { %v1430_v29 = vadd.f32 %v1429_v3, %v1428_v42  ;;  %v1451_v19 = vsel %vm24_vm0, %v3197_v11, 0.0  ;;  %v1526_v22 = vmul.f32 %v3216_v20, %v3216_v20  ;;  %v1648_v63 = vsel %vm24_vm0, %v1524_v41, 0.0 }
 0x15c   :  { %v1627_v34 = vadd.f32 %v1626_v28, %v1625_v21  ;;  %v1650_v42 = vsel %vm24_vm0, %v1525_v33, 0.0  ;;  %v1453_v21 = vsel %vm24_vm0, %v3216_v20, 0.0 }
 0x15d   :  { %v1432_v10 = vadd.f32 %v1431_v48, %v1430_v29  ;;  %v1652_v38 = vsel %vm24_vm0, %v1526_v22, 0.0 }
 0x15e   :  { %v1629_v47 = vadd.f32 %v1628_v7, %v1627_v34 }
 0x15f   :  { %v1434_v57 = vadd.f32 %v1433_v49, %v1432_v10 }
 0x160   :  { %v1631_v54 = vadd.f32 %v1630_v40, %v1629_v47 }
 0x161   :  { %v1436_v4 = vadd.f32 %v1435_v30, %v1434_v57 }
 0x162   :  { %v1633_v31 = vadd.f32 %v1632_v27, %v1631_v54 }
 0x163   :  { %v1438_v32 = vadd.f32 %v1437_v52, %v1436_v4 }
 0x164   :  { %v1635_v12 = vadd.f32 %v1634_v5, %v1633_v31 }
 0x165   :  { %v1440_v23 = vadd.f32 %v1439_v6, %v1438_v32 }
 0x166   :  { %v1637_v45 = vadd.f32 %v1636_v44, %v1635_v12 }
 0x167   :  { %v1442_v1 = vadd.f32 %v1441_v55, %v1440_v23 }
 0x168   :  { %v1639_v9 = vadd.f32 %v1638_v17, %v1637_v45 }
 0x169   :  { %v1444_v13 = vadd.f32 %v1443_v8, %v1442_v1 }
 0x16a   :  { %v1641_v15 = vadd.f32 %v1640_v2, %v1639_v9 }
 0x16b   :  { %v1446_v35 = vadd.f32 %v1445_v25, %v1444_v13 }
 0x16c   :  { %v1643_v14 = vadd.f32 %v1642_v16, %v1641_v15 }
 0x16d   :  { %v1448_v51 = vadd.f32 %v1447_v24, %v1446_v35 }
 0x16e   :  { %v1645_v58 = vadd.f32 %v1644_v37, %v1643_v14 }
 0x16f   :  { %v1450_v62 = vadd.f32 %v1449_v60, %v1448_v51 }
 0x170   :  { %v1647_v46 = vadd.f32 %v1646_v56, %v1645_v58 }
 0x171   :  { %v1452_v50 = vadd.f32 %v1451_v19, %v1450_v62 }
 0x172   :  { %v1649_v59 = vadd.f32 %v1648_v63, %v1647_v46 }
 0x173   :  { %v1454_v28 = vadd.f32 %v1453_v21, %v1452_v50 }
 0x174   :  { %v1651_v3 = vadd.f32 %v1650_v42, %v1649_v59 }
 0x175   :  { %v1455_v48 = vrot.slane %v1454_v28, 4 }
 0x176   :  { %v1653_v34 = vadd.f32 %v1652_v38, %v1651_v3 }
 0x177   :  { %v1456_v29 = vadd.f32 %v1455_v48, %v1454_v28 }
 0x178   :  { %v1654_v11 = vrot.slane %v1653_v34, 4 }
 0x179   :  { %v1457_v7 = vrot.slane %v1456_v29, 2 }
 0x17a   :  { %v1655_v40 = vadd.f32 %v1654_v11, %v1653_v34 }
 0x17b   :  { %v1458_v43 = vadd.f32 %v1457_v7, %v1456_v29 }
 0x17c   :  { %v1656_v10 = vrot.slane %v1655_v40, 2 }
 0x17d   :  { %v1459_v47 = vrot.slane %v1458_v43, 1 }
 0x17e   :  { %v1657_v39 = vadd.f32 %v1656_v10, %v1655_v40 }
 0x17f   :  { %v1460_v49 = vadd.f32 %v1459_v47, %v1458_v43 }
 0x180   :  { %v1658_v54 = vrot.slane %v1657_v39, 1 }
 0x181   :  { %1462 = vst.msk [vmem:[%s3341_s5] sm:$0x1] %vm1461_vm4, %v1460_v49 }
 0x182   :  { %v1659_v20 = vadd.f32 %v1658_v54, %v1657_v39 }
 0x184   :  { %1660 = vst.msk [vmem:[%s3341_s5 + $0x1] sm:$0x1] %vm1461_vm4, %v1659_v20 }

// kernel: densenet_forward.16
= control target key start
LH: loop header
LB: loop body
LE: loop exit
PB: predicated region body
PF: predicated region fallthrough
CT: control target
= control target key end

     0   :  { %s2762_s18 = smov 0   ;;  %s3227_s0 = inlined_call_operand.vmem [shape: f32[1,16], index: 0, kind: input, shape index: {}]   ;;  %s3228_s1 = inlined_call_operand.vmem [shape: f32[1,16], index: 1, kind: input, shape index: {}]   ;;  %s3229_s2 = inlined_call_operand.vmem [shape: bf16[2,8,8,16], index: 2, kind: input, shape index: {}]   ;;  %s3230_s3 = inlined_call_operand.vmem [shape: bf16[9,16,8], index: 3, kind: input, shape index: {}]   ;;  %s3231_s4 = inlined_call_operand.vmem [shape: bf16[2,8,8,8], index: 4, kind: output, shape index: {0}]   ;;  %s3232_s5 = inlined_call_operand.vmem [shape: f32[2,2,8], index: 5, kind: output, shape index: {1}]  }
   0x1 LB: > { %s2382_s19 = sadd.s32 4294967295, %s2728_s18   ;;  %p2386_p0 = scmp.ge.s32.totalorder %s2728_s18, 1  ;;  %s2728_s18 = sphi %s2762_s18, %s16_s18  }
   0x2   : > { %p190_p1 = scmp.lt.s32.totalorder %s2728_s18, 3 }
   0x4   : > { %p191_p2 = pnand %p2386_p0, %p190_p1 }
   0x5   : > { %v2701_v0 = vld [vmem:[%s3230_s3] sm:$0xff] (!%p191_p2)   ;;  %p222_p3 = scmp.lt.s32.totalorder (!%p191_p2), %s2382_s19, 1  ;;  %vm237_vm0 = vcmask (!%p191_p2), 125952   ;;  %v2730_v1 = vmov (!%p191_p2), 0   ;;  %v2788_v2 = vld [vmem:[%s3230_s3 + $0x8] sm:$0xff] (!%p191_p2)   ;;  %vm239_vm1 = vcmask (!%p191_p2), 122880  }
   0x6   : > { %194 = sbr.rel (%p191_p2) target bundleno = 388 (0x184), region = 36  ;;  %2599 = vmatprep.subr.bf16.mxu0 (!%p191_p2), %v2701_v0  ;;  %2689 = vmatprep.subr.bf16.mxu1 (!%p191_p2), %v2701_v0  ;;  %238 = vst.msk [vmem:[#allocation2] sm:$0xf] (!%p191_p2), %vm237_vm0, %v2730_v1  ;;  %241 = vst.msk [vmem:[#allocation2 + $0x8] sm:$0xf] (!%p191_p2), %vm237_vm0, %v2730_v1  ;;  %v2804_v3 = vld [vmem:[%s3230_s3 + $0x10] sm:$0xff] (!%p191_p2)  }
   0x7   : > { %243 = vst.msk [vmem:[#allocation2 + $0x10] sm:$0xf] (!%p191_p2), %vm237_vm0, %v2730_v1  ;;  %245 = vst.msk [vmem:[#allocation2 + $0x18] sm:$0xf] (!%p191_p2), %vm237_vm0, %v2730_v1  ;;  %2600 = vmatpush3.bf16.msra.mxu0 (!%p191_p2), %v2701_v0  ;;  %2690 = vmatpush3.bf16.msra.mxu1 (!%p191_p2), %v2701_v0  ;;  %v2392_v4 = vld [vmem:[%s3227_s0] ss:$0 sm:$0xff] (!%p191_p2) }
   0x8   : > { %247 = vst.msk [vmem:[#allocation2 + $0x20] sm:$0xf] (!%p191_p2), %vm237_vm0, %v2730_v1  ;;  %249 = vst.msk [vmem:[#allocation2 + $0x28] sm:$0xf] (!%p191_p2), %vm237_vm0, %v2730_v1  ;;  %2609 = vmatprep.subr.bf16.mxu1 (!%p191_p2), %v2788_v2  ;;  %2619 = vmatprep.subr.bf16.mxu0 (!%p191_p2), %v2804_v3  ;;  %vm480_vm2 = vcmask (!%p191_p2), 64512   ;;  %v2731_v13 = vmov (!%p191_p2), 0.0  }
   0x9   : > { %251 = vst.msk [vmem:[#allocation2 + $0x30] sm:$0xf] (!%p191_p2), %vm237_vm0, %v2730_v1  ;;  %253 = vst.msk [vmem:[#allocation2 + $0x38] sm:$0xf] (!%p191_p2), %vm237_vm0, %v2730_v1  ;;  %v2393_v14 = vld [vmem:[%s3228_s1] ss:$0 sm:$0xff] (!%p191_p2) }
   0xa   : > { %255 = vst.msk [vmem:[#allocation2 + $0x40] sm:$0xf] (!%p191_p2), %vm237_vm0, %v2730_v1  ;;  %257 = vst.msk [vmem:[#allocation2 + $0x48] sm:$0xf] (!%p191_p2), %vm237_vm0, %v2730_v1  ;;  %vm427_vm3 = vsmask.f32 (!%p191_p2), 7938 }
   0xb   : > { %240 = vst.msk [vmem:[#allocation2 + $0x4] sm:$0x1] (!%p191_p2), %vm239_vm1, %v2730_v1  ;;  %242 = vst.msk [vmem:[#allocation2 + $0xc] sm:$0x1] (!%p191_p2), %vm239_vm1, %v2730_v1  ;;  %vm433_vm4 = vsmask.f32 (!%p191_p2), 256 }
   0xc   : > { %244 = vst.msk [vmem:[#allocation2 + $0x14] sm:$0x1] (!%p191_p2), %vm239_vm1, %v2730_v1  ;;  %246 = vst.msk [vmem:[#allocation2 + $0x1c] sm:$0x1] (!%p191_p2), %vm239_vm1, %v2730_v1  ;;  %vm533_vm6 = vcmask (!%p191_p2), 130048   ;;  %vm912_vm8 = vcmask (!%p191_p2), 1042432  }
   0xd   : > { %s3242_s19 = smov (!%p222_p3, %s2382_s19), 1  ;;  %248 = vst.msk [vmem:[#allocation2 + $0x24] sm:$0x1] %vm239_vm1, %v2730_v1  ;;  %250 = vst.msk [vmem:[#allocation2 + $0x2c] sm:$0x1] %vm239_vm1, %v2730_v1  ;;  %vm913_vm9 = vcmask 1046532  }
   0xe   : > { %s2525_s24 = sshll.u32 %s3242_s19, 5  ;;  %252 = vst.msk [vmem:[#allocation2 + $0x34] sm:$0x1] %vm239_vm1, %v2730_v1  ;;  %254 = vst.msk [vmem:[#allocation2 + $0x3c] sm:$0x1] %vm239_vm1, %v2730_v1  ;;  %vm2234_vm14 = vcmask 60416  }
   0xf   : > { %256 = vst.msk [vmem:[#allocation2 + $0x44] sm:$0x1] %vm239_vm1, %v2730_v1  ;;  %258 = vst.msk [vmem:[#allocation2 + $0x4c] sm:$0x1] %vm239_vm1, %v2730_v1  ;;  %s226_s29 = scalar_lea.vmem %s3229_s2, %s2525_s24  ;;  %v2827_v34 = vld [vmem:[#allocation2] sm:$0xf]  ;;  %s3182_s26 = scalar_lea.vmem %s3231_s4, %s2525_s24 }
  0x10   : > { %v2536_v5 = vld [vmem:[%s226_s29] sm:$0xff]   ;;  %v2551_v6 = vld [vmem:[%s226_s29 + $0x8] sm:$0xff]   ;;  %v2552_v7 = vld [vmem:[%s226_s29 + $0x10] sm:$0xff]   ;;  %483 = vst.msk [vmem:[#allocation3 + $0x10] sm:$0xff] %vm480_vm2, %v2731_v13  ;;  %v647_v43 = vshrl.u32 %v2827_v34, 16  ;;  %s2391_s24 = sshll.u32 %s3242_s19, 1 }
  0x11   : > { %v2537_v8 = vunpack.c.l.bf16 %v2536_v5  ;;  %v2538_v9 = vunpack.c.h.bf16 %v2536_v5  ;;  %v2541_v10 = vunpack.c.l.bf16 %v2551_v6  ;;  %v2542_v11 = vunpack.c.h.bf16 %v2551_v6  ;;  %v2553_v12 = vld [vmem:[%s226_s29 + $0x18] sm:$0xff]   ;;  %481 = vst.msk [vmem:[#allocation3] sm:$0xff] %vm480_vm2, %v2731_v13  ;;  %482 = vst.msk [vmem:[#allocation3 + $0x8] sm:$0xff] %vm480_vm2, %v2731_v13  ;;  %v429_v56 = vld [vmem:[#allocation2 + $0x8] sm:$0xf]  ;;  %s235_s29 = scalar_lea.vmem %s3232_s5, %s2391_s24 }
  0x12   : > { %484 = vst.msk [vmem:[#allocation3 + $0x18] sm:$0xff] %vm480_vm2, %v2731_v13  ;;  %485 = vst.msk [vmem:[#allocation3 + $0x20] sm:$0xff] %vm480_vm2, %v2731_v13  ;;  %v2545_v15 = vunpack.c.l.bf16 %v2552_v7  ;;  %v2546_v16 = vunpack.c.h.bf16 %v2552_v7  ;;  %v2549_v17 = vunpack.c.l.bf16 %v2553_v12  ;;  %v2550_v18 = vunpack.c.h.bf16 %v2553_v12  ;;  %v450_v59 = vld [vmem:[#allocation2 + $0x20] sm:$0xf]  ;;  %v456_v0 = vld [vmem:[#allocation2 + $0x28] sm:$0xf] }
  0x13   : > { %486 = vst.msk [vmem:[#allocation3 + $0x28] sm:$0xff] %vm480_vm2, %v2731_v13  ;;  %487 = vst.msk [vmem:[#allocation3 + $0x30] sm:$0xff] %vm480_vm2, %v2731_v13  ;;  %v282_v19 = vmul.f32 %v2537_v8, %v2392_v4  ;;  %v285_v20 = vmul.f32 %v2542_v11, %v2392_v4  ;;  %v283_v21 = vmul.f32 %v2538_v9, %v2392_v4  ;;  %v2834_v51 = vrot.slane %v647_v43, 4  ;;  %v438_v8 = vld [vmem:[#allocation2 + $0x10] sm:$0xf] }
  0x14   : > { %488 = vst.msk [vmem:[#allocation3 + $0x38] sm:$0xff] %vm480_vm2, %v2731_v13  ;;  %v284_v22 = vmul.f32 %v2541_v10, %v2392_v4  ;;  %v286_v23 = vmul.f32 %v2545_v15, %v2392_v4  ;;  %v287_v24 = vmul.f32 %v2546_v16, %v2392_v4  ;;  %v288_v25 = vmul.f32 %v2549_v17, %v2392_v4  ;;  %vm2840_vm5 = vmand %vm237_vm0, %vm427_vm3  ;;  %v435_v15 = vld [vmem:[#allocation2 + $0xc] sm:$0x1]  ;;  %v628_v16 = vld [vmem:[#allocation2 + $0x4] sm:$0x1] }
  0x15   : > { %v289_v26 = vmul.f32 %v2550_v18, %v2392_v4  ;;  %v297_v27 = vadd.f32 %v2393_v14, %v282_v19  ;;  %v300_v28 = vadd.f32 %v2393_v14, %v285_v20  ;;  %v298_v29 = vadd.f32 %v2393_v14, %v283_v21  ;;  %v444_v21 = vld [vmem:[#allocation2 + $0x18] sm:$0xf]  ;;  %vm2856_vm7 = vmand %vm239_vm1, %vm433_vm4 }
  0x16   : > { %v299_v30 = vadd.f32 %v2393_v14, %v284_v22  ;;  %v301_v31 = vadd.f32 %v2393_v14, %v286_v23  ;;  %v302_v32 = vadd.f32 %v2393_v14, %v287_v24  ;;  %v303_v33 = vadd.f32 %v2393_v14, %v288_v25  ;;  %v462_v22 = vld [vmem:[#allocation2 + $0x30] sm:$0xf]  ;;  %v441_v23 = vld [vmem:[#allocation2 + $0x14] sm:$0x1]  ;;  %v447_v24 = vld [vmem:[#allocation2 + $0x1c] sm:$0x1] }
  0x17   : > { %v2829_v35 = vadd.f32 %v2393_v14, %v289_v26  ;;  %v305_v36 = vmax.f32 %v297_v27, 0.0  ;;  %v308_v37 = vmax.f32 %v300_v28, 0.0  ;;  %v306_v38 = vmax.f32 %v298_v29, 0.0  ;;  %vm2906_vm12 = vmor %vm912_vm8, %vm913_vm9  ;;  %v3021_v29 = vld [vmem:[%s3230_s3 + $0x40] sm:$0xff]  }
  0x18   : > { %v307_v39 = vmax.f32 %v299_v30, 0.0  ;;  %v309_v40 = vmax.f32 %v301_v31, 0.0  ;;  %v310_v41 = vmax.f32 %v302_v32, 0.0  ;;  %v311_v42 = vmax.f32 %v303_v33, 0.0 }
  0x19   : > { %v2527_v44 = vpack.c.bf16 %v305_v36, %v305_v36  ;;  %v2530_v45 = vpack.c.bf16 %v308_v37, %v308_v37  ;;  %v2528_v46 = vpack.c.bf16 %v306_v38, %v306_v38  ;;  %v453_v36 = vld [vmem:[#allocation2 + $0x24] sm:$0x1]  ;;  %v459_v37 = vld [vmem:[#allocation2 + $0x2c] sm:$0x1]  ;;  %v2866_v38 = vld [vmem:[#allocation2] sm:$0xe] }
  0x1a   : > { %v2529_v47 = vpack.c.bf16 %v307_v39, %v307_v39  ;;  %v2531_v48 = vpack.c.bf16 %v309_v40, %v309_v40  ;;  %v2532_v49 = vpack.c.bf16 %v310_v41, %v310_v41  ;;  %v2832_v50 = vpack.c.bf16 %v311_v42, %v311_v42 }
  0x1b   : > { %v346_v52 = vshrl.u32 %v2527_v44, 16  ;;  %v349_v53 = vshll.u32 %v2527_v44, 16  ;;  %v370_v54 = vshrl.u32 %v2530_v45, 16  ;;  %v373_v55 = vshll.u32 %v2530_v45, 16 }
  0x1c   : > { %v378_v57 = vshrl.u32 %v2531_v48, 16  ;;  %v381_v58 = vshll.u32 %v2531_v48, 16  ;;  %v354_v60 = vshrl.u32 %v2528_v46, 16  ;;  %v357_v61 = vshll.u32 %v2528_v46, 16 }
  0x1d   : > { %v348_v62 = vrot.slane %v346_v52, 7  ;;  %v2836_v63 = vrot.slane %v370_v54, 7  ;;  %v362_v1 = vshrl.u32 %v2529_v47, 16  ;;  %v365_v4 = vshll.u32 %v2529_v47, 16  ;;  %v2871_v47 = vld [vmem:[#allocation2 + $0x4] sm:$0x1] }
  0x1e   : > { %v2844_v6 = vrot.slane %v378_v57, 7  ;;  %v356_v7 = vrot.slane %v354_v60, 7  ;;  %v386_v9 = vshrl.u32 %v2532_v49, 16  ;;  %v389_v10 = vshll.u32 %v2532_v49, 16  ;;  %v465_v54 = vld [vmem:[#allocation2 + $0x34] sm:$0x1] }
  0x1f   : > { %v351_v11 = vor.u32 %v349_v53, %v348_v62  ;;  %v352_v12 = vrot.slane %v348_v62, 4  ;;  %v375_v13 = vor.u32 %v373_v55, %v2836_v63  ;;  %v376_v14 = vrot.slane %v2836_v63, 4  ;;  %v471_v55 = vld [vmem:[#allocation2 + $0x3c] sm:$0x1] }
  0x20   : > { %v383_v17 = vor.u32 %v381_v58, %v2844_v6  ;;  %v384_v18 = vrot.slane %v2844_v6, 4  ;;  %v359_v19 = vor.u32 %v357_v61, %v356_v7  ;;  %v360_v20 = vrot.slane %v356_v7, 4 }
  0x21   : > { %v430_v25 = vsel %vm2840_vm5, %v351_v11, %v429_v56  ;;  %v451_v26 = vsel %vm2840_vm5, %v375_v13, %v450_v59  ;;  %v364_v27 = vrot.slane %v362_v1, 7  ;;  %v388_v28 = vrot.slane %v386_v9, 7 }
  0x22   : > { %431 = vst [vmem:[#allocation2 + $0x8] sm:$0xf] %v430_v25  ;;  %452 = vst [vmem:[#allocation2 + $0x20] sm:$0xf] %v451_v26  ;;  %v457_v30 = vsel %vm2840_vm5, %v383_v17, %v456_v0  ;;  %v439_v31 = vsel %vm2840_vm5, %v359_v19, %v438_v8  ;;  %v394_v32 = vshrl.u32 %v2832_v50, 16  ;;  %v397_v33 = vshll.u32 %v2832_v50, 16 }
  0x23   : > { %458 = vst [vmem:[#allocation2 + $0x28] sm:$0xf] %v457_v30  ;;  %v367_v39 = vor.u32 %v365_v4, %v364_v27  ;;  %v368_v40 = vrot.slane %v364_v27, 4  ;;  %440 = vst [vmem:[#allocation2 + $0x10] sm:$0xf] %v439_v31  ;;  %v391_v41 = vor.u32 %v389_v10, %v388_v28  ;;  %v392_v42 = vrot.slane %v388_v28, 4 }
  0x24   : > { %v396_v43 = vrot.slane %v394_v32, 7  ;;  %v436_v44 = vsel %vm2856_vm7, %v352_v12, %v435_v15  ;;  %vm643_vm10 = vsmask.f32 3328  ;;  %vm644_vm11 = vsmask.f32 7440 }
  0x25   : > { %v650_v45 = vshll.u32 %v2827_v34, 16  ;;  %v656_v46 = vshll.u32 %v628_v16, 16  ;;  %v445_v48 = vsel %vm2840_vm5, %v367_v39, %v444_v21  ;;  %v463_v49 = vsel %vm2840_vm5, %v391_v41, %v462_v22  ;;  %v468_v50 = vld [vmem:[#allocation2 + $0x38] sm:$0xf]  ;;  %437 = vst [vmem:[#allocation2 + $0xc] sm:$0x1] %v436_v44  ;;  %vm2918_vm13 = vmor %vm643_vm10, %vm644_vm11 }
  0x26   : > { %v442_v52 = vsel %vm2856_vm7, %v360_v20, %v441_v23  ;;  %v448_v53 = vsel %vm2856_vm7, %v368_v40, %v447_v24  ;;  %446 = vst [vmem:[#allocation2 + $0x18] sm:$0xf] %v445_v48  ;;  %v399_v34 = vor.u32 %v397_v33, %v396_v43  ;;  %v400_v56 = vrot.slane %v396_v43, 4  ;;  %464 = vst [vmem:[#allocation2 + $0x30] sm:$0xf] %v463_v49 }
  0x27   : > { %v652_v57 = vrot.slane %v650_v45, 5  ;;  %v2881_v58 = vrot.slane %v656_v46, 5  ;;  %443 = vst [vmem:[#allocation2 + $0x14] sm:$0x1] %v442_v52  ;;  %449 = vst [vmem:[#allocation2 + $0x1c] sm:$0x1] %v448_v53  ;;  %v454_v59 = vsel %vm2856_vm7, %v376_v14, %v453_v36  ;;  %v460_v60 = vsel %vm2856_vm7, %v384_v18, %v459_v37 }
  0x28   : > { %v2422_v61 = vrot.slane %v2866_v38, 9  ;;  %v917_v62 = vrot.slane %v2871_v47, 5  ;;  %v469_v63 = vsel %vm2840_vm5, %v399_v34, %v468_v50  ;;  %455 = vst [vmem:[#allocation2 + $0x24] sm:$0x1] %v454_v59  ;;  %461 = vst [vmem:[#allocation2 + $0x2c] sm:$0x1] %v460_v60  ;;  %v466_v1 = vsel %vm2856_vm7, %v392_v42, %v465_v54 }
  0x29   : > { %v653_v0 = vor.u32 %v652_v57, %v2834_v51  ;;  %v472_v4 = vsel %vm2856_vm7, %v400_v56, %v471_v55  ;;  %v2702_v6 = vld [vmem:[#allocation2] ss:$8 sps:$4 sm:$0xff]   ;;  %470 = vst [vmem:[#allocation2 + $0x38] sm:$0xf] %v469_v63  ;;  %467 = vst [vmem:[#allocation2 + $0x34] sm:$0x1] %v466_v1 }
  0x2a   : > { %473 = vst [vmem:[#allocation2 + $0x3c] sm:$0x1] %v472_v4  ;;  %v2703_v7 = vld [vmem:[#allocation2 + $0x20] ss:$8 sps:$4 sm:$0xff]   ;;  %2601 = vmatprep.mubr.msk.bf16.mxu0 %vm533_vm6, %v2702_v6  ;;  %v631_v10 = vld [vmem:[#allocation2 + $0x10] sm:$0xf]  ;;  %v2925_v36 = vsel %vm2906_vm12, %v2422_v61, %v917_v62 }
  0x2b   : > { %v629_v8 = vld [vmem:[#allocation2 + $0x8] sm:$0xf]  ;;  %v654_v9 = vrot.slane %v653_v0, 4  ;;  %v2900_v51 = vld [vmem:[%s3230_s3 + $0x20] sm:$0xff]   ;;  %v312_v11 = vmax.f32 %v2829_v35, 0.0  ;;  %2605 = vmatprep.mubr.msk.bf16.mxu1 %vm533_vm6, %v2703_v7  ;;  %v675_v15 = vshrl.u32 %v631_v10, 16 }
  0x2c   : > { %v630_v12 = vld [vmem:[#allocation2 + $0xc] sm:$0x1]  ;;  %v661_v13 = vshrl.u32 %v629_v8, 16  ;;  %v664_v14 = vshll.u32 %v629_v8, 16  ;;  %v678_v16 = vshll.u32 %v631_v10, 16  ;;  %v2913_v35 = vld [vmem:[%s3230_s3 + $0x18] sm:$0xff]  }
  0x2d   : > { %v2704_v18 = vld [vmem:[#allocation2 + $0x10] ss:$8 sps:$4 sm:$0xff]   ;;  %v670_v21 = vshll.u32 %v630_v12, 16  ;;  %v677_v23 = vrot.slane %v675_v15, 4  ;;  %v635_v41 = vld [vmem:[#allocation2 + $0x20] sm:$0xf]  ;;  %v659_v42 = vsel %vm2918_vm13, %v654_v9, %v2881_v58  ;;  %v2932_v46 = vpack.c.bf16 %v312_v11, %v312_v11 }
  0x2e   : > { %v663_v19 = vrot.slane %v661_v13, 4  ;;  %v666_v20 = vrot.slane %v664_v14, 5  ;;  %v632_v22 = vld [vmem:[#allocation2 + $0x14] sm:$0x1]  ;;  %2602 = vmatmul.mubr.msk.bf16.vlgmr.msra.gmra.mrb[0].mxu0 %vm533_vm6, %v2704_v18  ;;  %v633_v25 = vld [vmem:[#allocation2 + $0x18] sm:$0xf] }
  0x2f   : > { %v634_v26 = vld [vmem:[#allocation2 + $0x1c] sm:$0x1]  ;;  %v680_v27 = vrot.slane %v678_v16, 5  ;;  %v684_v28 = vshll.u32 %v632_v22, 16  ;;  %v672_v32 = vrot.slane %v670_v21, 5  ;;  %v689_v33 = vshrl.u32 %v633_v25, 16  ;;  %2620 = vmatpush3.bf16.msra.mxu0 %v2804_v3 }
  0x30   : > { %v2705_v30 = vld [vmem:[#allocation2 + $0x30] ss:$8 sps:$4 sm:$0xff]   ;;  %v667_v31 = vor.u32 %v666_v20, %v663_v19  ;;  %v692_v39 = vshll.u32 %v633_v25, 16  ;;  %v698_v40 = vshll.u32 %v634_v26, 16  ;;  %2639 = vmatprep.subr.bf16.mxu0 %v2900_v51  ;;  %v636_v3 = vld [vmem:[#allocation2 + $0x24] sm:$0x1] }
  0x31   : > { %v681_v37 = vor.u32 %v680_v27, %v677_v23  ;;  %v686_v38 = vrot.slane %v684_v28, 5  ;;  %2606 = vmatmul.mubr.msk.bf16.vlgmr.msra.gmra.mrb[0].mxu1 %vm533_vm6, %v2705_v30  ;;  %v691_v44 = vrot.slane %v689_v33, 4  ;;  %v637_v45 = vld [vmem:[#allocation2 + $0x28] sm:$0xf]  ;;  %v638_v50 = vld [vmem:[#allocation2 + $0x2c] sm:$0x1] }
  0x32   : > { %v668_v43 = vrot.slane %v667_v31, 4  ;;  %2610 = vmatpush3.bf16.msra.mxu1 %v2788_v2  ;;  %v694_v48 = vrot.slane %v692_v39, 5  ;;  %v700_v49 = vrot.slane %v698_v40, 5  ;;  %v703_v52 = vshrl.u32 %v635_v41, 16  ;;  %v882_v56 = vld [vmem:[#allocation2 + $0x8] sm:$0xe] }
  0x33   : > { %v682_v47 = vrot.slane %v681_v37, 4  ;;  %2629 = vmatprep.subr.bf16.mxu1 %v2913_v35  ;;  %v706_v54 = vshll.u32 %v635_v41, 16  ;;  %v712_v55 = vshll.u32 %v636_v3, 16  ;;  %v717_v34 = vshrl.u32 %v637_v45, 16  ;;  %v883_v60 = vld [vmem:[#allocation2 + $0xc] sm:$0x1] }
  0x34   : > { %v673_v53 = vsel %vm2918_vm13, %v668_v43, %v672_v32  ;;  %v695_v59 = vor.u32 %v694_v48, %v691_v44  ;;  %v705_v2 = vrot.slane %v703_v52, 4  ;;  %v639_v61 = vld [vmem:[#allocation2 + $0x30] sm:$0xf]  ;;  %v720_v1 = vshll.u32 %v637_v45, 16  ;;  %v640_v4 = vld [vmem:[#allocation2 + $0x34] sm:$0x1] }
  0x35   : > { %v2413_v57 = vcombine.low %v659_v42, %v673_v53  ;;  %v687_v58 = vsel %vm2918_vm13, %v682_v47, %v686_v38  ;;  %v708_v62 = vrot.slane %v706_v54, 5  ;;  %v714_v63 = vrot.slane %v712_v55, 5  ;;  %v641_v10 = vld [vmem:[#allocation2 + $0x38] sm:$0xf]  ;;  %v642_v13 = vld [vmem:[#allocation2 + $0x3c] sm:$0x1] }
  0x36   : > { %v719_v0 = vrot.slane %v717_v34, 4  ;;  %v696_v6 = vrot.slane %v695_v59, 4  ;;  %v726_v7 = vshll.u32 %v638_v50, 16  ;;  %v2423_v8 = vrot.slane %v882_v56, 9  ;;  %v884_v21 = vld [vmem:[#allocation2 + $0x10] sm:$0xe] }
  0x37   : > { %2611 = vmatprep.mubr.msk.bf16.mxu1 %vm533_vm6, %v2413_v57  ;;  %v921_v9 = vrot.slane %v883_v60, 5  ;;  %v709_v11 = vor.u32 %v708_v62, %v705_v2  ;;  %v722_v12 = vrot.slane %v720_v1, 5  ;;  %v731_v14 = vshrl.u32 %v639_v61, 16  ;;  %v885_v22 = vld [vmem:[#allocation2 + $0x14] sm:$0x1]  ;;  %v2949_v31 = vld [vmem:[%s3230_s3 + $0x28] sm:$0xff]  }
  0x38   : > { %v734_v15 = vshll.u32 %v639_v61, 16  ;;  %v701_v16 = vsel %vm2918_vm13, %v696_v6, %v700_v49  ;;  %v728_v18 = vrot.slane %v726_v7, 5  ;;  %v740_v20 = vshll.u32 %v640_v4, 16  ;;  %v886_v28 = vld [vmem:[#allocation2 + $0x18] sm:$0xe] }
  0x39   : > { %v922_v19 = vsel %vm2906_vm12, %v2423_v8, %v921_v9  ;;  %v2414_v23 = vcombine.low %v687_v58, %v701_v16  ;;  %v710_v25 = vrot.slane %v709_v11, 4  ;;  %v723_v26 = vor.u32 %v722_v12, %v719_v0  ;;  %v887_v30 = vld [vmem:[#allocation2 + $0x1c] sm:$0x1]  ;;  %v888_v39 = vld [vmem:[#allocation2 + $0x20] sm:$0xe]  ;;  %v2971_v11 = vld [vmem:[%s3230_s3 + $0x30] sm:$0xff]  }
  0x3a   : > { %v2432_v27 = vcombine.low %v2925_v36, %v922_v19  ;;  %v733_v32 = vrot.slane %v731_v14, 4  ;;  %v736_v33 = vrot.slane %v734_v15, 5  ;;  %v742_v37 = vrot.slane %v740_v20, 5  ;;  %v889_v43 = vld [vmem:[#allocation2 + $0x24] sm:$0x1] }
  0x3b   : > { %v745_v38 = vshrl.u32 %v641_v10, 16  ;;  %2612 = vmatmul.mubr.msk.bf16.vlgmr.msra.gmra.mrb[4].mxu1 %vm533_vm6, %v2414_v23  ;;  %v715_v40 = vsel %vm2918_vm13, %v710_v25, %v714_v63  ;;  %v724_v41 = vrot.slane %v723_v26, 4  ;;  %v748_v36 = vshll.u32 %v641_v10, 16  ;;  %v890_v48 = vld [vmem:[#allocation2 + $0x28] sm:$0xe] }
  0x3c   : > { %2621 = vmatprep.mubr.msk.bf16.mxu0 %vm533_vm6, %v2432_v27  ;;  %v754_v42 = vshll.u32 %v642_v13, 16  ;;  %2630 = vmatpush3.bf16.msra.mxu1 %v2913_v35  ;;  %v737_v44 = vor.u32 %v736_v33, %v733_v32  ;;  %v2424_v45 = vrot.slane %v884_v21, 9  ;;  %v925_v47 = vrot.slane %v885_v22, 5  ;;  %v891_v54 = vld [vmem:[#allocation2 + $0x2c] sm:$0x1] }
  0x3d   : > { %v747_v3 = vrot.slane %v745_v38, 4  ;;  %v729_v49 = vsel %vm2918_vm13, %v724_v41, %v728_v18  ;;  %v750_v50 = vrot.slane %v748_v36, 5  ;;  %v2425_v53 = vrot.slane %v886_v28, 9  ;;  %2649 = vmatprep.subr.bf16.mxu1 %v2949_v31  ;;  %v892_v57 = vld [vmem:[#allocation2 + $0x30] sm:$0xe] }
  0x3e   : > { %v756_v52 = vrot.slane %v754_v42, 5  ;;  %v2415_v55 = vcombine.low %v715_v40, %v729_v49  ;;  %v738_v34 = vrot.slane %v737_v44, 4  ;;  %v926_v56 = vsel %vm2906_vm12, %v2424_v45, %v925_v47  ;;  %v893_v58 = vld [vmem:[#allocation2 + $0x34] sm:$0x1]  ;;  %v894_v62 = vld [vmem:[#allocation2 + $0x38] sm:$0xe] }
  0x3f   : > { %v929_v35 = vrot.slane %v887_v30, 5  ;;  %v751_v59 = vor.u32 %v750_v50, %v747_v3  ;;  %v2426_v2 = vrot.slane %v888_v39, 9  ;;  %v933_v60 = vrot.slane %v889_v43, 5  ;;  %v895_v4 = vld [vmem:[#allocation2 + $0x3c] sm:$0x1] }
  0x40   : > { %v2427_v61 = vrot.slane %v890_v48, 9  ;;  %2615 = vmatprep.mubr.msk.bf16.mxu1 %vm533_vm6, %v2415_v55  ;;  %v743_v63 = vsel %vm2918_vm13, %v738_v34, %v742_v37  ;;  %v937_v1 = vrot.slane %v891_v54, 5  ;;  %v2428_v6 = vrot.slane %v892_v57, 9  ;;  %v2710_v19 = vld [vmem:[#allocation2 + $0x8] ss:$8 sps:$4 sm:$0xff]  }
  0x41   : > { %v930_v0 = vsel %vm2906_vm12, %v2425_v53, %v929_v35  ;;  %v752_v7 = vrot.slane %v751_v59, 4  ;;  %v934_v9 = vsel %vm2906_vm12, %v2426_v2, %v933_v60  ;;  %v941_v10 = vrot.slane %v893_v58, 5  ;;  %v474_v25 = vld [vmem:[#allocation2 + $0x40] sm:$0xf]  ;;  %v1207_v26 = vld [vmem:[#allocation2 + $0x8] sm:$0xf] }
  0x42   : > { %v2433_v8 = vcombine.low %v926_v56, %v930_v0  ;;  %v938_v12 = vsel %vm2906_vm12, %v2427_v61, %v937_v1  ;;  %v2429_v13 = vrot.slane %v894_v62, 9  ;;  %v945_v14 = vrot.slane %v895_v4, 5  ;;  %v1208_v27 = vld [vmem:[#allocation2 + $0xc] sm:$0x1]  ;;  %v1209_v28 = vld [vmem:[#allocation2 + $0x10] sm:$0xf] }
  0x43   : > { %v757_v15 = vsel %vm2918_vm13, %v752_v7, %v756_v52  ;;  %v2434_v16 = vcombine.low %v934_v9, %v938_v12  ;;  %v942_v18 = vsel %vm2906_vm12, %v2428_v6, %v941_v10  ;;  %v402_v22 = vshrl.u32 %v2932_v46, 16  ;;  %v1211_v41 = vld [vmem:[#allocation2 + $0x18] sm:$0xf]  ;;  %v1212_v45 = vld [vmem:[#allocation2 + $0x1c] sm:$0x1] }
  0x44   : > { %2622 = vmatmul.mubr.msk.bf16.vlgmr.msra.gmra.mrb[4].mxu0 %vm533_vm6, %v2433_v8  ;;  %v2416_v20 = vcombine.low %v743_v63, %v757_v15  ;;  %v946_v21 = vsel %vm2906_vm12, %v2429_v13, %v945_v14  ;;  %v405_v23 = vshll.u32 %v2932_v46, 16  ;;  %v1224_v32 = vshrl.u32 %v1207_v26, 16  ;;  %v2711_v36 = vld [vmem:[#allocation2 + $0x18] ss:$8 sps:$4 sm:$0xff]   ;;  %v2713_v53 = vld [vmem:[#allocation2 + $0x28] ss:$8 sps:$4 sm:$0xff]  }
  0x45   : > { %2640 = vmatpush3.bf16.msra.mxu0 %v2900_v51  ;;  %2625 = vmatprep.mubr.msk.bf16.mxu0 %vm533_vm6, %v2434_v16  ;;  %v2988_v30 = vrot.slane %v402_v22, 7  ;;  %v1210_v51 = vld [vmem:[#allocation2 + $0x14] sm:$0x1]  ;;  %v1227_v33 = vshll.u32 %v1207_v26, 16  ;;  %v1233_v37 = vshll.u32 %v1208_v27, 16  ;;  %v2435_v38 = vcombine.low %v942_v18, %v946_v21  ;;  %v2999_v61 = vld [vmem:[%s3230_s3 + $0x38] sm:$0xff]  }
  0x46   : > { %2659 = vmatprep.subr.bf16.mxu0 %v2971_v11  ;;  %2616 = vmatmul.mubr.msk.bf16.gmra.mrb[8].mxu1 %vm533_vm6, %v2416_v20  ;;  %v1238_v46 = vshrl.u32 %v1209_v28, 16  ;;  %v1241_v39 = vshll.u32 %v1209_v28, 16  ;;  %v1247_v40 = vshll.u32 %v1210_v51, 16  ;;  %v1226_v44 = vrot.slane %v1224_v32, 4  ;;  %v1213_v52 = vld [vmem:[#allocation2 + $0x20] sm:$0xf] }
  0x47   : > { %2631 = vmatprep.mubr.msk.bf16.mxu1 %vm533_vm6, %v2710_v19  ;;  %v407_v42 = vor.u32 %v405_v23, %v2988_v30  ;;  %v408_v43 = vrot.slane %v2988_v30, 4  ;;  %v1229_v3 = vrot.slane %v1227_v33, 5  ;;  %v1235_v47 = vrot.slane %v1233_v37, 5  ;;  %v1214_v34 = vld [vmem:[#allocation2 + $0x24] sm:$0x1] }
  0x48   : > { %v1240_v48 = vrot.slane %v1238_v46, 4  ;;  %v1243_v49 = vrot.slane %v1241_v39, 5  ;;  %v1249_v50 = vrot.slane %v1247_v40, 5  ;;  %v1252_v56 = vshrl.u32 %v1211_v41, 16  ;;  %v1215_v60 = vld [vmem:[#allocation2 + $0x28] sm:$0xf] }
  0x49   : > { %v475_v54 = vsel %vm2840_vm5, %v407_v42, %v474_v25  ;;  %v1230_v55 = vor.u32 %v1229_v3, %v1226_v44  ;;  %v1255_v35 = vshll.u32 %v1211_v41, 16  ;;  %v1261_v58 = vshll.u32 %v1212_v45, 16  ;;  %v1216_v1 = vld [vmem:[#allocation2 + $0x2c] sm:$0x1]  ;;  %v1217_v9 = vld [vmem:[#allocation2 + $0x30] sm:$0xf] }
  0x4a   : > { %476 = vst [vmem:[#allocation2 + $0x40] sm:$0xf] %v475_v54  ;;  %v1244_v57 = vor.u32 %v1243_v49, %v1240_v48  ;;  %v1266_v59 = vshrl.u32 %v1213_v52, 16  ;;  %v1269_v2 = vshll.u32 %v1213_v52, 16  ;;  %v1254_v5 = vrot.slane %v1252_v56, 4 }
  0x4b   : > { %v1231_v62 = vrot.slane %v1230_v55, 4  ;;  %v1257_v63 = vrot.slane %v1255_v35, 5  ;;  %v1275_v0 = vshll.u32 %v1214_v34, 16  ;;  %v1263_v6 = vrot.slane %v1261_v58, 5  ;;  %v477_v15 = vld [vmem:[#allocation2 + $0x44] sm:$0x1] }
  0x4c   : > { %2626 = vmatmul.mubr.msk.bf16.gmra.mrb[8].mxu0 %vm533_vm6, %v2435_v38  ;;  %v1245_v4 = vrot.slane %v1244_v57, 4  ;;  %v1268_v7 = vrot.slane %v1266_v59, 4  ;;  %v1271_v8 = vrot.slane %v1269_v2, 5  ;;  %v1280_v14 = vshrl.u32 %v1215_v60, 16  ;;  %v1218_v19 = vld [vmem:[#allocation2 + $0x34] sm:$0x1] }
  0x4d   : > { %v1236_v10 = vsel %vm2918_vm13, %v1231_v62, %v1235_v47  ;;  %v1258_v12 = vor.u32 %v1257_v63, %v1254_v5  ;;  %v1277_v13 = vrot.slane %v1275_v0, 5  ;;  %v1283_v20 = vshll.u32 %v1215_v60, 16  ;;  %v1219_v22 = vld [vmem:[#allocation2 + $0x38] sm:$0xf]  ;;  %v1220_v28 = vld [vmem:[#allocation2 + $0x3c] sm:$0x1] }
  0x4e   : > { %2632 = vmatmul.mubr.msk.bf16.vlgmr.msra.gmra.mrb[12].mxu1 %vm533_vm6, %v2711_v36  ;;  %v1250_v16 = vsel %vm2918_vm13, %v1245_v4, %v1249_v50  ;;  %v1272_v18 = vor.u32 %v1271_v8, %v1268_v7  ;;  %v1289_v21 = vshll.u32 %v1216_v1, 16  ;;  %v1282_v26 = vrot.slane %v1280_v14, 4  ;;  %v1458_v36 = vld [vmem:[#allocation2 + $0xc] sm:$0x1]  ;;  %v1459_v48 = vld [vmem:[#allocation2 + $0x10] sm:$0xe] }
  0x4f   : > { %2635 = vmatprep.mubr.msk.bf16.mxu1 %vm533_vm6, %v2713_v53  ;;  %2650 = vmatpush3.bf16.msra.mxu1 %v2949_v31  ;;  %v2454_v23 = vcombine.low %v1236_v10, %v1250_v16  ;;  %v1259_v25 = vrot.slane %v1258_v12, 4  ;;  %v1294_v27 = vshrl.u32 %v1217_v9, 16  ;;  %v1285_v32 = vrot.slane %v1283_v20, 5  ;;  %v1457_v31 = vld [vmem:[#allocation2 + $0x8] sm:$0xe] }
  0x50   : > { %2669 = vmatprep.subr.bf16.mxu1 %v2999_v61  ;;  %v1273_v51 = vrot.slane %v1272_v18, 4  ;;  %v1291_v33 = vrot.slane %v1289_v21, 5  ;;  %v1297_v37 = vshll.u32 %v1217_v9, 16  ;;  %v1303_v40 = vshll.u32 %v1218_v19, 16  ;;  %v1460_v49 = vld [vmem:[#allocation2 + $0x14] sm:$0x1] }
  0x51   : > { %v2714_v38 = vld [vmem:[#allocation2 + $0x38] ss:$8 sps:$4 sm:$0xff]   ;;  %2641 = vmatprep.mubr.msk.bf16.mxu0 %vm533_vm6, %v2454_v23  ;;  %v1264_v46 = vsel %vm2918_vm13, %v1259_v25, %v1263_v6  ;;  %v1296_v39 = vrot.slane %v1294_v27, 4  ;;  %v478_v41 = vsel %vm2856_vm7, %v408_v43, %v477_v15  ;;  %v1286_v44 = vor.u32 %v1285_v32, %v1282_v26  ;;  %v1462_v35 = vld [vmem:[#allocation2 + $0x1c] sm:$0x1] }
  0x52   : > { %v1278_v42 = vsel %vm2918_vm13, %v1273_v51, %v1277_v13  ;;  %v1299_v3 = vrot.slane %v1297_v37, 5  ;;  %479 = vst [vmem:[#allocation2 + $0x44] sm:$0x1] %v478_v41  ;;  %v1221_v45 = vld [vmem:[#allocation2 + $0x40] sm:$0xf]  ;;  %v1308_v47 = vshrl.u32 %v1219_v22, 16 }
  0x53   : > { %v2455_v50 = vcombine.low %v1264_v46, %v1278_v42  ;;  %v1305_v52 = vrot.slane %v1303_v40, 5  ;;  %v1311_v53 = vshll.u32 %v1219_v22, 16  ;;  %v1317_v54 = vshll.u32 %v1220_v28, 16  ;;  %v1461_v55 = vld [vmem:[#allocation2 + $0x18] sm:$0xe] }
  0x54   : > { %v1287_v30 = vrot.slane %v1286_v44, 4  ;;  %v1300_v43 = vor.u32 %v1299_v3, %v1296_v39  ;;  %v1310_v34 = vrot.slane %v1308_v47, 4  ;;  %v1322_v56 = vshrl.u32 %v1221_v45, 16  ;;  %v1463_v60 = vld [vmem:[#allocation2 + $0x20] sm:$0xe] }
  0x55   : > { %2642 = vmatmul.mubr.msk.bf16.vlgmr.msra.gmra.mrb[12].mxu0 %vm533_vm6, %v2455_v50  ;;  %v1313_v57 = vrot.slane %v1311_v53, 5  ;;  %v1319_v58 = vrot.slane %v1317_v54, 5  ;;  %v1325_v59 = vshll.u32 %v1221_v45, 16  ;;  %v2463_v2 = vrot.slane %v1457_v31, 9  ;;  %v1464_v1 = vld [vmem:[#allocation2 + $0x24] sm:$0x1] }
  0x56   : > { %2636 = vmatmul.mubr.msk.bf16.gmra.mrb[16].mxu1 %vm533_vm6, %v2714_v38  ;;  %v1292_v62 = vsel %vm2918_vm13, %v1287_v30, %v1291_v33  ;;  %v1301_v5 = vrot.slane %v1300_v43, 4  ;;  %2660 = vmatpush3.bf16.msra.mxu0 %v2971_v11  ;;  %v1324_v63 = vrot.slane %v1322_v56, 4  ;;  %v1491_v0 = vrot.slane %v1458_v36, 5  ;;  %v1465_v4 = vld [vmem:[#allocation2 + $0x28] sm:$0xe] }
  0x57   : > { %v1314_v6 = vor.u32 %v1313_v57, %v1310_v34  ;;  %v1327_v7 = vrot.slane %v1325_v59, 5  ;;  %v2464_v8 = vrot.slane %v1459_v48, 9  ;;  %v1495_v9 = vrot.slane %v1460_v49, 5  ;;  %v1466_v10 = vld [vmem:[#allocation2 + $0x2c] sm:$0x1]  ;;  %2679 = vmatprep.subr.bf16.mxu0 %v3021_v29 }
  0x58   : > { %v1306_v12 = vsel %vm2918_vm13, %v1301_v5, %v1305_v52  ;;  %v1492_v13 = vsel %vm2906_vm12, %v2463_v2, %v1491_v0  ;;  %v2465_v14 = vrot.slane %v1461_v55, 9  ;;  %v1499_v15 = vrot.slane %v1462_v35, 5  ;;  %v1467_v11 = vld [vmem:[#allocation2 + $0x30] sm:$0xe]  ;;  %v1468_v16 = vld [vmem:[#allocation2 + $0x34] sm:$0x1] }
  0x59   : > { %v2456_v18 = vcombine.low %v1292_v62, %v1306_v12  ;;  %v1222_v19 = vld [vmem:[#allocation2 + $0x44] sm:$0x1]  ;;  %v1315_v20 = vrot.slane %v1314_v6, 4  ;;  %v1328_v21 = vor.u32 %v1327_v7, %v1324_v63  ;;  %v1496_v22 = vsel %vm2906_vm12, %v2464_v8, %v1495_v9  ;;  %v1469_v23 = vld [vmem:[#allocation2 + $0x38] sm:$0xe] }
  0x5a   : > { %v1331_v25 = vshll.u32 %v1222_v19, 16  ;;  %v2473_v26 = vcombine.low %v1492_v13, %v1496_v22  ;;  %v1500_v27 = vsel %vm2906_vm12, %v2465_v14, %v1499_v15  ;;  %v2466_v28 = vrot.slane %v1463_v60, 9  ;;  %v1470_v51 = vld [vmem:[#allocation2 + $0x3c] sm:$0x1]  ;;  %v1471_v32 = vld [vmem:[#allocation2 + $0x40] sm:$0xe] }
  0x5b   : > { %2645 = vmatprep.mubr.msk.bf16.mxu0 %vm533_vm6, %v2456_v18  ;;  %v1320_v33 = vsel %vm2918_vm13, %v1315_v20, %v1319_v58  ;;  %v1329_v37 = vrot.slane %v1328_v21, 4  ;;  %v1503_v31 = vrot.slane %v1464_v1, 5  ;;  %v2467_v38 = vrot.slane %v1465_v4, 9  ;;  %v1472_v46 = vld [vmem:[#allocation2 + $0x44] sm:$0x1] }
  0x5c   : > { %v1333_v39 = vrot.slane %v1331_v25, 5  ;;  %2651 = vmatprep.mubr.msk.bf16.mxu1 %vm533_vm6, %v2473_v26  ;;  %v1507_v40 = vrot.slane %v1466_v10, 5  ;;  %v2468_v41 = vrot.slane %v1467_v11, 9  ;;  %v1511_v36 = vrot.slane %v1468_v16, 5  ;;  %v3041_v42 = vld [vmem:[#allocation2 + $0x48] sm:$0xf] }
  0x5d   : > { %v1504_v44 = vsel %vm2906_vm12, %v2466_v28, %v1503_v31  ;;  %v2469_v3 = vrot.slane %v1469_v23, 9  ;;  %v1515_v45 = vrot.slane %v1470_v51, 5  ;;  %v2470_v47 = vrot.slane %v1471_v32, 9  ;;  %v2717_v53 = vld [vmem:[#allocation2 + $0x10] ss:$8 sps:$4 sm:$0xff]  }
  0x5e   : > { %v1334_v48 = vsel %vm2918_vm13, %v1329_v37, %v1333_v39  ;;  %v2474_v49 = vcombine.low %v1500_v27, %v1504_v44  ;;  %v1508_v50 = vsel %vm2906_vm12, %v2467_v38, %v1507_v40  ;;  %v1512_v52 = vsel %vm2906_vm12, %v2468_v41, %v1511_v36  ;;  %v1782_v56 = vld [vmem:[#allocation2 + $0x10] sm:$0xf]  ;;  %v1783_v35 = vld [vmem:[#allocation2 + $0x14] sm:$0x1]  ;;  %v1784_v58 = vld [vmem:[#allocation2 + $0x18] sm:$0xf] }
  0x5f   : > { %v2457_v54 = vcombine.low %v1320_v33, %v1334_v48  ;;  %v2475_v55 = vcombine.low %v1508_v50, %v1512_v52  ;;  %v1519_v30 = vrot.slane %v1472_v46, 5  ;;  %v1516_v43 = vsel %vm2906_vm12, %v2469_v3, %v1515_v45  ;;  %v1785_v59 = vld [vmem:[#allocation2 + $0x1c] sm:$0x1]  ;;  %v2718_v62 = vld [vmem:[#allocation2 + $0x20] ss:$8 sps:$4 sm:$0xff]  }
  0x60   : > { %2652 = vmatmul.mubr.msk.bf16.vlgmr.msra.gmra.mrb[20].mxu1 %vm533_vm6, %v2474_v49  ;;  %v1897_v57 = vshrl.u32 %v3041_v42, 16  ;;  %v1799_v2 = vshrl.u32 %v1782_v56, 16  ;;  %v1802_v60 = vshll.u32 %v1782_v56, 16  ;;  %v1808_v5 = vshll.u32 %v1783_v35, 16  ;;  %v1786_v4 = vld [vmem:[#allocation2 + $0x20] sm:$0xf] }
  0x61   : > { %2646 = vmatmul.mubr.msk.bf16.gmra.mrb[16].mxu0 %vm533_vm6, %v2457_v54  ;;  %2655 = vmatprep.mubr.msk.bf16.mxu1 %vm533_vm6, %v2475_v55  ;;  %v1520_v34 = vsel %vm2906_vm12, %v2470_v47, %v1519_v30  ;;  %v1813_v63 = vshrl.u32 %v1784_v58, 16  ;;  %v1816_v0 = vshll.u32 %v1784_v58, 16  ;;  %v1822_v1 = vshll.u32 %v1785_v59, 16  ;;  %v2720_v7 = vld [vmem:[#allocation2 + $0x30] ss:$8 sps:$4 sm:$0xff]  }
  0x62   : > { %2670 = vmatpush3.bf16.msra.mxu1 %v2999_v61  ;;  %2661 = vmatprep.mubr.msk.bf16.mxu0 %vm533_vm6, %v2717_v53  ;;  %v2476_v6 = vcombine.low %v1516_v43, %v1520_v34  ;;  %v1801_v8 = vrot.slane %v1799_v2, 4  ;;  %v1804_v9 = vrot.slane %v1802_v60, 5  ;;  %v1787_v10 = vld [vmem:[#allocation2 + $0x24] sm:$0x1]  ;;  %v1788_v12 = vld [vmem:[#allocation2 + $0x28] sm:$0xf] }
  0x63   : > { %v1810_v13 = vrot.slane %v1808_v5, 5  ;;  %v1815_v61 = vrot.slane %v1813_v63, 4  ;;  %v1818_v14 = vrot.slane %v1816_v0, 5  ;;  %v1824_v15 = vrot.slane %v1822_v1, 5  ;;  %v1789_v11 = vld [vmem:[#allocation2 + $0x2c] sm:$0x1] }
  0x64   : > { %v1805_v16 = vor.u32 %v1804_v9, %v1801_v8  ;;  %v1827_v18 = vshrl.u32 %v1786_v4, 16  ;;  %v1830_v19 = vshll.u32 %v1786_v4, 16  ;;  %v1836_v20 = vshll.u32 %v1787_v10, 16  ;;  %v1790_v21 = vld [vmem:[#allocation2 + $0x30] sm:$0xf] }
  0x65   : > { %v1819_v22 = vor.u32 %v1818_v14, %v1815_v61  ;;  %v1841_v23 = vshrl.u32 %v1788_v12, 16  ;;  %v1844_v25 = vshll.u32 %v1788_v12, 16  ;;  %v1850_v26 = vshll.u32 %v1789_v11, 16  ;;  %v1791_v27 = vld [vmem:[#allocation2 + $0x34] sm:$0x1] }
  0x66   : > { %v1806_v28 = vrot.slane %v1805_v16, 4  ;;  %v1829_v51 = vrot.slane %v1827_v18, 4  ;;  %v1832_v32 = vrot.slane %v1830_v19, 5  ;;  %v1838_v33 = vrot.slane %v1836_v20, 5  ;;  %v1792_v37 = vld [vmem:[#allocation2 + $0x38] sm:$0xf] }
  0x67   : > { %v1820_v31 = vrot.slane %v1819_v22, 4  ;;  %v1843_v38 = vrot.slane %v1841_v23, 4  ;;  %v1846_v46 = vrot.slane %v1844_v25, 5  ;;  %v1852_v39 = vrot.slane %v1850_v26, 5  ;;  %v2721_v3 = vld [vmem:[#allocation2 + $0x40] ss:$8 sps:$4 sm:$0xff]  }
  0x68   : > { %2656 = vmatmul.mubr.msk.bf16.gmra.mrb[24].mxu1 %vm533_vm6, %v2476_v6  ;;  %v1811_v40 = vsel %vm2918_vm13, %v1806_v28, %v1810_v13  ;;  %v1833_v41 = vor.u32 %v1832_v32, %v1829_v51  ;;  %v1855_v36 = vshrl.u32 %v1790_v21, 16  ;;  %v1858_v44 = vshll.u32 %v1790_v21, 16  ;;  %v1793_v48 = vld [vmem:[#allocation2 + $0x3c] sm:$0x1]  ;;  %v1794_v52 = vld [vmem:[#allocation2 + $0x40] sm:$0xf] }
  0x69   : > { %2662 = vmatmul.mubr.msk.bf16.vlgmr.msra.gmra.mrb[20].mxu0 %vm533_vm6, %v2718_v62  ;;  %v1825_v45 = vsel %vm2918_vm13, %v1820_v31, %v1824_v15  ;;  %v1847_v47 = vor.u32 %v1846_v46, %v1843_v38  ;;  %v1864_v49 = vshll.u32 %v1791_v27, 16  ;;  %v1869_v50 = vshrl.u32 %v1792_v37, 16  ;;  %v1797_v58 = vld [vmem:[#allocation2 + $0x4c] sm:$0x1]  ;;  %v2032_v59 = vld [vmem:[#allocation2 + $0x10] sm:$0xe] }
  0x6a   : > { %2665 = vmatprep.mubr.msk.bf16.mxu0 %vm533_vm6, %v2720_v7  ;;  %2680 = vmatpush3.bf16.msra.mxu0 %v3021_v29  ;;  %v2495_v53 = vcombine.low %v1811_v40, %v1825_v45  ;;  %v1834_v54 = vrot.slane %v1833_v41, 4  ;;  %v1857_v55 = vrot.slane %v1855_v36, 4  ;;  %v1860_v30 = vrot.slane %v1858_v44, 5  ;;  %v1795_v29 = vld [vmem:[#allocation2 + $0x44] sm:$0x1] }
  0x6b   : > { %v1848_v43 = vrot.slane %v1847_v47, 4  ;;  %v1866_v34 = vrot.slane %v1864_v49, 5  ;;  %v1871_v56 = vrot.slane %v1869_v50, 4  ;;  %v1872_v35 = vshll.u32 %v1792_v37, 16  ;;  %v2033_v63 = vld [vmem:[#allocation2 + $0x14] sm:$0x1] }
  0x6c   : > { %2671 = vmatprep.mubr.msk.bf16.mxu1 %vm533_vm6, %v2495_v53  ;;  %v1839_v2 = vsel %vm2918_vm13, %v1834_v54, %v1838_v33  ;;  %v1861_v60 = vor.u32 %v1860_v30, %v1857_v55  ;;  %v1878_v62 = vshll.u32 %v1793_v48, 16  ;;  %v1883_v5 = vshrl.u32 %v1794_v52, 16  ;;  %v2034_v0 = vld [vmem:[#allocation2 + $0x18] sm:$0xe]  ;;  %v2035_v8 = vld [vmem:[#allocation2 + $0x1c] sm:$0x1] }
  0x6d   : > { %v1853_v1 = vsel %vm2918_vm13, %v1848_v43, %v1852_v39  ;;  %v1874_v4 = vrot.slane %v1872_v35, 5  ;;  %v1886_v6 = vshll.u32 %v1794_v52, 16  ;;  %v1892_v7 = vshll.u32 %v1795_v29, 16  ;;  %v2036_v9 = vld [vmem:[#allocation2 + $0x20] sm:$0xe] }
  0x6e   : > { %v2496_v10 = vcombine.low %v1839_v2, %v1853_v1  ;;  %v1862_v12 = vrot.slane %v1861_v60, 4  ;;  %v1880_v13 = vrot.slane %v1878_v62, 5  ;;  %v1885_v61 = vrot.slane %v1883_v5, 4  ;;  %v2037_v14 = vld [vmem:[#allocation2 + $0x24] sm:$0x1] }
  0x6f   : > { %v1875_v15 = vor.u32 %v1874_v4, %v1871_v56  ;;  %v1888_v11 = vrot.slane %v1886_v6, 5  ;;  %v1894_v16 = vrot.slane %v1892_v7, 5  ;;  %v1899_v18 = vrot.slane %v1897_v57, 4  ;;  %v2038_v19 = vld [vmem:[#allocation2 + $0x28] sm:$0xe] }
  0x70   : > { %2672 = vmatmul.mubr.msk.bf16.vlgmr.msra.gmra.mrb[28].mxu1 %vm533_vm6, %v2496_v10  ;;  %v1867_v20 = vsel %vm2918_vm13, %v1862_v12, %v1866_v34  ;;  %v1900_v21 = vshll.u32 %v3041_v42, 16  ;;  %v1906_v22 = vshll.u32 %v1797_v58, 16  ;;  %v2504_v23 = vrot.slane %v2032_v59, 9  ;;  %v2039_v25 = vld [vmem:[#allocation2 + $0x2c] sm:$0x1]  ;;  %v497_v10 = vld [vmem:[#allocation3] sm:$0xff] }
  0x71   : > { %2666 = vmatmul.mubr.msk.bf16.gmra.mrb[24].mxu0 %vm533_vm6, %v2721_v3  ;;  %v1876_v26 = vrot.slane %v1875_v15, 4  ;;  %v1889_v27 = vor.u32 %v1888_v11, %v1885_v61  ;;  %v2066_v28 = vrot.slane %v2033_v63, 5  ;;  %v2505_v51 = vrot.slane %v2034_v0, 9  ;;  %v2040_v32 = vld [vmem:[#allocation2 + $0x30] sm:$0xe]  ;;  %v498_v11 = vld [vmem:[#allocation3 + $0x8] sm:$0xff] }
  0x72   : > { %v1902_v33 = vrot.slane %v1900_v21, 5  ;;  %v1908_v37 = vrot.slane %v1906_v22, 5  ;;  %v2070_v31 = vrot.slane %v2035_v8, 5  ;;  %v2506_v57 = vrot.slane %v2036_v9, 9  ;;  %v2041_v38 = vld [vmem:[#allocation2 + $0x34] sm:$0x1] }
  0x73   : > { %v1881_v46 = vsel %vm2918_vm13, %v1876_v26, %v1880_v13  ;;  %v1890_v39 = vrot.slane %v1889_v27, 4  ;;  %v2067_v42 = vsel %vm2906_vm12, %v2504_v23, %v2066_v28  ;;  %v2074_v40 = vrot.slane %v2037_v14, 5  ;;  %v2042_v41 = vld [vmem:[#allocation2 + $0x38] sm:$0xe]  ;;  %v2043_v36 = vld [vmem:[#allocation2 + $0x3c] sm:$0x1] }
  0x74   : > { %v2497_v44 = vcombine.low %v1867_v20, %v1881_v46  ;;  %v1903_v3 = vor.u32 %v1902_v33, %v1899_v18  ;;  %v2071_v45 = vsel %vm2906_vm12, %v2505_v51, %v2070_v31  ;;  %v2507_v47 = vrot.slane %v2038_v19, 9  ;;  %v2044_v48 = vld [vmem:[#allocation2 + $0x40] sm:$0xe]  ;;  %v2045_v49 = vld [vmem:[#allocation2 + $0x44] sm:$0x1]  ;;  %v500_v13 = vld [vmem:[#allocation3 + $0x18] sm:$0xff] }
  0x75   : > { %v1895_v50 = vsel %vm2918_vm13, %v1890_v39, %v1894_v16  ;;  %v2514_v52 = vcombine.low %v2067_v42, %v2071_v45  ;;  %v2075_v53 = vsel %vm2906_vm12, %v2506_v57, %v2074_v40  ;;  %v2078_v54 = vrot.slane %v2039_v25, 5  ;;  %v2046_v55 = vld [vmem:[#allocation2 + $0x48] sm:$0xe]  ;;  %v2047_v56 = vld [vmem:[#allocation2 + $0x4c] sm:$0x1]  ;;  %v499_v9 = vld [vmem:[#allocation3 + $0x10] sm:$0xff] }
  0x76   : > { %2675 = vmatprep.mubr.msk.bf16.mxu1 %vm533_vm6, %v2497_v44  ;;  %v1904_v30 = vrot.slane %v1903_v3, 4  ;;  %v2508_v29 = vrot.slane %v2040_v32, 9  ;;  %v2082_v43 = vrot.slane %v2041_v38, 5  ;;  %v2509_v34 = vrot.slane %v2042_v41, 9  ;;  %v503_v14 = vld [vmem:[#allocation3 + $0x30] sm:$0xff]  ;;  %v501_v18 = vld [vmem:[#allocation3 + $0x20] sm:$0xff] }
  0x77   : > { %2681 = vmatprep.mubr.msk.bf16.mxu0 %vm533_vm6, %v2514_v52  ;;  %v2079_v35 = vsel %vm2906_vm12, %v2507_v47, %v2078_v54  ;;  %v2086_v58 = vrot.slane %v2043_v36, 5  ;;  %v2510_v59 = vrot.slane %v2044_v48, 9  ;;  %v2090_v2 = vrot.slane %v2045_v49, 5  ;;  %v504_v21 = vld [vmem:[#allocation3 + $0x38] sm:$0xff]  ;;  %v502_v27 = vld [vmem:[#allocation3 + $0x28] sm:$0xff] }
  0x78   : > { %v1909_v60 = vsel %vm2918_vm13, %v1904_v30, %v1908_v37  ;;  %v2515_v62 = vcombine.low %v2075_v53, %v2079_v35  ;;  %v2083_v5 = vsel %vm2906_vm12, %v2508_v29, %v2082_v43  ;;  %v2511_v63 = vrot.slane %v2046_v55, 9 }
  0x79   : > { %v2498_v0 = vcombine.low %v1895_v50, %v1909_v60  ;;  %v2087_v1 = vsel %vm2906_vm12, %v2509_v34, %v2086_v58  ;;  %v2094_v4 = vrot.slane %v2047_v56, 5  ;;  %v2091_v7 = vsel %vm2906_vm12, %v2510_v59, %v2090_v2 }
  0x7a   : > { %2682 = vmatmul.mubr.msk.bf16.vlgmr.msra.gmra.mrb[28].mxu0 %vm533_vm6, %v2515_v62  ;;  %v2516_v6 = vcombine.low %v2083_v5, %v2087_v1  ;;  %vm2264_vm15 = vcmask 57344  }
  0x7b   : > { %2676 = vmatmul.mubr.msk.bf16.gmra.mrb[32].mxu1 %vm533_vm6, %v2498_v0  ;;  %v2095_v24 = vsel %vm2906_vm12, %v2511_v63, %v2094_v4 }
  0x7c   : > { %2685 = vmatprep.mubr.msk.bf16.mxu0 %vm533_vm6, %v2516_v6  ;;  %v2517_v8 = vcombine.low %v2091_v7, %v2095_v24 }
  0x82   : > { %2686 = vmatmul.mubr.msk.bf16.gmra.mrb[32].mxu0 %vm533_vm6, %v2517_v8 }
 0x101   : > { %v2603_v12 = vpop.f32.mrb[0].mxu0 }
 0x102   : > { %v613_v61 = vadd.f32 %v2603_v12, %v499_v9  ;;  %v580_v15 = vpop.f32.mrb[1].mxu0 }
 0x103   : > { %v611_v16 = vadd.f32 %v580_v15, %v497_v10  ;;  %v2604_v19 = vpop.f32.mrb[2].mxu0 }
 0x104   : > { %621 = vst.msk [vmem:[#allocation3 + $0x10] sm:$0xff] %vm480_vm2, %v613_v61  ;;  %v2607_v17 = vpop.f32.mrb[0].mxu1  ;;  %v614_v20 = vadd.f32 %v2604_v19, %v500_v13  ;;  %v583_v22 = vpop.f32.mrb[3].mxu0 }
 0x105   : > { %v617_v23 = vadd.f32 %v2607_v17, %v503_v14  ;;  %619 = vst.msk [vmem:[#allocation3] sm:$0xff] %vm480_vm2, %v611_v16  ;;  %v596_v25 = vpop.f32.mrb[1].mxu1  ;;  %v612_v26 = vadd.f32 %v583_v22, %v498_v11 }
 0x106   : > { %v615_v28 = vadd.f32 %v596_v25, %v501_v18  ;;  %622 = vst.msk [vmem:[#allocation3 + $0x18] sm:$0xff] %vm480_vm2, %v614_v20  ;;  %v2608_v51 = vpop.f32.mrb[2].mxu1 }
 0x107   : > { %625 = vst.msk [vmem:[#allocation3 + $0x30] sm:$0xff] %vm480_vm2, %v617_v23  ;;  %v618_v32 = vadd.f32 %v2608_v51, %v504_v21  ;;  %620 = vst.msk [vmem:[#allocation3 + $0x8] sm:$0xff] %vm480_vm2, %v612_v26  ;;  %v599_v33 = vpop.f32.mrb[3].mxu1 }
 0x108   : > { %623 = vst.msk [vmem:[#allocation3 + $0x20] sm:$0xff] %vm480_vm2, %v615_v28  ;;  %v616_v37 = vadd.f32 %v599_v33, %v502_v27 }
 0x109   : > { %626 = vst.msk [vmem:[#allocation3 + $0x38] sm:$0xff] %vm480_vm2, %v618_v32 }
 0x10a   : > { %624 = vst.msk [vmem:[#allocation3 + $0x28] sm:$0xff] %vm480_vm2, %v616_v37 }
 0x10b   : > { %v760_v31 = vld [vmem:[#allocation3 + $0x10] sm:$0xff] }
 0x10c   : > { %v758_v57 = vld [vmem:[#allocation3] sm:$0xff] }
 0x10d   : > { %v761_v46 = vld [vmem:[#allocation3 + $0x18] sm:$0xff] }
 0x10e   : > { %v2613_v38 = vpop.f32.mrb[4].mxu1  ;;  %v759_v40 = vld [vmem:[#allocation3 + $0x8] sm:$0xff]  ;;  %v764_v52 = vld [vmem:[#allocation3 + $0x30] sm:$0xff] }
 0x10f   : > { %v866_v39 = vadd.f32 %v2613_v38, %v760_v31  ;;  %v833_v42 = vpop.f32.mrb[5].mxu1  ;;  %v762_v43 = vld [vmem:[#allocation3 + $0x20] sm:$0xff] }
 0x110   : > { %v864_v41 = vadd.f32 %v833_v42, %v758_v57  ;;  %v2614_v36 = vpop.f32.mrb[6].mxu1  ;;  %v765_v59 = vld [vmem:[#allocation3 + $0x38] sm:$0xff] }
 0x111   : > { %874 = vst.msk [vmem:[#allocation3 + $0x10] sm:$0xff] %vm480_vm2, %v866_v39  ;;  %v867_v44 = vadd.f32 %v2614_v36, %v761_v46  ;;  %v836_v3 = vpop.f32.mrb[7].mxu1  ;;  %v763_v63 = vld [vmem:[#allocation3 + $0x28] sm:$0xff] }
 0x112   : > { %872 = vst.msk [vmem:[#allocation3] sm:$0xff] %vm480_vm2, %v864_v41  ;;  %v865_v45 = vadd.f32 %v836_v3, %v759_v40 }
 0x113   : > { %875 = vst.msk [vmem:[#allocation3 + $0x18] sm:$0xff] %vm480_vm2, %v867_v44 }
 0x114   : > { %873 = vst.msk [vmem:[#allocation3 + $0x8] sm:$0xff] %vm480_vm2, %v865_v45 }
 0x117   : > { %v2623_v47 = vpop.f32.mrb[4].mxu0 }
 0x118   : > { %v1022_v48 = vpop.f32.mrb[5].mxu0  ;;  %v949_v49 = vld [vmem:[#allocation3 + $0x10] sm:$0xff] }
 0x119   : > { %v2624_v50 = vpop.f32.mrb[6].mxu0  ;;  %v2617_v53 = vpop.f32.mrb[8].mxu1  ;;  %v1055_v54 = vadd.f32 %v2623_v47, %v949_v49  ;;  %v947_v55 = vld [vmem:[#allocation3] sm:$0xff] }
 0x11a   : > { %v1025_v30 = vpop.f32.mrb[7].mxu0  ;;  %v870_v29 = vadd.f32 %v2617_v53, %v764_v52  ;;  %v849_v34 = vpop.f32.mrb[9].mxu1  ;;  %v1053_v56 = vadd.f32 %v1022_v48, %v947_v55  ;;  %v950_v35 = vld [vmem:[#allocation3 + $0x18] sm:$0xff] }
 0x11b   : > { %1063 = vst.msk [vmem:[#allocation3 + $0x10] sm:$0xff] %vm480_vm2, %v1055_v54  ;;  %v868_v58 = vadd.f32 %v849_v34, %v762_v43  ;;  %v2618_v2 = vpop.f32.mrb[10].mxu1  ;;  %v1056_v60 = vadd.f32 %v2624_v50, %v950_v35  ;;  %v948_v62 = vld [vmem:[#allocation3 + $0x8] sm:$0xff] }
 0x11c   : > { %878 = vst.msk [vmem:[#allocation3 + $0x30] sm:$0xff] %vm480_vm2, %v870_v29  ;;  %1061 = vst.msk [vmem:[#allocation3] sm:$0xff] %vm480_vm2, %v1053_v56  ;;  %v871_v5 = vadd.f32 %v2618_v2, %v765_v59  ;;  %v852_v0 = vpop.f32.mrb[11].mxu1  ;;  %v1054_v1 = vadd.f32 %v1025_v30, %v948_v62 }
 0x11d   : > { %876 = vst.msk [vmem:[#allocation3 + $0x20] sm:$0xff] %vm480_vm2, %v868_v58  ;;  %1064 = vst.msk [vmem:[#allocation3 + $0x18] sm:$0xff] %vm480_vm2, %v1056_v60  ;;  %v869_v4 = vadd.f32 %v852_v0, %v763_v63 }
 0x11e   : > { %879 = vst.msk [vmem:[#allocation3 + $0x38] sm:$0xff] %vm480_vm2, %v871_v5  ;;  %1062 = vst.msk [vmem:[#allocation3 + $0x8] sm:$0xff] %vm480_vm2, %v1054_v1 }
 0x11f   : > { %v2627_v6 = vpop.f32.mrb[8].mxu0  ;;  %877 = vst.msk [vmem:[#allocation3 + $0x28] sm:$0xff] %vm480_vm2, %v869_v4 }
 0x120   : > { %v1038_v7 = vpop.f32.mrb[9].mxu0 }
 0x121   : > { %v2628_v24 = vpop.f32.mrb[10].mxu0  ;;  %v2633_v8 = vpop.f32.mrb[12].mxu1 }
 0x122   : > { %v1041_v9 = vpop.f32.mrb[11].mxu0  ;;  %v1079_v10 = vld [vmem:[#allocation3 + $0x10] sm:$0xff]  ;;  %v1160_v12 = vpop.f32.mrb[13].mxu1 }
 0x123   : > { %v953_v13 = vld [vmem:[#allocation3 + $0x30] sm:$0xff]  ;;  %v1193_v61 = vadd.f32 %v2633_v8, %v1079_v10  ;;  %v1077_v14 = vld [vmem:[#allocation3] sm:$0xff]  ;;  %v2634_v15 = vpop.f32.mrb[14].mxu1 }
 0x124   : > { %v1059_v11 = vadd.f32 %v2627_v6, %v953_v13  ;;  %v951_v16 = vld [vmem:[#allocation3 + $0x20] sm:$0xff]  ;;  %v1191_v18 = vadd.f32 %v1160_v12, %v1077_v14  ;;  %v1080_v19 = vld [vmem:[#allocation3 + $0x18] sm:$0xff]  ;;  %v1163_v17 = vpop.f32.mrb[15].mxu1 }
 0x125   : > { %v1057_v20 = vadd.f32 %v1038_v7, %v951_v16  ;;  %v954_v21 = vld [vmem:[#allocation3 + $0x38] sm:$0xff]  ;;  %1201 = vst.msk [vmem:[#allocation3 + $0x10] sm:$0xff] %vm480_vm2, %v1193_v61  ;;  %v1194_v22 = vadd.f32 %v2634_v15, %v1080_v19  ;;  %v1078_v23 = vld [vmem:[#allocation3 + $0x8] sm:$0xff] }
 0x126   : > { %1067 = vst.msk [vmem:[#allocation3 + $0x30] sm:$0xff] %vm480_vm2, %v1059_v11  ;;  %v1060_v25 = vadd.f32 %v2628_v24, %v954_v21  ;;  %v952_v26 = vld [vmem:[#allocation3 + $0x28] sm:$0xff]  ;;  %1199 = vst.msk [vmem:[#allocation3] sm:$0xff] %vm480_vm2, %v1191_v18  ;;  %v1192_v27 = vadd.f32 %v1163_v17, %v1078_v23 }
 0x127   : > { %1065 = vst.msk [vmem:[#allocation3 + $0x20] sm:$0xff] %vm480_vm2, %v1057_v20  ;;  %v1058_v28 = vadd.f32 %v1041_v9, %v952_v26  ;;  %1202 = vst.msk [vmem:[#allocation3 + $0x18] sm:$0xff] %vm480_vm2, %v1194_v22 }
 0x128   : > { %1068 = vst.msk [vmem:[#allocation3 + $0x38] sm:$0xff] %vm480_vm2, %v1060_v25  ;;  %1200 = vst.msk [vmem:[#allocation3 + $0x8] sm:$0xff] %vm480_vm2, %v1192_v27  ;;  %v2643_v32 = vpop.f32.mrb[12].mxu0 }
 0x129   : > { %1066 = vst.msk [vmem:[#allocation3 + $0x28] sm:$0xff] %vm480_vm2, %v1058_v28  ;;  %v2637_v51 = vpop.f32.mrb[16].mxu1  ;;  %v1410_v37 = vpop.f32.mrb[13].mxu0 }
 0x12a   : > { %v1176_v33 = vpop.f32.mrb[17].mxu1  ;;  %v2644_v57 = vpop.f32.mrb[14].mxu0 }
 0x12b   : > { %v2638_v31 = vpop.f32.mrb[18].mxu1  ;;  %v1413_v39 = vpop.f32.mrb[15].mxu0 }
 0x12c   : > { %v1337_v38 = vld [vmem:[#allocation3 + $0x10] sm:$0xff]  ;;  %v1179_v46 = vpop.f32.mrb[19].mxu1 }
 0x12d   : > { %v1083_v42 = vld [vmem:[#allocation3 + $0x30] sm:$0xff]  ;;  %v1443_v40 = vadd.f32 %v2643_v32, %v1337_v38  ;;  %v1335_v41 = vld [vmem:[#allocation3] sm:$0xff] }
 0x12e   : > { %v1197_v36 = vadd.f32 %v2637_v51, %v1083_v42  ;;  %v1081_v44 = vld [vmem:[#allocation3 + $0x20] sm:$0xff]  ;;  %v1441_v3 = vadd.f32 %v1410_v37, %v1335_v41  ;;  %v1338_v45 = vld [vmem:[#allocation3 + $0x18] sm:$0xff] }
 0x12f   : > { %v1195_v47 = vadd.f32 %v1176_v33, %v1081_v44  ;;  %v1084_v48 = vld [vmem:[#allocation3 + $0x38] sm:$0xff]  ;;  %1451 = vst.msk [vmem:[#allocation3 + $0x10] sm:$0xff] %vm480_vm2, %v1443_v40  ;;  %v1444_v49 = vadd.f32 %v2644_v57, %v1338_v45  ;;  %v1336_v50 = vld [vmem:[#allocation3 + $0x8] sm:$0xff] }
 0x130   : > { %1205 = vst.msk [vmem:[#allocation3 + $0x30] sm:$0xff] %vm480_vm2, %v1197_v36  ;;  %v1198_v52 = vadd.f32 %v2638_v31, %v1084_v48  ;;  %v1082_v53 = vld [vmem:[#allocation3 + $0x28] sm:$0xff]  ;;  %1449 = vst.msk [vmem:[#allocation3] sm:$0xff] %vm480_vm2, %v1441_v3  ;;  %v1442_v54 = vadd.f32 %v1413_v39, %v1336_v50 }
 0x131   : > { %1203 = vst.msk [vmem:[#allocation3 + $0x20] sm:$0xff] %vm480_vm2, %v1195_v47  ;;  %v1196_v55 = vadd.f32 %v1179_v46, %v1082_v53  ;;  %1452 = vst.msk [vmem:[#allocation3 + $0x18] sm:$0xff] %vm480_vm2, %v1444_v49 }
 0x132   : > { %1206 = vst.msk [vmem:[#allocation3 + $0x38] sm:$0xff] %vm480_vm2, %v1198_v52  ;;  %1450 = vst.msk [vmem:[#allocation3 + $0x8] sm:$0xff] %vm480_vm2, %v1442_v54 }
 0x133   : > { %1204 = vst.msk [vmem:[#allocation3 + $0x28] sm:$0xff] %vm480_vm2, %v1196_v55  ;;  %v2653_v30 = vpop.f32.mrb[20].mxu1 }
 0x134   : > { %v2647_v29 = vpop.f32.mrb[16].mxu0  ;;  %v1596_v43 = vpop.f32.mrb[21].mxu1 }
 0x135   : > { %v1426_v34 = vpop.f32.mrb[17].mxu0  ;;  %v2654_v35 = vpop.f32.mrb[22].mxu1 }
 0x136   : > { %v1523_v56 = vld [vmem:[#allocation3 + $0x10] sm:$0xff]  ;;  %v2648_v59 = vpop.f32.mrb[18].mxu0  ;;  %v1599_v62 = vpop.f32.mrb[23].mxu1 }
 0x137   : > { %v1341_v58 = vld [vmem:[#allocation3 + $0x30] sm:$0xff]  ;;  %v1629_v2 = vadd.f32 %v2653_v30, %v1523_v56  ;;  %v1521_v60 = vld [vmem:[#allocation3] sm:$0xff]  ;;  %v1429_v0 = vpop.f32.mrb[19].mxu0 }
 0x138   : > { %v1447_v5 = vadd.f32 %v2647_v29, %v1341_v58  ;;  %v1339_v63 = vld [vmem:[#allocation3 + $0x20] sm:$0xff]  ;;  %v1627_v1 = vadd.f32 %v1596_v43, %v1521_v60  ;;  %v1524_v4 = vld [vmem:[#allocation3 + $0x18] sm:$0xff] }
 0x139   : > { %v1445_v6 = vadd.f32 %v1426_v34, %v1339_v63  ;;  %v1342_v7 = vld [vmem:[#allocation3 + $0x38] sm:$0xff]  ;;  %1637 = vst.msk [vmem:[#allocation3 + $0x10] sm:$0xff] %vm480_vm2, %v1629_v2  ;;  %v1630_v24 = vadd.f32 %v2654_v35, %v1524_v4  ;;  %v1522_v8 = vld [vmem:[#allocation3 + $0x8] sm:$0xff] }
 0x13a   : > { %1455 = vst.msk [vmem:[#allocation3 + $0x30] sm:$0xff] %vm480_vm2, %v1447_v5  ;;  %v1448_v9 = vadd.f32 %v2648_v59, %v1342_v7  ;;  %v1340_v10 = vld [vmem:[#allocation3 + $0x28] sm:$0xff]  ;;  %1635 = vst.msk [vmem:[#allocation3] sm:$0xff] %vm480_vm2, %v1627_v1  ;;  %v1628_v12 = vadd.f32 %v1599_v62, %v1522_v8 }
 0x13b   : > { %1453 = vst.msk [vmem:[#allocation3 + $0x20] sm:$0xff] %vm480_vm2, %v1445_v6  ;;  %v1446_v13 = vadd.f32 %v1429_v0, %v1340_v10  ;;  %1638 = vst.msk [vmem:[#allocation3 + $0x18] sm:$0xff] %vm480_vm2, %v1630_v24  ;;  %v2657_v61 = vpop.f32.mrb[24].mxu1 }
 0x13c   : > { %1456 = vst.msk [vmem:[#allocation3 + $0x38] sm:$0xff] %vm480_vm2, %v1448_v9  ;;  %1636 = vst.msk [vmem:[#allocation3 + $0x8] sm:$0xff] %vm480_vm2, %v1628_v12  ;;  %v1612_v14 = vpop.f32.mrb[25].mxu1  ;;  %v2663_v15 = vpop.f32.mrb[20].mxu0 }
 0x13d   : > { %1454 = vst.msk [vmem:[#allocation3 + $0x28] sm:$0xff] %vm480_vm2, %v1446_v13  ;;  %v2658_v11 = vpop.f32.mrb[26].mxu1  ;;  %v1735_v16 = vpop.f32.mrb[21].mxu0 }
 0x13e   : > { %v1615_v18 = vpop.f32.mrb[27].mxu1  ;;  %v2664_v19 = vpop.f32.mrb[22].mxu0 }
 0x13f   : > { %v1738_v20 = vpop.f32.mrb[23].mxu0 }
 0x140   : > { %v1654_v17 = vld [vmem:[#allocation3 + $0x10] sm:$0xff] }
 0x141   : > { %v1527_v21 = vld [vmem:[#allocation3 + $0x30] sm:$0xff]  ;;  %v1768_v22 = vadd.f32 %v2663_v15, %v1654_v17  ;;  %v1652_v23 = vld [vmem:[#allocation3] sm:$0xff] }
 0x142   : > { %v1633_v25 = vadd.f32 %v2657_v61, %v1527_v21  ;;  %v1525_v26 = vld [vmem:[#allocation3 + $0x20] sm:$0xff]  ;;  %v1766_v27 = vadd.f32 %v1735_v16, %v1652_v23  ;;  %v1655_v28 = vld [vmem:[#allocation3 + $0x18] sm:$0xff] }
 0x143   : > { %v1631_v51 = vadd.f32 %v1612_v14, %v1525_v26  ;;  %v1528_v32 = vld [vmem:[#allocation3 + $0x38] sm:$0xff]  ;;  %1776 = vst.msk [vmem:[#allocation3 + $0x10] sm:$0xff] %vm480_vm2, %v1768_v22  ;;  %v1769_v33 = vadd.f32 %v2664_v19, %v1655_v28  ;;  %v1653_v37 = vld [vmem:[#allocation3 + $0x8] sm:$0xff]  ;;  %v2673_v40 = vpop.f32.mrb[28].mxu1 }
 0x144   : > { %1641 = vst.msk [vmem:[#allocation3 + $0x30] sm:$0xff] %vm480_vm2, %v1633_v25  ;;  %v1634_v31 = vadd.f32 %v2658_v11, %v1528_v32  ;;  %v1526_v57 = vld [vmem:[#allocation3 + $0x28] sm:$0xff]  ;;  %1774 = vst.msk [vmem:[#allocation3] sm:$0xff] %vm480_vm2, %v1766_v27  ;;  %v1767_v38 = vadd.f32 %v1738_v20, %v1653_v37  ;;  %v2667_v39 = vpop.f32.mrb[24].mxu0  ;;  %v1985_v36 = vpop.f32.mrb[29].mxu1 }
 0x145   : > { %1639 = vst.msk [vmem:[#allocation3 + $0x20] sm:$0xff] %vm480_vm2, %v1631_v51  ;;  %v1632_v46 = vadd.f32 %v1615_v18, %v1526_v57  ;;  %1777 = vst.msk [vmem:[#allocation3 + $0x18] sm:$0xff] %vm480_vm2, %v1769_v33  ;;  %v1751_v42 = vpop.f32.mrb[25].mxu0  ;;  %v2674_v3 = vpop.f32.mrb[30].mxu1 }
 0x146   : > { %1642 = vst.msk [vmem:[#allocation3 + $0x38] sm:$0xff] %vm480_vm2, %v1634_v31  ;;  %1775 = vst.msk [vmem:[#allocation3 + $0x8] sm:$0xff] %vm480_vm2, %v1767_v38  ;;  %v2668_v41 = vpop.f32.mrb[26].mxu0  ;;  %v1988_v45 = vpop.f32.mrb[31].mxu1 }
 0x147   : > { %1640 = vst.msk [vmem:[#allocation3 + $0x28] sm:$0xff] %vm480_vm2, %v1632_v46  ;;  %v1754_v44 = vpop.f32.mrb[27].mxu0 }
 0x14a   : > { %v1912_v47 = vld [vmem:[#allocation3 + $0x10] sm:$0xff] }
 0x14b   : > { %v1658_v48 = vld [vmem:[#allocation3 + $0x30] sm:$0xff]  ;;  %v2018_v49 = vadd.f32 %v2673_v40, %v1912_v47  ;;  %v1910_v50 = vld [vmem:[#allocation3] sm:$0xff] }
 0x14c   : > { %v1772_v52 = vadd.f32 %v2667_v39, %v1658_v48  ;;  %v1656_v53 = vld [vmem:[#allocation3 + $0x20] sm:$0xff]  ;;  %v2016_v54 = vadd.f32 %v1985_v36, %v1910_v50  ;;  %v1913_v55 = vld [vmem:[#allocation3 + $0x18] sm:$0xff] }
 0x14d   : > { %v1770_v30 = vadd.f32 %v1751_v42, %v1656_v53  ;;  %v1659_v29 = vld [vmem:[#allocation3 + $0x38] sm:$0xff]  ;;  %2026 = vst.msk [vmem:[#allocation3 + $0x10] sm:$0xff] %vm480_vm2, %v2018_v49  ;;  %v2019_v43 = vadd.f32 %v2674_v3, %v1913_v55  ;;  %v1911_v34 = vld [vmem:[#allocation3 + $0x8] sm:$0xff]  ;;  %v2683_v2 = vpop.f32.mrb[28].mxu0 }
 0x14e   : > { %1780 = vst.msk [vmem:[#allocation3 + $0x30] sm:$0xff] %vm480_vm2, %v1772_v52  ;;  %v1773_v56 = vadd.f32 %v2668_v41, %v1659_v29  ;;  %v1657_v35 = vld [vmem:[#allocation3 + $0x28] sm:$0xff]  ;;  %2024 = vst.msk [vmem:[#allocation3] sm:$0xff] %vm480_vm2, %v2016_v54  ;;  %v2017_v58 = vadd.f32 %v1988_v45, %v1911_v34  ;;  %v2677_v60 = vpop.f32.mrb[32].mxu1  ;;  %v2171_v62 = vpop.f32.mrb[29].mxu0 }
 0x14f   : > { %1778 = vst.msk [vmem:[#allocation3 + $0x20] sm:$0xff] %vm480_vm2, %v1770_v30  ;;  %v1771_v59 = vadd.f32 %v1754_v44, %v1657_v35  ;;  %2027 = vst.msk [vmem:[#allocation3 + $0x18] sm:$0xff] %vm480_vm2, %v2019_v43  ;;  %v2001_v5 = vpop.f32.mrb[33].mxu1  ;;  %v2684_v63 = vpop.f32.mrb[30].mxu0 }
 0x150   : > { %1781 = vst.msk [vmem:[#allocation3 + $0x38] sm:$0xff] %vm480_vm2, %v1773_v56  ;;  %2025 = vst.msk [vmem:[#allocation3 + $0x8] sm:$0xff] %vm480_vm2, %v2017_v58  ;;  %v2678_v0 = vpop.f32.mrb[34].mxu1  ;;  %v2174_v1 = vpop.f32.mrb[31].mxu0 }
 0x151   : > { %1779 = vst.msk [vmem:[#allocation3 + $0x28] sm:$0xff] %vm480_vm2, %v1771_v59  ;;  %v2004_v6 = vpop.f32.mrb[35].mxu1 }
 0x154   : > { %v2098_v4 = vld [vmem:[#allocation3 + $0x10] sm:$0xff] }
 0x155   : > { %v1916_v7 = vld [vmem:[#allocation3 + $0x30] sm:$0xff]  ;;  %v2204_v24 = vadd.f32 %v2683_v2, %v2098_v4  ;;  %v2096_v8 = vld [vmem:[#allocation3] sm:$0xff]  ;;  %v2687_v17 = vpop.f32.mrb[32].mxu0 }
 0x156   : > { %v2022_v9 = vadd.f32 %v2677_v60, %v1916_v7  ;;  %v1914_v10 = vld [vmem:[#allocation3 + $0x20] sm:$0xff]  ;;  %v2202_v12 = vadd.f32 %v2171_v62, %v2096_v8  ;;  %v2099_v13 = vld [vmem:[#allocation3 + $0x18] sm:$0xff]  ;;  %v2187_v21 = vpop.f32.mrb[33].mxu0 }
 0x157   : > { %v2020_v61 = vadd.f32 %v2001_v5, %v1914_v10  ;;  %v1917_v14 = vld [vmem:[#allocation3 + $0x38] sm:$0xff]  ;;  %2212 = vst.msk [vmem:[#allocation3 + $0x10] sm:$0xff] %vm480_vm2, %v2204_v24  ;;  %v2205_v15 = vadd.f32 %v2684_v63, %v2099_v13  ;;  %v2097_v11 = vld [vmem:[#allocation3 + $0x8] sm:$0xff]  ;;  %v2688_v22 = vpop.f32.mrb[34].mxu0 }
 0x158   : > { %2030 = vst.msk [vmem:[#allocation3 + $0x30] sm:$0xff] %vm480_vm2, %v2022_v9  ;;  %v2023_v16 = vadd.f32 %v2678_v0, %v1917_v14  ;;  %v1915_v18 = vld [vmem:[#allocation3 + $0x28] sm:$0xff]  ;;  %2210 = vst.msk [vmem:[#allocation3] sm:$0xff] %vm480_vm2, %v2202_v12  ;;  %v2203_v19 = vadd.f32 %v2174_v1, %v2097_v11  ;;  %v2190_v23 = vpop.f32.mrb[35].mxu0 }
 0x159   : > { %2028 = vst.msk [vmem:[#allocation3 + $0x20] sm:$0xff] %vm480_vm2, %v2020_v61  ;;  %v2021_v20 = vadd.f32 %v2004_v6, %v1915_v18  ;;  %2213 = vst.msk [vmem:[#allocation3 + $0x18] sm:$0xff] %vm480_vm2, %v2205_v15 }
 0x15a   : > { %2031 = vst.msk [vmem:[#allocation3 + $0x38] sm:$0xff] %vm480_vm2, %v2023_v16  ;;  %2211 = vst.msk [vmem:[#allocation3 + $0x8] sm:$0xff] %vm480_vm2, %v2203_v19 }
 0x15b   : > { %2029 = vst.msk [vmem:[#allocation3 + $0x28] sm:$0xff] %vm480_vm2, %v2021_v20 }
 0x15e   : > { %v2220_v25 = vld [vmem:[#allocation3 + $0x10] sm:$0xff] }
 0x15f   : > { %v2228_v26 = vpack.c.bf16 %v2220_v25, %v2220_v25  ;;  %v2218_v27 = vld [vmem:[#allocation3] sm:$0xff]  ;;  %v2102_v28 = vld [vmem:[#allocation3 + $0x30] sm:$0xff]  ;;  %v2268_v44 = vmul.f32 %v2220_v25, %v2220_v25  ;;  %v2246_v52 = vsel %vm480_vm2, %v2220_v25, 0.0 }
 0x160   : > { %v2226_v51 = vpack.c.bf16 %v2218_v27, %v2218_v27  ;;  %v2266_v32 = vmul.f32 %v2218_v27, %v2218_v27  ;;  %v2221_v33 = vld [vmem:[#allocation3 + $0x18] sm:$0xff]  ;;  %v2208_v37 = vadd.f32 %v2687_v17, %v2102_v28  ;;  %v2100_v31 = vld [vmem:[#allocation3 + $0x20] sm:$0xff]  ;;  %v2243_v39 = vsel %vm480_vm2, %v2218_v27, 0.0 }
 0x161   : > { %2237 = vst.msk [vmem:[%s3182_s26 + $0x8] sm:$0xf] %vm2234_vm14, %v2228_v26  ;;  %v2229_v57 = vpack.c.bf16 %v2221_v33, %v2221_v33  ;;  %v2219_v38 = vld [vmem:[#allocation3 + $0x8] sm:$0xff]  ;;  %v2103_v46 = vld [vmem:[#allocation3 + $0x38] sm:$0xff]  ;;  %v2206_v45 = vadd.f32 %v2187_v21, %v2100_v31  ;;  %v2277_v55 = vsel %vm480_vm2, %v2268_v44, 0.0  ;;  %v2269_v30 = vmul.f32 %v2221_v33, %v2221_v33 }
 0x162   : > { %2235 = vst.msk [vmem:[%s3182_s26] sm:$0xf] %vm2234_vm14, %v2226_v51  ;;  %v2227_v42 = vpack.c.bf16 %v2219_v38, %v2219_v38  ;;  %v2244_v40 = vsel %vm480_vm2, %v2219_v38, 0.0  ;;  %v2267_v41 = vmul.f32 %v2219_v38, %v2219_v38  ;;  %v2101_v36 = vld [vmem:[#allocation3 + $0x28] sm:$0xff]  ;;  %v2209_v47 = vadd.f32 %v2688_v22, %v2103_v46 }
 0x163   : > { %2216 = vst.msk [vmem:[#allocation3 + $0x30] sm:$0xff] %vm480_vm2, %v2208_v37  ;;  %v2245_v3 = vadd.f32 %v2244_v40, %v2243_v39  ;;  %v2274_v48 = vsel %vm480_vm2, %v2266_v32, 0.0  ;;  %v2207_v50 = vadd.f32 %v2190_v23, %v2101_v36  ;;  %2214 = vst.msk [vmem:[#allocation3 + $0x20] sm:$0xff] %vm480_vm2, %v2206_v45  ;;  %v2248_v43 = vsel %vm480_vm2, %v2221_v33, 0.0 }
 0x164   : > { %2238 = vst.msk [vmem:[%s3182_s26 + $0xc] sm:$0xf] %vm2234_vm14, %v2229_v57  ;;  %2236 = vst.msk [vmem:[%s3182_s26 + $0x4] sm:$0xf] %vm2234_vm14, %v2227_v42  ;;  %v2275_v49 = vsel %vm480_vm2, %v2267_v41, 0.0  ;;  %v2279_v58 = vsel %vm480_vm2, %v2269_v30, 0.0 }
 0x165   : > { %v2276_v53 = vadd.f32 %v2275_v49, %v2274_v48  ;;  %2217 = vst.msk [vmem:[#allocation3 + $0x38] sm:$0xff] %vm480_vm2, %v2209_v47  ;;  %v2247_v54 = vadd.f32 %v2246_v52, %v2245_v3  ;;  %2215 = vst.msk [vmem:[#allocation3 + $0x28] sm:$0xff] %vm480_vm2, %v2207_v50 }
 0x167   : > { %v2278_v29 = vadd.f32 %v2277_v55, %v2276_v53  ;;  %v2249_v35 = vadd.f32 %v2248_v43, %v2247_v54 }
 0x169   : > { %v2280_v2 = vadd.f32 %v2279_v58, %v2278_v29 }
 0x16a   : > { %v2224_v34 = vld [vmem:[#allocation3 + $0x30] sm:$0xff]  ;;  %v2222_v59 = vld [vmem:[#allocation3 + $0x20] sm:$0xff] }
 0x16b   : > { %v2232_v56 = vpack.c.bf16 %v2224_v34, %v2224_v34  ;;  %v2230_v62 = vpack.c.bf16 %v2222_v59, %v2222_v59  ;;  %v2250_v5 = vsel %vm480_vm2, %v2222_v59, 0.0  ;;  %v2270_v63 = vmul.f32 %v2222_v59, %v2222_v59 }
 0x16c   : > { %v2225_v60 = vld [vmem:[#allocation3 + $0x38] sm:$0xff]  ;;  %v2223_v1 = vld [vmem:[#allocation3 + $0x28] sm:$0xff]  ;;  %v2251_v4 = vadd.f32 %v2250_v5, %v2249_v35  ;;  %v2272_v7 = vmul.f32 %v2224_v34, %v2224_v34  ;;  %v2254_v13 = vsel %vm480_vm2, %v2224_v34, 0.0 }
 0x16d   : > { %2241 = vst.msk [vmem:[%s3182_s26 + $0x18] sm:$0xf] %vm2234_vm14, %v2232_v56  ;;  %v2233_v0 = vpack.c.bf16 %v2225_v60, %v2225_v60  ;;  %v2231_v6 = vpack.c.bf16 %v2223_v1, %v2223_v1  ;;  %2239 = vst.msk [vmem:[%s3182_s26 + $0x10] sm:$0xf] %vm2234_vm14, %v2230_v62  ;;  %v2281_v24 = vsel %vm480_vm2, %v2270_v63, 0.0  ;;  %v2252_v8 = vsel %vm480_vm2, %v2223_v1, 0.0 }
 0x16e   : > { %v2271_v9 = vmul.f32 %v2223_v1, %v2223_v1  ;;  %v2282_v10 = vadd.f32 %v2281_v24, %v2280_v2  ;;  %v2253_v12 = vadd.f32 %v2252_v8, %v2251_v4  ;;  %v2273_v61 = vmul.f32 %v2225_v60, %v2225_v60 }
 0x16f   : > { %2242 = vst.msk [vmem:[%s3182_s26 + $0x1c] sm:$0xf] %vm2234_vm14, %v2233_v0  ;;  %2240 = vst.msk [vmem:[%s3182_s26 + $0x14] sm:$0xf] %vm2234_vm14, %v2231_v6  ;;  %v2285_v16 = vsel %vm480_vm2, %v2272_v7, 0.0  ;;  %v2256_v18 = vsel %vm480_vm2, %v2225_v60, 0.0 }
 0x170   : > { %v2283_v14 = vsel %vm480_vm2, %v2271_v9, 0.0  ;;  %v2255_v15 = vadd.f32 %v2254_v13, %v2253_v12  ;;  %v2287_v20 = vsel %vm480_vm2, %v2273_v61, 0.0 }
 0x171   : > { %v2284_v11 = vadd.f32 %v2283_v14, %v2282_v10 }
 0x172   : > { %v2257_v19 = vadd.f32 %v2256_v18, %v2255_v15 }
 0x173   : > { %v2286_v17 = vadd.f32 %v2285_v16, %v2284_v11 }
 0x174   : > { %v2258_v21 = vrot.slane %v2257_v19, 4 }
 0x175   : > { %v2288_v22 = vadd.f32 %v2287_v20, %v2286_v17 }
 0x176   : > { %v2259_v23 = vadd.f32 %v2258_v21, %v2257_v19 }
 0x177   : > { %v2289_v25 = vrot.slane %v2288_v22, 4 }
 0x178   : > { %v2260_v26 = vrot.slane %v2259_v23, 2 }
 0x179   : > { %v2290_v27 = vadd.f32 %v2289_v25, %v2288_v22 }
 0x17a   : > { %v2261_v28 = vadd.f32 %v2260_v26, %v2259_v23 }
 0x17b   : > { %v2291_v51 = vrot.slane %v2290_v27, 2 }
 0x17c   : > { %v2262_v32 = vrot.slane %v2261_v28, 1 }
 0x17d   : > { %v2292_v33 = vadd.f32 %v2291_v51, %v2290_v27 }
 0x17e   : > { %v2263_v37 = vadd.f32 %v2262_v32, %v2261_v28 }
 0x17f   : > { %v2293_v31 = vrot.slane %v2292_v33, 1 }
 0x180   : > { %2265 = vst.msk [vmem:[%s235_s29] sm:$0x1] %vm2264_vm15, %v2263_v37 }
 0x181   : > { %v2294_v57 = vadd.f32 %v2293_v31, %v2292_v33 }
 0x183   : > { %2295 = vst.msk [vmem:[%s235_s29 + $0x1] sm:$0x1] %vm2264_vm15, %v2294_v57 }
 0x184 PF: > { %s16_s18 = sadd.s32 1, %s2728_s18  }
 0x185   : > { %p13_p4 = scmp.ge.s32.totalorder %s16_s18, 4  }
 0x187   :  { %15 = sbr.rel (!%p13_p4) target bundleno = 1 (0x1), region = 88 }

// kernel: densenet_forward.19
= control target key start
LH: loop header
LB: loop body
LE: loop exit
PB: predicated region body
PF: predicated region fallthrough
CT: control target
= control target key end

     0   :  { %s1060_s12 = smov 0   ;;  %s1233_s0 = inlined_call_operand.vmem [shape: f32[1,32], index: 0, kind: input, shape index: {}]   ;;  %s1234_s1 = inlined_call_operand.vmem [shape: f32[1,32], index: 1, kind: input, shape index: {}]   ;;  %s1235_s2 = inlined_call_operand.vmem [shape: bf16[2,8,8,32], index: 2, kind: input, shape index: {}]   ;;  %s1236_s3 = inlined_call_operand.vmem [shape: bf16[2,4,4,32], index: 3, kind: output, shape index: {}]  }
   0x1 LB: > { %s956_s13 = sadd.s32 4294967295, %s1037_s12   ;;  %p960_p0 = scmp.ge.s32.totalorder %s1037_s12, 1  ;;  %s1037_s12 = sphi %s1060_s12, %s13_s12  }
   0x2   : > { %p137_p1 = scmp.lt.s32.totalorder %s1037_s12, 3 }
   0x4   : > { %p138_p2 = pnand %p960_p0, %p137_p1 }
   0x6   : > { %141 = sbr.rel (%p138_p2) target bundleno = 90 (0x5a), region = 32 }
   0xd   : > { %p161_p3 = scmp.lt.s32.totalorder %s956_s13, 1  ;;  %v237_v0 = vlaneseq  ;;  %v1039_v1 = vmov 1983009808   ;;  %v965_v5 = vld [vmem:[%s1233_s0] ss:$0 sm:$0xff]  ;;  %vm834_vm0 = vcmask 1041409  }
   0xe   : > { %v235_v2 = vunpack.c.l.s4 %v1039_v1  ;;  %v966_v19 = vld [vmem:[%s1234_s1] ss:$0 sm:$0xff]  ;;  %vm837_vm1 = vcmask 1042434   ;;  %vm840_vm2 = vcmask 1043459   ;;  %vm896_vm3 = vcmask 254976  }
   0xf   : > { %s1249_s13 = smov (!%p161_p3, %s956_s13), 1  ;;  %v238_v3 = vshrl.u32 %v237_v0, 7 }
  0x10   : > { %s1001_s14 = sshll.u32 %s1249_s13, 5  ;;  %v236_v4 = vunpack.c.0.s8 %v235_v2  ;;  %s1002_s22 = sshll.u32 %s1249_s13, 3 }
  0x11   : > { %s165_s17 = scalar_lea.vmem %s1235_s2, %s1001_s14  ;;  %s170_s25 = scalar_lea.vmem %s1236_s3, %s1002_s22 }
  0x12   : > { %v1004_v6 = vld [vmem:[%s165_s17] sm:$0xff]   ;;  %v1019_v7 = vld [vmem:[%s165_s17 + $0x8] sm:$0xff]   ;;  %v1020_v8 = vld [vmem:[%s165_s17 + $0x10] sm:$0xff]   ;;  %v1077_v9 = vsub.s32 %v236_v4, %v238_v3 }
  0x13   : > { %v1005_v10 = vunpack.c.l.bf16 %v1004_v6  ;;  %v1006_v11 = vunpack.c.h.bf16 %v1004_v6  ;;  %v1009_v12 = vunpack.c.l.bf16 %v1019_v7  ;;  %v1010_v13 = vunpack.c.h.bf16 %v1019_v7  ;;  %v1021_v14 = vld [vmem:[%s165_s17 + $0x18] sm:$0xff]  }
  0x14   : > { %1242 = vst [vmem:[#allocation2_spill] sm:$0xff] %v1077_v9  ;;  %v1013_v15 = vunpack.c.l.bf16 %v1020_v8  ;;  %v1014_v16 = vunpack.c.h.bf16 %v1020_v8  ;;  %v1017_v17 = vunpack.c.l.bf16 %v1021_v14  ;;  %v1018_v18 = vunpack.c.h.bf16 %v1021_v14 }
  0x15   : > { %v194_v20 = vmul.f32 %v1005_v10, %v965_v5  ;;  %v195_v21 = vmul.f32 %v1006_v11, %v965_v5  ;;  %v196_v22 = vmul.f32 %v1009_v12, %v965_v5  ;;  %v197_v23 = vmul.f32 %v1010_v13, %v965_v5 }
  0x16   : > { %v198_v24 = vmul.f32 %v1013_v15, %v965_v5  ;;  %v199_v25 = vmul.f32 %v1014_v16, %v965_v5  ;;  %v200_v26 = vmul.f32 %v1017_v17, %v965_v5  ;;  %v201_v27 = vmul.f32 %v1018_v18, %v965_v5 }
  0x17   : > { %v209_v28 = vadd.f32 %v966_v19, %v194_v20  ;;  %v210_v29 = vadd.f32 %v966_v19, %v195_v21  ;;  %v211_v30 = vadd.f32 %v966_v19, %v196_v22  ;;  %v212_v31 = vadd.f32 %v966_v19, %v197_v23 }
  0x18   : > { %v213_v32 = vadd.f32 %v966_v19, %v198_v24  ;;  %v214_v33 = vadd.f32 %v966_v19, %v199_v25  ;;  %v215_v34 = vadd.f32 %v966_v19, %v200_v26  ;;  %v216_v35 = vadd.f32 %v966_v19, %v201_v27 }
  0x19   : > { %v217_v36 = vmax.f32 %v209_v28, 0.0  ;;  %v218_v37 = vmax.f32 %v210_v29, 0.0  ;;  %v219_v38 = vmax.f32 %v211_v30, 0.0  ;;  %v220_v39 = vmax.f32 %v212_v31, 0.0 }
  0x1a   : > { %v221_v40 = vmax.f32 %v213_v32, 0.0  ;;  %v222_v41 = vmax.f32 %v214_v33, 0.0  ;;  %v223_v42 = vmax.f32 %v215_v34, 0.0  ;;  %v224_v43 = vmax.f32 %v216_v35, 0.0 }
  0x1b   : > { %v233_v44 = vcombine.high %v217_v36, %v217_v36  ;;  %v240_v45 = vrot.slane %v217_v36, %v1077_v9  ;;  %v250_v46 = vcombine.high %v218_v37, %v218_v37  ;;  %v1084_v47 = vrot.slane %v218_v37, %v1077_v9 }
  0x1c   : > { %v267_v48 = vcombine.high %v219_v38, %v219_v38  ;;  %v274_v49 = vrot.slane %v219_v38, %v1077_v9  ;;  %v284_v50 = vcombine.high %v220_v39, %v220_v39  ;;  %v1088_v51 = vrot.slane %v220_v39, %v1077_v9 }
  0x1d   : > { %v247_v52 = vrot.slane %v233_v44, %v1077_v9  ;;  %v248_v53 = vcombine.high %v240_v45, %v240_v45  ;;  %v1092_v54 = vrot.slane %v250_v46, %v1077_v9  ;;  %v1096_v55 = vcombine.high %v1084_v47, %v1084_v47 }
  0x1e   : > { %v281_v56 = vrot.slane %v267_v48, %v1077_v9  ;;  %v282_v57 = vcombine.high %v274_v49, %v274_v49  ;;  %v1100_v58 = vrot.slane %v284_v50, %v1077_v9  ;;  %v1104_v59 = vcombine.high %v1088_v51, %v1088_v51 }
  0x1f   : > { %v249_v60 = vcombine.high %v247_v52, %v247_v52  ;;  %v1108_v61 = vcombine.high %v1092_v54, %v1092_v54  ;;  %v301_v62 = vcombine.high %v221_v40, %v221_v40  ;;  %v308_v63 = vrot.slane %v221_v40, %v1077_v9 }
  0x20   : > { %v283_v0 = vcombine.high %v281_v56, %v281_v56  ;;  %v1113_v1 = vcombine.high %v1100_v58, %v1100_v58  ;;  %v318_v2 = vcombine.high %v222_v41, %v222_v41  ;;  %v1116_v3 = vrot.slane %v222_v41, %v1077_v9 }
  0x21   : > { %v315_v4 = vrot.slane %v301_v62, %v1077_v9  ;;  %v316_v5 = vcombine.high %v308_v63, %v308_v63  ;;  %v335_v6 = vcombine.high %v223_v42, %v223_v42  ;;  %v342_v7 = vrot.slane %v223_v42, %v1077_v9 }
  0x22   : > { %v1121_v8 = vrot.slane %v318_v2, %v1077_v9  ;;  %v1125_v10 = vcombine.high %v1116_v3, %v1116_v3  ;;  %v352_v11 = vcombine.high %v224_v43, %v224_v43  ;;  %v1128_v12 = vrot.slane %v224_v43, %v1077_v9 }
  0x23   : > { %v317_v13 = vcombine.high %v315_v4, %v315_v4  ;;  %v349_v14 = vrot.slane %v335_v6, %v1077_v9  ;;  %v350_v15 = vcombine.high %v342_v7, %v342_v7  ;;  %v967_v16 = vrot.slane %v240_v45, 9 }
  0x24   : > { %v1133_v17 = vcombine.high %v1121_v8, %v1121_v8  ;;  %v1136_v18 = vrot.slane %v352_v11, %v1077_v9  ;;  %v1140_v19 = vcombine.high %v1128_v12, %v1128_v12  ;;  %v968_v20 = vrot.slane %v248_v53, 9 }
  0x25   : > { %v351_v21 = vcombine.high %v349_v14, %v349_v14  ;;  %v969_v22 = vrot.slane %v247_v52, 9  ;;  %v970_v23 = vrot.slane %v249_v60, 9  ;;  %v971_v24 = vrot.slane %v274_v49, 9 }
  0x26   : > { %1243 = vst [vmem:[#allocation3_spill] sm:$0xff] %v1136_v18  ;;  %v1144_v25 = vcombine.high %v1136_v18, %v1136_v18  ;;  %v972_v26 = vrot.slane %v282_v57, 9  ;;  %v973_v27 = vrot.slane %v281_v56, 9  ;;  %v974_v28 = vrot.slane %v283_v0, 9 }
  0x27   : > { %v975_v29 = vrot.slane %v308_v63, 9  ;;  %v976_v30 = vrot.slane %v316_v5, 9  ;;  %v977_v31 = vrot.slane %v315_v4, 9  ;;  %v978_v32 = vrot.slane %v317_v13, 9 }
  0x28   : > { %1244 = vst [vmem:[#allocation4_spill] sm:$0xff] %v1144_v25  ;;  %v979_v33 = vrot.slane %v342_v7, 9  ;;  %v980_v34 = vrot.slane %v350_v15, 9  ;;  %v981_v35 = vrot.slane %v349_v14, 9  ;;  %v982_v36 = vrot.slane %v351_v21, 9 }
  0x29   : > { %v449_v37 = vadd.f32 %v967_v16, %v240_v45  ;;  %v450_v38 = vadd.f32 %v968_v20, %v248_v53  ;;  %v451_v39 = vadd.f32 %v969_v22, %v247_v52  ;;  %v452_v40 = vadd.f32 %v970_v23, %v249_v60 }
  0x2a   : > { %v453_v41 = vadd.f32 %v971_v24, %v274_v49  ;;  %v454_v42 = vadd.f32 %v972_v26, %v282_v57  ;;  %v455_v43 = vadd.f32 %v973_v27, %v281_v56  ;;  %v456_v44 = vadd.f32 %v974_v28, %v283_v0 }
  0x2b   : > { %v457_v46 = vadd.f32 %v975_v29, %v308_v63  ;;  %v458_v48 = vadd.f32 %v976_v30, %v316_v5  ;;  %v459_v50 = vadd.f32 %v977_v31, %v315_v4  ;;  %v460_v62 = vadd.f32 %v978_v32, %v317_v13 }
  0x2c   : > { %v461_v2 = vadd.f32 %v979_v33, %v342_v7  ;;  %v462_v6 = vadd.f32 %v980_v34, %v350_v15  ;;  %v463_v11 = vadd.f32 %v981_v35, %v349_v14  ;;  %v464_v9 = vadd.f32 %v982_v36, %v351_v21 }
  0x2d   : > { %v465_v25 = vadd.f32 %v449_v37, %v1084_v47  ;;  %v466_v18 = vadd.f32 %v450_v38, %v1096_v55  ;;  %v467_v45 = vadd.f32 %v451_v39, %v1092_v54  ;;  %v468_v52 = vadd.f32 %v452_v40, %v1108_v61  ;;  %v1245_v13 = vld [vmem:[#allocation3_spill] sm:$0xff] }
  0x2e   : > { %v469_v49 = vadd.f32 %v453_v41, %v1088_v51  ;;  %v470_v53 = vadd.f32 %v454_v42, %v1104_v59  ;;  %v471_v56 = vadd.f32 %v455_v43, %v1100_v58  ;;  %v472_v57 = vadd.f32 %v456_v44, %v1113_v1 }
  0x2f   : > { %v473_v60 = vadd.f32 %v457_v46, %v1116_v3  ;;  %v474_v63 = vadd.f32 %v458_v48, %v1125_v10  ;;  %v475_v0 = vadd.f32 %v459_v50, %v1121_v8  ;;  %v476_v4 = vadd.f32 %v460_v62, %v1133_v17  ;;  %v1246_v15 = vld [vmem:[#allocation4_spill] sm:$0xff] }
  0x30   : > { %v477_v5 = vadd.f32 %v461_v2, %v1128_v12  ;;  %v478_v7 = vadd.f32 %v462_v6, %v1140_v19  ;;  %v479_v14 = vadd.f32 %v463_v11, %v1245_v13  ;;  %v480_v16 = vadd.f32 %v464_v9, %v1246_v15 }
  0x31   : > { %v983_v20 = vrot.slane %v1084_v47, 9  ;;  %v984_v21 = vrot.slane %v1096_v55, 9  ;;  %v985_v22 = vrot.slane %v1092_v54, 9  ;;  %v986_v23 = vrot.slane %v1108_v61, 9 }
  0x32   : > { %v987_v24 = vrot.slane %v1088_v51, 9  ;;  %v988_v26 = vrot.slane %v1104_v59, 9  ;;  %v989_v27 = vrot.slane %v1100_v58, 9  ;;  %v990_v28 = vrot.slane %v1113_v1, 9 }
  0x33   : > { %v991_v29 = vrot.slane %v1116_v3, 9  ;;  %v992_v9 = vrot.slane %v1125_v10, 9  ;;  %v993_v47 = vrot.slane %v1121_v8, 9  ;;  %v994_v55 = vrot.slane %v1133_v17, 9 }
  0x34   : > { %v995_v54 = vrot.slane %v1128_v12, 9  ;;  %v996_v61 = vrot.slane %v1140_v19, 9  ;;  %v997_v51 = vrot.slane %v1245_v13, 9  ;;  %v998_v59 = vrot.slane %v1246_v15, 9 }
  0x35   : > { %v529_v30 = vadd.f32 %v983_v20, %v465_v25  ;;  %v530_v58 = vadd.f32 %v984_v21, %v466_v18  ;;  %v531_v31 = vadd.f32 %v985_v22, %v467_v45  ;;  %v532_v1 = vadd.f32 %v986_v23, %v468_v52  ;;  %v1247_v20 = vld [vmem:[#allocation2_spill] sm:$0xff] }
  0x36   : > { %v533_v32 = vadd.f32 %v987_v24, %v469_v49  ;;  %v534_v3 = vadd.f32 %v988_v26, %v470_v53  ;;  %v535_v33 = vadd.f32 %v989_v27, %v471_v56  ;;  %v536_v10 = vadd.f32 %v990_v28, %v472_v57 }
  0x37   : > { %v537_v34 = vadd.f32 %v991_v29, %v473_v60  ;;  %v538_v8 = vadd.f32 %v992_v9, %v474_v63  ;;  %v539_v35 = vadd.f32 %v993_v47, %v475_v0  ;;  %v540_v17 = vadd.f32 %v994_v55, %v476_v4 }
  0x38   : > { %v541_v36 = vadd.f32 %v995_v54, %v477_v5  ;;  %v542_v12 = vadd.f32 %v996_v61, %v478_v7  ;;  %v543_v37 = vadd.f32 %v997_v51, %v479_v14  ;;  %v544_v19 = vadd.f32 %v998_v59, %v480_v16 }
  0x39   : > { %v545_v38 = vmul.f32 0.25, %v529_v30  ;;  %v546_v39 = vmul.f32 0.25, %v530_v58  ;;  %v547_v40 = vmul.f32 0.25, %v531_v31  ;;  %v548_v41 = vmul.f32 0.25, %v532_v1 }
  0x3a   : > { %v549_v25 = vmul.f32 0.25, %v533_v32  ;;  %v550_v18 = vmul.f32 0.25, %v534_v3  ;;  %v551_v42 = vmul.f32 0.25, %v535_v33  ;;  %v552_v43 = vmul.f32 0.25, %v536_v10 }
  0x3b   : > { %v553_v44 = vmul.f32 0.25, %v537_v34  ;;  %v554_v46 = vmul.f32 0.25, %v538_v8  ;;  %v555_v48 = vmul.f32 0.25, %v539_v35  ;;  %v556_v50 = vmul.f32 0.25, %v540_v17 }
  0x3c   : > { %v557_v62 = vmul.f32 0.25, %v541_v36  ;;  %v558_v2 = vmul.f32 0.25, %v542_v12  ;;  %v559_v6 = vmul.f32 0.25, %v543_v37  ;;  %v560_v11 = vmul.f32 0.25, %v544_v19 }
  0x3d   : > { %v561_v45 = vpack.c.bf16 %v545_v38, %v545_v38  ;;  %v562_v52 = vpack.c.bf16 %v546_v39, %v546_v39  ;;  %v563_v49 = vpack.c.bf16 %v547_v40, %v547_v40  ;;  %v564_v53 = vpack.c.bf16 %v548_v41, %v548_v41 }
  0x3e   : > { %v565_v56 = vpack.c.bf16 %v549_v25, %v549_v25  ;;  %v566_v57 = vpack.c.bf16 %v550_v18, %v550_v18  ;;  %v567_v60 = vpack.c.bf16 %v551_v42, %v551_v42  ;;  %v568_v63 = vpack.c.bf16 %v552_v43, %v552_v43 }
  0x3f   : > { %v569_v0 = vpack.c.bf16 %v553_v44, %v553_v44  ;;  %v570_v4 = vpack.c.bf16 %v554_v46, %v554_v46  ;;  %v571_v5 = vpack.c.bf16 %v555_v48, %v555_v48  ;;  %v572_v7 = vpack.c.bf16 %v556_v50, %v556_v50 }
  0x40   : > { %v573_v13 = vpack.c.bf16 %v557_v62, %v557_v62  ;;  %v574_v14 = vpack.c.bf16 %v558_v2, %v558_v2  ;;  %v575_v15 = vpack.c.bf16 %v559_v6, %v559_v6  ;;  %v576_v16 = vpack.c.bf16 %v560_v11, %v560_v11 }
  0x41   : > { %v599_v21 = vrot.slane %v561_v45, %v1247_v20  ;;  %v606_v22 = vrot.slane %v562_v52, %v1247_v20  ;;  %v613_v23 = vrot.slane %v563_v49, %v1247_v20  ;;  %v620_v24 = vrot.slane %v564_v53, %v1247_v20 }
  0x42   : > { %v627_v26 = vrot.slane %v565_v56, %v1247_v20  ;;  %v634_v27 = vrot.slane %v566_v57, %v1247_v20  ;;  %v641_v28 = vrot.slane %v567_v60, %v1247_v20  ;;  %v648_v29 = vrot.slane %v568_v63, %v1247_v20 }
  0x43   : > { %v655_v9 = vrot.slane %v569_v0, %v1247_v20  ;;  %v662_v47 = vrot.slane %v570_v4, %v1247_v20  ;;  %v669_v55 = vrot.slane %v571_v5, %v1247_v20  ;;  %v676_v54 = vrot.slane %v572_v7, %v1247_v20 }
  0x44   : > { %v683_v61 = vrot.slane %v573_v13, %v1247_v20  ;;  %v690_v51 = vrot.slane %v574_v14, %v1247_v20  ;;  %v697_v59 = vrot.slane %v575_v15, %v1247_v20  ;;  %v704_v30 = vrot.slane %v576_v16, %v1247_v20 }
  0x45   : > { %v711_v58 = vrot.slane %v599_v21, %v1247_v20  ;;  %v718_v31 = vrot.slane %v606_v22, %v1247_v20  ;;  %v725_v1 = vrot.slane %v613_v23, %v1247_v20  ;;  %v732_v32 = vrot.slane %v620_v24, %v1247_v20 }
  0x46   : > { %v739_v3 = vrot.slane %v627_v26, %v1247_v20  ;;  %v746_v33 = vrot.slane %v634_v27, %v1247_v20  ;;  %v753_v10 = vrot.slane %v641_v28, %v1247_v20  ;;  %v760_v34 = vrot.slane %v648_v29, %v1247_v20 }
  0x47   : > { %v767_v8 = vrot.slane %v655_v9, %v1247_v20  ;;  %v774_v35 = vrot.slane %v662_v47, %v1247_v20  ;;  %v781_v17 = vrot.slane %v669_v55, %v1247_v20  ;;  %v788_v36 = vrot.slane %v676_v54, %v1247_v20 }
  0x48   : > { %v795_v12 = vrot.slane %v683_v61, %v1247_v20  ;;  %v802_v37 = vrot.slane %v690_v51, %v1247_v20  ;;  %v809_v19 = vrot.slane %v697_v59, %v1247_v20  ;;  %v816_v38 = vrot.slane %v704_v30, %v1247_v20 }
  0x49   : > { %v817_v39 = vunpack.c.l.b16 %v711_v58  ;;  %v818_v40 = vunpack.c.l.b16 %v718_v31  ;;  %v819_v41 = vunpack.c.l.b16 %v725_v1  ;;  %v820_v25 = vunpack.c.l.b16 %v732_v32 }
  0x4a   : > { %v821_v18 = vunpack.c.l.b16 %v739_v3  ;;  %v822_v42 = vunpack.c.l.b16 %v746_v33  ;;  %v823_v43 = vunpack.c.l.b16 %v753_v10  ;;  %v824_v44 = vunpack.c.l.b16 %v760_v34 }
  0x4b   : > { %v825_v46 = vunpack.c.l.b16 %v767_v8  ;;  %v826_v48 = vunpack.c.l.b16 %v774_v35  ;;  %v827_v50 = vunpack.c.l.b16 %v781_v17  ;;  %v828_v62 = vunpack.c.l.b16 %v788_v36 }
  0x4c   : > { %v829_v2 = vunpack.c.l.b16 %v795_v12  ;;  %v830_v6 = vunpack.c.l.b16 %v802_v37  ;;  %v831_v11 = vunpack.c.l.b16 %v809_v19  ;;  %v832_v45 = vunpack.c.l.b16 %v816_v38 }
  0x4d   : > { %v833_v52 = vrot.slane %v818_v40, 7  ;;  %v836_v49 = vrot.slane %v819_v41, 6  ;;  %v839_v53 = vrot.slane %v820_v25, 5  ;;  %v842_v56 = vrot.slane %v822_v42, 7 }
  0x4e   : > { %v844_v57 = vrot.slane %v823_v43, 6  ;;  %v846_v60 = vrot.slane %v824_v44, 5  ;;  %v848_v63 = vrot.slane %v826_v48, 7  ;;  %v850_v0 = vrot.slane %v827_v50, 6 }
  0x4f   : > { %v835_v4 = vsel %vm834_vm0, %v833_v52, %v817_v39  ;;  %v843_v5 = vsel %vm834_vm0, %v842_v56, %v821_v18  ;;  %v852_v7 = vrot.slane %v828_v62, 5  ;;  %v854_v13 = vrot.slane %v830_v6, 7 }
  0x50   : > { %v838_v14 = vsel %vm837_vm1, %v836_v49, %v835_v4  ;;  %v845_v15 = vsel %vm837_vm1, %v844_v57, %v843_v5  ;;  %v849_v16 = vsel %vm834_vm0, %v848_v63, %v825_v46  ;;  %v856_v21 = vrot.slane %v831_v11, 6 }
  0x51   : > { %v841_v22 = vsel %vm840_vm2, %v839_v53, %v838_v14  ;;  %v847_v23 = vsel %vm840_vm2, %v846_v60, %v845_v15  ;;  %v851_v24 = vsel %vm837_vm1, %v850_v0, %v849_v16  ;;  %v855_v26 = vsel %vm834_vm0, %v854_v13, %v829_v2 }
  0x52   : > { %v853_v27 = vsel %vm840_vm2, %v852_v7, %v851_v24  ;;  %v857_v28 = vsel %vm837_vm1, %v856_v21, %v855_v26  ;;  %v858_v29 = vrot.slane %v832_v45, 5  ;;  %v860_v9 = vpack.c.b16 %v841_v22, %v841_v22 }
  0x53   : > { %v861_v47 = vpack.c.b16 %v847_v23, %v847_v23  ;;  %v862_v55 = vpack.c.b16 %v853_v27, %v853_v27 }
  0x54   : > { %v859_v54 = vsel %vm840_vm2, %v858_v29, %v857_v28  ;;  %v870_v61 = vrot.slane %v860_v9, %v1247_v20 }
  0x55   : > { %v863_v51 = vpack.c.b16 %v859_v54, %v859_v54  ;;  %v877_v59 = vrot.slane %v861_v47, %v1247_v20  ;;  %v884_v30 = vrot.slane %v862_v55, %v1247_v20 }
  0x56   : > { %897 = vst.msk [vmem:[%s170_s25] sm:$0x3] %vm896_vm3, %v870_v61 }
  0x57   : > { %v891_v58 = vrot.slane %v863_v51, %v1247_v20  ;;  %898 = vst.msk [vmem:[%s170_s25 + $0x2] sm:$0x3] %vm896_vm3, %v877_v59  ;;  %899 = vst.msk [vmem:[%s170_s25 + $0x4] sm:$0x3] %vm896_vm3, %v884_v30 }
  0x59   : > { %900 = vst.msk [vmem:[%s170_s25 + $0x6] sm:$0x3] %vm896_vm3, %v891_v58 }
  0x5a PF: > { %s13_s12 = sadd.s32 1, %s1037_s12  }
  0x5b   : > { %p10_p4 = scmp.ge.s32.totalorder %s13_s12, 4  }
  0x5d   :  { %12 = sbr.rel (!%p10_p4) target bundleno = 1 (0x1), region = 62 }

// kernel: densenet_forward.20
= control target key start
LH: loop header
LB: loop body
LE: loop exit
PB: predicated region body
PF: predicated region fallthrough
CT: control target
= control target key end

     0   :  { %vm24_vm0 = vcmask 130048   ;;  %v257_v1 = vmov 0.0   ;;  %vm85_vm1 = vcmask 261120   ;;  %vm173_vm2 = vcmask 125952   ;;  %s344_s3 = inlined_call_operand.vmem [shape: bf16[32,16], index: 3, kind: input, shape index: {}]   ;;  %s345_s0 = inlined_call_operand.vmem [shape: f32[1,32], index: 0, kind: input, shape index: {}]   ;;  %s346_s2 = inlined_call_operand.vmem [shape: bf16[32,32], index: 2, kind: input, shape index: {}]   ;;  %s347_s1 = inlined_call_operand.vmem [shape: f32[1,32], index: 1, kind: input, shape index: {}]   ;;  %s348_s4 = inlined_call_operand.vmem [shape: bf16[32,16], index: 4, kind: output, shape index: {0}]   ;;  %s349_s5 = inlined_call_operand.vmem [shape: f32[1,2,16], index: 5, kind: output, shape index: {1}]  }
   0x1   :  { %v255_v0 = vld [vmem:[%s344_s3] sm:$0xff]   ;;  %27 = vst.msk [vmem:[#allocation2 + $0x10] sm:$0xff] %vm24_vm0, %v257_v1  ;;  %25 = vst.msk [vmem:[#allocation2] sm:$0xff] %vm24_vm0, %v257_v1  ;;  %v256_v2 = vld [vmem:[%s344_s3 + $0x8] sm:$0xff]   ;;  %vm191_vm3 = vcmask 122880  }
   0x2   :  { %26 = vst.msk [vmem:[#allocation2 + $0x8] sm:$0xff] %vm24_vm0, %v257_v1  ;;  %28 = vst.msk [vmem:[#allocation2 + $0x18] sm:$0xff] %vm24_vm0, %v257_v1  ;;  %246 = vmatprep.subr.bf16.mxu0 %v255_v0  ;;  %v234_v3 = vld [vmem:[%s346_s2] sm:$0xff]   ;;  %v241_v4 = vld [vmem:[%s346_s2 + $0x8] sm:$0xff]  }
   0x3   :  { %v219_v5 = vld [vmem:[%s345_s0] ss:$0 sm:$0xff]  ;;  %247 = vmatpush3.bf16.msra.mxu0 %v255_v0  ;;  %v235_v6 = vunpack.c.l.bf16 %v234_v3  ;;  %v236_v7 = vunpack.c.h.bf16 %v234_v3  ;;  %v239_v8 = vunpack.c.l.bf16 %v241_v4  ;;  %v240_v9 = vunpack.c.h.bf16 %v241_v4 }
   0x4   :  { %248 = vmatprep.subr.bf16.mxu0 %v256_v2  ;;  %v220_v10 = vld [vmem:[%s347_s1] ss:$0 sm:$0xff] }
   0x5   :  { %v44_v11 = vmul.f32 %v235_v6, %v219_v5  ;;  %v45_v12 = vmul.f32 %v236_v7, %v219_v5  ;;  %v46_v13 = vmul.f32 %v239_v8, %v219_v5  ;;  %v47_v14 = vmul.f32 %v240_v9, %v219_v5 }
   0x7   :  { %249 = vmatpush3.bf16.msra.mxu0 %v256_v2  ;;  %v55_v15 = vadd.f32 %v220_v10, %v44_v11  ;;  %v56_v16 = vadd.f32 %v220_v10, %v45_v12  ;;  %v57_v17 = vadd.f32 %v220_v10, %v46_v13  ;;  %v58_v18 = vadd.f32 %v220_v10, %v47_v14 }
   0x8   :  { %v65_v25 = vld [vmem:[#allocation2 + $0x10] sm:$0xff]  ;;  %v63_v26 = vld [vmem:[#allocation2] sm:$0xff] }
   0x9   :  { %v59_v19 = vmax.f32 %v55_v15, 0.0  ;;  %v60_v20 = vmax.f32 %v56_v16, 0.0  ;;  %v61_v21 = vmax.f32 %v57_v17, 0.0  ;;  %v62_v22 = vmax.f32 %v58_v18, 0.0  ;;  %v66_v28 = vld [vmem:[#allocation2 + $0x18] sm:$0xff]  ;;  %v64_v31 = vld [vmem:[#allocation2 + $0x8] sm:$0xff] }
   0xb   :  { %v67_v23 = vpack.c.bf16 %v60_v20, %v59_v19  ;;  %v68_v24 = vpack.c.bf16 %v62_v22, %v61_v21 }
   0xd   :  { %250 = vmatprep.mubr.msk.bf16.mxu0 %vm85_vm1, %v67_v23 }
   0xe   :  { %251 = vmatmul.mubr.msk.bf16.vlgmr.msra.gmra.mrb[0].mxu0 %vm85_vm1, %v68_v24 }
  0xe1   :  { %v252_v27 = vpop.f32.mrb[0].mxu0 }
  0xe2   :  { %v143_v29 = vadd.f32 %v252_v27, %v65_v25  ;;  %v126_v30 = vpop.f32.mrb[1].mxu0 }
  0xe3   :  { %v141_v32 = vadd.f32 %v126_v30, %v63_v26  ;;  %v253_v33 = vpop.f32.mrb[2].mxu0 }
  0xe4   :  { %148 = vst.msk [vmem:[#allocation2 + $0x10] sm:$0xff] %vm24_vm0, %v143_v29  ;;  %v144_v34 = vadd.f32 %v253_v33, %v66_v28  ;;  %v129_v35 = vpop.f32.mrb[3].mxu0 }
  0xe5   :  { %146 = vst.msk [vmem:[#allocation2] sm:$0xff] %vm24_vm0, %v141_v32  ;;  %v142_v36 = vadd.f32 %v129_v35, %v64_v31 }
  0xe6   :  { %149 = vst.msk [vmem:[#allocation2 + $0x18] sm:$0xff] %vm24_vm0, %v144_v34 }
  0xe7   :  { %147 = vst.msk [vmem:[#allocation2 + $0x8] sm:$0xff] %vm24_vm0, %v142_v36 }
  0xeb   :  { %v155_v37 = vld [vmem:[#allocation2 + $0x10] sm:$0xff] }
  0xec   :  { %v231_v38 = vpack.c.bf16 %v155_v37, %v155_v37  ;;  %v153_v39 = vld [vmem:[#allocation2] sm:$0xff]  ;;  %v195_v43 = vmul.f32 %v155_v37, %v155_v37  ;;  %v181_v51 = vsel %vm24_vm0, %v155_v37, 0.0 }
  0xed   :  { %v229_v40 = vpack.c.bf16 %v153_v39, %v153_v39  ;;  %v193_v41 = vmul.f32 %v153_v39, %v153_v39  ;;  %v156_v42 = vld [vmem:[#allocation2 + $0x18] sm:$0xff]  ;;  %v178_v46 = vsel %vm24_vm0, %v153_v39, 0.0 }
  0xee   :  { %176 = vst.msk [vmem:[%s348_s4 + $0x8] sm:$0xf] %vm173_vm2, %v231_v38  ;;  %v232_v44 = vpack.c.bf16 %v156_v42, %v156_v42  ;;  %v154_v45 = vld [vmem:[#allocation2 + $0x8] sm:$0xff]  ;;  %v196_v53 = vmul.f32 %v156_v42, %v156_v42  ;;  %v200_v57 = vsel %vm24_vm0, %v195_v43, 0.0  ;;  %v183_v58 = vsel %vm24_vm0, %v156_v42, 0.0 }
  0xef   :  { %174 = vst.msk [vmem:[%s348_s4] sm:$0xf] %vm173_vm2, %v229_v40  ;;  %v230_v47 = vpack.c.bf16 %v154_v45, %v154_v45  ;;  %v179_v48 = vsel %vm24_vm0, %v154_v45, 0.0  ;;  %v194_v49 = vmul.f32 %v154_v45, %v154_v45  ;;  %v197_v52 = vsel %vm24_vm0, %v193_v41, 0.0 }
  0xf0   :  { %177 = vst.msk [vmem:[%s348_s4 + $0xc] sm:$0xf] %vm173_vm2, %v232_v44  ;;  %v180_v50 = vadd.f32 %v179_v48, %v178_v46  ;;  %v202_v61 = vsel %vm24_vm0, %v196_v53, 0.0 }
  0xf1   :  { %175 = vst.msk [vmem:[%s348_s4 + $0x4] sm:$0xf] %vm173_vm2, %v230_v47  ;;  %v198_v54 = vsel %vm24_vm0, %v194_v49, 0.0 }
  0xf2   :  { %v182_v55 = vadd.f32 %v181_v51, %v180_v50  ;;  %v199_v56 = vadd.f32 %v198_v54, %v197_v52 }
  0xf4   :  { %v184_v59 = vadd.f32 %v183_v58, %v182_v55  ;;  %v201_v60 = vadd.f32 %v200_v57, %v199_v56 }
  0xf6   :  { %v185_v62 = vrot.slane %v184_v59, 4  ;;  %v203_v63 = vadd.f32 %v202_v61, %v201_v60 }
  0xf8   :  { %v186_v0 = vadd.f32 %v185_v62, %v184_v59  ;;  %v204_v1 = vrot.slane %v203_v63, 4 }
  0xfa   :  { %v187_v2 = vrot.slane %v186_v0, 2  ;;  %v205_v3 = vadd.f32 %v204_v1, %v203_v63 }
  0xfc   :  { %v188_v4 = vadd.f32 %v187_v2, %v186_v0  ;;  %v206_v5 = vrot.slane %v205_v3, 2 }
  0xfe   :  { %v189_v6 = vrot.slane %v188_v4, 1  ;;  %v207_v7 = vadd.f32 %v206_v5, %v205_v3 }
 0x100   :  { %v190_v8 = vadd.f32 %v189_v6, %v188_v4  ;;  %v208_v9 = vrot.slane %v207_v7, 1 }
 0x102   :  { %192 = vst.msk [vmem:[%s349_s5] sm:$0x1] %vm191_vm3, %v190_v8  ;;  %v209_v10 = vadd.f32 %v208_v9, %v207_v7 }
 0x104   :  { %210 = vst.msk [vmem:[%s349_s5 + $0x1] sm:$0x1] %vm191_vm3, %v209_v10 }

// kernel: densenet_forward.25
= control target key start
LH: loop header
LB: loop body
LE: loop exit
PB: predicated region body
PF: predicated region fallthrough
CT: control target
= control target key end

     0   :  { %v223_v1 = vmov 0.0   ;;  %vm224_vm0 = vmmov 0   ;;  %s294_s0 = inlined_call_operand.vmem [shape: f32[1,32], index: 0, kind: input, shape index: {}]   ;;  %s295_s1 = inlined_call_operand.vmem [shape: f32[1,32], index: 1, kind: input, shape index: {}]   ;;  %s296_s2 = inlined_call_operand.vmem [shape: bf16[2,16,32], index: 2, kind: input, shape index: {}]   ;;  %s297_s3 = inlined_call_operand.vmem [shape: bf16[32,128], index: 3, kind: input, shape index: {}]   ;;  %s298_s4 = inlined_call_operand.vmem [shape: f32[1,128], index: 4, kind: input, shape index: {}]   ;;  %s299_s5 = inlined_call_operand.hbm [shape: f32[2,128], index: 5, kind: output, shape index: {}]  }
   0x1   :  { %v197_v0 = vld [vmem:[%s297_s3] sm:$0xff]   ;;  %186 = vmatprep.subr.bf16.mxu0 %v223_v1  ;;  %v198_v2 = vld [vmem:[%s297_s3 + $0x8] sm:$0xff]   ;;  %190 = vmatprep.mubr.msk.bf16.mxu0 %vm224_vm0, %v223_v1 }
   0x2   :  { %187 = vmatpush3.bf16.msra.mxu0 %v197_v0  ;;  %v175_v3 = vld [vmem:[%s296_s2] sm:$0xff]   ;;  %v182_v4 = vld [vmem:[%s296_s2 + $0x8] sm:$0xff]  }
   0x3   :  { %v168_v5 = vld [vmem:[%s294_s0] ss:$0 sm:$0xff]  ;;  %188 = vmatprep.subr.bf16.mxu0 %v223_v1  ;;  %v176_v6 = vunpack.c.l.bf16 %v175_v3  ;;  %v177_v7 = vunpack.c.h.bf16 %v175_v3  ;;  %v180_v8 = vunpack.c.l.bf16 %v182_v4  ;;  %v181_v9 = vunpack.c.h.bf16 %v182_v4 }
   0x4   :  { %10 = vsyncpa [#allocation3], 0  ;;  %v169_v10 = vld [vmem:[%s295_s1] ss:$0 sm:$0xff]  ;;  %vm56_vm1 = vcmask 261120   ;;  %vm95_vm2 = vcmask 1041409  }
   0x5   :  { %v37_v11 = vmul.f32 %v176_v6, %v168_v5  ;;  %v38_v12 = vmul.f32 %v177_v7, %v168_v5  ;;  %v39_v13 = vmul.f32 %v180_v8, %v168_v5  ;;  %v40_v14 = vmul.f32 %v181_v9, %v168_v5  ;;  %v170_v49 = vld [vmem:[%s298_s4] ss:$0 sm:$0xff]  ;;  %s225_s2 = smov [#allocation2]  }
   0x6   :  { %189 = vmatpush3.bf16.msra.mxu0 %v198_v2  ;;  %s160_s29 = sshll.u32 %s225_s2, 4  ;;  %s161_s29 = int_to_ptr.vmem [resolvable:$true] %s160_s29 }
   0x7   :  { %v48_v15 = vadd.f32 %v169_v10, %v37_v11  ;;  %v49_v16 = vadd.f32 %v169_v10, %v38_v12  ;;  %v50_v17 = vadd.f32 %v169_v10, %v39_v13  ;;  %v51_v18 = vadd.f32 %v169_v10, %v40_v14  ;;  %s199_s30 = scalar_lea.vmem %s161_s29, 32  ;;  %p204_p1 = scmp.lt.s32.totalorder %s161_s29, %s161_s29 }
   0x8   :  { %p200_p0 = scmp.ne.s32.totalorder %s161_s29, %s199_s30  ;;  %p205_p2 = scmp.lt.s32.totalorder %s199_s30, %s199_s30 }
   0x9   :  { %v52_v19 = vmax.f32 %v48_v15, 0.0  ;;  %v53_v20 = vmax.f32 %v49_v16, 0.0  ;;  %v54_v21 = vmax.f32 %v50_v17, 0.0  ;;  %v55_v22 = vmax.f32 %v51_v18, 0.0 }
   0xa   :  { %p206_p3 = por %p205_p2, %p204_p1 }
   0xb   :  { %v57_v23 = vsel %vm56_vm1, %v52_v19, 0.0  ;;  %v58_v24 = vsel %vm56_vm1, %v53_v20, 0.0  ;;  %v66_v25 = vsel %vm56_vm1, %v54_v21, 0.0  ;;  %v67_v26 = vsel %vm56_vm1, %v55_v22, 0.0 }
   0xc   :  { %v59_v27 = vadd.f32 %v58_v24, %v57_v23  ;;  %v68_v28 = vadd.f32 %v67_v26, %v66_v25  ;;  %p207_p4 = pnand %p206_p3, %p200_p0 }
   0xe   :  { %v60_v29 = vrot.slane %v59_v27, 4  ;;  %v69_v30 = vrot.slane %v68_v28, 4 }
  0x10   :  { %v61_v31 = vadd.f32 %v60_v29, %v59_v27  ;;  %v70_v32 = vadd.f32 %v69_v30, %v68_v28 }
  0x12   :  { %v62_v33 = vrot.slane %v61_v31, 2  ;;  %v71_v34 = vrot.slane %v70_v32, 2 }
  0x14   :  { %v63_v35 = vadd.f32 %v62_v33, %v61_v31  ;;  %v72_v36 = vadd.f32 %v71_v34, %v70_v32 }
  0x16   :  { %v64_v37 = vrot.slane %v63_v35, 1  ;;  %v73_v38 = vrot.slane %v72_v36, 1 }
  0x18   :  { %v65_v39 = vadd.f32 %v64_v37, %v63_v35  ;;  %v74_v40 = vadd.f32 %v73_v38, %v72_v36 }
  0x1a   :  { %v76_v41 = vmul.f32 0.0625, %v65_v39  ;;  %v77_v42 = vmul.f32 0.0625, %v74_v40 }
  0x1c   :  { %v78_v43 = vpack.c.bf16 %v76_v41, %v76_v41  ;;  %v79_v44 = vpack.c.bf16 %v77_v42, %v77_v42 }
  0x1e   :  { %v93_v45 = vunpack.c.l.b16 %v78_v43  ;;  %v94_v46 = vunpack.c.l.b16 %v79_v44 }
  0x20   :  { %v96_v47 = vsel %vm95_vm2, %v94_v46, %v93_v45 }
  0x21   :  { %v97_v48 = vpack.c.b16 %v96_v47, %v96_v47 }
  0x23   :  { %191 = vmatmul.mubr.msk.bf16.vlgmr.msra.gmra.mrb[0].mxu0 %vm56_vm1, %v97_v48 }
  0xf6   :  { %v147_v50 = vpop.f32.mrb[0].mxu0 }
  0xf7   :  { %v148_v51 = vadd.f32 %v170_v49, %v147_v50  ;;  %v192_v52 = vpop.f32.mrb[1].mxu0 }
  0xf8   :  { %v150_v53 = vpop.f32.mrb[2].mxu0 }
  0xf9   :  { %153 = vst [vmem:[#allocation2] sm:$0x3] %v148_v51  ;;  %v193_v54 = vpop.f32.mrb[3].mxu0 }
  0xfa   :  { %210 = shalt.err (!%p207_p4)
}
  0xfb   :  { %s211_s4 = scalar_lea.hbm %s299_s5, 32 }
  0xfc   :  { %p212_p5 = scmp.ne.s32.totalorder %s299_s5, %s211_s4  ;;  %p215_p6 = scmp.lt.u32.totalorder %s211_s4, %s299_s5 }
  0xfe   :  { %p217_p7 = pnand %p215_p6, %p212_p5 }
 0x100   :  { %220 = shalt.err (!%p217_p7)
}
 0x101   :  { %163 = dma.vmem_to_hbm [thread:$0]  %s161_s29, 32, %s299_s5, [#allocation3]  }
 0x102   :  { %221 = dma.done.wait [#allocation3], 32  }
 0x103   :  { %222 = vsyncadd [#allocation3], 4294967264 }
 0x104   :  { %167 = vsyncpa [#allocation3], 1 }

// kernel: densenet_forward.22
= control target key start
LH: loop header
LB: loop body
LE: loop exit
PB: predicated region body
PF: predicated region fallthrough
CT: control target
= control target key end

     0   :  { %s1893_s18 = smov 0   ;;  %s2125_s0 = inlined_call_operand.vmem [shape: f32[1,16], index: 0, kind: input, shape index: {}]   ;;  %s2126_s1 = inlined_call_operand.vmem [shape: f32[1,16], index: 1, kind: input, shape index: {}]   ;;  %s2127_s2 = inlined_call_operand.vmem [shape: bf16[2,4,4,16], index: 2, kind: input, shape index: {}]   ;;  %s2128_s3 = inlined_call_operand.vmem [shape: bf16[9,16,8], index: 3, kind: input, shape index: {}]   ;;  %s2129_s4 = inlined_call_operand.vmem [shape: bf16[2,4,4,8], index: 4, kind: output, shape index: {0}]   ;;  %s2130_s5 = inlined_call_operand.vmem [shape: f32[2,2,8], index: 5, kind: output, shape index: {1}]  }
   0x1 LB: > { %s1650_s19 = sadd.s32 4294967295, %s1857_s18   ;;  %p1654_p0 = scmp.ge.s32.totalorder %s1857_s18, 1  ;;  %s1857_s18 = sphi %s1893_s18, %s16_s18  }
   0x2   : > { %p190_p1 = scmp.lt.s32.totalorder %s1857_s18, 3 }
   0x4   : > { %p191_p2 = pnand %p1654_p0, %p190_p1 }
   0x5   : > { %v1828_v0 = vld [vmem:[%s2128_s3] sm:$0xff] (!%p191_p2)   ;;  %v1859_v1 = vmov (!%p191_p2), 0.0   ;;  %p222_p3 = scmp.lt.s32.totalorder (!%p191_p2), %s1650_s19, 1  ;;  %vm237_vm0 = vcmask (!%p191_p2), 124928   ;;  %vm1860_vm1 = vmmov (!%p191_p2), 0   ;;  %v1861_v2 = vmov (!%p191_p2), 0  }
   0x6   : > { %194 = sbr.rel (%p191_p2) target bundleno = 376 (0x178), region = 36  ;;  %1762 = vmatprep.subr.bf16.mxu0 (!%p191_p2), %v1859_v1  ;;  %1768 = vmatprep.subr.bf16.mxu1 (!%p191_p2), %v1859_v1  ;;  %238 = vst.msk [vmem:[#allocation2] sm:$0x7] (!%p191_p2), %vm237_vm0, %v1861_v2  ;;  %239 = vst.msk [vmem:[#allocation2 + $0x4] sm:$0x7] (!%p191_p2), %vm237_vm0, %v1861_v2  ;;  %v1831_v3 = vld [vmem:[%s2128_s3 + $0x8] sm:$0xff] (!%p191_p2)   ;;  %v362_v45 = vlaneseq (!%p191_p2) }
   0x7   : > { %1763 = vmatpush3.bf16.msra.mxu0 (!%p191_p2), %v1828_v0  ;;  %1764 = vmatprep.mubr.msk.bf16.mxu0 (!%p191_p2), %vm1860_vm1, %v1859_v1  ;;  %240 = vst.msk [vmem:[#allocation2 + $0x8] sm:$0x7] (!%p191_p2), %vm237_vm0, %v1861_v2  ;;  %241 = vst.msk [vmem:[#allocation2 + $0xc] sm:$0x7] (!%p191_p2), %vm237_vm0, %v1861_v2  ;;  %v1660_v4 = vld [vmem:[%s2125_s0] ss:$0 sm:$0xff] (!%p191_p2) }
   0x8   : > { %242 = vst.msk [vmem:[#allocation2 + $0x10] sm:$0x7] (!%p191_p2), %vm237_vm0, %v1861_v2  ;;  %243 = vst.msk [vmem:[#allocation2 + $0x14] sm:$0x7] (!%p191_p2), %vm237_vm0, %v1861_v2  ;;  %1770 = vmatprep.mubr.msk.bf16.mxu1 (!%p191_p2), %vm1860_vm1, %v1859_v1  ;;  %1774 = vmatprep.subr.bf16.mxu0 (!%p191_p2), %v1859_v1  ;;  %v1661_v11 = vld [vmem:[%s2126_s1] ss:$0 sm:$0xff] (!%p191_p2) }
   0x9   : > { %1769 = vmatpush3.bf16.msra.mxu1 (!%p191_p2), %v1831_v3  ;;  %vm328_vm2 = vsmask.f32 (!%p191_p2), 2306  ;;  %vm469_vm3 = vsmask.f32 (!%p191_p2), 1280  ;;  %vm470_vm4 = vsmask.f32 (!%p191_p2), 3336 }
   0xa   : > { %1780 = vmatprep.subr.bf16.mxu1 (!%p191_p2), %v1859_v1  ;;  %vm1937_vm5 = vmand (!%p191_p2), %vm237_vm0, %vm328_vm2  ;;  %v1862_v43 = vmov (!%p191_p2), 1983009808   ;;  %vm342_vm6 = vcmask (!%p191_p2), 64512   ;;  %vm472_vm8 = vsmask.f32 (!%p191_p2), 5392  ;;  %v363_v62 = vshrl.u32 (!%p191_p2), %v362_v45, 7 }
   0xb   : > { %v360_v44 = vunpack.c.l.s4 (!%p191_p2), %v1862_v43  ;;  %343 = vst.msk [vmem:[#allocation3] sm:$0xff] (!%p191_p2), %vm342_vm6, %v1859_v1  ;;  %344 = vst.msk [vmem:[#allocation3 + $0x8] sm:$0xff] (!%p191_p2), %vm342_vm6, %v1859_v1  ;;  %vm474_vm9 = vsmask.f32 (!%p191_p2), 7448  ;;  %vm648_vm11 = vcmask (!%p191_p2), 1040384   ;;  %vm649_vm12 = vcmask (!%p191_p2), 1042434  }
   0xc   : > { %vm471_vm7 = vmor (!%p191_p2), %vm469_vm3, %vm470_vm4  ;;  %vm380_vm13 = vcmask (!%p191_p2), 130048   ;;  %vm651_vm15 = vcmask (!%p191_p2), 1044484   ;;  %vm653_vm0 = vcmask (!%p191_p2), 1046534  }
   0xd   : > { %s2142_s19 = smov (!%p222_p3, %s1650_s19), 1  ;;  %v1668_v19 = vld.sshfl [vmem:[#allocation2] sm:$0x13 pattern:$0x76325410]  ;;  %v361_v61 = vunpack.c.0.s8 %v360_v44  ;;  %vm473_vm10 = vmor %vm471_vm7, %vm472_vm8 }
   0xe   : > { %s1738_s24 = sshll.u32 %s2142_s19, 3  ;;  %v477_v27 = vshrl.u32 %v1668_v19, 16  ;;  %v480_v35 = vshll.u32 %v1668_v19, 16  ;;  %v330_v39 = vld [vmem:[#allocation2 + $0x4] sm:$0x7]  ;;  %v444_v50 = vcombine.high %v1668_v19, %v1668_v19  ;;  %vm1959_vm14 = vmor %vm473_vm10, %vm474_vm9 }
   0xf   : > { %s226_s27 = scalar_lea.vmem %s2127_s2, %s1738_s24  ;;  %v333_v42 = vld [vmem:[#allocation2 + $0x8] sm:$0x7]  ;;  %v336_v49 = vld [vmem:[#allocation2 + $0xc] sm:$0x7]  ;;  %vm1964_vm2 = vmor %vm648_vm11, %vm649_vm12  ;;  %s231_s26 = scalar_lea.vmem %s2129_s4, %s1738_s24 }
  0x10   : > { %v244_v5 = vld [vmem:[%s226_s27] sm:$0x3]  ;;  %v245_v6 = vld [vmem:[%s226_s27 + $0x2] sm:$0x3]  ;;  %v246_v7 = vld [vmem:[%s226_s27 + $0x4] sm:$0x3] }
  0x11   : > { %v248_v8 = vunpack.c.l.bf16 %v244_v5  ;;  %v249_v9 = vunpack.c.l.bf16 %v245_v6  ;;  %v250_v10 = vunpack.c.l.bf16 %v246_v7  ;;  %v247_v18 = vld [vmem:[%s226_s27 + $0x6] sm:$0x3]  ;;  %v479_v52 = vrot.slane %v477_v27, 6  ;;  %vm1978_vm3 = vmor %vm1964_vm2, %vm651_vm15  ;;  %v1841_v7 = vld [vmem:[%s2128_s3 + $0x38] sm:$0xff]   ;;  %s1659_s24 = sshll.u32 %s2142_s19, 1 }
  0x12   : > { %v251_v23 = vunpack.c.l.bf16 %v247_v18  ;;  %v482_v53 = vrot.slane %v480_v35, 7  ;;  %v1951_v57 = vld.sshfl [vmem:[#allocation2] sm:$0x12 pattern:$0x76325410]  ;;  %v486_v0 = vshll.u32 %v444_v50, 16  ;;  %v1957_v6 = vsub.s32 %v361_v61, %v363_v62  ;;  %vm1986_vm4 = vmor %vm1978_vm3, %vm653_vm0  ;;  %s235_s29 = scalar_lea.vmem %s2130_s5, %s1659_s24 }
  0x13   : > { %v259_v12 = vmul.f32 %v1660_v4, %v248_v8  ;;  %v260_v13 = vmul.f32 %v1660_v4, %v249_v9  ;;  %v261_v14 = vmul.f32 %v1660_v4, %v250_v10  ;;  %v623_v2 = vcombine.high %v1951_v57, %v1951_v57 }
  0x14   : > { %v262_v28 = vmul.f32 %v1660_v4, %v251_v23  ;;  %v483_v63 = vor.u32 %v482_v53, %v479_v52  ;;  %v339_v4 = vld [vmem:[#allocation2 + $0x10] sm:$0x7]  ;;  %v1680_v8 = vrot.slane %v1951_v57, 9  ;;  %v488_v10 = vrot.slane %v486_v0, 7 }
  0x15   : > { %v270_v15 = vadd.f32 %v1661_v11, %v259_v12  ;;  %v271_v16 = vadd.f32 %v1661_v11, %v260_v13  ;;  %v272_v17 = vadd.f32 %v1661_v11, %v261_v14  ;;  %v657_v12 = vrot.slane %v623_v2, 7 }
  0x16   : > { %v273_v36 = vadd.f32 %v1661_v11, %v262_v28  ;;  %v484_v9 = vrot.slane %v483_v63, 2 }
  0x17   : > { %v274_v20 = vmax.f32 %v270_v15, 0.0  ;;  %v275_v21 = vmax.f32 %v271_v16, 0.0  ;;  %v276_v22 = vmax.f32 %v272_v17, 0.0  ;;  %v1832_v17 = vld [vmem:[%s2128_s3 + $0x10] sm:$0xff]  }
  0x18   : > { %v277_v46 = vmax.f32 %v273_v36, 0.0 }
  0x19   : > { %v1740_v24 = vpack.c.bf16 %v274_v20, %v274_v20  ;;  %v1741_v25 = vpack.c.bf16 %v275_v21, %v275_v21  ;;  %v1742_v26 = vpack.c.bf16 %v276_v22, %v276_v22 }
  0x1a   : > { %v1743_v54 = vpack.c.bf16 %v277_v46, %v277_v46 }
  0x1b   : > { %v295_v29 = vshrl.u32 %v1740_v24, 16  ;;  %v298_v30 = vshll.u32 %v1740_v24, 16  ;;  %v302_v31 = vshrl.u32 %v1741_v25, 16  ;;  %v305_v32 = vshll.u32 %v1741_v25, 16 }
  0x1c   : > { %v309_v33 = vshrl.u32 %v1742_v26, 16  ;;  %v312_v34 = vshll.u32 %v1742_v26, 16  ;;  %v316_v59 = vshrl.u32 %v1743_v54, 16  ;;  %v319_v60 = vshll.u32 %v1743_v54, 16 }
  0x1d   : > { %v297_v37 = vrot.slane %v295_v29, 7  ;;  %v304_v38 = vrot.slane %v302_v31, 7  ;;  %v489_v24 = vsel %vm1959_vm14, %v484_v9, %v488_v10 }
  0x1e   : > { %v311_v40 = vrot.slane %v309_v33, 7  ;;  %v318_v3 = vrot.slane %v316_v59, 7 }
  0x1f   : > { %v300_v47 = vor.u32 %v298_v30, %v297_v37  ;;  %v307_v48 = vor.u32 %v305_v32, %v304_v38 }
  0x20   : > { %v314_v51 = vor.u32 %v312_v34, %v311_v40  ;;  %v321_v5 = vor.u32 %v319_v60, %v318_v3 }
  0x21   : > { %v331_v55 = vsel %vm1937_vm5, %v300_v47, %v330_v39  ;;  %v334_v56 = vsel %vm1937_vm5, %v307_v48, %v333_v42 }
  0x22   : > { %332 = vst [vmem:[#allocation2 + $0x4] sm:$0x7] %v331_v55  ;;  %335 = vst [vmem:[#allocation2 + $0x8] sm:$0x7] %v334_v56  ;;  %v337_v58 = vsel %vm1937_vm5, %v314_v51, %v336_v49  ;;  %v340_v13 = vsel %vm1937_vm5, %v321_v5, %v339_v4  ;;  %v658_v55 = vsel %vm1986_vm4, %v1680_v8, %v657_v12  ;;  %vm1550_vm5 = vcmask 57344  }
  0x23   : > { %338 = vst [vmem:[#allocation2 + $0xc] sm:$0x7] %v337_v58  ;;  %341 = vst [vmem:[#allocation2 + $0x10] sm:$0x7] %v340_v13 }
  0x24   : > { %v1719_v51 = vld.sshfl [vmem:[#allocation2 + $0x14] sm:$0x13 pattern:$0x76325410] }
  0x25   : > { %v1303_v11 = vshrl.u32 %v1719_v51, 16  ;;  %v1306_v12 = vshll.u32 %v1719_v51, 16 }
  0x29   : > { %v1845_v14 = vld.sshfl [vmem:[#allocation2] sm:$0xf pattern:$0x76325410] }
  0x2a   : > { %v1846_v15 = vld.sshfl [vmem:[#allocation2 + $0x8] sm:$0xf pattern:$0x76325410] }
  0x2b   : > { %v1669_v16 = vld.sshfl [vmem:[#allocation2 + $0x4] sm:$0x13 pattern:$0x76325410]  ;;  %v373_v28 = vcombine.low %v1845_v14, %v1846_v15 }
  0x2c   : > { %v1670_v18 = vld.sshfl [vmem:[#allocation2 + $0x8] sm:$0x13 pattern:$0x76325410]  ;;  %v452_v19 = vcombine.high %v1669_v16, %v1669_v16  ;;  %v491_v20 = vshrl.u32 %v1669_v16, 16  ;;  %v494_v21 = vshll.u32 %v1669_v16, 16 }
  0x2d   : > { %v1671_v22 = vld.sshfl [vmem:[#allocation2 + $0xc] sm:$0x13 pattern:$0x76325410]  ;;  %v460_v23 = vcombine.high %v1670_v18, %v1670_v18  ;;  %v505_v25 = vshrl.u32 %v1670_v18, 16  ;;  %v508_v26 = vshll.u32 %v1670_v18, 16  ;;  %1765 = vmatmul.mubr.msk.bf16.vlgmr.msra.gmra.mrb[0].mxu0 %vm380_vm13, %v373_v28 }
  0x2e   : > { %v468_v29 = vcombine.high %v1671_v22, %v1671_v22  ;;  %v493_v30 = vrot.slane %v491_v20, 6  ;;  %v496_v31 = vrot.slane %v494_v21, 7  ;;  %v1677_v32 = vld.sshfl [vmem:[#allocation2 + $0x4] sm:$0x12 pattern:$0x76325410]  ;;  %1775 = vmatpush3.bf16.msra.mxu0 %v1832_v17  ;;  %1776 = vmatprep.mubr.msk.bf16.mxu0 %vm1860_vm1, %v1859_v1 }
  0x2f   : > { %v500_v33 = vshll.u32 %v452_v19, 16  ;;  %v507_v34 = vrot.slane %v505_v25, 6  ;;  %v510_v35 = vrot.slane %v508_v26, 7  ;;  %v514_v36 = vshll.u32 %v460_v23, 16  ;;  %1786 = vmatprep.subr.bf16.mxu0 %v1859_v1 }
  0x30   : > { %v497_v37 = vor.u32 %v496_v31, %v493_v30  ;;  %v519_v38 = vshrl.u32 %v1671_v22, 16  ;;  %v522_v39 = vshll.u32 %v1671_v22, 16  ;;  %v528_v40 = vshll.u32 %v468_v29, 16  ;;  %v1833_v31 = vld [vmem:[%s2128_s3 + $0x18] sm:$0xff]  }
  0x31   : > { %v502_v42 = vrot.slane %v500_v33, 7  ;;  %v511_v43 = vor.u32 %v510_v35, %v507_v34  ;;  %v516_v44 = vrot.slane %v514_v36, 7  ;;  %v1678_v45 = vld.sshfl [vmem:[#allocation2 + $0x8] sm:$0x12 pattern:$0x76325410]  ;;  %v631_v46 = vcombine.high %v1677_v32, %v1677_v32 }
  0x32   : > { %v498_v47 = vrot.slane %v497_v37, 2  ;;  %v521_v48 = vrot.slane %v519_v38, 6  ;;  %v524_v49 = vrot.slane %v522_v39, 7  ;;  %v530_v50 = vrot.slane %v528_v40, 7  ;;  %v1836_v38 = vld [vmem:[%s2128_s3 + $0x20] sm:$0xff]  }
  0x33   : > { %v512_v52 = vrot.slane %v511_v43, 2  ;;  %v1679_v53 = vld.sshfl [vmem:[#allocation2 + $0xc] sm:$0x12 pattern:$0x76325410]  ;;  %v639_v54 = vcombine.high %v1678_v45, %v1678_v45  ;;  %v1681_v56 = vrot.slane %v1677_v32, 9  ;;  %v1259_v26 = vcombine.high %v1719_v51, %v1719_v51 }
  0x34   : > { %v1997_v57 = vsel %vm1959_vm14, %v498_v47, %v502_v42  ;;  %v525_v58 = vor.u32 %v524_v49, %v521_v48  ;;  %v647_v59 = vcombine.high %v1679_v53, %v1679_v53  ;;  %v661_v60 = vrot.slane %v631_v46, 7  ;;  %v1695_v2 = vld.sshfl [vmem:[#allocation2 + $0x10] sm:$0x13 pattern:$0x76325410] }
  0x35   : > { %v517_v61 = vsel %vm1959_vm14, %v512_v52, %v516_v44  ;;  %v537_v62 = vcombine.low %v489_v24, %v1997_v57  ;;  %v1682_v63 = vrot.slane %v1678_v45, 9  ;;  %v665_v0 = vrot.slane %v639_v54, 7  ;;  %v1703_v17 = vld.sshfl [vmem:[#allocation2 + $0x10] sm:$0x12 pattern:$0x76325410] }
  0x36   : > { %v526_v3 = vrot.slane %v525_v58, 2  ;;  %v2004_v4 = vsel %vm1986_vm4, %v1681_v56, %v661_v60  ;;  %v1683_v5 = vrot.slane %v1679_v53, 9  ;;  %v669_v8 = vrot.slane %v647_v59, 7  ;;  %v1837_v56 = vld [vmem:[%s2128_s3 + $0x28] sm:$0xff]  }
  0x37   : > { %v2008_v9 = vsel %vm1986_vm4, %v1682_v63, %v665_v0  ;;  %v676_v10 = vcombine.low %v658_v55, %v2004_v4  ;;  %v545_v14 = vrot.slane %v537_v62, %v1957_v6  ;;  %v870_v16 = vcombine.high %v1695_v2, %v1695_v2  ;;  %v1847_v22 = vld.sshfl [vmem:[#allocation2 + $0x4] sm:$0xf pattern:$0x76325410]  ;;  %v1838_v62 = vld [vmem:[%s2128_s3 + $0x30] sm:$0xff]  }
  0x38   : > { %v531_v13 = vsel %vm1959_vm14, %v526_v3, %v530_v50  ;;  %v670_v15 = vsel %vm1986_vm4, %v1683_v5, %v669_v8  ;;  %v914_v21 = vshrl.u32 %v1695_v2, 16  ;;  %v1848_v23 = vld.sshfl [vmem:[#allocation2 + $0xc] sm:$0xf pattern:$0x76325410]  ;;  %v917_v24 = vshll.u32 %v1695_v2, 16 }
  0x39   : > { %v538_v18 = vcombine.low %v517_v61, %v531_v13  ;;  %v677_v19 = vcombine.low %v2008_v9, %v670_v15  ;;  %v684_v20 = vrot.slane %v676_v10, %v1957_v6  ;;  %v923_v25 = vshll.u32 %v870_v16, 16  ;;  %v1727_v44 = vld.sshfl [vmem:[#allocation2 + $0x14] sm:$0x12 pattern:$0x76325410] }
  0x3a   : > { %v916_v29 = vrot.slane %v914_v21, 6  ;;  %v1042_v30 = vcombine.high %v1703_v17, %v1703_v17  ;;  %v919_v32 = vrot.slane %v917_v24, 7  ;;  %v1707_v33 = vrot.slane %v1703_v17, 9  ;;  %v349_v17 = vld [vmem:[#allocation3] sm:$0xff] }
  0x3b   : > { %v2019_v27 = vrot.slane %v538_v18, %v1957_v6  ;;  %v2022_v28 = vrot.slane %v677_v19, %v1957_v6  ;;  %v1305_v34 = vrot.slane %v1303_v11, 6  ;;  %v1308_v35 = vrot.slane %v1306_v12, 7  ;;  %v1849_v60 = vld.sshfl [vmem:[#allocation2 + $0x8] sm:$0xf pattern:$0x76325410] }
  0x3c   : > { %v1057_v39 = vrot.slane %v1042_v30, 7  ;;  %v920_v40 = vor.u32 %v919_v32, %v916_v29  ;;  %v925_v42 = vrot.slane %v923_v25, 7  ;;  %v932_v43 = vcombine.low %v1997_v57, %v517_v61  ;;  %v1850_v61 = vld.sshfl [vmem:[#allocation2 + $0x10] sm:$0xf pattern:$0x76325410] }
  0x3d   : > { %v553_v36 = vcombine.low %v545_v14, %v2019_v27  ;;  %v692_v37 = vcombine.low %v684_v20, %v2022_v28  ;;  %v1309_v47 = vor.u32 %v1308_v35, %v1305_v34  ;;  %v1312_v48 = vshll.u32 %v1259_v26, 16  ;;  %v350_v19 = vld [vmem:[#allocation3 + $0x8] sm:$0xff] }
  0x3e   : > { %v921_v45 = vrot.slane %v920_v40, 2  ;;  %v1058_v46 = vsel %vm1986_vm4, %v1707_v33, %v1057_v39  ;;  %v776_v49 = vcombine.low %v1847_v22, %v1848_v23  ;;  %v1431_v51 = vcombine.high %v1727_v44, %v1727_v44 }
  0x3f   : > { %1771 = vmatmul.mubr.msk.bf16.vlgmr.msra.gmra.mrb[0].mxu1 %vm380_vm13, %v553_v36  ;;  %1777 = vmatmul.mubr.msk.bf16.vlgmr.msra.gmra.mrb[4].mxu0 %vm380_vm13, %v692_v37  ;;  %v940_v53 = vrot.slane %v932_v43, %v1957_v6  ;;  %v1064_v54 = vcombine.low %v2004_v4, %v2008_v9  ;;  %v1065_v55 = vcombine.low %v670_v15, %v1058_v46  ;;  %v1310_v57 = vrot.slane %v1309_v47, 2 }
  0x40   : > { %1781 = vmatpush3.bf16.msra.mxu1 %v1833_v31  ;;  %1782 = vmatprep.mubr.msk.bf16.mxu1 %vm1860_vm1, %v1859_v1  ;;  %v926_v50 = vsel %vm1959_vm14, %v921_v45, %v925_v42  ;;  %v1314_v58 = vrot.slane %v1312_v48, 7  ;;  %v1731_v63 = vrot.slane %v1727_v44, 9  ;;  %v1446_v0 = vrot.slane %v1431_v51, 7 }
  0x41   : > { %1787 = vmatpush3.bf16.msra.mxu0 %v1836_v38  ;;  %1788 = vmatprep.mubr.msk.bf16.mxu0 %vm1860_vm1, %v1859_v1  ;;  %v933_v52 = vcombine.low %v531_v13, %v926_v50  ;;  %v1072_v3 = vrot.slane %v1064_v54, %v1957_v6  ;;  %v1079_v4 = vrot.slane %v1065_v55, %v1957_v6  ;;  %v1842_v13 = vld [vmem:[%s2128_s3 + $0x40] sm:$0xff]  }
  0x42   : > { %1792 = vmatprep.subr.bf16.mxu1 %v1859_v1  ;;  %1798 = vmatprep.subr.bf16.mxu0 %v1859_v1  ;;  %v1315_v5 = vsel %vm1959_vm14, %v1310_v57, %v1314_v58  ;;  %v1447_v8 = vsel %vm1986_vm4, %v1731_v63, %v1446_v0  ;;  %v1165_v11 = vcombine.low %v1849_v60, %v1850_v61 }
  0x43   : > { %v947_v59 = vrot.slane %v933_v52, %v1957_v6  ;;  %v1080_v9 = vcombine.low %v1072_v3, %v1079_v4  ;;  %v1322_v10 = vcombine.low %v926_v50, %v1315_v5  ;;  %v1454_v12 = vcombine.low %v1058_v46, %v1447_v8 }
  0x45   : > { %v948_v2 = vcombine.low %v940_v53, %v947_v59  ;;  %v1336_v14 = vrot.slane %v1322_v10, %v1957_v6  ;;  %v1468_v41 = vrot.slane %v1454_v12, %v1957_v6 }
  0x47   : > { %1783 = vmatmul.mubr.msk.bf16.vlgmr.msra.gmra.mrb[4].mxu1 %vm380_vm13, %v776_v49  ;;  %1789 = vmatmul.mubr.msk.bf16.vlgmr.msra.gmra.mrb[8].mxu0 %vm380_vm13, %v948_v2  ;;  %v1337_v15 = vcombine.low %v2019_v27, %v1336_v14  ;;  %v1469_v16 = vcombine.low %v2022_v28, %v1468_v41 }
  0x48   : > { %1793 = vmatpush3.bf16.msra.mxu1 %v1837_v56  ;;  %1794 = vmatprep.mubr.msk.bf16.mxu1 %vm1860_vm1, %v1859_v1 }
  0x49   : > { %1804 = vmatprep.subr.bf16.mxu1 %v1859_v1  ;;  %1799 = vmatpush3.bf16.msra.mxu0 %v1838_v62 }
  0x4a   : > { %1800 = vmatprep.mubr.msk.bf16.mxu0 %vm1860_vm1, %v1859_v1  ;;  %1810 = vmatprep.subr.bf16.mxu0 %v1859_v1 }
  0x4f   : > { %1795 = vmatmul.mubr.msk.bf16.vlgmr.msra.gmra.mrb[8].mxu1 %vm380_vm13, %v1080_v9  ;;  %1801 = vmatmul.mubr.msk.bf16.vlgmr.msra.gmra.mrb[12].mxu0 %vm380_vm13, %v1165_v11 }
  0x50   : > { %1805 = vmatpush3.bf16.msra.mxu1 %v1841_v7  ;;  %1806 = vmatprep.mubr.msk.bf16.mxu1 %vm1860_vm1, %v1859_v1 }
  0x51   : > { %1811 = vmatpush3.bf16.msra.mxu0 %v1842_v13  ;;  %1812 = vmatprep.mubr.msk.bf16.mxu0 %vm1860_vm1, %v1859_v1  ;;  %vm1536_vm1 = vcmask 58368  }
  0x57   : > { %1807 = vmatmul.mubr.msk.bf16.vlgmr.msra.gmra.mrb[12].mxu1 %vm380_vm13, %v1337_v15  ;;  %1813 = vmatmul.mubr.msk.bf16.vlgmr.msra.gmra.mrb[16].mxu0 %vm380_vm13, %v1469_v16 }
 0x100   : > { %v418_v18 = vpop.f32.mrb[0].mxu0 }
 0x101   : > { %v425_v20 = vadd.f32 %v418_v18, %v349_v17  ;;  %v1766_v21 = vpop.f32.mrb[1].mxu0 }
 0x102   : > { %v421_v22 = vpop.f32.mrb[2].mxu0 }
 0x103   : > { %427 = vst.msk [vmem:[#allocation3] sm:$0xff] %vm342_vm6, %v425_v20  ;;  %v426_v6 = vadd.f32 %v421_v22, %v350_v19  ;;  %v1767_v23 = vpop.f32.mrb[3].mxu0 }
 0x105   : > { %428 = vst.msk [vmem:[#allocation3 + $0x8] sm:$0xff] %vm342_vm6, %v426_v6 }
 0x10a   : > { %v532_v1 = vld [vmem:[#allocation3] sm:$0xff] }
 0x10c   : > { %v533_v25 = vld [vmem:[#allocation3 + $0x8] sm:$0xff] }
 0x112   : > { %v597_v24 = vpop.f32.mrb[0].mxu1  ;;  %v736_v26 = vpop.f32.mrb[4].mxu0 }
 0x113   : > { %v604_v27 = vadd.f32 %v597_v24, %v532_v1  ;;  %v1772_v28 = vpop.f32.mrb[1].mxu1  ;;  %v1778_v29 = vpop.f32.mrb[5].mxu0 }
 0x114   : > { %v600_v30 = vpop.f32.mrb[2].mxu1  ;;  %v739_v31 = vpop.f32.mrb[6].mxu0 }
 0x115   : > { %606 = vst.msk [vmem:[#allocation3] sm:$0xff] %vm342_vm6, %v604_v27  ;;  %v605_v32 = vadd.f32 %v600_v30, %v533_v25  ;;  %v1773_v33 = vpop.f32.mrb[3].mxu1  ;;  %v1779_v34 = vpop.f32.mrb[7].mxu0 }
 0x117   : > { %607 = vst.msk [vmem:[#allocation3 + $0x8] sm:$0xff] %vm342_vm6, %v605_v32 }
 0x11a   : > { %v820_v35 = vpop.f32.mrb[4].mxu1  ;;  %v992_v39 = vpop.f32.mrb[8].mxu0 }
 0x11b   : > { %v1784_v36 = vpop.f32.mrb[5].mxu1  ;;  %v1790_v43 = vpop.f32.mrb[9].mxu0 }
 0x11c   : > { %v671_v37 = vld [vmem:[#allocation3] sm:$0xff]  ;;  %v823_v38 = vpop.f32.mrb[6].mxu1  ;;  %v995_v45 = vpop.f32.mrb[10].mxu0 }
 0x11d   : > { %v743_v40 = vadd.f32 %v736_v26, %v671_v37  ;;  %v1785_v42 = vpop.f32.mrb[7].mxu1  ;;  %v1791_v47 = vpop.f32.mrb[11].mxu0 }
 0x11e   : > { %v672_v44 = vld [vmem:[#allocation3 + $0x8] sm:$0xff] }
 0x11f   : > { %745 = vst.msk [vmem:[#allocation3] sm:$0xff] %vm342_vm6, %v743_v40  ;;  %v744_v46 = vadd.f32 %v739_v31, %v672_v44 }
 0x121   : > { %746 = vst.msk [vmem:[#allocation3 + $0x8] sm:$0xff] %vm342_vm6, %v744_v46 }
 0x122   : > { %v1124_v48 = vpop.f32.mrb[8].mxu1  ;;  %v1209_v51 = vpop.f32.mrb[12].mxu0 }
 0x123   : > { %v1796_v49 = vpop.f32.mrb[9].mxu1  ;;  %v1802_v53 = vpop.f32.mrb[13].mxu0 }
 0x124   : > { %v1127_v50 = vpop.f32.mrb[10].mxu1  ;;  %v1212_v55 = vpop.f32.mrb[14].mxu0 }
 0x125   : > { %v1797_v52 = vpop.f32.mrb[11].mxu1  ;;  %v1803_v57 = vpop.f32.mrb[15].mxu0 }
 0x126   : > { %v751_v54 = vld [vmem:[#allocation3] sm:$0xff] }
 0x127   : > { %v827_v56 = vadd.f32 %v820_v35, %v751_v54 }
 0x128   : > { %v752_v58 = vld [vmem:[#allocation3 + $0x8] sm:$0xff] }
 0x129   : > { %829 = vst.msk [vmem:[#allocation3] sm:$0xff] %vm342_vm6, %v827_v56  ;;  %v828_v59 = vadd.f32 %v823_v38, %v752_v58 }
 0x12a   : > { %v1381_v60 = vpop.f32.mrb[12].mxu1  ;;  %v1513_v63 = vpop.f32.mrb[16].mxu0 }
 0x12b   : > { %830 = vst.msk [vmem:[#allocation3 + $0x8] sm:$0xff] %vm342_vm6, %v828_v59  ;;  %v1808_v61 = vpop.f32.mrb[13].mxu1  ;;  %v1814_v2 = vpop.f32.mrb[17].mxu0 }
 0x12c   : > { %v1384_v62 = vpop.f32.mrb[14].mxu1  ;;  %v1516_v3 = vpop.f32.mrb[18].mxu0 }
 0x12d   : > { %v1809_v0 = vpop.f32.mrb[15].mxu1  ;;  %v1815_v4 = vpop.f32.mrb[19].mxu0 }
 0x130   : > { %v927_v5 = vld [vmem:[#allocation3] sm:$0xff] }
 0x131   : > { %v999_v8 = vadd.f32 %v992_v39, %v927_v5 }
 0x132   : > { %v928_v9 = vld [vmem:[#allocation3 + $0x8] sm:$0xff] }
 0x133   : > { %1001 = vst.msk [vmem:[#allocation3] sm:$0xff] %vm342_vm6, %v999_v8  ;;  %v1000_v10 = vadd.f32 %v995_v45, %v928_v9 }
 0x135   : > { %1002 = vst.msk [vmem:[#allocation3 + $0x8] sm:$0xff] %vm342_vm6, %v1000_v10 }
 0x13a   : > { %v1059_v7 = vld [vmem:[#allocation3] sm:$0xff] }
 0x13b   : > { %v1131_v11 = vadd.f32 %v1124_v48, %v1059_v7 }
 0x13c   : > { %v1060_v12 = vld [vmem:[#allocation3 + $0x8] sm:$0xff] }
 0x13d   : > { %1133 = vst.msk [vmem:[#allocation3] sm:$0xff] %vm342_vm6, %v1131_v11  ;;  %v1132_v13 = vadd.f32 %v1127_v50, %v1060_v12 }
 0x13f   : > { %1134 = vst.msk [vmem:[#allocation3 + $0x8] sm:$0xff] %vm342_vm6, %v1132_v13 }
 0x144   : > { %v1140_v14 = vld [vmem:[#allocation3] sm:$0xff] }
 0x145   : > { %v1216_v41 = vadd.f32 %v1209_v51, %v1140_v14 }
 0x146   : > { %v1141_v15 = vld [vmem:[#allocation3 + $0x8] sm:$0xff] }
 0x147   : > { %1218 = vst.msk [vmem:[#allocation3] sm:$0xff] %vm342_vm6, %v1216_v41  ;;  %v1217_v16 = vadd.f32 %v1212_v55, %v1141_v15 }
 0x149   : > { %1219 = vst.msk [vmem:[#allocation3 + $0x8] sm:$0xff] %vm342_vm6, %v1217_v16 }
 0x14e   : > { %v1316_v17 = vld [vmem:[#allocation3] sm:$0xff] }
 0x14f   : > { %v1388_v18 = vadd.f32 %v1381_v60, %v1316_v17 }
 0x150   : > { %v1317_v19 = vld [vmem:[#allocation3 + $0x8] sm:$0xff] }
 0x151   : > { %1390 = vst.msk [vmem:[#allocation3] sm:$0xff] %vm342_vm6, %v1388_v18  ;;  %v1389_v20 = vadd.f32 %v1384_v62, %v1317_v19 }
 0x153   : > { %1391 = vst.msk [vmem:[#allocation3 + $0x8] sm:$0xff] %vm342_vm6, %v1389_v20 }
 0x158   : > { %v1448_v21 = vld [vmem:[#allocation3] sm:$0xff] }
 0x159   : > { %v1520_v22 = vadd.f32 %v1513_v63, %v1448_v21 }
 0x15a   : > { %v1449_v6 = vld [vmem:[#allocation3 + $0x8] sm:$0xff] }
 0x15b   : > { %1522 = vst.msk [vmem:[#allocation3] sm:$0xff] %vm342_vm6, %v1520_v22  ;;  %v1521_v23 = vadd.f32 %v1516_v3, %v1449_v6 }
 0x15d   : > { %1523 = vst.msk [vmem:[#allocation3 + $0x8] sm:$0xff] %vm342_vm6, %v1521_v23 }
 0x162   : > { %v1524_v1 = vld [vmem:[#allocation3] sm:$0xff] }
 0x163   : > { %v1528_v24 = vcombine.high %v1524_v1, %v1524_v1  ;;  %v1532_v25 = vpack.c.bf16 %v1524_v1, %v1524_v1  ;;  %v1552_v26 = vmul.f32 %v1524_v1, %v1524_v1  ;;  %v1541_v31 = vsel %vm342_vm6, %v1524_v1, 0.0 }
 0x164   : > { %v1525_v27 = vld [vmem:[#allocation3 + $0x8] sm:$0xff] }
 0x165   : > { %v1533_v28 = vpack.c.bf16 %v1528_v24, %v1528_v24  ;;  %1537 = vst.msk [vmem:[%s231_s26] sm:$0x3] %vm1536_vm1, %v1532_v25  ;;  %v1529_v29 = vcombine.high %v1525_v27, %v1525_v27  ;;  %v1534_v30 = vpack.c.bf16 %v1525_v27, %v1525_v27  ;;  %v1542_v32 = vsel %vm342_vm6, %v1525_v27, 0.0 }
 0x166   : > { %v1553_v33 = vmul.f32 %v1525_v27, %v1525_v27  ;;  %v1543_v35 = vadd.f32 %v1542_v32, %v1541_v31  ;;  %v1554_v36 = vsel %vm342_vm6, %v1552_v26, 0.0 }
 0x167   : > { %1538 = vst.msk [vmem:[%s231_s26 + $0x2] sm:$0x3] %vm1536_vm1, %v1533_v28  ;;  %v1535_v34 = vpack.c.bf16 %v1529_v29, %v1529_v29  ;;  %1539 = vst.msk [vmem:[%s231_s26 + $0x4] sm:$0x3] %vm1536_vm1, %v1534_v30 }
 0x168   : > { %v1555_v37 = vsel %vm342_vm6, %v1553_v33, 0.0  ;;  %v1544_v38 = vrot.slane %v1543_v35, 4 }
 0x169   : > { %1540 = vst.msk [vmem:[%s231_s26 + $0x6] sm:$0x3] %vm1536_vm1, %v1535_v34  ;;  %v1556_v39 = vadd.f32 %v1555_v37, %v1554_v36 }
 0x16a   : > { %v1545_v40 = vadd.f32 %v1544_v38, %v1543_v35 }
 0x16b   : > { %v1557_v42 = vrot.slane %v1556_v39, 4 }
 0x16c   : > { %v1546_v43 = vrot.slane %v1545_v40, 2 }
 0x16d   : > { %v1558_v44 = vadd.f32 %v1557_v42, %v1556_v39 }
 0x16e   : > { %v1547_v45 = vadd.f32 %v1546_v43, %v1545_v40 }
 0x16f   : > { %v1559_v46 = vrot.slane %v1558_v44, 2 }
 0x170   : > { %v1548_v47 = vrot.slane %v1547_v45, 1 }
 0x171   : > { %v1560_v48 = vadd.f32 %v1559_v46, %v1558_v44 }
 0x172   : > { %v1549_v49 = vadd.f32 %v1548_v47, %v1547_v45 }
 0x173   : > { %v1561_v50 = vrot.slane %v1560_v48, 1 }
 0x174   : > { %1551 = vst.msk [vmem:[%s235_s29] sm:$0x1] %vm1550_vm5, %v1549_v49 }
 0x175   : > { %v1562_v51 = vadd.f32 %v1561_v50, %v1560_v48 }
 0x177   : > { %1563 = vst.msk [vmem:[%s235_s29 + $0x1] sm:$0x1] %vm1550_vm5, %v1562_v51 }
 0x178 PF: > { %s16_s18 = sadd.s32 1, %s1857_s18  }
 0x179   : > { %p13_p4 = scmp.ge.s32.totalorder %s16_s18, 4  }
 0x17b   :  { %15 = sbr.rel (!%p13_p4) target bundleno = 1 (0x1), region = 88 }

</bundles_post_ra>
